<compile_context>
chip_gen: v7x
topology: tpu7x:2x2x1
jax: 0.10.0
libtpu: 0.0.40
codegen_flags: <defaults>
</compile_context>

<pallas_src>
import functools
import math

import jax
import jax.numpy as jnp
from jax.experimental import pallas as pl
from jax.experimental.pallas import tpu as pltpu


# Order in which weight arrays are passed to the kernel (after patches, pos).
_WEIGHT_ORDER = [
    # large bf16 matmul weights
    "backbone_w", "conv_w",
    "e_qkv_w", "e_o_w", "e_f1_w", "e_f2_w",
    "d_qkv_w", "d_sao_w", "d_cq_w", "d_ckv_w", "d_co_w", "d_f1_w", "d_f2_w",
    "head_w",
    # packed tiny f32 params
    "stem_vec",    # [2, max(backbone_dim, d)] : backbone_b, conv_b
    "enc_vec",     # [Le, 8, W]  : qkv_b, o_b, ln1_g, ln1_b, f1_b, f2_b, ln2_g, ln2_b
    "dec_vec",     # [Ld, 13, W] : qkv_b, sao_b, ln1_g, ln1_b, cq_b, ckv_b, co_b,
                   #               ln2_g, ln2_b, f1_b, f2_b, ln3_g, ln3_b
    "final_vec",   # [5, max(d, n_pad)] : enc_norm_g, enc_norm_b, dec_norm_g,
                   #                      dec_norm_b, head_b
]


# ----------------------------- fused Pallas kernel -----------------------------

def _detr_kernel(*refs, nheads, hidden_dim, num_classes, n_enc, n_dec,
                 n_img, seq):
    f32 = jnp.float32
    bf16 = jnp.bfloat16
    d = hidden_dim
    dh = d // nheads
    S = seq

    patches_ref, pos_ref = refs[0], refs[1]
    w = dict(zip(_WEIGHT_ORDER, refs[2:2 + len(_WEIGHT_ORDER)]))
    out_ref = refs[2 + len(_WEIGHT_ORDER)]

    ffn_e = w["e_f1_w"].shape[-1]
    ffn_d = w["d_f1_w"].shape[-1]
    bb_dim = w["backbone_w"].shape[-1]
    n_pad = out_ref.shape[-1]

    def dot(x, wmat):
        # bf16 MXU inputs, f32 accumulation (weights are already bf16).
        return jnp.dot(x.astype(bf16), wmat, preferred_element_type=f32)

    def layernorm(h, g, b, eps=1e-5):
        mu = jnp.mean(h, axis=-1, keepdims=True)
        c = h - mu
        var = jnp.mean(c * c, axis=-1, keepdims=True)
        return c * jax.lax.rsqrt(var + eps) * g + b

    def attention(q, k, v, o_w, o_b):
        # q/k/v: [n_img*S, d] bf16 (softmax scale pre-folded into Q weights)
        # o_w: [d, d] bf16; o_b: [1, d] f32.
        # 1) issue all (image, head) QK^T matmuls first.
        scores = []
        for b in range(n_img):
            qb = q[b * S:(b + 1) * S]
            kb = k[b * S:(b + 1) * S]
            for h in range(nheads):
                sl = slice(h * dh, (h + 1) * dh)
                scores.append(jax.lax.dot_general(
                    qb[:, sl], kb[:, sl], (((1,), (1,)), ((), ())),
                    preferred_element_type=f32))
        # 2) one batched softmax over the sublane-stacked score tile.
        s = jnp.concatenate(scores, axis=0)                  # [n_img*H*S, S]
        s = s - jnp.max(s, axis=-1, keepdims=True)
        p = jnp.exp(s)
        p = (p * pl.reciprocal(jnp.sum(p, axis=-1, keepdims=True),
                               approx=True)).astype(bf16)
        # 3) all PV matmuls; heads concat on lanes, images on sublanes.
        ctx_rows = []
        for b in range(n_img):
            vb = v[b * S:(b + 1) * S]
            heads = []
            for h in range(nheads):
                r0 = (b * nheads + h) * S
                heads.append(jnp.dot(p[r0:r0 + S], vb[:, h * dh:(h + 1) * dh],
                                     preferred_element_type=f32))
            ctx_rows.append(jnp.concatenate(heads, axis=1))  # [S, d]
        ctx = jnp.concatenate(ctx_rows, axis=0)              # [n_img*S, d]
        # 4) single fused output projection over all rows / heads.
        return jnp.dot(ctx.astype(bf16), o_w, preferred_element_type=f32) + o_b

    def enc_layer(x, l):
        ev = w["enc_vec"][l]                                 # [8, W] f32
        qkv = (dot(x, w["e_qkv_w"][l]) + ev[0:1, :3 * d]).astype(bf16)
        sa = attention(qkv[:, :d], qkv[:, d:2 * d], qkv[:, 2 * d:],
                       w["e_o_w"][l], ev[1:2, :d])
        x = layernorm(x + sa, ev[2:3, :d], ev[3:4, :d])
        ff = jnp.maximum(dot(x, w["e_f1_w"][l]) + ev[4:5, :ffn_e], 0.0)
        ff = dot(ff, w["e_f2_w"][l]) + ev[5:6, :d]
        return layernorm(x + ff, ev[6:7, :d], ev[7:8, :d])

    def dec_layer(y, mem, l):
        dv = w["dec_vec"][l]                                 # [13, W] f32
        qkv = (dot(y, w["d_qkv_w"][l]) + dv[0:1, :3 * d]).astype(bf16)
        sa = attention(qkv[:, :d], qkv[:, d:2 * d], qkv[:, 2 * d:],
                       w["d_sao_w"][l], dv[1:2, :d])
        y = layernorm(y + sa, dv[2:3, :d], dv[3:4, :d])
        cq = (dot(y, w["d_cq_w"][l]) + dv[4:5, :d]).astype(bf16)
        kv = (dot(mem, w["d_ckv_w"][l]) + dv[5:6, :2 * d]).astype(bf16)
        ca = attention(cq, kv[:, :d], kv[:, d:], w["d_co_w"][l], dv[6:7, :d])
        y = layernorm(y + ca, dv[7:8, :d], dv[8:9, :d])
        ff = jnp.maximum(dot(y, w["d_f1_w"][l]) + dv[9:10, :ffn_d], 0.0)
        ff = dot(ff, w["d_f2_w"][l]) + dv[10:11, :d]
        return layernorm(y + ff, dv[11:12, :d], dv[12:13, :d])

    # --- stem: patch-conv backbone stand-in + 1x1 conv + positional encoding ---
    sv = w["stem_vec"][...]
    feats = jnp.maximum(dot(patches_ref[...], w["backbone_w"][...])
                        + sv[0:1, :bb_dim], 0.0)             # [B*S, bb_dim]
    src = dot(feats, w["conv_w"][...]) + sv[1:2, :d] + pos_ref[...]   # [B*S, d]

    # --- transformer encoder (post-norm) + final encoder LayerNorm ---
    fv = w["final_vec"][...]
    x = src
    for l in range(n_enc):
        x = enc_layer(x, l)
    mem = layernorm(x, fv[0:1, :d], fv[1:2, :d])

    # --- transformer decoder (tgt = src, as in transformer(src, src)) ---
    y = src
    for l in range(n_dec):
        y = dec_layer(y, mem, l)
    hs = layernorm(y, fv[2:3, :d], fv[3:4, :d])

    # --- fused class/bbox head (lane-padded to 128); sigmoid only on bbox cols ---
    head = dot(hs, w["head_w"][...]) + fv[4:5, :n_pad]
    col = jax.lax.broadcasted_iota(jnp.int32, head.shape, 1)
    is_bbox = (col >= num_classes) & (col < num_classes + 4)
    out_ref[...] = jnp.where(is_bbox, jax.nn.sigmoid(head), head)


# ----------------------------- wrapper -----------------------------

def patchify(x, patch):
    """NCHW image -> [B, Hp*Wp, C*patch*patch]; spatial order matches flatten(2)."""
    B, C, H, W = x.shape
    Hp, Wp = H // patch, W // patch
    x = x.reshape(B, C, Hp, patch, Wp, patch)
    x = x.transpose(0, 2, 4, 1, 3, 5)
    return x.reshape(B, Hp * Wp, C * patch * patch)


def detr_forward(params, images, *, patch=32, nheads=4, num_classes=32):
    B, C, H, W = images.shape
    S = (H // patch) * (W // patch)
    d = params["conv_w"].shape[-1]
    n_enc = params["e_qkv_w"].shape[0]
    n_dec = params["d_qkv_w"].shape[0]
    n_pad = params["head_w"].shape[-1]

    patches = patchify(images, patch).reshape(B * S, -1).astype(jnp.bfloat16)
    pos = jnp.tile(params["pos"][:S], (B, 1))                 # [B*S, d]
    weights = [params[k] for k in _WEIGHT_ORDER]

    def full_spec(shape):
        n = len(shape)
        return pl.BlockSpec(shape, lambda i, n=n: (0,) * n)

    in_specs = ([full_spec(patches.shape), full_spec(pos.shape)]
                + [full_spec(wt.shape) for wt in weights])
    out_specs = full_spec((B * S, n_pad))

    kernel = functools.partial(
        _detr_kernel, nheads=nheads, hidden_dim=d, num_classes=num_classes,
        n_enc=n_enc, n_dec=n_dec, n_img=B, seq=S)

    # Batch folded into M: single grid step; every matmul spans all B*S rows.
    out = pl.pallas_call(
        kernel,
        out_shape=jax.ShapeDtypeStruct((B * S, n_pad), jnp.float32),
        grid=(1,),
        in_specs=in_specs,
        out_specs=out_specs,
        compiler_params=pltpu.CompilerParams(
            dimension_semantics=("arbitrary",)),
    )(patches, pos, *weights)

    cls = out[:, :num_classes].reshape(B, S, num_classes).transpose(1, 0, 2)
    bbox = out[:, num_classes:num_classes + 4].reshape(B, S, 4).transpose(1, 0, 2)
    return cls, bbox                         # [S, B, num_classes], [S, B, 4]


# ----------------------------- parameter init -----------------------------

def init_detr_params(key, *, in_chans=3, patch=32, backbone_dim=128,
                     hidden_dim=64, ffn_dim=128, nheads=4,
                     num_encoder_layers=2, num_decoder_layers=2,
                     num_classes=32, num_pos=100):
    state = {"key": key}

    def nxt():
        state["key"], sub = jax.random.split(state["key"])
        return sub

    def wmat(*shape):
        return jax.random.normal(nxt(), shape, jnp.float32) * 0.02

    d, f = hidden_dim, ffn_dim
    Le, Ld = num_encoder_layers, num_decoder_layers
    dh = d // nheads
    scale = 1.0 / math.sqrt(dh)
    n_pad = max(128, -(-(num_classes + 4) // 128) * 128)   # lane-dense head width
    assert num_classes + 4 <= n_pad
    vw = max(3 * d, f)        # packed per-layer param width

    # QKV weights with the softmax scale folded into the Q third (biases are
    # zero at init, so no bias rescale is needed).
    def qkv_scaled(L):
        m = wmat(L, d, 3 * d)
        return m.at[:, :, :d].multiply(scale)

    # fused, lane-padded class/bbox head
    cls_w = wmat(d, num_classes)
    bbox_w = wmat(d, 4)
    head_w = jnp.zeros((d, n_pad), jnp.float32)
    head_w = head_w.at[:, :num_classes].set(cls_w)
    head_w = head_w.at[:, num_classes:num_classes + 4].set(bbox_w)

    # packed tiny f32 params (all biases / LN betas zero; LN gammas one)
    stem_vec = jnp.zeros((2, max(backbone_dim, d)), jnp.float32)

    enc_vec = jnp.zeros((Le, 8, vw), jnp.float32)
    enc_vec = enc_vec.at[:, 2, :d].set(1.0)    # ln1_g
    enc_vec = enc_vec.at[:, 6, :d].set(1.0)    # ln2_g

    dec_vec = jnp.zeros((Ld, 13, vw), jnp.float32)
    dec_vec = dec_vec.at[:, 2, :d].set(1.0)    # ln1_g
    dec_vec = dec_vec.at[:, 7, :d].set(1.0)    # ln2_g
    dec_vec = dec_vec.at[:, 11, :d].set(1.0)   # ln3_g

    final_vec = jnp.zeros((5, max(d, n_pad)), jnp.float32)
    final_vec = final_vec.at[0, :d].set(1.0)   # enc_norm_g
    final_vec = final_vec.at[2, :d].set(1.0)   # dec_norm_g

    bf16 = jnp.bfloat16
    return dict(
        backbone_w=wmat(in_chans * patch * patch, backbone_dim).astype(bf16),
        conv_w=wmat(backbone_dim, d).astype(bf16),
        pos=jax.random.normal(nxt(), (num_pos, d), jnp.float32),
        # encoder layer stacks
        e_qkv_w=qkv_scaled(Le).astype(bf16),
        e_o_w=wmat(Le, d, d).astype(bf16),
        e_f1_w=wmat(Le, d, f).astype(bf16),
        e_f2_w=wmat(Le, f, d).astype(bf16),
        # decoder layer stacks
        d_qkv_w=qkv_scaled(Ld).astype(bf16),
        d_sao_w=wmat(Ld, d, d).astype(bf16),
        d_cq_w=(wmat(Ld, d, d) * scale).astype(bf16),
        d_ckv_w=wmat(Ld, d, 2 * d).astype(bf16),
        d_co_w=wmat(Ld, d, d).astype(bf16),
        d_f1_w=wmat(Ld, d, f).astype(bf16),
        d_f2_w=wmat(Ld, f, d).astype(bf16),
        head_w=head_w.astype(bf16),
        # packed tiny f32 params
        stem_vec=stem_vec,
        enc_vec=enc_vec,
        dec_vec=dec_vec,
        final_vec=final_vec,
    )


# ----------------------------- main -----------------------------

if __name__ == "__main__":
    key = jax.random.PRNGKey(0)
    k_params, k_img = jax.random.split(key)

    # Small, module-consistent shapes:
    #   image [2, 3, 128, 128] -> stride-32 backbone -> 4x4 feature map -> S=16
    B, C, H, W = 2, 3, 128, 128
    PATCH = 32
    HIDDEN = 64
    NHEADS = 4
    NUM_CLASSES = 32

    params = init_detr_params(
        k_params, in_chans=C, patch=PATCH, backbone_dim=128,
        hidden_dim=HIDDEN, ffn_dim=128, nheads=NHEADS,
        num_encoder_layers=2, num_decoder_layers=2,
        num_classes=NUM_CLASSES, num_pos=100)

    images = jax.random.normal(k_img, (B, C, H, W), jnp.float32)

    fwd = jax.jit(functools.partial(detr_forward, patch=PATCH, nheads=NHEADS,
                                    num_classes=NUM_CLASSES))
    outputs_class, outputs_bbox = fwd(params, images)
    jax.block_until_ready((outputs_class, outputs_bbox))

    S = (H // PATCH) * (W // PATCH)
    assert outputs_class.shape == (S, B, NUM_CLASSES), outputs_class.shape
    assert outputs_bbox.shape == (S, B, 4), outputs_bbox.shape
    assert bool(jnp.all(jnp.isfinite(outputs_class)))
    assert bool(jnp.all((outputs_bbox >= 0.0) & (outputs_bbox <= 1.0)))
    print("KERNEL_OK")
</pallas_src>

<mosaic_0001>
module attributes {stable_mosaic.version = 11 : i64} {
  func.func @_detr_kernel(%arg0: i32, %arg1: memref<32x3072xbf16, #tpu.memory_space<vmem>>, %arg2: memref<32x64xf32, #tpu.memory_space<vmem>>, %arg3: memref<3072x128xbf16, #tpu.memory_space<vmem>>, %arg4: memref<128x64xbf16, #tpu.memory_space<vmem>>, %arg5: memref<2x64x192xbf16, #tpu.memory_space<vmem>>, %arg6: memref<2x64x64xbf16, #tpu.memory_space<vmem>>, %arg7: memref<2x64x128xbf16, #tpu.memory_space<vmem>>, %arg8: memref<2x128x64xbf16, #tpu.memory_space<vmem>>, %arg9: memref<2x64x192xbf16, #tpu.memory_space<vmem>>, %arg10: memref<2x64x64xbf16, #tpu.memory_space<vmem>>, %arg11: memref<2x64x64xbf16, #tpu.memory_space<vmem>>, %arg12: memref<2x64x128xbf16, #tpu.memory_space<vmem>>, %arg13: memref<2x64x64xbf16, #tpu.memory_space<vmem>>, %arg14: memref<2x64x128xbf16, #tpu.memory_space<vmem>>, %arg15: memref<2x128x64xbf16, #tpu.memory_space<vmem>>, %arg16: memref<64x128xbf16, #tpu.memory_space<vmem>>, %arg17: memref<2x128xf32, #tpu.memory_space<vmem>>, %arg18: memref<2x8x192xf32, #tpu.memory_space<vmem>>, %arg19: memref<2x13x192xf32, #tpu.memory_space<vmem>>, %arg20: memref<5x128xf32, #tpu.memory_space<vmem>>, %arg21: memref<32x128xf32, #tpu.memory_space<vmem>>) attributes {dimension_semantics = [#tpu.dimension_semantics<arbitrary>], iteration_bounds = array<i64: 1>, scalar_prefetch = 0 : i64, scratch_operands = 0 : i64, tpu.core_type = #tpu.core_type<tc>, window_params = [{pipeline_mode = #tpu.pipeline_mode<synchronous>, transform_indices = @transform_0, window_bounds = array<i64: 32, 3072>}, {pipeline_mode = #tpu.pipeline_mode<synchronous>, transform_indices = @transform_1, window_bounds = array<i64: 32, 64>}, {pipeline_mode = #tpu.pipeline_mode<synchronous>, transform_indices = @transform_2, window_bounds = array<i64: 3072, 128>}, {pipeline_mode = #tpu.pipeline_mode<synchronous>, transform_indices = @transform_3, window_bounds = array<i64: 128, 64>}, {pipeline_mode = #tpu.pipeline_mode<synchronous>, transform_indices = @transform_4, window_bounds = array<i64: 2, 64, 192>}, {pipeline_mode = #tpu.pipeline_mode<synchronous>, transform_indices = @transform_5, window_bounds = array<i64: 2, 64, 64>}, {pipeline_mode = #tpu.pipeline_mode<synchronous>, transform_indices = @transform_6, window_bounds = array<i64: 2, 64, 128>}, {pipeline_mode = #tpu.pipeline_mode<synchronous>, transform_indices = @transform_7, window_bounds = array<i64: 2, 128, 64>}, {pipeline_mode = #tpu.pipeline_mode<synchronous>, transform_indices = @transform_8, window_bounds = array<i64: 2, 64, 192>}, {pipeline_mode = #tpu.pipeline_mode<synchronous>, transform_indices = @transform_9, window_bounds = array<i64: 2, 64, 64>}, {pipeline_mode = #tpu.pipeline_mode<synchronous>, transform_indices = @transform_10, window_bounds = array<i64: 2, 64, 64>}, {pipeline_mode = #tpu.pipeline_mode<synchronous>, transform_indices = @transform_11, window_bounds = array<i64: 2, 64, 128>}, {pipeline_mode = #tpu.pipeline_mode<synchronous>, transform_indices = @transform_12, window_bounds = array<i64: 2, 64, 64>}, {pipeline_mode = #tpu.pipeline_mode<synchronous>, transform_indices = @transform_13, window_bounds = array<i64: 2, 64, 128>}, {pipeline_mode = #tpu.pipeline_mode<synchronous>, transform_indices = @transform_14, window_bounds = array<i64: 2, 128, 64>}, {pipeline_mode = #tpu.pipeline_mode<synchronous>, transform_indices = @transform_15, window_bounds = array<i64: 64, 128>}, {pipeline_mode = #tpu.pipeline_mode<synchronous>, transform_indices = @transform_16, window_bounds = array<i64: 2, 128>}, {pipeline_mode = #tpu.pipeline_mode<synchronous>, transform_indices = @transform_17, window_bounds = array<i64: 2, 8, 192>}, {pipeline_mode = #tpu.pipeline_mode<synchronous>, transform_indices = @transform_18, window_bounds = array<i64: 2, 13, 192>}, {pipeline_mode = #tpu.pipeline_mode<synchronous>, transform_indices = @transform_19, window_bounds = array<i64: 5, 128>}, {pipeline_mode = #tpu.pipeline_mode<synchronous>, transform_indices = @transform_20, window_bounds = array<i64: 32, 128>}]} {
    %c0 = arith.constant 0 : index
    %c0_0 = arith.constant 0 : index
    %0 = vector.load %arg17[%c0, %c0_0] : memref<2x128xf32, #tpu.memory_space<vmem>>, vector<2x128xf32>
    %c0_1 = arith.constant 0 : index
    %c0_2 = arith.constant 0 : index
    %1 = vector.load %arg1[%c0_1, %c0_2] : memref<32x3072xbf16, #tpu.memory_space<vmem>>, vector<32x3072xbf16>
    %c0_3 = arith.constant 0 : index
    %c0_4 = arith.constant 0 : index
    %2 = vector.load %arg3[%c0_3, %c0_4] : memref<3072x128xbf16, #tpu.memory_space<vmem>>, vector<3072x128xbf16>
    %cst = arith.constant dense<0.000000e+00> : vector<32x128xf32>
    %3 = tpu.matmul %1, %2, %cst {dimension_numbers = #tpu.dot_dimension_numbers<[1], [0], [0], [1], [0, 0, 1, 1], [], []>} : vector<32x3072xbf16>, vector<3072x128xbf16>, vector<32x128xf32> -> vector<32x128xf32>
    %4 = vector.extract_strided_slice %0 {offsets = [0, 0], sizes = [1, 128], strides = [1, 1]} : vector<2x128xf32> to vector<1x128xf32>
    %5 = vector.broadcast %4 : vector<1x128xf32> to vector<32x128xf32>
    %6 = arith.addf %3, %5 : vector<32x128xf32>
    %cst_5 = arith.constant 0.000000e+00 : f32
    %7 = vector.broadcast %cst_5 : f32 to vector<32x128xf32>
    %8 = arith.maximumf %6, %7 : vector<32x128xf32>
    %c0_6 = arith.constant 0 : index
    %c0_7 = arith.constant 0 : index
    %9 = vector.load %arg4[%c0_6, %c0_7] : memref<128x64xbf16, #tpu.memory_space<vmem>>, vector<128x64xbf16>
    %10 = arith.truncf %8 : vector<32x128xf32> to vector<32x128xbf16>
    %cst_8 = arith.constant dense<0.000000e+00> : vector<32x64xf32>
    %11 = tpu.matmul %10, %9, %cst_8 {dimension_numbers = #tpu.dot_dimension_numbers<[1], [0], [0], [1], [0, 0, 1, 1], [], []>} : vector<32x128xbf16>, vector<128x64xbf16>, vector<32x64xf32> -> vector<32x64xf32>
    %12 = vector.extract_strided_slice %0 {offsets = [1, 0], sizes = [1, 64], strides = [1, 1]} : vector<2x128xf32> to vector<1x64xf32>
    %13 = vector.broadcast %12 : vector<1x64xf32> to vector<32x64xf32>
    %14 = arith.addf %11, %13 : vector<32x64xf32>
    %c0_9 = arith.constant 0 : index
    %c0_10 = arith.constant 0 : index
    %15 = vector.load %arg2[%c0_9, %c0_10] : memref<32x64xf32, #tpu.memory_space<vmem>>, vector<32x64xf32>
    %16 = arith.addf %14, %15 : vector<32x64xf32>
    %c0_11 = arith.constant 0 : index
    %c0_12 = arith.constant 0 : index
    %17 = vector.load %arg20[%c0_11, %c0_12] : memref<5x128xf32, #tpu.memory_space<vmem>>, vector<5x128xf32>
    %c0_13 = arith.constant 0 : index
    %c0_14 = arith.constant 0 : index
    %c0_15 = arith.constant 0 : index
    %18 = vector.load %arg18[%c0_13, %c0_14, %c0_15] : memref<2x8x192xf32, #tpu.memory_space<vmem>>, vector<1x8x192xf32>
    %19 = vector.shape_cast %18 : vector<1x8x192xf32> to vector<8x192xf32>
    %c0_16 = arith.constant 0 : index
    %c0_17 = arith.constant 0 : index
    %c0_18 = arith.constant 0 : index
    %20 = vector.load %arg5[%c0_16, %c0_17, %c0_18] : memref<2x64x192xbf16, #tpu.memory_space<vmem>>, vector<1x64x192xbf16>
    %21 = vector.shape_cast %20 : vector<1x64x192xbf16> to vector<64x192xbf16>
    %22 = arith.truncf %16 : vector<32x64xf32> to vector<32x64xbf16>
    %cst_19 = arith.constant dense<0.000000e+00> : vector<32x192xf32>
    %23 = tpu.matmul %22, %21, %cst_19 {dimension_numbers = #tpu.dot_dimension_numbers<[1], [0], [0], [1], [0, 0, 1, 1], [], []>} : vector<32x64xbf16>, vector<64x192xbf16>, vector<32x192xf32> -> vector<32x192xf32>
    %24 = vector.extract_strided_slice %19 {offsets = [0, 0], sizes = [1, 192], strides = [1, 1]} : vector<8x192xf32> to vector<1x192xf32>
    %25 = vector.broadcast %24 : vector<1x192xf32> to vector<32x192xf32>
    %26 = arith.addf %23, %25 : vector<32x192xf32>
    %27 = arith.truncf %26 : vector<32x192xf32> to vector<32x192xbf16>
    %28 = vector.extract_strided_slice %27 {offsets = [0, 0], sizes = [32, 64], strides = [1, 1]} : vector<32x192xbf16> to vector<32x64xbf16>
    %29 = vector.extract_strided_slice %27 {offsets = [0, 64], sizes = [32, 64], strides = [1, 1]} : vector<32x192xbf16> to vector<32x64xbf16>
    %30 = vector.extract_strided_slice %27 {offsets = [0, 128], sizes = [32, 64], strides = [1, 1]} : vector<32x192xbf16> to vector<32x64xbf16>
    %c0_20 = arith.constant 0 : index
    %c0_21 = arith.constant 0 : index
    %c0_22 = arith.constant 0 : index
    %31 = vector.load %arg6[%c0_20, %c0_21, %c0_22] : memref<2x64x64xbf16, #tpu.memory_space<vmem>>, vector<1x64x64xbf16>
    %32 = vector.shape_cast %31 : vector<1x64x64xbf16> to vector<64x64xbf16>
    %33 = vector.extract_strided_slice %19 {offsets = [1, 0], sizes = [1, 64], strides = [1, 1]} : vector<8x192xf32> to vector<1x64xf32>
    %34 = vector.extract_strided_slice %28 {offsets = [0, 0], sizes = [16, 64], strides = [1, 1]} : vector<32x64xbf16> to vector<16x64xbf16>
    %35 = vector.extract_strided_slice %29 {offsets = [0, 0], sizes = [16, 64], strides = [1, 1]} : vector<32x64xbf16> to vector<16x64xbf16>
    %36 = vector.extract_strided_slice %34 {offsets = [0, 0], sizes = [16, 16], strides = [1, 1]} : vector<16x64xbf16> to vector<16x16xbf16>
    %37 = vector.extract_strided_slice %35 {offsets = [0, 0], sizes = [16, 16], strides = [1, 1]} : vector<16x64xbf16> to vector<16x16xbf16>
    %cst_23 = arith.constant dense<0.000000e+00> : vector<16x16xf32>
    %38 = tpu.matmul %36, %37, %cst_23 {dimension_numbers = #tpu.dot_dimension_numbers<[1], [1], [0], [0], [0, 0, 1, 0], [], []>} : vector<16x16xbf16>, vector<16x16xbf16>, vector<16x16xf32> -> vector<16x16xf32>
    %39 = vector.extract_strided_slice %34 {offsets = [0, 16], sizes = [16, 16], strides = [1, 1]} : vector<16x64xbf16> to vector<16x16xbf16>
    %40 = vector.extract_strided_slice %35 {offsets = [0, 16], sizes = [16, 16], strides = [1, 1]} : vector<16x64xbf16> to vector<16x16xbf16>
    %cst_24 = arith.constant dense<0.000000e+00> : vector<16x16xf32>
    %41 = tpu.matmul %39, %40, %cst_24 {dimension_numbers = #tpu.dot_dimension_numbers<[1], [1], [0], [0], [0, 0, 1, 0], [], []>} : vector<16x16xbf16>, vector<16x16xbf16>, vector<16x16xf32> -> vector<16x16xf32>
    %42 = vector.extract_strided_slice %34 {offsets = [0, 32], sizes = [16, 16], strides = [1, 1]} : vector<16x64xbf16> to vector<16x16xbf16>
    %43 = vector.extract_strided_slice %35 {offsets = [0, 32], sizes = [16, 16], strides = [1, 1]} : vector<16x64xbf16> to vector<16x16xbf16>
    %cst_25 = arith.constant dense<0.000000e+00> : vector<16x16xf32>
    %44 = tpu.matmul %42, %43, %cst_25 {dimension_numbers = #tpu.dot_dimension_numbers<[1], [1], [0], [0], [0, 0, 1, 0], [], []>} : vector<16x16xbf16>, vector<16x16xbf16>, vector<16x16xf32> -> vector<16x16xf32>
    %45 = vector.extract_strided_slice %34 {offsets = [0, 48], sizes = [16, 16], strides = [1, 1]} : vector<16x64xbf16> to vector<16x16xbf16>
    %46 = vector.extract_strided_slice %35 {offsets = [0, 48], sizes = [16, 16], strides = [1, 1]} : vector<16x64xbf16> to vector<16x16xbf16>
    %cst_26 = arith.constant dense<0.000000e+00> : vector<16x16xf32>
    %47 = tpu.matmul %45, %46, %cst_26 {dimension_numbers = #tpu.dot_dimension_numbers<[1], [1], [0], [0], [0, 0, 1, 0], [], []>} : vector<16x16xbf16>, vector<16x16xbf16>, vector<16x16xf32> -> vector<16x16xf32>
    %48 = vector.extract_strided_slice %28 {offsets = [16, 0], sizes = [16, 64], strides = [1, 1]} : vector<32x64xbf16> to vector<16x64xbf16>
    %49 = vector.extract_strided_slice %29 {offsets = [16, 0], sizes = [16, 64], strides = [1, 1]} : vector<32x64xbf16> to vector<16x64xbf16>
    %50 = vector.extract_strided_slice %48 {offsets = [0, 0], sizes = [16, 16], strides = [1, 1]} : vector<16x64xbf16> to vector<16x16xbf16>
    %51 = vector.extract_strided_slice %49 {offsets = [0, 0], sizes = [16, 16], strides = [1, 1]} : vector<16x64xbf16> to vector<16x16xbf16>
    %cst_27 = arith.constant dense<0.000000e+00> : vector<16x16xf32>
    %52 = tpu.matmul %50, %51, %cst_27 {dimension_numbers = #tpu.dot_dimension_numbers<[1], [1], [0], [0], [0, 0, 1, 0], [], []>} : vector<16x16xbf16>, vector<16x16xbf16>, vector<16x16xf32> -> vector<16x16xf32>
    %53 = vector.extract_strided_slice %48 {offsets = [0, 16], sizes = [16, 16], strides = [1, 1]} : vector<16x64xbf16> to vector<16x16xbf16>
    %54 = vector.extract_strided_slice %49 {offsets = [0, 16], sizes = [16, 16], strides = [1, 1]} : vector<16x64xbf16> to vector<16x16xbf16>
    %cst_28 = arith.constant dense<0.000000e+00> : vector<16x16xf32>
    %55 = tpu.matmul %53, %54, %cst_28 {dimension_numbers = #tpu.dot_dimension_numbers<[1], [1], [0], [0], [0, 0, 1, 0], [], []>} : vector<16x16xbf16>, vector<16x16xbf16>, vector<16x16xf32> -> vector<16x16xf32>
    %56 = vector.extract_strided_slice %48 {offsets = [0, 32], sizes = [16, 16], strides = [1, 1]} : vector<16x64xbf16> to vector<16x16xbf16>
    %57 = vector.extract_strided_slice %49 {offsets = [0, 32], sizes = [16, 16], strides = [1, 1]} : vector<16x64xbf16> to vector<16x16xbf16>
    %cst_29 = arith.constant dense<0.000000e+00> : vector<16x16xf32>
    %58 = tpu.matmul %56, %57, %cst_29 {dimension_numbers = #tpu.dot_dimension_numbers<[1], [1], [0], [0], [0, 0, 1, 0], [], []>} : vector<16x16xbf16>, vector<16x16xbf16>, vector<16x16xf32> -> vector<16x16xf32>
    %59 = vector.extract_strided_slice %48 {offsets = [0, 48], sizes = [16, 16], strides = [1, 1]} : vector<16x64xbf16> to vector<16x16xbf16>
    %60 = vector.extract_strided_slice %49 {offsets = [0, 48], sizes = [16, 16], strides = [1, 1]} : vector<16x64xbf16> to vector<16x16xbf16>
    %cst_30 = arith.constant dense<0.000000e+00> : vector<16x16xf32>
    %61 = tpu.matmul %59, %60, %cst_30 {dimension_numbers = #tpu.dot_dimension_numbers<[1], [1], [0], [0], [0, 0, 1, 0], [], []>} : vector<16x16xbf16>, vector<16x16xbf16>, vector<16x16xf32> -> vector<16x16xf32>
    %62 = tpu.concatenate %38, %41, %44, %47, %52, %55, %58, %61 in 0 : vector<16x16xf32>, vector<16x16xf32>, vector<16x16xf32>, vector<16x16xf32>, vector<16x16xf32>, vector<16x16xf32>, vector<16x16xf32>, vector<16x16xf32> -> vector<128x16xf32>
    %cst_31 = arith.constant dense<0xFF800000> : vector<128xf32>
    %63 = vector.multi_reduction <maximumf>, %62, %cst_31 [1] : vector<128x16xf32> to vector<128xf32>
    %64 = vector.shape_cast %63 : vector<128xf32> to vector<128x1xf32>
    %65 = vector.broadcast %64 : vector<128x1xf32> to vector<128x16xf32>
    %66 = arith.subf %62, %65 : vector<128x16xf32>
    %67 = math.exp %66 : vector<128x16xf32>
    %cst_32 = arith.constant dense<0.000000e+00> : vector<128xf32>
    %68 = vector.multi_reduction <add>, %67, %cst_32 [1] : vector<128x16xf32> to vector<128xf32>
    %69 = vector.shape_cast %68 : vector<128xf32> to vector<128x1xf32>
    %70 = tpu.reciprocal %69 {approx = true} : vector<128x1xf32> -> vector<128x1xf32>
    %71 = vector.broadcast %70 : vector<128x1xf32> to vector<128x16xf32>
    %72 = arith.mulf %67, %71 : vector<128x16xf32>
    %73 = arith.truncf %72 : vector<128x16xf32> to vector<128x16xbf16>
    %74 = vector.extract_strided_slice %30 {offsets = [0, 0], sizes = [16, 64], strides = [1, 1]} : vector<32x64xbf16> to vector<16x64xbf16>
    %75 = vector.extract_strided_slice %73 {offsets = [0, 0], sizes = [16, 16], strides = [1, 1]} : vector<128x16xbf16> to vector<16x16xbf16>
    %76 = vector.extract_strided_slice %74 {offsets = [0, 0], sizes = [16, 16], strides = [1, 1]} : vector<16x64xbf16> to vector<16x16xbf16>
    %cst_33 = arith.constant dense<0.000000e+00> : vector<16x16xf32>
    %77 = tpu.matmul %75, %76, %cst_33 {dimension_numbers = #tpu.dot_dimension_numbers<[1], [0], [0], [1], [0, 0, 1, 1], [], []>} : vector<16x16xbf16>, vector<16x16xbf16>, vector<16x16xf32> -> vector<16x16xf32>
    %78 = vector.extract_strided_slice %73 {offsets = [16, 0], sizes = [16, 16], strides = [1, 1]} : vector<128x16xbf16> to vector<16x16xbf16>
    %79 = vector.extract_strided_slice %74 {offsets = [0, 16], sizes = [16, 16], strides = [1, 1]} : vector<16x64xbf16> to vector<16x16xbf16>
    %cst_34 = arith.constant dense<0.000000e+00> : vector<16x16xf32>
    %80 = tpu.matmul %78, %79, %cst_34 {dimension_numbers = #tpu.dot_dimension_numbers<[1], [0], [0], [1], [0, 0, 1, 1], [], []>} : vector<16x16xbf16>, vector<16x16xbf16>, vector<16x16xf32> -> vector<16x16xf32>
    %81 = vector.extract_strided_slice %73 {offsets = [32, 0], sizes = [16, 16], strides = [1, 1]} : vector<128x16xbf16> to vector<16x16xbf16>
    %82 = vector.extract_strided_slice %74 {offsets = [0, 32], sizes = [16, 16], strides = [1, 1]} : vector<16x64xbf16> to vector<16x16xbf16>
    %cst_35 = arith.constant dense<0.000000e+00> : vector<16x16xf32>
    %83 = tpu.matmul %81, %82, %cst_35 {dimension_numbers = #tpu.dot_dimension_numbers<[1], [0], [0], [1], [0, 0, 1, 1], [], []>} : vector<16x16xbf16>, vector<16x16xbf16>, vector<16x16xf32> -> vector<16x16xf32>
    %84 = vector.extract_strided_slice %73 {offsets = [48, 0], sizes = [16, 16], strides = [1, 1]} : vector<128x16xbf16> to vector<16x16xbf16>
    %85 = vector.extract_strided_slice %74 {offsets = [0, 48], sizes = [16, 16], strides = [1, 1]} : vector<16x64xbf16> to vector<16x16xbf16>
    %cst_36 = arith.constant dense<0.000000e+00> : vector<16x16xf32>
    %86 = tpu.matmul %84, %85, %cst_36 {dimension_numbers = #tpu.dot_dimension_numbers<[1], [0], [0], [1], [0, 0, 1, 1], [], []>} : vector<16x16xbf16>, vector<16x16xbf16>, vector<16x16xf32> -> vector<16x16xf32>
    %87 = tpu.concatenate %77, %80, %83, %86 in 1 : vector<16x16xf32>, vector<16x16xf32>, vector<16x16xf32>, vector<16x16xf32> -> vector<16x64xf32>
    %88 = vector.extract_strided_slice %30 {offsets = [16, 0], sizes = [16, 64], strides = [1, 1]} : vector<32x64xbf16> to vector<16x64xbf16>
    %89 = vector.extract_strided_slice %73 {offsets = [64, 0], sizes = [16, 16], strides = [1, 1]} : vector<128x16xbf16> to vector<16x16xbf16>
    %90 = vector.extract_strided_slice %88 {offsets = [0, 0], sizes = [16, 16], strides = [1, 1]} : vector<16x64xbf16> to vector<16x16xbf16>
    %cst_37 = arith.constant dense<0.000000e+00> : vector<16x16xf32>
    %91 = tpu.matmul %89, %90, %cst_37 {dimension_numbers = #tpu.dot_dimension_numbers<[1], [0], [0], [1], [0, 0, 1, 1], [], []>} : vector<16x16xbf16>, vector<16x16xbf16>, vector<16x16xf32> -> vector<16x16xf32>
    %92 = vector.extract_strided_slice %73 {offsets = [80, 0], sizes = [16, 16], strides = [1, 1]} : vector<128x16xbf16> to vector<16x16xbf16>
    %93 = vector.extract_strided_slice %88 {offsets = [0, 16], sizes = [16, 16], strides = [1, 1]} : vector<16x64xbf16> to vector<16x16xbf16>
    %cst_38 = arith.constant dense<0.000000e+00> : vector<16x16xf32>
    %94 = tpu.matmul %92, %93, %cst_38 {dimension_numbers = #tpu.dot_dimension_numbers<[1], [0], [0], [1], [0, 0, 1, 1], [], []>} : vector<16x16xbf16>, vector<16x16xbf16>, vector<16x16xf32> -> vector<16x16xf32>
    %95 = vector.extract_strided_slice %73 {offsets = [96, 0], sizes = [16, 16], strides = [1, 1]} : vector<128x16xbf16> to vector<16x16xbf16>
    %96 = vector.extract_strided_slice %88 {offsets = [0, 32], sizes = [16, 16], strides = [1, 1]} : vector<16x64xbf16> to vector<16x16xbf16>
    %cst_39 = arith.constant dense<0.000000e+00> : vector<16x16xf32>
    %97 = tpu.matmul %95, %96, %cst_39 {dimension_numbers = #tpu.dot_dimension_numbers<[1], [0], [0], [1], [0, 0, 1, 1], [], []>} : vector<16x16xbf16>, vector<16x16xbf16>, vector<16x16xf32> -> vector<16x16xf32>
    %98 = vector.extract_strided_slice %73 {offsets = [112, 0], sizes = [16, 16], strides = [1, 1]} : vector<128x16xbf16> to vector<16x16xbf16>
    %99 = vector.extract_strided_slice %88 {offsets = [0, 48], sizes = [16, 16], strides = [1, 1]} : vector<16x64xbf16> to vector<16x16xbf16>
    %cst_40 = arith.constant dense<0.000000e+00> : vector<16x16xf32>
    %100 = tpu.matmul %98, %99, %cst_40 {dimension_numbers = #tpu.dot_dimension_numbers<[1], [0], [0], [1], [0, 0, 1, 1], [], []>} : vector<16x16xbf16>, vector<16x16xbf16>, vector<16x16xf32> -> vector<16x16xf32>
    %101 = tpu.concatenate %91, %94, %97, %100 in 1 : vector<16x16xf32>, vector<16x16xf32>, vector<16x16xf32>, vector<16x16xf32> -> vector<16x64xf32>
    %102 = tpu.concatenate %87, %101 in 0 : vector<16x64xf32>, vector<16x64xf32> -> vector<32x64xf32>
    %103 = arith.truncf %102 : vector<32x64xf32> to vector<32x64xbf16>
    %cst_41 = arith.constant dense<0.000000e+00> : vector<32x64xf32>
    %104 = tpu.matmul %103, %32, %cst_41 {dimension_numbers = #tpu.dot_dimension_numbers<[1], [0], [0], [1], [0, 0, 1, 1], [], []>} : vector<32x64xbf16>, vector<64x64xbf16>, vector<32x64xf32> -> vector<32x64xf32>
    %105 = vector.broadcast %33 : vector<1x64xf32> to vector<32x64xf32>
    %106 = arith.addf %104, %105 : vector<32x64xf32>
    %107 = arith.addf %16, %106 : vector<32x64xf32>
    %108 = vector.extract_strided_slice %19 {offsets = [2, 0], sizes = [1, 64], strides = [1, 1]} : vector<8x192xf32> to vector<1x64xf32>
    %109 = vector.extract_strided_slice %19 {offsets = [3, 0], sizes = [1, 64], strides = [1, 1]} : vector<8x192xf32> to vector<1x64xf32>
    %cst_42 = arith.constant dense<0.000000e+00> : vector<32xf32>
    %110 = vector.multi_reduction <add>, %107, %cst_42 [1] : vector<32x64xf32> to vector<32xf32>
    %111 = vector.shape_cast %110 : vector<32xf32> to vector<32x1xf32>
    %cst_43 = arith.constant 6.400000e+01 : f32
    %112 = vector.broadcast %cst_43 : f32 to vector<32x1xf32>
    %113 = arith.divf %111, %112 : vector<32x1xf32>
    %114 = vector.broadcast %113 : vector<32x1xf32> to vector<32x64xf32>
    %115 = arith.subf %107, %114 : vector<32x64xf32>
    %116 = arith.mulf %115, %115 : vector<32x64xf32>
    %cst_44 = arith.constant dense<0.000000e+00> : vector<32xf32>
    %117 = vector.multi_reduction <add>, %116, %cst_44 [1] : vector<32x64xf32> to vector<32xf32>
    %118 = vector.shape_cast %117 : vector<32xf32> to vector<32x1xf32>
    %cst_45 = arith.constant 6.400000e+01 : f32
    %119 = vector.broadcast %cst_45 : f32 to vector<32x1xf32>
    %120 = arith.divf %118, %119 : vector<32x1xf32>
    %cst_46 = arith.constant 9.99999974E-6 : f32
    %121 = vector.broadcast %cst_46 : f32 to vector<32x1xf32>
    %122 = arith.addf %120, %121 : vector<32x1xf32>
    %123 = math.rsqrt %122 : vector<32x1xf32>
    %124 = vector.broadcast %123 : vector<32x1xf32> to vector<32x64xf32>
    %125 = arith.mulf %115, %124 : vector<32x64xf32>
    %126 = vector.broadcast %108 : vector<1x64xf32> to vector<32x64xf32>
    %127 = arith.mulf %125, %126 : vector<32x64xf32>
    %128 = vector.broadcast %109 : vector<1x64xf32> to vector<32x64xf32>
    %129 = arith.addf %127, %128 : vector<32x64xf32>
    %c0_47 = arith.constant 0 : index
    %c0_48 = arith.constant 0 : index
    %c0_49 = arith.constant 0 : index
    %130 = vector.load %arg7[%c0_47, %c0_48, %c0_49] : memref<2x64x128xbf16, #tpu.memory_space<vmem>>, vector<1x64x128xbf16>
    %131 = vector.shape_cast %130 : vector<1x64x128xbf16> to vector<64x128xbf16>
    %132 = arith.truncf %129 : vector<32x64xf32> to vector<32x64xbf16>
    %cst_50 = arith.constant dense<0.000000e+00> : vector<32x128xf32>
    %133 = tpu.matmul %132, %131, %cst_50 {dimension_numbers = #tpu.dot_dimension_numbers<[1], [0], [0], [1], [0, 0, 1, 1], [], []>} : vector<32x64xbf16>, vector<64x128xbf16>, vector<32x128xf32> -> vector<32x128xf32>
    %134 = vector.extract_strided_slice %19 {offsets = [4, 0], sizes = [1, 128], strides = [1, 1]} : vector<8x192xf32> to vector<1x128xf32>
    %135 = vector.broadcast %134 : vector<1x128xf32> to vector<32x128xf32>
    %136 = arith.addf %133, %135 : vector<32x128xf32>
    %cst_51 = arith.constant 0.000000e+00 : f32
    %137 = vector.broadcast %cst_51 : f32 to vector<32x128xf32>
    %138 = arith.maximumf %136, %137 : vector<32x128xf32>
    %c0_52 = arith.constant 0 : index
    %c0_53 = arith.constant 0 : index
    %c0_54 = arith.constant 0 : index
    %139 = vector.load %arg8[%c0_52, %c0_53, %c0_54] : memref<2x128x64xbf16, #tpu.memory_space<vmem>>, vector<1x128x64xbf16>
    %140 = vector.shape_cast %139 : vector<1x128x64xbf16> to vector<128x64xbf16>
    %141 = arith.truncf %138 : vector<32x128xf32> to vector<32x128xbf16>
    %cst_55 = arith.constant dense<0.000000e+00> : vector<32x64xf32>
    %142 = tpu.matmul %141, %140, %cst_55 {dimension_numbers = #tpu.dot_dimension_numbers<[1], [0], [0], [1], [0, 0, 1, 1], [], []>} : vector<32x128xbf16>, vector<128x64xbf16>, vector<32x64xf32> -> vector<32x64xf32>
    %143 = vector.extract_strided_slice %19 {offsets = [5, 0], sizes = [1, 64], strides = [1, 1]} : vector<8x192xf32> to vector<1x64xf32>
    %144 = vector.broadcast %143 : vector<1x64xf32> to vector<32x64xf32>
    %145 = arith.addf %142, %144 : vector<32x64xf32>
    %146 = arith.addf %129, %145 : vector<32x64xf32>
    %147 = vector.extract_strided_slice %19 {offsets = [6, 0], sizes = [1, 64], strides = [1, 1]} : vector<8x192xf32> to vector<1x64xf32>
    %148 = vector.extract_strided_slice %19 {offsets = [7, 0], sizes = [1, 64], strides = [1, 1]} : vector<8x192xf32> to vector<1x64xf32>
    %cst_56 = arith.constant dense<0.000000e+00> : vector<32xf32>
    %149 = vector.multi_reduction <add>, %146, %cst_56 [1] : vector<32x64xf32> to vector<32xf32>
    %150 = vector.shape_cast %149 : vector<32xf32> to vector<32x1xf32>
    %cst_57 = arith.constant 6.400000e+01 : f32
    %151 = vector.broadcast %cst_57 : f32 to vector<32x1xf32>
    %152 = arith.divf %150, %151 : vector<32x1xf32>
    %153 = vector.broadcast %152 : vector<32x1xf32> to vector<32x64xf32>
    %154 = arith.subf %146, %153 : vector<32x64xf32>
    %155 = arith.mulf %154, %154 : vector<32x64xf32>
    %cst_58 = arith.constant dense<0.000000e+00> : vector<32xf32>
    %156 = vector.multi_reduction <add>, %155, %cst_58 [1] : vector<32x64xf32> to vector<32xf32>
    %157 = vector.shape_cast %156 : vector<32xf32> to vector<32x1xf32>
    %cst_59 = arith.constant 6.400000e+01 : f32
    %158 = vector.broadcast %cst_59 : f32 to vector<32x1xf32>
    %159 = arith.divf %157, %158 : vector<32x1xf32>
    %cst_60 = arith.constant 9.99999974E-6 : f32
    %160 = vector.broadcast %cst_60 : f32 to vector<32x1xf32>
    %161 = arith.addf %159, %160 : vector<32x1xf32>
    %162 = math.rsqrt %161 : vector<32x1xf32>
    %163 = vector.broadcast %162 : vector<32x1xf32> to vector<32x64xf32>
    %164 = arith.mulf %154, %163 : vector<32x64xf32>
    %165 = vector.broadcast %147 : vector<1x64xf32> to vector<32x64xf32>
    %166 = arith.mulf %164, %165 : vector<32x64xf32>
    %167 = vector.broadcast %148 : vector<1x64xf32> to vector<32x64xf32>
    %168 = arith.addf %166, %167 : vector<32x64xf32>
    %c1 = arith.constant 1 : index
    %c0_61 = arith.constant 0 : index
    %c0_62 = arith.constant 0 : index
    %169 = vector.load %arg18[%c1, %c0_61, %c0_62] : memref<2x8x192xf32, #tpu.memory_space<vmem>>, vector<1x8x192xf32>
    %170 = vector.shape_cast %169 : vector<1x8x192xf32> to vector<8x192xf32>
    %c1_63 = arith.constant 1 : index
    %c0_64 = arith.constant 0 : index
    %c0_65 = arith.constant 0 : index
    %171 = vector.load %arg5[%c1_63, %c0_64, %c0_65] : memref<2x64x192xbf16, #tpu.memory_space<vmem>>, vector<1x64x192xbf16>
    %172 = vector.shape_cast %171 : vector<1x64x192xbf16> to vector<64x192xbf16>
    %173 = arith.truncf %168 : vector<32x64xf32> to vector<32x64xbf16>
    %cst_66 = arith.constant dense<0.000000e+00> : vector<32x192xf32>
    %174 = tpu.matmul %173, %172, %cst_66 {dimension_numbers = #tpu.dot_dimension_numbers<[1], [0], [0], [1], [0, 0, 1, 1], [], []>} : vector<32x64xbf16>, vector<64x192xbf16>, vector<32x192xf32> -> vector<32x192xf32>
    %175 = vector.extract_strided_slice %170 {offsets = [0, 0], sizes = [1, 192], strides = [1, 1]} : vector<8x192xf32> to vector<1x192xf32>
    %176 = vector.broadcast %175 : vector<1x192xf32> to vector<32x192xf32>
    %177 = arith.addf %174, %176 : vector<32x192xf32>
    %178 = arith.truncf %177 : vector<32x192xf32> to vector<32x192xbf16>
    %179 = vector.extract_strided_slice %178 {offsets = [0, 0], sizes = [32, 64], strides = [1, 1]} : vector<32x192xbf16> to vector<32x64xbf16>
    %180 = vector.extract_strided_slice %178 {offsets = [0, 64], sizes = [32, 64], strides = [1, 1]} : vector<32x192xbf16> to vector<32x64xbf16>
    %181 = vector.extract_strided_slice %178 {offsets = [0, 128], sizes = [32, 64], strides = [1, 1]} : vector<32x192xbf16> to vector<32x64xbf16>
    %c1_67 = arith.constant 1 : index
    %c0_68 = arith.constant 0 : index
    %c0_69 = arith.constant 0 : index
    %182 = vector.load %arg6[%c1_67, %c0_68, %c0_69] : memref<2x64x64xbf16, #tpu.memory_space<vmem>>, vector<1x64x64xbf16>
    %183 = vector.shape_cast %182 : vector<1x64x64xbf16> to vector<64x64xbf16>
    %184 = vector.extract_strided_slice %170 {offsets = [1, 0], sizes = [1, 64], strides = [1, 1]} : vector<8x192xf32> to vector<1x64xf32>
    %185 = vector.extract_strided_slice %179 {offsets = [0, 0], sizes = [16, 64], strides = [1, 1]} : vector<32x64xbf16> to vector<16x64xbf16>
    %186 = vector.extract_strided_slice %180 {offsets = [0, 0], sizes = [16, 64], strides = [1, 1]} : vector<32x64xbf16> to vector<16x64xbf16>
    %187 = vector.extract_strided_slice %185 {offsets = [0, 0], sizes = [16, 16], strides = [1, 1]} : vector<16x64xbf16> to vector<16x16xbf16>
    %188 = vector.extract_strided_slice %186 {offsets = [0, 0], sizes = [16, 16], strides = [1, 1]} : vector<16x64xbf16> to vector<16x16xbf16>
    %cst_70 = arith.constant dense<0.000000e+00> : vector<16x16xf32>
    %189 = tpu.matmul %187, %188, %cst_70 {dimension_numbers = #tpu.dot_dimension_numbers<[1], [1], [0], [0], [0, 0, 1, 0], [], []>} : vector<16x16xbf16>, vector<16x16xbf16>, vector<16x16xf32> -> vector<16x16xf32>
    %190 = vector.extract_strided_slice %185 {offsets = [0, 16], sizes = [16, 16], strides = [1, 1]} : vector<16x64xbf16> to vector<16x16xbf16>
    %191 = vector.extract_strided_slice %186 {offsets = [0, 16], sizes = [16, 16], strides = [1, 1]} : vector<16x64xbf16> to vector<16x16xbf16>
    %cst_71 = arith.constant dense<0.000000e+00> : vector<16x16xf32>
    %192 = tpu.matmul %190, %191, %cst_71 {dimension_numbers = #tpu.dot_dimension_numbers<[1], [1], [0], [0], [0, 0, 1, 0], [], []>} : vector<16x16xbf16>, vector<16x16xbf16>, vector<16x16xf32> -> vector<16x16xf32>
    %193 = vector.extract_strided_slice %185 {offsets = [0, 32], sizes = [16, 16], strides = [1, 1]} : vector<16x64xbf16> to vector<16x16xbf16>
    %194 = vector.extract_strided_slice %186 {offsets = [0, 32], sizes = [16, 16], strides = [1, 1]} : vector<16x64xbf16> to vector<16x16xbf16>
    %cst_72 = arith.constant dense<0.000000e+00> : vector<16x16xf32>
    %195 = tpu.matmul %193, %194, %cst_72 {dimension_numbers = #tpu.dot_dimension_numbers<[1], [1], [0], [0], [0, 0, 1, 0], [], []>} : vector<16x16xbf16>, vector<16x16xbf16>, vector<16x16xf32> -> vector<16x16xf32>
    %196 = vector.extract_strided_slice %185 {offsets = [0, 48], sizes = [16, 16], strides = [1, 1]} : vector<16x64xbf16> to vector<16x16xbf16>
    %197 = vector.extract_strided_slice %186 {offsets = [0, 48], sizes = [16, 16], strides = [1, 1]} : vector<16x64xbf16> to vector<16x16xbf16>
    %cst_73 = arith.constant dense<0.000000e+00> : vector<16x16xf32>
    %198 = tpu.matmul %196, %197, %cst_73 {dimension_numbers = #tpu.dot_dimension_numbers<[1], [1], [0], [0], [0, 0, 1, 0], [], []>} : vector<16x16xbf16>, vector<16x16xbf16>, vector<16x16xf32> -> vector<16x16xf32>
    %199 = vector.extract_strided_slice %179 {offsets = [16, 0], sizes = [16, 64], strides = [1, 1]} : vector<32x64xbf16> to vector<16x64xbf16>
    %200 = vector.extract_strided_slice %180 {offsets = [16, 0], sizes = [16, 64], strides = [1, 1]} : vector<32x64xbf16> to vector<16x64xbf16>
    %201 = vector.extract_strided_slice %199 {offsets = [0, 0], sizes = [16, 16], strides = [1, 1]} : vector<16x64xbf16> to vector<16x16xbf16>
    %202 = vector.extract_strided_slice %200 {offsets = [0, 0], sizes = [16, 16], strides = [1, 1]} : vector<16x64xbf16> to vector<16x16xbf16>
    %cst_74 = arith.constant dense<0.000000e+00> : vector<16x16xf32>
    %203 = tpu.matmul %201, %202, %cst_74 {dimension_numbers = #tpu.dot_dimension_numbers<[1], [1], [0], [0], [0, 0, 1, 0], [], []>} : vector<16x16xbf16>, vector<16x16xbf16>, vector<16x16xf32> -> vector<16x16xf32>
    %204 = vector.extract_strided_slice %199 {offsets = [0, 16], sizes = [16, 16], strides = [1, 1]} : vector<16x64xbf16> to vector<16x16xbf16>
    %205 = vector.extract_strided_slice %200 {offsets = [0, 16], sizes = [16, 16], strides = [1, 1]} : vector<16x64xbf16> to vector<16x16xbf16>
    %cst_75 = arith.constant dense<0.000000e+00> : vector<16x16xf32>
    %206 = tpu.matmul %204, %205, %cst_75 {dimension_numbers = #tpu.dot_dimension_numbers<[1], [1], [0], [0], [0, 0, 1, 0], [], []>} : vector<16x16xbf16>, vector<16x16xbf16>, vector<16x16xf32> -> vector<16x16xf32>
    %207 = vector.extract_strided_slice %199 {offsets = [0, 32], sizes = [16, 16], strides = [1, 1]} : vector<16x64xbf16> to vector<16x16xbf16>
    %208 = vector.extract_strided_slice %200 {offsets = [0, 32], sizes = [16, 16], strides = [1, 1]} : vector<16x64xbf16> to vector<16x16xbf16>
    %cst_76 = arith.constant dense<0.000000e+00> : vector<16x16xf32>
    %209 = tpu.matmul %207, %208, %cst_76 {dimension_numbers = #tpu.dot_dimension_numbers<[1], [1], [0], [0], [0, 0, 1, 0], [], []>} : vector<16x16xbf16>, vector<16x16xbf16>, vector<16x16xf32> -> vector<16x16xf32>
    %210 = vector.extract_strided_slice %199 {offsets = [0, 48], sizes = [16, 16], strides = [1, 1]} : vector<16x64xbf16> to vector<16x16xbf16>
    %211 = vector.extract_strided_slice %200 {offsets = [0, 48], sizes = [16, 16], strides = [1, 1]} : vector<16x64xbf16> to vector<16x16xbf16>
    %cst_77 = arith.constant dense<0.000000e+00> : vector<16x16xf32>
    %212 = tpu.matmul %210, %211, %cst_77 {dimension_numbers = #tpu.dot_dimension_numbers<[1], [1], [0], [0], [0, 0, 1, 0], [], []>} : vector<16x16xbf16>, vector<16x16xbf16>, vector<16x16xf32> -> vector<16x16xf32>
    %213 = tpu.concatenate %189, %192, %195, %198, %203, %206, %209, %212 in 0 : vector<16x16xf32>, vector<16x16xf32>, vector<16x16xf32>, vector<16x16xf32>, vector<16x16xf32>, vector<16x16xf32>, vector<16x16xf32>, vector<16x16xf32> -> vector<128x16xf32>
    %cst_78 = arith.constant dense<0xFF800000> : vector<128xf32>
    %214 = vector.multi_reduction <maximumf>, %213, %cst_78 [1] : vector<128x16xf32> to vector<128xf32>
    %215 = vector.shape_cast %214 : vector<128xf32> to vector<128x1xf32>
    %216 = vector.broadcast %215 : vector<128x1xf32> to vector<128x16xf32>
    %217 = arith.subf %213, %216 : vector<128x16xf32>
    %218 = math.exp %217 : vector<128x16xf32>
    %cst_79 = arith.constant dense<0.000000e+00> : vector<128xf32>
    %219 = vector.multi_reduction <add>, %218, %cst_79 [1] : vector<128x16xf32> to vector<128xf32>
    %220 = vector.shape_cast %219 : vector<128xf32> to vector<128x1xf32>
    %221 = tpu.reciprocal %220 {approx = true} : vector<128x1xf32> -> vector<128x1xf32>
    %222 = vector.broadcast %221 : vector<128x1xf32> to vector<128x16xf32>
    %223 = arith.mulf %218, %222 : vector<128x16xf32>
    %224 = arith.truncf %223 : vector<128x16xf32> to vector<128x16xbf16>
    %225 = vector.extract_strided_slice %181 {offsets = [0, 0], sizes = [16, 64], strides = [1, 1]} : vector<32x64xbf16> to vector<16x64xbf16>
    %226 = vector.extract_strided_slice %224 {offsets = [0, 0], sizes = [16, 16], strides = [1, 1]} : vector<128x16xbf16> to vector<16x16xbf16>
    %227 = vector.extract_strided_slice %225 {offsets = [0, 0], sizes = [16, 16], strides = [1, 1]} : vector<16x64xbf16> to vector<16x16xbf16>
    %cst_80 = arith.constant dense<0.000000e+00> : vector<16x16xf32>
    %228 = tpu.matmul %226, %227, %cst_80 {dimension_numbers = #tpu.dot_dimension_numbers<[1], [0], [0], [1], [0, 0, 1, 1], [], []>} : vector<16x16xbf16>, vector<16x16xbf16>, vector<16x16xf32> -> vector<16x16xf32>
    %229 = vector.extract_strided_slice %224 {offsets = [16, 0], sizes = [16, 16], strides = [1, 1]} : vector<128x16xbf16> to vector<16x16xbf16>
    %230 = vector.extract_strided_slice %225 {offsets = [0, 16], sizes = [16, 16], strides = [1, 1]} : vector<16x64xbf16> to vector<16x16xbf16>
    %cst_81 = arith.constant dense<0.000000e+00> : vector<16x16xf32>
    %231 = tpu.matmul %229, %230, %cst_81 {dimension_numbers = #tpu.dot_dimension_numbers<[1], [0], [0], [1], [0, 0, 1, 1], [], []>} : vector<16x16xbf16>, vector<16x16xbf16>, vector<16x16xf32> -> vector<16x16xf32>
    %232 = vector.extract_strided_slice %224 {offsets = [32, 0], sizes = [16, 16], strides = [1, 1]} : vector<128x16xbf16> to vector<16x16xbf16>
    %233 = vector.extract_strided_slice %225 {offsets = [0, 32], sizes = [16, 16], strides = [1, 1]} : vector<16x64xbf16> to vector<16x16xbf16>
    %cst_82 = arith.constant dense<0.000000e+00> : vector<16x16xf32>
    %234 = tpu.matmul %232, %233, %cst_82 {dimension_numbers = #tpu.dot_dimension_numbers<[1], [0], [0], [1], [0, 0, 1, 1], [], []>} : vector<16x16xbf16>, vector<16x16xbf16>, vector<16x16xf32> -> vector<16x16xf32>
    %235 = vector.extract_strided_slice %224 {offsets = [48, 0], sizes = [16, 16], strides = [1, 1]} : vector<128x16xbf16> to vector<16x16xbf16>
    %236 = vector.extract_strided_slice %225 {offsets = [0, 48], sizes = [16, 16], strides = [1, 1]} : vector<16x64xbf16> to vector<16x16xbf16>
    %cst_83 = arith.constant dense<0.000000e+00> : vector<16x16xf32>
    %237 = tpu.matmul %235, %236, %cst_83 {dimension_numbers = #tpu.dot_dimension_numbers<[1], [0], [0], [1], [0, 0, 1, 1], [], []>} : vector<16x16xbf16>, vector<16x16xbf16>, vector<16x16xf32> -> vector<16x16xf32>
    %238 = tpu.concatenate %228, %231, %234, %237 in 1 : vector<16x16xf32>, vector<16x16xf32>, vector<16x16xf32>, vector<16x16xf32> -> vector<16x64xf32>
    %239 = vector.extract_strided_slice %181 {offsets = [16, 0], sizes = [16, 64], strides = [1, 1]} : vector<32x64xbf16> to vector<16x64xbf16>
    %240 = vector.extract_strided_slice %224 {offsets = [64, 0], sizes = [16, 16], strides = [1, 1]} : vector<128x16xbf16> to vector<16x16xbf16>
    %241 = vector.extract_strided_slice %239 {offsets = [0, 0], sizes = [16, 16], strides = [1, 1]} : vector<16x64xbf16> to vector<16x16xbf16>
    %cst_84 = arith.constant dense<0.000000e+00> : vector<16x16xf32>
    %242 = tpu.matmul %240, %241, %cst_84 {dimension_numbers = #tpu.dot_dimension_numbers<[1], [0], [0], [1], [0, 0, 1, 1], [], []>} : vector<16x16xbf16>, vector<16x16xbf16>, vector<16x16xf32> -> vector<16x16xf32>
    %243 = vector.extract_strided_slice %224 {offsets = [80, 0], sizes = [16, 16], strides = [1, 1]} : vector<128x16xbf16> to vector<16x16xbf16>
    %244 = vector.extract_strided_slice %239 {offsets = [0, 16], sizes = [16, 16], strides = [1, 1]} : vector<16x64xbf16> to vector<16x16xbf16>
    %cst_85 = arith.constant dense<0.000000e+00> : vector<16x16xf32>
    %245 = tpu.matmul %243, %244, %cst_85 {dimension_numbers = #tpu.dot_dimension_numbers<[1], [0], [0], [1], [0, 0, 1, 1], [], []>} : vector<16x16xbf16>, vector<16x16xbf16>, vector<16x16xf32> -> vector<16x16xf32>
    %246 = vector.extract_strided_slice %224 {offsets = [96, 0], sizes = [16, 16], strides = [1, 1]} : vector<128x16xbf16> to vector<16x16xbf16>
    %247 = vector.extract_strided_slice %239 {offsets = [0, 32], sizes = [16, 16], strides = [1, 1]} : vector<16x64xbf16> to vector<16x16xbf16>
    %cst_86 = arith.constant dense<0.000000e+00> : vector<16x16xf32>
    %248 = tpu.matmul %246, %247, %cst_86 {dimension_numbers = #tpu.dot_dimension_numbers<[1], [0], [0], [1], [0, 0, 1, 1], [], []>} : vector<16x16xbf16>, vector<16x16xbf16>, vector<16x16xf32> -> vector<16x16xf32>
    %249 = vector.extract_strided_slice %224 {offsets = [112, 0], sizes = [16, 16], strides = [1, 1]} : vector<128x16xbf16> to vector<16x16xbf16>
    %250 = vector.extract_strided_slice %239 {offsets = [0, 48], sizes = [16, 16], strides = [1, 1]} : vector<16x64xbf16> to vector<16x16xbf16>
    %cst_87 = arith.constant dense<0.000000e+00> : vector<16x16xf32>
    %251 = tpu.matmul %249, %250, %cst_87 {dimension_numbers = #tpu.dot_dimension_numbers<[1], [0], [0], [1], [0, 0, 1, 1], [], []>} : vector<16x16xbf16>, vector<16x16xbf16>, vector<16x16xf32> -> vector<16x16xf32>
    %252 = tpu.concatenate %242, %245, %248, %251 in 1 : vector<16x16xf32>, vector<16x16xf32>, vector<16x16xf32>, vector<16x16xf32> -> vector<16x64xf32>
    %253 = tpu.concatenate %238, %252 in 0 : vector<16x64xf32>, vector<16x64xf32> -> vector<32x64xf32>
    %254 = arith.truncf %253 : vector<32x64xf32> to vector<32x64xbf16>
    %cst_88 = arith.constant dense<0.000000e+00> : vector<32x64xf32>
    %255 = tpu.matmul %254, %183, %cst_88 {dimension_numbers = #tpu.dot_dimension_numbers<[1], [0], [0], [1], [0, 0, 1, 1], [], []>} : vector<32x64xbf16>, vector<64x64xbf16>, vector<32x64xf32> -> vector<32x64xf32>
    %256 = vector.broadcast %184 : vector<1x64xf32> to vector<32x64xf32>
    %257 = arith.addf %255, %256 : vector<32x64xf32>
    %258 = arith.addf %168, %257 : vector<32x64xf32>
    %259 = vector.extract_strided_slice %170 {offsets = [2, 0], sizes = [1, 64], strides = [1, 1]} : vector<8x192xf32> to vector<1x64xf32>
    %260 = vector.extract_strided_slice %170 {offsets = [3, 0], sizes = [1, 64], strides = [1, 1]} : vector<8x192xf32> to vector<1x64xf32>
    %cst_89 = arith.constant dense<0.000000e+00> : vector<32xf32>
    %261 = vector.multi_reduction <add>, %258, %cst_89 [1] : vector<32x64xf32> to vector<32xf32>
    %262 = vector.shape_cast %261 : vector<32xf32> to vector<32x1xf32>
    %cst_90 = arith.constant 6.400000e+01 : f32
    %263 = vector.broadcast %cst_90 : f32 to vector<32x1xf32>
    %264 = arith.divf %262, %263 : vector<32x1xf32>
    %265 = vector.broadcast %264 : vector<32x1xf32> to vector<32x64xf32>
    %266 = arith.subf %258, %265 : vector<32x64xf32>
    %267 = arith.mulf %266, %266 : vector<32x64xf32>
    %cst_91 = arith.constant dense<0.000000e+00> : vector<32xf32>
    %268 = vector.multi_reduction <add>, %267, %cst_91 [1] : vector<32x64xf32> to vector<32xf32>
    %269 = vector.shape_cast %268 : vector<32xf32> to vector<32x1xf32>
    %cst_92 = arith.constant 6.400000e+01 : f32
    %270 = vector.broadcast %cst_92 : f32 to vector<32x1xf32>
    %271 = arith.divf %269, %270 : vector<32x1xf32>
    %cst_93 = arith.constant 9.99999974E-6 : f32
    %272 = vector.broadcast %cst_93 : f32 to vector<32x1xf32>
    %273 = arith.addf %271, %272 : vector<32x1xf32>
    %274 = math.rsqrt %273 : vector<32x1xf32>
    %275 = vector.broadcast %274 : vector<32x1xf32> to vector<32x64xf32>
    %276 = arith.mulf %266, %275 : vector<32x64xf32>
    %277 = vector.broadcast %259 : vector<1x64xf32> to vector<32x64xf32>
    %278 = arith.mulf %276, %277 : vector<32x64xf32>
    %279 = vector.broadcast %260 : vector<1x64xf32> to vector<32x64xf32>
    %280 = arith.addf %278, %279 : vector<32x64xf32>
    %c1_94 = arith.constant 1 : index
    %c0_95 = arith.constant 0 : index
    %c0_96 = arith.constant 0 : index
    %281 = vector.load %arg7[%c1_94, %c0_95, %c0_96] : memref<2x64x128xbf16, #tpu.memory_space<vmem>>, vector<1x64x128xbf16>
    %282 = vector.shape_cast %281 : vector<1x64x128xbf16> to vector<64x128xbf16>
    %283 = arith.truncf %280 : vector<32x64xf32> to vector<32x64xbf16>
    %cst_97 = arith.constant dense<0.000000e+00> : vector<32x128xf32>
    %284 = tpu.matmul %283, %282, %cst_97 {dimension_numbers = #tpu.dot_dimension_numbers<[1], [0], [0], [1], [0, 0, 1, 1], [], []>} : vector<32x64xbf16>, vector<64x128xbf16>, vector<32x128xf32> -> vector<32x128xf32>
    %285 = vector.extract_strided_slice %170 {offsets = [4, 0], sizes = [1, 128], strides = [1, 1]} : vector<8x192xf32> to vector<1x128xf32>
    %286 = vector.broadcast %285 : vector<1x128xf32> to vector<32x128xf32>
    %287 = arith.addf %284, %286 : vector<32x128xf32>
    %cst_98 = arith.constant 0.000000e+00 : f32
    %288 = vector.broadcast %cst_98 : f32 to vector<32x128xf32>
    %289 = arith.maximumf %287, %288 : vector<32x128xf32>
    %c1_99 = arith.constant 1 : index
    %c0_100 = arith.constant 0 : index
    %c0_101 = arith.constant 0 : index
    %290 = vector.load %arg8[%c1_99, %c0_100, %c0_101] : memref<2x128x64xbf16, #tpu.memory_space<vmem>>, vector<1x128x64xbf16>
    %291 = vector.shape_cast %290 : vector<1x128x64xbf16> to vector<128x64xbf16>
    %292 = arith.truncf %289 : vector<32x128xf32> to vector<32x128xbf16>
    %cst_102 = arith.constant dense<0.000000e+00> : vector<32x64xf32>
    %293 = tpu.matmul %292, %291, %cst_102 {dimension_numbers = #tpu.dot_dimension_numbers<[1], [0], [0], [1], [0, 0, 1, 1], [], []>} : vector<32x128xbf16>, vector<128x64xbf16>, vector<32x64xf32> -> vector<32x64xf32>
    %294 = vector.extract_strided_slice %170 {offsets = [5, 0], sizes = [1, 64], strides = [1, 1]} : vector<8x192xf32> to vector<1x64xf32>
    %295 = vector.broadcast %294 : vector<1x64xf32> to vector<32x64xf32>
    %296 = arith.addf %293, %295 : vector<32x64xf32>
    %297 = arith.addf %280, %296 : vector<32x64xf32>
    %298 = vector.extract_strided_slice %170 {offsets = [6, 0], sizes = [1, 64], strides = [1, 1]} : vector<8x192xf32> to vector<1x64xf32>
    %299 = vector.extract_strided_slice %170 {offsets = [7, 0], sizes = [1, 64], strides = [1, 1]} : vector<8x192xf32> to vector<1x64xf32>
    %cst_103 = arith.constant dense<0.000000e+00> : vector<32xf32>
    %300 = vector.multi_reduction <add>, %297, %cst_103 [1] : vector<32x64xf32> to vector<32xf32>
    %301 = vector.shape_cast %300 : vector<32xf32> to vector<32x1xf32>
    %cst_104 = arith.constant 6.400000e+01 : f32
    %302 = vector.broadcast %cst_104 : f32 to vector<32x1xf32>
    %303 = arith.divf %301, %302 : vector<32x1xf32>
    %304 = vector.broadcast %303 : vector<32x1xf32> to vector<32x64xf32>
    %305 = arith.subf %297, %304 : vector<32x64xf32>
    %306 = arith.mulf %305, %305 : vector<32x64xf32>
    %cst_105 = arith.constant dense<0.000000e+00> : vector<32xf32>
    %307 = vector.multi_reduction <add>, %306, %cst_105 [1] : vector<32x64xf32> to vector<32xf32>
    %308 = vector.shape_cast %307 : vector<32xf32> to vector<32x1xf32>
    %cst_106 = arith.constant 6.400000e+01 : f32
    %309 = vector.broadcast %cst_106 : f32 to vector<32x1xf32>
    %310 = arith.divf %308, %309 : vector<32x1xf32>
    %cst_107 = arith.constant 9.99999974E-6 : f32
    %311 = vector.broadcast %cst_107 : f32 to vector<32x1xf32>
    %312 = arith.addf %310, %311 : vector<32x1xf32>
    %313 = math.rsqrt %312 : vector<32x1xf32>
    %314 = vector.broadcast %313 : vector<32x1xf32> to vector<32x64xf32>
    %315 = arith.mulf %305, %314 : vector<32x64xf32>
    %316 = vector.broadcast %298 : vector<1x64xf32> to vector<32x64xf32>
    %317 = arith.mulf %315, %316 : vector<32x64xf32>
    %318 = vector.broadcast %299 : vector<1x64xf32> to vector<32x64xf32>
    %319 = arith.addf %317, %318 : vector<32x64xf32>
    %320 = vector.extract_strided_slice %17 {offsets = [0, 0], sizes = [1, 64], strides = [1, 1]} : vector<5x128xf32> to vector<1x64xf32>
    %321 = vector.extract_strided_slice %17 {offsets = [1, 0], sizes = [1, 64], strides = [1, 1]} : vector<5x128xf32> to vector<1x64xf32>
    %cst_108 = arith.constant dense<0.000000e+00> : vector<32xf32>
    %322 = vector.multi_reduction <add>, %319, %cst_108 [1] : vector<32x64xf32> to vector<32xf32>
    %323 = vector.shape_cast %322 : vector<32xf32> to vector<32x1xf32>
    %cst_109 = arith.constant 6.400000e+01 : f32
    %324 = vector.broadcast %cst_109 : f32 to vector<32x1xf32>
    %325 = arith.divf %323, %324 : vector<32x1xf32>
    %326 = vector.broadcast %325 : vector<32x1xf32> to vector<32x64xf32>
    %327 = arith.subf %319, %326 : vector<32x64xf32>
    %328 = arith.mulf %327, %327 : vector<32x64xf32>
    %cst_110 = arith.constant dense<0.000000e+00> : vector<32xf32>
    %329 = vector.multi_reduction <add>, %328, %cst_110 [1] : vector<32x64xf32> to vector<32xf32>
    %330 = vector.shape_cast %329 : vector<32xf32> to vector<32x1xf32>
    %cst_111 = arith.constant 6.400000e+01 : f32
    %331 = vector.broadcast %cst_111 : f32 to vector<32x1xf32>
    %332 = arith.divf %330, %331 : vector<32x1xf32>
    %cst_112 = arith.constant 9.99999974E-6 : f32
    %333 = vector.broadcast %cst_112 : f32 to vector<32x1xf32>
    %334 = arith.addf %332, %333 : vector<32x1xf32>
    %335 = math.rsqrt %334 : vector<32x1xf32>
    %336 = vector.broadcast %335 : vector<32x1xf32> to vector<32x64xf32>
    %337 = arith.mulf %327, %336 : vector<32x64xf32>
    %338 = vector.broadcast %320 : vector<1x64xf32> to vector<32x64xf32>
    %339 = arith.mulf %337, %338 : vector<32x64xf32>
    %340 = vector.broadcast %321 : vector<1x64xf32> to vector<32x64xf32>
    %341 = arith.addf %339, %340 : vector<32x64xf32>
    %c0_113 = arith.constant 0 : index
    %c0_114 = arith.constant 0 : index
    %c0_115 = arith.constant 0 : index
    %342 = vector.load %arg19[%c0_113, %c0_114, %c0_115] : memref<2x13x192xf32, #tpu.memory_space<vmem>>, vector<1x13x192xf32>
    %343 = vector.shape_cast %342 : vector<1x13x192xf32> to vector<13x192xf32>
    %c0_116 = arith.constant 0 : index
    %c0_117 = arith.constant 0 : index
    %c0_118 = arith.constant 0 : index
    %344 = vector.load %arg9[%c0_116, %c0_117, %c0_118] : memref<2x64x192xbf16, #tpu.memory_space<vmem>>, vector<1x64x192xbf16>
    %345 = vector.shape_cast %344 : vector<1x64x192xbf16> to vector<64x192xbf16>
    %346 = arith.truncf %16 : vector<32x64xf32> to vector<32x64xbf16>
    %cst_119 = arith.constant dense<0.000000e+00> : vector<32x192xf32>
    %347 = tpu.matmul %346, %345, %cst_119 {dimension_numbers = #tpu.dot_dimension_numbers<[1], [0], [0], [1], [0, 0, 1, 1], [], []>} : vector<32x64xbf16>, vector<64x192xbf16>, vector<32x192xf32> -> vector<32x192xf32>
    %348 = vector.extract_strided_slice %343 {offsets = [0, 0], sizes = [1, 192], strides = [1, 1]} : vector<13x192xf32> to vector<1x192xf32>
    %349 = vector.broadcast %348 : vector<1x192xf32> to vector<32x192xf32>
    %350 = arith.addf %347, %349 : vector<32x192xf32>
    %351 = arith.truncf %350 : vector<32x192xf32> to vector<32x192xbf16>
    %352 = vector.extract_strided_slice %351 {offsets = [0, 0], sizes = [32, 64], strides = [1, 1]} : vector<32x192xbf16> to vector<32x64xbf16>
    %353 = vector.extract_strided_slice %351 {offsets = [0, 64], sizes = [32, 64], strides = [1, 1]} : vector<32x192xbf16> to vector<32x64xbf16>
    %354 = vector.extract_strided_slice %351 {offsets = [0, 128], sizes = [32, 64], strides = [1, 1]} : vector<32x192xbf16> to vector<32x64xbf16>
    %c0_120 = arith.constant 0 : index
    %c0_121 = arith.constant 0 : index
    %c0_122 = arith.constant 0 : index
    %355 = vector.load %arg10[%c0_120, %c0_121, %c0_122] : memref<2x64x64xbf16, #tpu.memory_space<vmem>>, vector<1x64x64xbf16>
    %356 = vector.shape_cast %355 : vector<1x64x64xbf16> to vector<64x64xbf16>
    %357 = vector.extract_strided_slice %343 {offsets = [1, 0], sizes = [1, 64], strides = [1, 1]} : vector<13x192xf32> to vector<1x64xf32>
    %358 = vector.extract_strided_slice %352 {offsets = [0, 0], sizes = [16, 64], strides = [1, 1]} : vector<32x64xbf16> to vector<16x64xbf16>
    %359 = vector.extract_strided_slice %353 {offsets = [0, 0], sizes = [16, 64], strides = [1, 1]} : vector<32x64xbf16> to vector<16x64xbf16>
    %360 = vector.extract_strided_slice %358 {offsets = [0, 0], sizes = [16, 16], strides = [1, 1]} : vector<16x64xbf16> to vector<16x16xbf16>
    %361 = vector.extract_strided_slice %359 {offsets = [0, 0], sizes = [16, 16], strides = [1, 1]} : vector<16x64xbf16> to vector<16x16xbf16>
    %cst_123 = arith.constant dense<0.000000e+00> : vector<16x16xf32>
    %362 = tpu.matmul %360, %361, %cst_123 {dimension_numbers = #tpu.dot_dimension_numbers<[1], [1], [0], [0], [0, 0, 1, 0], [], []>} : vector<16x16xbf16>, vector<16x16xbf16>, vector<16x16xf32> -> vector<16x16xf32>
    %363 = vector.extract_strided_slice %358 {offsets = [0, 16], sizes = [16, 16], strides = [1, 1]} : vector<16x64xbf16> to vector<16x16xbf16>
    %364 = vector.extract_strided_slice %359 {offsets = [0, 16], sizes = [16, 16], strides = [1, 1]} : vector<16x64xbf16> to vector<16x16xbf16>
    %cst_124 = arith.constant dense<0.000000e+00> : vector<16x16xf32>
    %365 = tpu.matmul %363, %364, %cst_124 {dimension_numbers = #tpu.dot_dimension_numbers<[1], [1], [0], [0], [0, 0, 1, 0], [], []>} : vector<16x16xbf16>, vector<16x16xbf16>, vector<16x16xf32> -> vector<16x16xf32>
    %366 = vector.extract_strided_slice %358 {offsets = [0, 32], sizes = [16, 16], strides = [1, 1]} : vector<16x64xbf16> to vector<16x16xbf16>
    %367 = vector.extract_strided_slice %359 {offsets = [0, 32], sizes = [16, 16], strides = [1, 1]} : vector<16x64xbf16> to vector<16x16xbf16>
    %cst_125 = arith.constant dense<0.000000e+00> : vector<16x16xf32>
    %368 = tpu.matmul %366, %367, %cst_125 {dimension_numbers = #tpu.dot_dimension_numbers<[1], [1], [0], [0], [0, 0, 1, 0], [], []>} : vector<16x16xbf16>, vector<16x16xbf16>, vector<16x16xf32> -> vector<16x16xf32>
    %369 = vector.extract_strided_slice %358 {offsets = [0, 48], sizes = [16, 16], strides = [1, 1]} : vector<16x64xbf16> to vector<16x16xbf16>
    %370 = vector.extract_strided_slice %359 {offsets = [0, 48], sizes = [16, 16], strides = [1, 1]} : vector<16x64xbf16> to vector<16x16xbf16>
    %cst_126 = arith.constant dense<0.000000e+00> : vector<16x16xf32>
    %371 = tpu.matmul %369, %370, %cst_126 {dimension_numbers = #tpu.dot_dimension_numbers<[1], [1], [0], [0], [0, 0, 1, 0], [], []>} : vector<16x16xbf16>, vector<16x16xbf16>, vector<16x16xf32> -> vector<16x16xf32>
    %372 = vector.extract_strided_slice %352 {offsets = [16, 0], sizes = [16, 64], strides = [1, 1]} : vector<32x64xbf16> to vector<16x64xbf16>
    %373 = vector.extract_strided_slice %353 {offsets = [16, 0], sizes = [16, 64], strides = [1, 1]} : vector<32x64xbf16> to vector<16x64xbf16>
    %374 = vector.extract_strided_slice %372 {offsets = [0, 0], sizes = [16, 16], strides = [1, 1]} : vector<16x64xbf16> to vector<16x16xbf16>
    %375 = vector.extract_strided_slice %373 {offsets = [0, 0], sizes = [16, 16], strides = [1, 1]} : vector<16x64xbf16> to vector<16x16xbf16>
    %cst_127 = arith.constant dense<0.000000e+00> : vector<16x16xf32>
    %376 = tpu.matmul %374, %375, %cst_127 {dimension_numbers = #tpu.dot_dimension_numbers<[1], [1], [0], [0], [0, 0, 1, 0], [], []>} : vector<16x16xbf16>, vector<16x16xbf16>, vector<16x16xf32> -> vector<16x16xf32>
    %377 = vector.extract_strided_slice %372 {offsets = [0, 16], sizes = [16, 16], strides = [1, 1]} : vector<16x64xbf16> to vector<16x16xbf16>
    %378 = vector.extract_strided_slice %373 {offsets = [0, 16], sizes = [16, 16], strides = [1, 1]} : vector<16x64xbf16> to vector<16x16xbf16>
    %cst_128 = arith.constant dense<0.000000e+00> : vector<16x16xf32>
    %379 = tpu.matmul %377, %378, %cst_128 {dimension_numbers = #tpu.dot_dimension_numbers<[1], [1], [0], [0], [0, 0, 1, 0], [], []>} : vector<16x16xbf16>, vector<16x16xbf16>, vector<16x16xf32> -> vector<16x16xf32>
    %380 = vector.extract_strided_slice %372 {offsets = [0, 32], sizes = [16, 16], strides = [1, 1]} : vector<16x64xbf16> to vector<16x16xbf16>
    %381 = vector.extract_strided_slice %373 {offsets = [0, 32], sizes = [16, 16], strides = [1, 1]} : vector<16x64xbf16> to vector<16x16xbf16>
    %cst_129 = arith.constant dense<0.000000e+00> : vector<16x16xf32>
    %382 = tpu.matmul %380, %381, %cst_129 {dimension_numbers = #tpu.dot_dimension_numbers<[1], [1], [0], [0], [0, 0, 1, 0], [], []>} : vector<16x16xbf16>, vector<16x16xbf16>, vector<16x16xf32> -> vector<16x16xf32>
    %383 = vector.extract_strided_slice %372 {offsets = [0, 48], sizes = [16, 16], strides = [1, 1]} : vector<16x64xbf16> to vector<16x16xbf16>
    %384 = vector.extract_strided_slice %373 {offsets = [0, 48], sizes = [16, 16], strides = [1, 1]} : vector<16x64xbf16> to vector<16x16xbf16>
    %cst_130 = arith.constant dense<0.000000e+00> : vector<16x16xf32>
    %385 = tpu.matmul %383, %384, %cst_130 {dimension_numbers = #tpu.dot_dimension_numbers<[1], [1], [0], [0], [0, 0, 1, 0], [], []>} : vector<16x16xbf16>, vector<16x16xbf16>, vector<16x16xf32> -> vector<16x16xf32>
    %386 = tpu.concatenate %362, %365, %368, %371, %376, %379, %382, %385 in 0 : vector<16x16xf32>, vector<16x16xf32>, vector<16x16xf32>, vector<16x16xf32>, vector<16x16xf32>, vector<16x16xf32>, vector<16x16xf32>, vector<16x16xf32> -> vector<128x16xf32>
    %cst_131 = arith.constant dense<0xFF800000> : vector<128xf32>
    %387 = vector.multi_reduction <maximumf>, %386, %cst_131 [1] : vector<128x16xf32> to vector<128xf32>
    %388 = vector.shape_cast %387 : vector<128xf32> to vector<128x1xf32>
    %389 = vector.broadcast %388 : vector<128x1xf32> to vector<128x16xf32>
    %390 = arith.subf %386, %389 : vector<128x16xf32>
    %391 = math.exp %390 : vector<128x16xf32>
    %cst_132 = arith.constant dense<0.000000e+00> : vector<128xf32>
    %392 = vector.multi_reduction <add>, %391, %cst_132 [1] : vector<128x16xf32> to vector<128xf32>
    %393 = vector.shape_cast %392 : vector<128xf32> to vector<128x1xf32>
    %394 = tpu.reciprocal %393 {approx = true} : vector<128x1xf32> -> vector<128x1xf32>
    %395 = vector.broadcast %394 : vector<128x1xf32> to vector<128x16xf32>
    %396 = arith.mulf %391, %395 : vector<128x16xf32>
    %397 = arith.truncf %396 : vector<128x16xf32> to vector<128x16xbf16>
    %398 = vector.extract_strided_slice %354 {offsets = [0, 0], sizes = [16, 64], strides = [1, 1]} : vector<32x64xbf16> to vector<16x64xbf16>
    %399 = vector.extract_strided_slice %397 {offsets = [0, 0], sizes = [16, 16], strides = [1, 1]} : vector<128x16xbf16> to vector<16x16xbf16>
    %400 = vector.extract_strided_slice %398 {offsets = [0, 0], sizes = [16, 16], strides = [1, 1]} : vector<16x64xbf16> to vector<16x16xbf16>
    %cst_133 = arith.constant dense<0.000000e+00> : vector<16x16xf32>
    %401 = tpu.matmul %399, %400, %cst_133 {dimension_numbers = #tpu.dot_dimension_numbers<[1], [0], [0], [1], [0, 0, 1, 1], [], []>} : vector<16x16xbf16>, vector<16x16xbf16>, vector<16x16xf32> -> vector<16x16xf32>
    %402 = vector.extract_strided_slice %397 {offsets = [16, 0], sizes = [16, 16], strides = [1, 1]} : vector<128x16xbf16> to vector<16x16xbf16>
    %403 = vector.extract_strided_slice %398 {offsets = [0, 16], sizes = [16, 16], strides = [1, 1]} : vector<16x64xbf16> to vector<16x16xbf16>
    %cst_134 = arith.constant dense<0.000000e+00> : vector<16x16xf32>
    %404 = tpu.matmul %402, %403, %cst_134 {dimension_numbers = #tpu.dot_dimension_numbers<[1], [0], [0], [1], [0, 0, 1, 1], [], []>} : vector<16x16xbf16>, vector<16x16xbf16>, vector<16x16xf32> -> vector<16x16xf32>
    %405 = vector.extract_strided_slice %397 {offsets = [32, 0], sizes = [16, 16], strides = [1, 1]} : vector<128x16xbf16> to vector<16x16xbf16>
    %406 = vector.extract_strided_slice %398 {offsets = [0, 32], sizes = [16, 16], strides = [1, 1]} : vector<16x64xbf16> to vector<16x16xbf16>
    %cst_135 = arith.constant dense<0.000000e+00> : vector<16x16xf32>
    %407 = tpu.matmul %405, %406, %cst_135 {dimension_numbers = #tpu.dot_dimension_numbers<[1], [0], [0], [1], [0, 0, 1, 1], [], []>} : vector<16x16xbf16>, vector<16x16xbf16>, vector<16x16xf32> -> vector<16x16xf32>
    %408 = vector.extract_strided_slice %397 {offsets = [48, 0], sizes = [16, 16], strides = [1, 1]} : vector<128x16xbf16> to vector<16x16xbf16>
    %409 = vector.extract_strided_slice %398 {offsets = [0, 48], sizes = [16, 16], strides = [1, 1]} : vector<16x64xbf16> to vector<16x16xbf16>
    %cst_136 = arith.constant dense<0.000000e+00> : vector<16x16xf32>
    %410 = tpu.matmul %408, %409, %cst_136 {dimension_numbers = #tpu.dot_dimension_numbers<[1], [0], [0], [1], [0, 0, 1, 1], [], []>} : vector<16x16xbf16>, vector<16x16xbf16>, vector<16x16xf32> -> vector<16x16xf32>
    %411 = tpu.concatenate %401, %404, %407, %410 in 1 : vector<16x16xf32>, vector<16x16xf32>, vector<16x16xf32>, vector<16x16xf32> -> vector<16x64xf32>
    %412 = vector.extract_strided_slice %354 {offsets = [16, 0], sizes = [16, 64], strides = [1, 1]} : vector<32x64xbf16> to vector<16x64xbf16>
    %413 = vector.extract_strided_slice %397 {offsets = [64, 0], sizes = [16, 16], strides = [1, 1]} : vector<128x16xbf16> to vector<16x16xbf16>
    %414 = vector.extract_strided_slice %412 {offsets = [0, 0], sizes = [16, 16], strides = [1, 1]} : vector<16x64xbf16> to vector<16x16xbf16>
    %cst_137 = arith.constant dense<0.000000e+00> : vector<16x16xf32>
    %415 = tpu.matmul %413, %414, %cst_137 {dimension_numbers = #tpu.dot_dimension_numbers<[1], [0], [0], [1], [0, 0, 1, 1], [], []>} : vector<16x16xbf16>, vector<16x16xbf16>, vector<16x16xf32> -> vector<16x16xf32>
    %416 = vector.extract_strided_slice %397 {offsets = [80, 0], sizes = [16, 16], strides = [1, 1]} : vector<128x16xbf16> to vector<16x16xbf16>
    %417 = vector.extract_strided_slice %412 {offsets = [0, 16], sizes = [16, 16], strides = [1, 1]} : vector<16x64xbf16> to vector<16x16xbf16>
    %cst_138 = arith.constant dense<0.000000e+00> : vector<16x16xf32>
    %418 = tpu.matmul %416, %417, %cst_138 {dimension_numbers = #tpu.dot_dimension_numbers<[1], [0], [0], [1], [0, 0, 1, 1], [], []>} : vector<16x16xbf16>, vector<16x16xbf16>, vector<16x16xf32> -> vector<16x16xf32>
    %419 = vector.extract_strided_slice %397 {offsets = [96, 0], sizes = [16, 16], strides = [1, 1]} : vector<128x16xbf16> to vector<16x16xbf16>
    %420 = vector.extract_strided_slice %412 {offsets = [0, 32], sizes = [16, 16], strides = [1, 1]} : vector<16x64xbf16> to vector<16x16xbf16>
    %cst_139 = arith.constant dense<0.000000e+00> : vector<16x16xf32>
    %421 = tpu.matmul %419, %420, %cst_139 {dimension_numbers = #tpu.dot_dimension_numbers<[1], [0], [0], [1], [0, 0, 1, 1], [], []>} : vector<16x16xbf16>, vector<16x16xbf16>, vector<16x16xf32> -> vector<16x16xf32>
    %422 = vector.extract_strided_slice %397 {offsets = [112, 0], sizes = [16, 16], strides = [1, 1]} : vector<128x16xbf16> to vector<16x16xbf16>
    %423 = vector.extract_strided_slice %412 {offsets = [0, 48], sizes = [16, 16], strides = [1, 1]} : vector<16x64xbf16> to vector<16x16xbf16>
    %cst_140 = arith.constant dense<0.000000e+00> : vector<16x16xf32>
    %424 = tpu.matmul %422, %423, %cst_140 {dimension_numbers = #tpu.dot_dimension_numbers<[1], [0], [0], [1], [0, 0, 1, 1], [], []>} : vector<16x16xbf16>, vector<16x16xbf16>, vector<16x16xf32> -> vector<16x16xf32>
    %425 = tpu.concatenate %415, %418, %421, %424 in 1 : vector<16x16xf32>, vector<16x16xf32>, vector<16x16xf32>, vector<16x16xf32> -> vector<16x64xf32>
    %426 = tpu.concatenate %411, %425 in 0 : vector<16x64xf32>, vector<16x64xf32> -> vector<32x64xf32>
    %427 = arith.truncf %426 : vector<32x64xf32> to vector<32x64xbf16>
    %cst_141 = arith.constant dense<0.000000e+00> : vector<32x64xf32>
    %428 = tpu.matmul %427, %356, %cst_141 {dimension_numbers = #tpu.dot_dimension_numbers<[1], [0], [0], [1], [0, 0, 1, 1], [], []>} : vector<32x64xbf16>, vector<64x64xbf16>, vector<32x64xf32> -> vector<32x64xf32>
    %429 = vector.broadcast %357 : vector<1x64xf32> to vector<32x64xf32>
    %430 = arith.addf %428, %429 : vector<32x64xf32>
    %431 = arith.addf %16, %430 : vector<32x64xf32>
    %432 = vector.extract_strided_slice %343 {offsets = [2, 0], sizes = [1, 64], strides = [1, 1]} : vector<13x192xf32> to vector<1x64xf32>
    %433 = vector.extract_strided_slice %343 {offsets = [3, 0], sizes = [1, 64], strides = [1, 1]} : vector<13x192xf32> to vector<1x64xf32>
    %cst_142 = arith.constant dense<0.000000e+00> : vector<32xf32>
    %434 = vector.multi_reduction <add>, %431, %cst_142 [1] : vector<32x64xf32> to vector<32xf32>
    %435 = vector.shape_cast %434 : vector<32xf32> to vector<32x1xf32>
    %cst_143 = arith.constant 6.400000e+01 : f32
    %436 = vector.broadcast %cst_143 : f32 to vector<32x1xf32>
    %437 = arith.divf %435, %436 : vector<32x1xf32>
    %438 = vector.broadcast %437 : vector<32x1xf32> to vector<32x64xf32>
    %439 = arith.subf %431, %438 : vector<32x64xf32>
    %440 = arith.mulf %439, %439 : vector<32x64xf32>
    %cst_144 = arith.constant dense<0.000000e+00> : vector<32xf32>
    %441 = vector.multi_reduction <add>, %440, %cst_144 [1] : vector<32x64xf32> to vector<32xf32>
    %442 = vector.shape_cast %441 : vector<32xf32> to vector<32x1xf32>
    %cst_145 = arith.constant 6.400000e+01 : f32
    %443 = vector.broadcast %cst_145 : f32 to vector<32x1xf32>
    %444 = arith.divf %442, %443 : vector<32x1xf32>
    %cst_146 = arith.constant 9.99999974E-6 : f32
    %445 = vector.broadcast %cst_146 : f32 to vector<32x1xf32>
    %446 = arith.addf %444, %445 : vector<32x1xf32>
    %447 = math.rsqrt %446 : vector<32x1xf32>
    %448 = vector.broadcast %447 : vector<32x1xf32> to vector<32x64xf32>
    %449 = arith.mulf %439, %448 : vector<32x64xf32>
    %450 = vector.broadcast %432 : vector<1x64xf32> to vector<32x64xf32>
    %451 = arith.mulf %449, %450 : vector<32x64xf32>
    %452 = vector.broadcast %433 : vector<1x64xf32> to vector<32x64xf32>
    %453 = arith.addf %451, %452 : vector<32x64xf32>
    %c0_147 = arith.constant 0 : index
    %c0_148 = arith.constant 0 : index
    %c0_149 = arith.constant 0 : index
    %454 = vector.load %arg11[%c0_147, %c0_148, %c0_149] : memref<2x64x64xbf16, #tpu.memory_space<vmem>>, vector<1x64x64xbf16>
    %455 = vector.shape_cast %454 : vector<1x64x64xbf16> to vector<64x64xbf16>
    %456 = arith.truncf %453 : vector<32x64xf32> to vector<32x64xbf16>
    %cst_150 = arith.constant dense<0.000000e+00> : vector<32x64xf32>
    %457 = tpu.matmul %456, %455, %cst_150 {dimension_numbers = #tpu.dot_dimension_numbers<[1], [0], [0], [1], [0, 0, 1, 1], [], []>} : vector<32x64xbf16>, vector<64x64xbf16>, vector<32x64xf32> -> vector<32x64xf32>
    %458 = vector.extract_strided_slice %343 {offsets = [4, 0], sizes = [1, 64], strides = [1, 1]} : vector<13x192xf32> to vector<1x64xf32>
    %459 = vector.broadcast %458 : vector<1x64xf32> to vector<32x64xf32>
    %460 = arith.addf %457, %459 : vector<32x64xf32>
    %461 = arith.truncf %460 : vector<32x64xf32> to vector<32x64xbf16>
    %c0_151 = arith.constant 0 : index
    %c0_152 = arith.constant 0 : index
    %c0_153 = arith.constant 0 : index
    %462 = vector.load %arg12[%c0_151, %c0_152, %c0_153] : memref<2x64x128xbf16, #tpu.memory_space<vmem>>, vector<1x64x128xbf16>
    %463 = vector.shape_cast %462 : vector<1x64x128xbf16> to vector<64x128xbf16>
    %464 = arith.truncf %341 : vector<32x64xf32> to vector<32x64xbf16>
    %cst_154 = arith.constant dense<0.000000e+00> : vector<32x128xf32>
    %465 = tpu.matmul %464, %463, %cst_154 {dimension_numbers = #tpu.dot_dimension_numbers<[1], [0], [0], [1], [0, 0, 1, 1], [], []>} : vector<32x64xbf16>, vector<64x128xbf16>, vector<32x128xf32> -> vector<32x128xf32>
    %466 = vector.extract_strided_slice %343 {offsets = [5, 0], sizes = [1, 128], strides = [1, 1]} : vector<13x192xf32> to vector<1x128xf32>
    %467 = vector.broadcast %466 : vector<1x128xf32> to vector<32x128xf32>
    %468 = arith.addf %465, %467 : vector<32x128xf32>
    %469 = arith.truncf %468 : vector<32x128xf32> to vector<32x128xbf16>
    %470 = vector.extract_strided_slice %469 {offsets = [0, 0], sizes = [32, 64], strides = [1, 1]} : vector<32x128xbf16> to vector<32x64xbf16>
    %471 = vector.extract_strided_slice %469 {offsets = [0, 64], sizes = [32, 64], strides = [1, 1]} : vector<32x128xbf16> to vector<32x64xbf16>
    %c0_155 = arith.constant 0 : index
    %c0_156 = arith.constant 0 : index
    %c0_157 = arith.constant 0 : index
    %472 = vector.load %arg13[%c0_155, %c0_156, %c0_157] : memref<2x64x64xbf16, #tpu.memory_space<vmem>>, vector<1x64x64xbf16>
    %473 = vector.shape_cast %472 : vector<1x64x64xbf16> to vector<64x64xbf16>
    %474 = vector.extract_strided_slice %343 {offsets = [6, 0], sizes = [1, 64], strides = [1, 1]} : vector<13x192xf32> to vector<1x64xf32>
    %475 = vector.extract_strided_slice %461 {offsets = [0, 0], sizes = [16, 64], strides = [1, 1]} : vector<32x64xbf16> to vector<16x64xbf16>
    %476 = vector.extract_strided_slice %470 {offsets = [0, 0], sizes = [16, 64], strides = [1, 1]} : vector<32x64xbf16> to vector<16x64xbf16>
    %477 = vector.extract_strided_slice %475 {offsets = [0, 0], sizes = [16, 16], strides = [1, 1]} : vector<16x64xbf16> to vector<16x16xbf16>
    %478 = vector.extract_strided_slice %476 {offsets = [0, 0], sizes = [16, 16], strides = [1, 1]} : vector<16x64xbf16> to vector<16x16xbf16>
    %cst_158 = arith.constant dense<0.000000e+00> : vector<16x16xf32>
    %479 = tpu.matmul %477, %478, %cst_158 {dimension_numbers = #tpu.dot_dimension_numbers<[1], [1], [0], [0], [0, 0, 1, 0], [], []>} : vector<16x16xbf16>, vector<16x16xbf16>, vector<16x16xf32> -> vector<16x16xf32>
    %480 = vector.extract_strided_slice %475 {offsets = [0, 16], sizes = [16, 16], strides = [1, 1]} : vector<16x64xbf16> to vector<16x16xbf16>
    %481 = vector.extract_strided_slice %476 {offsets = [0, 16], sizes = [16, 16], strides = [1, 1]} : vector<16x64xbf16> to vector<16x16xbf16>
    %cst_159 = arith.constant dense<0.000000e+00> : vector<16x16xf32>
    %482 = tpu.matmul %480, %481, %cst_159 {dimension_numbers = #tpu.dot_dimension_numbers<[1], [1], [0], [0], [0, 0, 1, 0], [], []>} : vector<16x16xbf16>, vector<16x16xbf16>, vector<16x16xf32> -> vector<16x16xf32>
    %483 = vector.extract_strided_slice %475 {offsets = [0, 32], sizes = [16, 16], strides = [1, 1]} : vector<16x64xbf16> to vector<16x16xbf16>
    %484 = vector.extract_strided_slice %476 {offsets = [0, 32], sizes = [16, 16], strides = [1, 1]} : vector<16x64xbf16> to vector<16x16xbf16>
    %cst_160 = arith.constant dense<0.000000e+00> : vector<16x16xf32>
    %485 = tpu.matmul %483, %484, %cst_160 {dimension_numbers = #tpu.dot_dimension_numbers<[1], [1], [0], [0], [0, 0, 1, 0], [], []>} : vector<16x16xbf16>, vector<16x16xbf16>, vector<16x16xf32> -> vector<16x16xf32>
    %486 = vector.extract_strided_slice %475 {offsets = [0, 48], sizes = [16, 16], strides = [1, 1]} : vector<16x64xbf16> to vector<16x16xbf16>
    %487 = vector.extract_strided_slice %476 {offsets = [0, 48], sizes = [16, 16], strides = [1, 1]} : vector<16x64xbf16> to vector<16x16xbf16>
    %cst_161 = arith.constant dense<0.000000e+00> : vector<16x16xf32>
    %488 = tpu.matmul %486, %487, %cst_161 {dimension_numbers = #tpu.dot_dimension_numbers<[1], [1], [0], [0], [0, 0, 1, 0], [], []>} : vector<16x16xbf16>, vector<16x16xbf16>, vector<16x16xf32> -> vector<16x16xf32>
    %489 = vector.extract_strided_slice %461 {offsets = [16, 0], sizes = [16, 64], strides = [1, 1]} : vector<32x64xbf16> to vector<16x64xbf16>
    %490 = vector.extract_strided_slice %470 {offsets = [16, 0], sizes = [16, 64], strides = [1, 1]} : vector<32x64xbf16> to vector<16x64xbf16>
    %491 = vector.extract_strided_slice %489 {offsets = [0, 0], sizes = [16, 16], strides = [1, 1]} : vector<16x64xbf16> to vector<16x16xbf16>
    %492 = vector.extract_strided_slice %490 {offsets = [0, 0], sizes = [16, 16], strides = [1, 1]} : vector<16x64xbf16> to vector<16x16xbf16>
    %cst_162 = arith.constant dense<0.000000e+00> : vector<16x16xf32>
    %493 = tpu.matmul %491, %492, %cst_162 {dimension_numbers = #tpu.dot_dimension_numbers<[1], [1], [0], [0], [0, 0, 1, 0], [], []>} : vector<16x16xbf16>, vector<16x16xbf16>, vector<16x16xf32> -> vector<16x16xf32>
    %494 = vector.extract_strided_slice %489 {offsets = [0, 16], sizes = [16, 16], strides = [1, 1]} : vector<16x64xbf16> to vector<16x16xbf16>
    %495 = vector.extract_strided_slice %490 {offsets = [0, 16], sizes = [16, 16], strides = [1, 1]} : vector<16x64xbf16> to vector<16x16xbf16>
    %cst_163 = arith.constant dense<0.000000e+00> : vector<16x16xf32>
    %496 = tpu.matmul %494, %495, %cst_163 {dimension_numbers = #tpu.dot_dimension_numbers<[1], [1], [0], [0], [0, 0, 1, 0], [], []>} : vector<16x16xbf16>, vector<16x16xbf16>, vector<16x16xf32> -> vector<16x16xf32>
    %497 = vector.extract_strided_slice %489 {offsets = [0, 32], sizes = [16, 16], strides = [1, 1]} : vector<16x64xbf16> to vector<16x16xbf16>
    %498 = vector.extract_strided_slice %490 {offsets = [0, 32], sizes = [16, 16], strides = [1, 1]} : vector<16x64xbf16> to vector<16x16xbf16>
    %cst_164 = arith.constant dense<0.000000e+00> : vector<16x16xf32>
    %499 = tpu.matmul %497, %498, %cst_164 {dimension_numbers = #tpu.dot_dimension_numbers<[1], [1], [0], [0], [0, 0, 1, 0], [], []>} : vector<16x16xbf16>, vector<16x16xbf16>, vector<16x16xf32> -> vector<16x16xf32>
    %500 = vector.extract_strided_slice %489 {offsets = [0, 48], sizes = [16, 16], strides = [1, 1]} : vector<16x64xbf16> to vector<16x16xbf16>
    %501 = vector.extract_strided_slice %490 {offsets = [0, 48], sizes = [16, 16], strides = [1, 1]} : vector<16x64xbf16> to vector<16x16xbf16>
    %cst_165 = arith.constant dense<0.000000e+00> : vector<16x16xf32>
    %502 = tpu.matmul %500, %501, %cst_165 {dimension_numbers = #tpu.dot_dimension_numbers<[1], [1], [0], [0], [0, 0, 1, 0], [], []>} : vector<16x16xbf16>, vector<16x16xbf16>, vector<16x16xf32> -> vector<16x16xf32>
    %503 = tpu.concatenate %479, %482, %485, %488, %493, %496, %499, %502 in 0 : vector<16x16xf32>, vector<16x16xf32>, vector<16x16xf32>, vector<16x16xf32>, vector<16x16xf32>, vector<16x16xf32>, vector<16x16xf32>, vector<16x16xf32> -> vector<128x16xf32>
    %cst_166 = arith.constant dense<0xFF800000> : vector<128xf32>
    %504 = vector.multi_reduction <maximumf>, %503, %cst_166 [1] : vector<128x16xf32> to vector<128xf32>
    %505 = vector.shape_cast %504 : vector<128xf32> to vector<128x1xf32>
    %506 = vector.broadcast %505 : vector<128x1xf32> to vector<128x16xf32>
    %507 = arith.subf %503, %506 : vector<128x16xf32>
    %508 = math.exp %507 : vector<128x16xf32>
    %cst_167 = arith.constant dense<0.000000e+00> : vector<128xf32>
    %509 = vector.multi_reduction <add>, %508, %cst_167 [1] : vector<128x16xf32> to vector<128xf32>
    %510 = vector.shape_cast %509 : vector<128xf32> to vector<128x1xf32>
    %511 = tpu.reciprocal %510 {approx = true} : vector<128x1xf32> -> vector<128x1xf32>
    %512 = vector.broadcast %511 : vector<128x1xf32> to vector<128x16xf32>
    %513 = arith.mulf %508, %512 : vector<128x16xf32>
    %514 = arith.truncf %513 : vector<128x16xf32> to vector<128x16xbf16>
    %515 = vector.extract_strided_slice %471 {offsets = [0, 0], sizes = [16, 64], strides = [1, 1]} : vector<32x64xbf16> to vector<16x64xbf16>
    %516 = vector.extract_strided_slice %514 {offsets = [0, 0], sizes = [16, 16], strides = [1, 1]} : vector<128x16xbf16> to vector<16x16xbf16>
    %517 = vector.extract_strided_slice %515 {offsets = [0, 0], sizes = [16, 16], strides = [1, 1]} : vector<16x64xbf16> to vector<16x16xbf16>
    %cst_168 = arith.constant dense<0.000000e+00> : vector<16x16xf32>
    %518 = tpu.matmul %516, %517, %cst_168 {dimension_numbers = #tpu.dot_dimension_numbers<[1], [0], [0], [1], [0, 0, 1, 1], [], []>} : vector<16x16xbf16>, vector<16x16xbf16>, vector<16x16xf32> -> vector<16x16xf32>
    %519 = vector.extract_strided_slice %514 {offsets = [16, 0], sizes = [16, 16], strides = [1, 1]} : vector<128x16xbf16> to vector<16x16xbf16>
    %520 = vector.extract_strided_slice %515 {offsets = [0, 16], sizes = [16, 16], strides = [1, 1]} : vector<16x64xbf16> to vector<16x16xbf16>
    %cst_169 = arith.constant dense<0.000000e+00> : vector<16x16xf32>
    %521 = tpu.matmul %519, %520, %cst_169 {dimension_numbers = #tpu.dot_dimension_numbers<[1], [0], [0], [1], [0, 0, 1, 1], [], []>} : vector<16x16xbf16>, vector<16x16xbf16>, vector<16x16xf32> -> vector<16x16xf32>
    %522 = vector.extract_strided_slice %514 {offsets = [32, 0], sizes = [16, 16], strides = [1, 1]} : vector<128x16xbf16> to vector<16x16xbf16>
    %523 = vector.extract_strided_slice %515 {offsets = [0, 32], sizes = [16, 16], strides = [1, 1]} : vector<16x64xbf16> to vector<16x16xbf16>
    %cst_170 = arith.constant dense<0.000000e+00> : vector<16x16xf32>
    %524 = tpu.matmul %522, %523, %cst_170 {dimension_numbers = #tpu.dot_dimension_numbers<[1], [0], [0], [1], [0, 0, 1, 1], [], []>} : vector<16x16xbf16>, vector<16x16xbf16>, vector<16x16xf32> -> vector<16x16xf32>
    %525 = vector.extract_strided_slice %514 {offsets = [48, 0], sizes = [16, 16], strides = [1, 1]} : vector<128x16xbf16> to vector<16x16xbf16>
    %526 = vector.extract_strided_slice %515 {offsets = [0, 48], sizes = [16, 16], strides = [1, 1]} : vector<16x64xbf16> to vector<16x16xbf16>
    %cst_171 = arith.constant dense<0.000000e+00> : vector<16x16xf32>
    %527 = tpu.matmul %525, %526, %cst_171 {dimension_numbers = #tpu.dot_dimension_numbers<[1], [0], [0], [1], [0, 0, 1, 1], [], []>} : vector<16x16xbf16>, vector<16x16xbf16>, vector<16x16xf32> -> vector<16x16xf32>
    %528 = tpu.concatenate %518, %521, %524, %527 in 1 : vector<16x16xf32>, vector<16x16xf32>, vector<16x16xf32>, vector<16x16xf32> -> vector<16x64xf32>
    %529 = vector.extract_strided_slice %471 {offsets = [16, 0], sizes = [16, 64], strides = [1, 1]} : vector<32x64xbf16> to vector<16x64xbf16>
    %530 = vector.extract_strided_slice %514 {offsets = [64, 0], sizes = [16, 16], strides = [1, 1]} : vector<128x16xbf16> to vector<16x16xbf16>
    %531 = vector.extract_strided_slice %529 {offsets = [0, 0], sizes = [16, 16], strides = [1, 1]} : vector<16x64xbf16> to vector<16x16xbf16>
    %cst_172 = arith.constant dense<0.000000e+00> : vector<16x16xf32>
    %532 = tpu.matmul %530, %531, %cst_172 {dimension_numbers = #tpu.dot_dimension_numbers<[1], [0], [0], [1], [0, 0, 1, 1], [], []>} : vector<16x16xbf16>, vector<16x16xbf16>, vector<16x16xf32> -> vector<16x16xf32>
    %533 = vector.extract_strided_slice %514 {offsets = [80, 0], sizes = [16, 16], strides = [1, 1]} : vector<128x16xbf16> to vector<16x16xbf16>
    %534 = vector.extract_strided_slice %529 {offsets = [0, 16], sizes = [16, 16], strides = [1, 1]} : vector<16x64xbf16> to vector<16x16xbf16>
    %cst_173 = arith.constant dense<0.000000e+00> : vector<16x16xf32>
    %535 = tpu.matmul %533, %534, %cst_173 {dimension_numbers = #tpu.dot_dimension_numbers<[1], [0], [0], [1], [0, 0, 1, 1], [], []>} : vector<16x16xbf16>, vector<16x16xbf16>, vector<16x16xf32> -> vector<16x16xf32>
    %536 = vector.extract_strided_slice %514 {offsets = [96, 0], sizes = [16, 16], strides = [1, 1]} : vector<128x16xbf16> to vector<16x16xbf16>
    %537 = vector.extract_strided_slice %529 {offsets = [0, 32], sizes = [16, 16], strides = [1, 1]} : vector<16x64xbf16> to vector<16x16xbf16>
    %cst_174 = arith.constant dense<0.000000e+00> : vector<16x16xf32>
    %538 = tpu.matmul %536, %537, %cst_174 {dimension_numbers = #tpu.dot_dimension_numbers<[1], [0], [0], [1], [0, 0, 1, 1], [], []>} : vector<16x16xbf16>, vector<16x16xbf16>, vector<16x16xf32> -> vector<16x16xf32>
    %539 = vector.extract_strided_slice %514 {offsets = [112, 0], sizes = [16, 16], strides = [1, 1]} : vector<128x16xbf16> to vector<16x16xbf16>
    %540 = vector.extract_strided_slice %529 {offsets = [0, 48], sizes = [16, 16], strides = [1, 1]} : vector<16x64xbf16> to vector<16x16xbf16>
    %cst_175 = arith.constant dense<0.000000e+00> : vector<16x16xf32>
    %541 = tpu.matmul %539, %540, %cst_175 {dimension_numbers = #tpu.dot_dimension_numbers<[1], [0], [0], [1], [0, 0, 1, 1], [], []>} : vector<16x16xbf16>, vector<16x16xbf16>, vector<16x16xf32> -> vector<16x16xf32>
    %542 = tpu.concatenate %532, %535, %538, %541 in 1 : vector<16x16xf32>, vector<16x16xf32>, vector<16x16xf32>, vector<16x16xf32> -> vector<16x64xf32>
    %543 = tpu.concatenate %528, %542 in 0 : vector<16x64xf32>, vector<16x64xf32> -> vector<32x64xf32>
    %544 = arith.truncf %543 : vector<32x64xf32> to vector<32x64xbf16>
    %cst_176 = arith.constant dense<0.000000e+00> : vector<32x64xf32>
    %545 = tpu.matmul %544, %473, %cst_176 {dimension_numbers = #tpu.dot_dimension_numbers<[1], [0], [0], [1], [0, 0, 1, 1], [], []>} : vector<32x64xbf16>, vector<64x64xbf16>, vector<32x64xf32> -> vector<32x64xf32>
    %546 = vector.broadcast %474 : vector<1x64xf32> to vector<32x64xf32>
    %547 = arith.addf %545, %546 : vector<32x64xf32>
    %548 = arith.addf %453, %547 : vector<32x64xf32>
    %549 = vector.extract_strided_slice %343 {offsets = [7, 0], sizes = [1, 64], strides = [1, 1]} : vector<13x192xf32> to vector<1x64xf32>
    %550 = vector.extract_strided_slice %343 {offsets = [8, 0], sizes = [1, 64], strides = [1, 1]} : vector<13x192xf32> to vector<1x64xf32>
    %cst_177 = arith.constant dense<0.000000e+00> : vector<32xf32>
    %551 = vector.multi_reduction <add>, %548, %cst_177 [1] : vector<32x64xf32> to vector<32xf32>
    %552 = vector.shape_cast %551 : vector<32xf32> to vector<32x1xf32>
    %cst_178 = arith.constant 6.400000e+01 : f32
    %553 = vector.broadcast %cst_178 : f32 to vector<32x1xf32>
    %554 = arith.divf %552, %553 : vector<32x1xf32>
    %555 = vector.broadcast %554 : vector<32x1xf32> to vector<32x64xf32>
    %556 = arith.subf %548, %555 : vector<32x64xf32>
    %557 = arith.mulf %556, %556 : vector<32x64xf32>
    %cst_179 = arith.constant dense<0.000000e+00> : vector<32xf32>
    %558 = vector.multi_reduction <add>, %557, %cst_179 [1] : vector<32x64xf32> to vector<32xf32>
    %559 = vector.shape_cast %558 : vector<32xf32> to vector<32x1xf32>
    %cst_180 = arith.constant 6.400000e+01 : f32
    %560 = vector.broadcast %cst_180 : f32 to vector<32x1xf32>
    %561 = arith.divf %559, %560 : vector<32x1xf32>
    %cst_181 = arith.constant 9.99999974E-6 : f32
    %562 = vector.broadcast %cst_181 : f32 to vector<32x1xf32>
    %563 = arith.addf %561, %562 : vector<32x1xf32>
    %564 = math.rsqrt %563 : vector<32x1xf32>
    %565 = vector.broadcast %564 : vector<32x1xf32> to vector<32x64xf32>
    %566 = arith.mulf %556, %565 : vector<32x64xf32>
    %567 = vector.broadcast %549 : vector<1x64xf32> to vector<32x64xf32>
    %568 = arith.mulf %566, %567 : vector<32x64xf32>
    %569 = vector.broadcast %550 : vector<1x64xf32> to vector<32x64xf32>
    %570 = arith.addf %568, %569 : vector<32x64xf32>
    %c0_182 = arith.constant 0 : index
    %c0_183 = arith.constant 0 : index
    %c0_184 = arith.constant 0 : index
    %571 = vector.load %arg14[%c0_182, %c0_183, %c0_184] : memref<2x64x128xbf16, #tpu.memory_space<vmem>>, vector<1x64x128xbf16>
    %572 = vector.shape_cast %571 : vector<1x64x128xbf16> to vector<64x128xbf16>
    %573 = arith.truncf %570 : vector<32x64xf32> to vector<32x64xbf16>
    %cst_185 = arith.constant dense<0.000000e+00> : vector<32x128xf32>
    %574 = tpu.matmul %573, %572, %cst_185 {dimension_numbers = #tpu.dot_dimension_numbers<[1], [0], [0], [1], [0, 0, 1, 1], [], []>} : vector<32x64xbf16>, vector<64x128xbf16>, vector<32x128xf32> -> vector<32x128xf32>
    %575 = vector.extract_strided_slice %343 {offsets = [9, 0], sizes = [1, 128], strides = [1, 1]} : vector<13x192xf32> to vector<1x128xf32>
    %576 = vector.broadcast %575 : vector<1x128xf32> to vector<32x128xf32>
    %577 = arith.addf %574, %576 : vector<32x128xf32>
    %cst_186 = arith.constant 0.000000e+00 : f32
    %578 = vector.broadcast %cst_186 : f32 to vector<32x128xf32>
    %579 = arith.maximumf %577, %578 : vector<32x128xf32>
    %c0_187 = arith.constant 0 : index
    %c0_188 = arith.constant 0 : index
    %c0_189 = arith.constant 0 : index
    %580 = vector.load %arg15[%c0_187, %c0_188, %c0_189] : memref<2x128x64xbf16, #tpu.memory_space<vmem>>, vector<1x128x64xbf16>
    %581 = vector.shape_cast %580 : vector<1x128x64xbf16> to vector<128x64xbf16>
    %582 = arith.truncf %579 : vector<32x128xf32> to vector<32x128xbf16>
    %cst_190 = arith.constant dense<0.000000e+00> : vector<32x64xf32>
    %583 = tpu.matmul %582, %581, %cst_190 {dimension_numbers = #tpu.dot_dimension_numbers<[1], [0], [0], [1], [0, 0, 1, 1], [], []>} : vector<32x128xbf16>, vector<128x64xbf16>, vector<32x64xf32> -> vector<32x64xf32>
    %584 = vector.extract_strided_slice %343 {offsets = [10, 0], sizes = [1, 64], strides = [1, 1]} : vector<13x192xf32> to vector<1x64xf32>
    %585 = vector.broadcast %584 : vector<1x64xf32> to vector<32x64xf32>
    %586 = arith.addf %583, %585 : vector<32x64xf32>
    %587 = arith.addf %570, %586 : vector<32x64xf32>
    %588 = vector.extract_strided_slice %343 {offsets = [11, 0], sizes = [1, 64], strides = [1, 1]} : vector<13x192xf32> to vector<1x64xf32>
    %589 = vector.extract_strided_slice %343 {offsets = [12, 0], sizes = [1, 64], strides = [1, 1]} : vector<13x192xf32> to vector<1x64xf32>
    %cst_191 = arith.constant dense<0.000000e+00> : vector<32xf32>
    %590 = vector.multi_reduction <add>, %587, %cst_191 [1] : vector<32x64xf32> to vector<32xf32>
    %591 = vector.shape_cast %590 : vector<32xf32> to vector<32x1xf32>
    %cst_192 = arith.constant 6.400000e+01 : f32
    %592 = vector.broadcast %cst_192 : f32 to vector<32x1xf32>
    %593 = arith.divf %591, %592 : vector<32x1xf32>
    %594 = vector.broadcast %593 : vector<32x1xf32> to vector<32x64xf32>
    %595 = arith.subf %587, %594 : vector<32x64xf32>
    %596 = arith.mulf %595, %595 : vector<32x64xf32>
    %cst_193 = arith.constant dense<0.000000e+00> : vector<32xf32>
    %597 = vector.multi_reduction <add>, %596, %cst_193 [1] : vector<32x64xf32> to vector<32xf32>
    %598 = vector.shape_cast %597 : vector<32xf32> to vector<32x1xf32>
    %cst_194 = arith.constant 6.400000e+01 : f32
    %599 = vector.broadcast %cst_194 : f32 to vector<32x1xf32>
    %600 = arith.divf %598, %599 : vector<32x1xf32>
    %cst_195 = arith.constant 9.99999974E-6 : f32
    %601 = vector.broadcast %cst_195 : f32 to vector<32x1xf32>
    %602 = arith.addf %600, %601 : vector<32x1xf32>
    %603 = math.rsqrt %602 : vector<32x1xf32>
    %604 = vector.broadcast %603 : vector<32x1xf32> to vector<32x64xf32>
    %605 = arith.mulf %595, %604 : vector<32x64xf32>
    %606 = vector.broadcast %588 : vector<1x64xf32> to vector<32x64xf32>
    %607 = arith.mulf %605, %606 : vector<32x64xf32>
    %608 = vector.broadcast %589 : vector<1x64xf32> to vector<32x64xf32>
    %609 = arith.addf %607, %608 : vector<32x64xf32>
    %c1_196 = arith.constant 1 : index
    %c0_197 = arith.constant 0 : index
    %c0_198 = arith.constant 0 : index
    %610 = vector.load %arg19[%c1_196, %c0_197, %c0_198] : memref<2x13x192xf32, #tpu.memory_space<vmem>>, vector<1x13x192xf32>
    %611 = vector.shape_cast %610 : vector<1x13x192xf32> to vector<13x192xf32>
    %c1_199 = arith.constant 1 : index
    %c0_200 = arith.constant 0 : index
    %c0_201 = arith.constant 0 : index
    %612 = vector.load %arg9[%c1_199, %c0_200, %c0_201] : memref<2x64x192xbf16, #tpu.memory_space<vmem>>, vector<1x64x192xbf16>
    %613 = vector.shape_cast %612 : vector<1x64x192xbf16> to vector<64x192xbf16>
    %614 = arith.truncf %609 : vector<32x64xf32> to vector<32x64xbf16>
    %cst_202 = arith.constant dense<0.000000e+00> : vector<32x192xf32>
    %615 = tpu.matmul %614, %613, %cst_202 {dimension_numbers = #tpu.dot_dimension_numbers<[1], [0], [0], [1], [0, 0, 1, 1], [], []>} : vector<32x64xbf16>, vector<64x192xbf16>, vector<32x192xf32> -> vector<32x192xf32>
    %616 = vector.extract_strided_slice %611 {offsets = [0, 0], sizes = [1, 192], strides = [1, 1]} : vector<13x192xf32> to vector<1x192xf32>
    %617 = vector.broadcast %616 : vector<1x192xf32> to vector<32x192xf32>
    %618 = arith.addf %615, %617 : vector<32x192xf32>
    %619 = arith.truncf %618 : vector<32x192xf32> to vector<32x192xbf16>
    %620 = vector.extract_strided_slice %619 {offsets = [0, 0], sizes = [32, 64], strides = [1, 1]} : vector<32x192xbf16> to vector<32x64xbf16>
    %621 = vector.extract_strided_slice %619 {offsets = [0, 64], sizes = [32, 64], strides = [1, 1]} : vector<32x192xbf16> to vector<32x64xbf16>
    %622 = vector.extract_strided_slice %619 {offsets = [0, 128], sizes = [32, 64], strides = [1, 1]} : vector<32x192xbf16> to vector<32x64xbf16>
    %c1_203 = arith.constant 1 : index
    %c0_204 = arith.constant 0 : index
    %c0_205 = arith.constant 0 : index
    %623 = vector.load %arg10[%c1_203, %c0_204, %c0_205] : memref<2x64x64xbf16, #tpu.memory_space<vmem>>, vector<1x64x64xbf16>
    %624 = vector.shape_cast %623 : vector<1x64x64xbf16> to vector<64x64xbf16>
    %625 = vector.extract_strided_slice %611 {offsets = [1, 0], sizes = [1, 64], strides = [1, 1]} : vector<13x192xf32> to vector<1x64xf32>
    %626 = vector.extract_strided_slice %620 {offsets = [0, 0], sizes = [16, 64], strides = [1, 1]} : vector<32x64xbf16> to vector<16x64xbf16>
    %627 = vector.extract_strided_slice %621 {offsets = [0, 0], sizes = [16, 64], strides = [1, 1]} : vector<32x64xbf16> to vector<16x64xbf16>
    %628 = vector.extract_strided_slice %626 {offsets = [0, 0], sizes = [16, 16], strides = [1, 1]} : vector<16x64xbf16> to vector<16x16xbf16>
    %629 = vector.extract_strided_slice %627 {offsets = [0, 0], sizes = [16, 16], strides = [1, 1]} : vector<16x64xbf16> to vector<16x16xbf16>
    %cst_206 = arith.constant dense<0.000000e+00> : vector<16x16xf32>
    %630 = tpu.matmul %628, %629, %cst_206 {dimension_numbers = #tpu.dot_dimension_numbers<[1], [1], [0], [0], [0, 0, 1, 0], [], []>} : vector<16x16xbf16>, vector<16x16xbf16>, vector<16x16xf32> -> vector<16x16xf32>
    %631 = vector.extract_strided_slice %626 {offsets = [0, 16], sizes = [16, 16], strides = [1, 1]} : vector<16x64xbf16> to vector<16x16xbf16>
    %632 = vector.extract_strided_slice %627 {offsets = [0, 16], sizes = [16, 16], strides = [1, 1]} : vector<16x64xbf16> to vector<16x16xbf16>
    %cst_207 = arith.constant dense<0.000000e+00> : vector<16x16xf32>
    %633 = tpu.matmul %631, %632, %cst_207 {dimension_numbers = #tpu.dot_dimension_numbers<[1], [1], [0], [0], [0, 0, 1, 0], [], []>} : vector<16x16xbf16>, vector<16x16xbf16>, vector<16x16xf32> -> vector<16x16xf32>
    %634 = vector.extract_strided_slice %626 {offsets = [0, 32], sizes = [16, 16], strides = [1, 1]} : vector<16x64xbf16> to vector<16x16xbf16>
    %635 = vector.extract_strided_slice %627 {offsets = [0, 32], sizes = [16, 16], strides = [1, 1]} : vector<16x64xbf16> to vector<16x16xbf16>
    %cst_208 = arith.constant dense<0.000000e+00> : vector<16x16xf32>
    %636 = tpu.matmul %634, %635, %cst_208 {dimension_numbers = #tpu.dot_dimension_numbers<[1], [1], [0], [0], [0, 0, 1, 0], [], []>} : vector<16x16xbf16>, vector<16x16xbf16>, vector<16x16xf32> -> vector<16x16xf32>
    %637 = vector.extract_strided_slice %626 {offsets = [0, 48], sizes = [16, 16], strides = [1, 1]} : vector<16x64xbf16> to vector<16x16xbf16>
    %638 = vector.extract_strided_slice %627 {offsets = [0, 48], sizes = [16, 16], strides = [1, 1]} : vector<16x64xbf16> to vector<16x16xbf16>
    %cst_209 = arith.constant dense<0.000000e+00> : vector<16x16xf32>
    %639 = tpu.matmul %637, %638, %cst_209 {dimension_numbers = #tpu.dot_dimension_numbers<[1], [1], [0], [0], [0, 0, 1, 0], [], []>} : vector<16x16xbf16>, vector<16x16xbf16>, vector<16x16xf32> -> vector<16x16xf32>
    %640 = vector.extract_strided_slice %620 {offsets = [16, 0], sizes = [16, 64], strides = [1, 1]} : vector<32x64xbf16> to vector<16x64xbf16>
    %641 = vector.extract_strided_slice %621 {offsets = [16, 0], sizes = [16, 64], strides = [1, 1]} : vector<32x64xbf16> to vector<16x64xbf16>
    %642 = vector.extract_strided_slice %640 {offsets = [0, 0], sizes = [16, 16], strides = [1, 1]} : vector<16x64xbf16> to vector<16x16xbf16>
    %643 = vector.extract_strided_slice %641 {offsets = [0, 0], sizes = [16, 16], strides = [1, 1]} : vector<16x64xbf16> to vector<16x16xbf16>
    %cst_210 = arith.constant dense<0.000000e+00> : vector<16x16xf32>
    %644 = tpu.matmul %642, %643, %cst_210 {dimension_numbers = #tpu.dot_dimension_numbers<[1], [1], [0], [0], [0, 0, 1, 0], [], []>} : vector<16x16xbf16>, vector<16x16xbf16>, vector<16x16xf32> -> vector<16x16xf32>
    %645 = vector.extract_strided_slice %640 {offsets = [0, 16], sizes = [16, 16], strides = [1, 1]} : vector<16x64xbf16> to vector<16x16xbf16>
    %646 = vector.extract_strided_slice %641 {offsets = [0, 16], sizes = [16, 16], strides = [1, 1]} : vector<16x64xbf16> to vector<16x16xbf16>
    %cst_211 = arith.constant dense<0.000000e+00> : vector<16x16xf32>
    %647 = tpu.matmul %645, %646, %cst_211 {dimension_numbers = #tpu.dot_dimension_numbers<[1], [1], [0], [0], [0, 0, 1, 0], [], []>} : vector<16x16xbf16>, vector<16x16xbf16>, vector<16x16xf32> -> vector<16x16xf32>
    %648 = vector.extract_strided_slice %640 {offsets = [0, 32], sizes = [16, 16], strides = [1, 1]} : vector<16x64xbf16> to vector<16x16xbf16>
    %649 = vector.extract_strided_slice %641 {offsets = [0, 32], sizes = [16, 16], strides = [1, 1]} : vector<16x64xbf16> to vector<16x16xbf16>
    %cst_212 = arith.constant dense<0.000000e+00> : vector<16x16xf32>
    %650 = tpu.matmul %648, %649, %cst_212 {dimension_numbers = #tpu.dot_dimension_numbers<[1], [1], [0], [0], [0, 0, 1, 0], [], []>} : vector<16x16xbf16>, vector<16x16xbf16>, vector<16x16xf32> -> vector<16x16xf32>
    %651 = vector.extract_strided_slice %640 {offsets = [0, 48], sizes = [16, 16], strides = [1, 1]} : vector<16x64xbf16> to vector<16x16xbf16>
    %652 = vector.extract_strided_slice %641 {offsets = [0, 48], sizes = [16, 16], strides = [1, 1]} : vector<16x64xbf16> to vector<16x16xbf16>
    %cst_213 = arith.constant dense<0.000000e+00> : vector<16x16xf32>
    %653 = tpu.matmul %651, %652, %cst_213 {dimension_numbers = #tpu.dot_dimension_numbers<[1], [1], [0], [0], [0, 0, 1, 0], [], []>} : vector<16x16xbf16>, vector<16x16xbf16>, vector<16x16xf32> -> vector<16x16xf32>
    %654 = tpu.concatenate %630, %633, %636, %639, %644, %647, %650, %653 in 0 : vector<16x16xf32>, vector<16x16xf32>, vector<16x16xf32>, vector<16x16xf32>, vector<16x16xf32>, vector<16x16xf32>, vector<16x16xf32>, vector<16x16xf32> -> vector<128x16xf32>
    %cst_214 = arith.constant dense<0xFF800000> : vector<128xf32>
    %655 = vector.multi_reduction <maximumf>, %654, %cst_214 [1] : vector<128x16xf32> to vector<128xf32>
    %656 = vector.shape_cast %655 : vector<128xf32> to vector<128x1xf32>
    %657 = vector.broadcast %656 : vector<128x1xf32> to vector<128x16xf32>
    %658 = arith.subf %654, %657 : vector<128x16xf32>
    %659 = math.exp %658 : vector<128x16xf32>
    %cst_215 = arith.constant dense<0.000000e+00> : vector<128xf32>
    %660 = vector.multi_reduction <add>, %659, %cst_215 [1] : vector<128x16xf32> to vector<128xf32>
    %661 = vector.shape_cast %660 : vector<128xf32> to vector<128x1xf32>
    %662 = tpu.reciprocal %661 {approx = true} : vector<128x1xf32> -> vector<128x1xf32>
    %663 = vector.broadcast %662 : vector<128x1xf32> to vector<128x16xf32>
    %664 = arith.mulf %659, %663 : vector<128x16xf32>
    %665 = arith.truncf %664 : vector<128x16xf32> to vector<128x16xbf16>
    %666 = vector.extract_strided_slice %622 {offsets = [0, 0], sizes = [16, 64], strides = [1, 1]} : vector<32x64xbf16> to vector<16x64xbf16>
    %667 = vector.extract_strided_slice %665 {offsets = [0, 0], sizes = [16, 16], strides = [1, 1]} : vector<128x16xbf16> to vector<16x16xbf16>
    %668 = vector.extract_strided_slice %666 {offsets = [0, 0], sizes = [16, 16], strides = [1, 1]} : vector<16x64xbf16> to vector<16x16xbf16>
    %cst_216 = arith.constant dense<0.000000e+00> : vector<16x16xf32>
    %669 = tpu.matmul %667, %668, %cst_216 {dimension_numbers = #tpu.dot_dimension_numbers<[1], [0], [0], [1], [0, 0, 1, 1], [], []>} : vector<16x16xbf16>, vector<16x16xbf16>, vector<16x16xf32> -> vector<16x16xf32>
    %670 = vector.extract_strided_slice %665 {offsets = [16, 0], sizes = [16, 16], strides = [1, 1]} : vector<128x16xbf16> to vector<16x16xbf16>
    %671 = vector.extract_strided_slice %666 {offsets = [0, 16], sizes = [16, 16], strides = [1, 1]} : vector<16x64xbf16> to vector<16x16xbf16>
    %cst_217 = arith.constant dense<0.000000e+00> : vector<16x16xf32>
    %672 = tpu.matmul %670, %671, %cst_217 {dimension_numbers = #tpu.dot_dimension_numbers<[1], [0], [0], [1], [0, 0, 1, 1], [], []>} : vector<16x16xbf16>, vector<16x16xbf16>, vector<16x16xf32> -> vector<16x16xf32>
    %673 = vector.extract_strided_slice %665 {offsets = [32, 0], sizes = [16, 16], strides = [1, 1]} : vector<128x16xbf16> to vector<16x16xbf16>
    %674 = vector.extract_strided_slice %666 {offsets = [0, 32], sizes = [16, 16], strides = [1, 1]} : vector<16x64xbf16> to vector<16x16xbf16>
    %cst_218 = arith.constant dense<0.000000e+00> : vector<16x16xf32>
    %675 = tpu.matmul %673, %674, %cst_218 {dimension_numbers = #tpu.dot_dimension_numbers<[1], [0], [0], [1], [0, 0, 1, 1], [], []>} : vector<16x16xbf16>, vector<16x16xbf16>, vector<16x16xf32> -> vector<16x16xf32>
    %676 = vector.extract_strided_slice %665 {offsets = [48, 0], sizes = [16, 16], strides = [1, 1]} : vector<128x16xbf16> to vector<16x16xbf16>
    %677 = vector.extract_strided_slice %666 {offsets = [0, 48], sizes = [16, 16], strides = [1, 1]} : vector<16x64xbf16> to vector<16x16xbf16>
    %cst_219 = arith.constant dense<0.000000e+00> : vector<16x16xf32>
    %678 = tpu.matmul %676, %677, %cst_219 {dimension_numbers = #tpu.dot_dimension_numbers<[1], [0], [0], [1], [0, 0, 1, 1], [], []>} : vector<16x16xbf16>, vector<16x16xbf16>, vector<16x16xf32> -> vector<16x16xf32>
    %679 = tpu.concatenate %669, %672, %675, %678 in 1 : vector<16x16xf32>, vector<16x16xf32>, vector<16x16xf32>, vector<16x16xf32> -> vector<16x64xf32>
    %680 = vector.extract_strided_slice %622 {offsets = [16, 0], sizes = [16, 64], strides = [1, 1]} : vector<32x64xbf16> to vector<16x64xbf16>
    %681 = vector.extract_strided_slice %665 {offsets = [64, 0], sizes = [16, 16], strides = [1, 1]} : vector<128x16xbf16> to vector<16x16xbf16>
    %682 = vector.extract_strided_slice %680 {offsets = [0, 0], sizes = [16, 16], strides = [1, 1]} : vector<16x64xbf16> to vector<16x16xbf16>
    %cst_220 = arith.constant dense<0.000000e+00> : vector<16x16xf32>
    %683 = tpu.matmul %681, %682, %cst_220 {dimension_numbers = #tpu.dot_dimension_numbers<[1], [0], [0], [1], [0, 0, 1, 1], [], []>} : vector<16x16xbf16>, vector<16x16xbf16>, vector<16x16xf32> -> vector<16x16xf32>
    %684 = vector.extract_strided_slice %665 {offsets = [80, 0], sizes = [16, 16], strides = [1, 1]} : vector<128x16xbf16> to vector<16x16xbf16>
    %685 = vector.extract_strided_slice %680 {offsets = [0, 16], sizes = [16, 16], strides = [1, 1]} : vector<16x64xbf16> to vector<16x16xbf16>
    %cst_221 = arith.constant dense<0.000000e+00> : vector<16x16xf32>
    %686 = tpu.matmul %684, %685, %cst_221 {dimension_numbers = #tpu.dot_dimension_numbers<[1], [0], [0], [1], [0, 0, 1, 1], [], []>} : vector<16x16xbf16>, vector<16x16xbf16>, vector<16x16xf32> -> vector<16x16xf32>
    %687 = vector.extract_strided_slice %665 {offsets = [96, 0], sizes = [16, 16], strides = [1, 1]} : vector<128x16xbf16> to vector<16x16xbf16>
    %688 = vector.extract_strided_slice %680 {offsets = [0, 32], sizes = [16, 16], strides = [1, 1]} : vector<16x64xbf16> to vector<16x16xbf16>
    %cst_222 = arith.constant dense<0.000000e+00> : vector<16x16xf32>
    %689 = tpu.matmul %687, %688, %cst_222 {dimension_numbers = #tpu.dot_dimension_numbers<[1], [0], [0], [1], [0, 0, 1, 1], [], []>} : vector<16x16xbf16>, vector<16x16xbf16>, vector<16x16xf32> -> vector<16x16xf32>
    %690 = vector.extract_strided_slice %665 {offsets = [112, 0], sizes = [16, 16], strides = [1, 1]} : vector<128x16xbf16> to vector<16x16xbf16>
    %691 = vector.extract_strided_slice %680 {offsets = [0, 48], sizes = [16, 16], strides = [1, 1]} : vector<16x64xbf16> to vector<16x16xbf16>
    %cst_223 = arith.constant dense<0.000000e+00> : vector<16x16xf32>
    %692 = tpu.matmul %690, %691, %cst_223 {dimension_numbers = #tpu.dot_dimension_numbers<[1], [0], [0], [1], [0, 0, 1, 1], [], []>} : vector<16x16xbf16>, vector<16x16xbf16>, vector<16x16xf32> -> vector<16x16xf32>
    %693 = tpu.concatenate %683, %686, %689, %692 in 1 : vector<16x16xf32>, vector<16x16xf32>, vector<16x16xf32>, vector<16x16xf32> -> vector<16x64xf32>
    %694 = tpu.concatenate %679, %693 in 0 : vector<16x64xf32>, vector<16x64xf32> -> vector<32x64xf32>
    %695 = arith.truncf %694 : vector<32x64xf32> to vector<32x64xbf16>
    %cst_224 = arith.constant dense<0.000000e+00> : vector<32x64xf32>
    %696 = tpu.matmul %695, %624, %cst_224 {dimension_numbers = #tpu.dot_dimension_numbers<[1], [0], [0], [1], [0, 0, 1, 1], [], []>} : vector<32x64xbf16>, vector<64x64xbf16>, vector<32x64xf32> -> vector<32x64xf32>
    %697 = vector.broadcast %625 : vector<1x64xf32> to vector<32x64xf32>
    %698 = arith.addf %696, %697 : vector<32x64xf32>
    %699 = arith.addf %609, %698 : vector<32x64xf32>
    %700 = vector.extract_strided_slice %611 {offsets = [2, 0], sizes = [1, 64], strides = [1, 1]} : vector<13x192xf32> to vector<1x64xf32>
    %701 = vector.extract_strided_slice %611 {offsets = [3, 0], sizes = [1, 64], strides = [1, 1]} : vector<13x192xf32> to vector<1x64xf32>
    %cst_225 = arith.constant dense<0.000000e+00> : vector<32xf32>
    %702 = vector.multi_reduction <add>, %699, %cst_225 [1] : vector<32x64xf32> to vector<32xf32>
    %703 = vector.shape_cast %702 : vector<32xf32> to vector<32x1xf32>
    %cst_226 = arith.constant 6.400000e+01 : f32
    %704 = vector.broadcast %cst_226 : f32 to vector<32x1xf32>
    %705 = arith.divf %703, %704 : vector<32x1xf32>
    %706 = vector.broadcast %705 : vector<32x1xf32> to vector<32x64xf32>
    %707 = arith.subf %699, %706 : vector<32x64xf32>
    %708 = arith.mulf %707, %707 : vector<32x64xf32>
    %cst_227 = arith.constant dense<0.000000e+00> : vector<32xf32>
    %709 = vector.multi_reduction <add>, %708, %cst_227 [1] : vector<32x64xf32> to vector<32xf32>
    %710 = vector.shape_cast %709 : vector<32xf32> to vector<32x1xf32>
    %cst_228 = arith.constant 6.400000e+01 : f32
    %711 = vector.broadcast %cst_228 : f32 to vector<32x1xf32>
    %712 = arith.divf %710, %711 : vector<32x1xf32>
    %cst_229 = arith.constant 9.99999974E-6 : f32
    %713 = vector.broadcast %cst_229 : f32 to vector<32x1xf32>
    %714 = arith.addf %712, %713 : vector<32x1xf32>
    %715 = math.rsqrt %714 : vector<32x1xf32>
    %716 = vector.broadcast %715 : vector<32x1xf32> to vector<32x64xf32>
    %717 = arith.mulf %707, %716 : vector<32x64xf32>
    %718 = vector.broadcast %700 : vector<1x64xf32> to vector<32x64xf32>
    %719 = arith.mulf %717, %718 : vector<32x64xf32>
    %720 = vector.broadcast %701 : vector<1x64xf32> to vector<32x64xf32>
    %721 = arith.addf %719, %720 : vector<32x64xf32>
    %c1_230 = arith.constant 1 : index
    %c0_231 = arith.constant 0 : index
    %c0_232 = arith.constant 0 : index
    %722 = vector.load %arg11[%c1_230, %c0_231, %c0_232] : memref<2x64x64xbf16, #tpu.memory_space<vmem>>, vector<1x64x64xbf16>
    %723 = vector.shape_cast %722 : vector<1x64x64xbf16> to vector<64x64xbf16>
    %724 = arith.truncf %721 : vector<32x64xf32> to vector<32x64xbf16>
    %cst_233 = arith.constant dense<0.000000e+00> : vector<32x64xf32>
    %725 = tpu.matmul %724, %723, %cst_233 {dimension_numbers = #tpu.dot_dimension_numbers<[1], [0], [0], [1], [0, 0, 1, 1], [], []>} : vector<32x64xbf16>, vector<64x64xbf16>, vector<32x64xf32> -> vector<32x64xf32>
    %726 = vector.extract_strided_slice %611 {offsets = [4, 0], sizes = [1, 64], strides = [1, 1]} : vector<13x192xf32> to vector<1x64xf32>
    %727 = vector.broadcast %726 : vector<1x64xf32> to vector<32x64xf32>
    %728 = arith.addf %725, %727 : vector<32x64xf32>
    %729 = arith.truncf %728 : vector<32x64xf32> to vector<32x64xbf16>
    %c1_234 = arith.constant 1 : index
    %c0_235 = arith.constant 0 : index
    %c0_236 = arith.constant 0 : index
    %730 = vector.load %arg12[%c1_234, %c0_235, %c0_236] : memref<2x64x128xbf16, #tpu.memory_space<vmem>>, vector<1x64x128xbf16>
    %731 = vector.shape_cast %730 : vector<1x64x128xbf16> to vector<64x128xbf16>
    %732 = arith.truncf %341 : vector<32x64xf32> to vector<32x64xbf16>
    %cst_237 = arith.constant dense<0.000000e+00> : vector<32x128xf32>
    %733 = tpu.matmul %732, %731, %cst_237 {dimension_numbers = #tpu.dot_dimension_numbers<[1], [0], [0], [1], [0, 0, 1, 1], [], []>} : vector<32x64xbf16>, vector<64x128xbf16>, vector<32x128xf32> -> vector<32x128xf32>
    %734 = vector.extract_strided_slice %611 {offsets = [5, 0], sizes = [1, 128], strides = [1, 1]} : vector<13x192xf32> to vector<1x128xf32>
    %735 = vector.broadcast %734 : vector<1x128xf32> to vector<32x128xf32>
    %736 = arith.addf %733, %735 : vector<32x128xf32>
    %737 = arith.truncf %736 : vector<32x128xf32> to vector<32x128xbf16>
    %738 = vector.extract_strided_slice %737 {offsets = [0, 0], sizes = [32, 64], strides = [1, 1]} : vector<32x128xbf16> to vector<32x64xbf16>
    %739 = vector.extract_strided_slice %737 {offsets = [0, 64], sizes = [32, 64], strides = [1, 1]} : vector<32x128xbf16> to vector<32x64xbf16>
    %c1_238 = arith.constant 1 : index
    %c0_239 = arith.constant 0 : index
    %c0_240 = arith.constant 0 : index
    %740 = vector.load %arg13[%c1_238, %c0_239, %c0_240] : memref<2x64x64xbf16, #tpu.memory_space<vmem>>, vector<1x64x64xbf16>
    %741 = vector.shape_cast %740 : vector<1x64x64xbf16> to vector<64x64xbf16>
    %742 = vector.extract_strided_slice %611 {offsets = [6, 0], sizes = [1, 64], strides = [1, 1]} : vector<13x192xf32> to vector<1x64xf32>
    %743 = vector.extract_strided_slice %729 {offsets = [0, 0], sizes = [16, 64], strides = [1, 1]} : vector<32x64xbf16> to vector<16x64xbf16>
    %744 = vector.extract_strided_slice %738 {offsets = [0, 0], sizes = [16, 64], strides = [1, 1]} : vector<32x64xbf16> to vector<16x64xbf16>
    %745 = vector.extract_strided_slice %743 {offsets = [0, 0], sizes = [16, 16], strides = [1, 1]} : vector<16x64xbf16> to vector<16x16xbf16>
    %746 = vector.extract_strided_slice %744 {offsets = [0, 0], sizes = [16, 16], strides = [1, 1]} : vector<16x64xbf16> to vector<16x16xbf16>
    %cst_241 = arith.constant dense<0.000000e+00> : vector<16x16xf32>
    %747 = tpu.matmul %745, %746, %cst_241 {dimension_numbers = #tpu.dot_dimension_numbers<[1], [1], [0], [0], [0, 0, 1, 0], [], []>} : vector<16x16xbf16>, vector<16x16xbf16>, vector<16x16xf32> -> vector<16x16xf32>
    %748 = vector.extract_strided_slice %743 {offsets = [0, 16], sizes = [16, 16], strides = [1, 1]} : vector<16x64xbf16> to vector<16x16xbf16>
    %749 = vector.extract_strided_slice %744 {offsets = [0, 16], sizes = [16, 16], strides = [1, 1]} : vector<16x64xbf16> to vector<16x16xbf16>
    %cst_242 = arith.constant dense<0.000000e+00> : vector<16x16xf32>
    %750 = tpu.matmul %748, %749, %cst_242 {dimension_numbers = #tpu.dot_dimension_numbers<[1], [1], [0], [0], [0, 0, 1, 0], [], []>} : vector<16x16xbf16>, vector<16x16xbf16>, vector<16x16xf32> -> vector<16x16xf32>
    %751 = vector.extract_strided_slice %743 {offsets = [0, 32], sizes = [16, 16], strides = [1, 1]} : vector<16x64xbf16> to vector<16x16xbf16>
    %752 = vector.extract_strided_slice %744 {offsets = [0, 32], sizes = [16, 16], strides = [1, 1]} : vector<16x64xbf16> to vector<16x16xbf16>
    %cst_243 = arith.constant dense<0.000000e+00> : vector<16x16xf32>
    %753 = tpu.matmul %751, %752, %cst_243 {dimension_numbers = #tpu.dot_dimension_numbers<[1], [1], [0], [0], [0, 0, 1, 0], [], []>} : vector<16x16xbf16>, vector<16x16xbf16>, vector<16x16xf32> -> vector<16x16xf32>
    %754 = vector.extract_strided_slice %743 {offsets = [0, 48], sizes = [16, 16], strides = [1, 1]} : vector<16x64xbf16> to vector<16x16xbf16>
    %755 = vector.extract_strided_slice %744 {offsets = [0, 48], sizes = [16, 16], strides = [1, 1]} : vector<16x64xbf16> to vector<16x16xbf16>
    %cst_244 = arith.constant dense<0.000000e+00> : vector<16x16xf32>
    %756 = tpu.matmul %754, %755, %cst_244 {dimension_numbers = #tpu.dot_dimension_numbers<[1], [1], [0], [0], [0, 0, 1, 0], [], []>} : vector<16x16xbf16>, vector<16x16xbf16>, vector<16x16xf32> -> vector<16x16xf32>
    %757 = vector.extract_strided_slice %729 {offsets = [16, 0], sizes = [16, 64], strides = [1, 1]} : vector<32x64xbf16> to vector<16x64xbf16>
    %758 = vector.extract_strided_slice %738 {offsets = [16, 0], sizes = [16, 64], strides = [1, 1]} : vector<32x64xbf16> to vector<16x64xbf16>
    %759 = vector.extract_strided_slice %757 {offsets = [0, 0], sizes = [16, 16], strides = [1, 1]} : vector<16x64xbf16> to vector<16x16xbf16>
    %760 = vector.extract_strided_slice %758 {offsets = [0, 0], sizes = [16, 16], strides = [1, 1]} : vector<16x64xbf16> to vector<16x16xbf16>
    %cst_245 = arith.constant dense<0.000000e+00> : vector<16x16xf32>
    %761 = tpu.matmul %759, %760, %cst_245 {dimension_numbers = #tpu.dot_dimension_numbers<[1], [1], [0], [0], [0, 0, 1, 0], [], []>} : vector<16x16xbf16>, vector<16x16xbf16>, vector<16x16xf32> -> vector<16x16xf32>
    %762 = vector.extract_strided_slice %757 {offsets = [0, 16], sizes = [16, 16], strides = [1, 1]} : vector<16x64xbf16> to vector<16x16xbf16>
    %763 = vector.extract_strided_slice %758 {offsets = [0, 16], sizes = [16, 16], strides = [1, 1]} : vector<16x64xbf16> to vector<16x16xbf16>
    %cst_246 = arith.constant dense<0.000000e+00> : vector<16x16xf32>
    %764 = tpu.matmul %762, %763, %cst_246 {dimension_numbers = #tpu.dot_dimension_numbers<[1], [1], [0], [0], [0, 0, 1, 0], [], []>} : vector<16x16xbf16>, vector<16x16xbf16>, vector<16x16xf32> -> vector<16x16xf32>
    %765 = vector.extract_strided_slice %757 {offsets = [0, 32], sizes = [16, 16], strides = [1, 1]} : vector<16x64xbf16> to vector<16x16xbf16>
    %766 = vector.extract_strided_slice %758 {offsets = [0, 32], sizes = [16, 16], strides = [1, 1]} : vector<16x64xbf16> to vector<16x16xbf16>
    %cst_247 = arith.constant dense<0.000000e+00> : vector<16x16xf32>
    %767 = tpu.matmul %765, %766, %cst_247 {dimension_numbers = #tpu.dot_dimension_numbers<[1], [1], [0], [0], [0, 0, 1, 0], [], []>} : vector<16x16xbf16>, vector<16x16xbf16>, vector<16x16xf32> -> vector<16x16xf32>
    %768 = vector.extract_strided_slice %757 {offsets = [0, 48], sizes = [16, 16], strides = [1, 1]} : vector<16x64xbf16> to vector<16x16xbf16>
    %769 = vector.extract_strided_slice %758 {offsets = [0, 48], sizes = [16, 16], strides = [1, 1]} : vector<16x64xbf16> to vector<16x16xbf16>
    %cst_248 = arith.constant dense<0.000000e+00> : vector<16x16xf32>
    %770 = tpu.matmul %768, %769, %cst_248 {dimension_numbers = #tpu.dot_dimension_numbers<[1], [1], [0], [0], [0, 0, 1, 0], [], []>} : vector<16x16xbf16>, vector<16x16xbf16>, vector<16x16xf32> -> vector<16x16xf32>
    %771 = tpu.concatenate %747, %750, %753, %756, %761, %764, %767, %770 in 0 : vector<16x16xf32>, vector<16x16xf32>, vector<16x16xf32>, vector<16x16xf32>, vector<16x16xf32>, vector<16x16xf32>, vector<16x16xf32>, vector<16x16xf32> -> vector<128x16xf32>
    %cst_249 = arith.constant dense<0xFF800000> : vector<128xf32>
    %772 = vector.multi_reduction <maximumf>, %771, %cst_249 [1] : vector<128x16xf32> to vector<128xf32>
    %773 = vector.shape_cast %772 : vector<128xf32> to vector<128x1xf32>
    %774 = vector.broadcast %773 : vector<128x1xf32> to vector<128x16xf32>
    %775 = arith.subf %771, %774 : vector<128x16xf32>
    %776 = math.exp %775 : vector<128x16xf32>
    %cst_250 = arith.constant dense<0.000000e+00> : vector<128xf32>
    %777 = vector.multi_reduction <add>, %776, %cst_250 [1] : vector<128x16xf32> to vector<128xf32>
    %778 = vector.shape_cast %777 : vector<128xf32> to vector<128x1xf32>
    %779 = tpu.reciprocal %778 {approx = true} : vector<128x1xf32> -> vector<128x1xf32>
    %780 = vector.broadcast %779 : vector<128x1xf32> to vector<128x16xf32>
    %781 = arith.mulf %776, %780 : vector<128x16xf32>
    %782 = arith.truncf %781 : vector<128x16xf32> to vector<128x16xbf16>
    %783 = vector.extract_strided_slice %739 {offsets = [0, 0], sizes = [16, 64], strides = [1, 1]} : vector<32x64xbf16> to vector<16x64xbf16>
    %784 = vector.extract_strided_slice %782 {offsets = [0, 0], sizes = [16, 16], strides = [1, 1]} : vector<128x16xbf16> to vector<16x16xbf16>
    %785 = vector.extract_strided_slice %783 {offsets = [0, 0], sizes = [16, 16], strides = [1, 1]} : vector<16x64xbf16> to vector<16x16xbf16>
    %cst_251 = arith.constant dense<0.000000e+00> : vector<16x16xf32>
    %786 = tpu.matmul %784, %785, %cst_251 {dimension_numbers = #tpu.dot_dimension_numbers<[1], [0], [0], [1], [0, 0, 1, 1], [], []>} : vector<16x16xbf16>, vector<16x16xbf16>, vector<16x16xf32> -> vector<16x16xf32>
    %787 = vector.extract_strided_slice %782 {offsets = [16, 0], sizes = [16, 16], strides = [1, 1]} : vector<128x16xbf16> to vector<16x16xbf16>
    %788 = vector.extract_strided_slice %783 {offsets = [0, 16], sizes = [16, 16], strides = [1, 1]} : vector<16x64xbf16> to vector<16x16xbf16>
    %cst_252 = arith.constant dense<0.000000e+00> : vector<16x16xf32>
    %789 = tpu.matmul %787, %788, %cst_252 {dimension_numbers = #tpu.dot_dimension_numbers<[1], [0], [0], [1], [0, 0, 1, 1], [], []>} : vector<16x16xbf16>, vector<16x16xbf16>, vector<16x16xf32> -> vector<16x16xf32>
    %790 = vector.extract_strided_slice %782 {offsets = [32, 0], sizes = [16, 16], strides = [1, 1]} : vector<128x16xbf16> to vector<16x16xbf16>
    %791 = vector.extract_strided_slice %783 {offsets = [0, 32], sizes = [16, 16], strides = [1, 1]} : vector<16x64xbf16> to vector<16x16xbf16>
    %cst_253 = arith.constant dense<0.000000e+00> : vector<16x16xf32>
    %792 = tpu.matmul %790, %791, %cst_253 {dimension_numbers = #tpu.dot_dimension_numbers<[1], [0], [0], [1], [0, 0, 1, 1], [], []>} : vector<16x16xbf16>, vector<16x16xbf16>, vector<16x16xf32> -> vector<16x16xf32>
    %793 = vector.extract_strided_slice %782 {offsets = [48, 0], sizes = [16, 16], strides = [1, 1]} : vector<128x16xbf16> to vector<16x16xbf16>
    %794 = vector.extract_strided_slice %783 {offsets = [0, 48], sizes = [16, 16], strides = [1, 1]} : vector<16x64xbf16> to vector<16x16xbf16>
    %cst_254 = arith.constant dense<0.000000e+00> : vector<16x16xf32>
    %795 = tpu.matmul %793, %794, %cst_254 {dimension_numbers = #tpu.dot_dimension_numbers<[1], [0], [0], [1], [0, 0, 1, 1], [], []>} : vector<16x16xbf16>, vector<16x16xbf16>, vector<16x16xf32> -> vector<16x16xf32>
    %796 = tpu.concatenate %786, %789, %792, %795 in 1 : vector<16x16xf32>, vector<16x16xf32>, vector<16x16xf32>, vector<16x16xf32> -> vector<16x64xf32>
    %797 = vector.extract_strided_slice %739 {offsets = [16, 0], sizes = [16, 64], strides = [1, 1]} : vector<32x64xbf16> to vector<16x64xbf16>
    %798 = vector.extract_strided_slice %782 {offsets = [64, 0], sizes = [16, 16], strides = [1, 1]} : vector<128x16xbf16> to vector<16x16xbf16>
    %799 = vector.extract_strided_slice %797 {offsets = [0, 0], sizes = [16, 16], strides = [1, 1]} : vector<16x64xbf16> to vector<16x16xbf16>
    %cst_255 = arith.constant dense<0.000000e+00> : vector<16x16xf32>
    %800 = tpu.matmul %798, %799, %cst_255 {dimension_numbers = #tpu.dot_dimension_numbers<[1], [0], [0], [1], [0, 0, 1, 1], [], []>} : vector<16x16xbf16>, vector<16x16xbf16>, vector<16x16xf32> -> vector<16x16xf32>
    %801 = vector.extract_strided_slice %782 {offsets = [80, 0], sizes = [16, 16], strides = [1, 1]} : vector<128x16xbf16> to vector<16x16xbf16>
    %802 = vector.extract_strided_slice %797 {offsets = [0, 16], sizes = [16, 16], strides = [1, 1]} : vector<16x64xbf16> to vector<16x16xbf16>
    %cst_256 = arith.constant dense<0.000000e+00> : vector<16x16xf32>
    %803 = tpu.matmul %801, %802, %cst_256 {dimension_numbers = #tpu.dot_dimension_numbers<[1], [0], [0], [1], [0, 0, 1, 1], [], []>} : vector<16x16xbf16>, vector<16x16xbf16>, vector<16x16xf32> -> vector<16x16xf32>
    %804 = vector.extract_strided_slice %782 {offsets = [96, 0], sizes = [16, 16], strides = [1, 1]} : vector<128x16xbf16> to vector<16x16xbf16>
    %805 = vector.extract_strided_slice %797 {offsets = [0, 32], sizes = [16, 16], strides = [1, 1]} : vector<16x64xbf16> to vector<16x16xbf16>
    %cst_257 = arith.constant dense<0.000000e+00> : vector<16x16xf32>
    %806 = tpu.matmul %804, %805, %cst_257 {dimension_numbers = #tpu.dot_dimension_numbers<[1], [0], [0], [1], [0, 0, 1, 1], [], []>} : vector<16x16xbf16>, vector<16x16xbf16>, vector<16x16xf32> -> vector<16x16xf32>
    %807 = vector.extract_strided_slice %782 {offsets = [112, 0], sizes = [16, 16], strides = [1, 1]} : vector<128x16xbf16> to vector<16x16xbf16>
    %808 = vector.extract_strided_slice %797 {offsets = [0, 48], sizes = [16, 16], strides = [1, 1]} : vector<16x64xbf16> to vector<16x16xbf16>
    %cst_258 = arith.constant dense<0.000000e+00> : vector<16x16xf32>
    %809 = tpu.matmul %807, %808, %cst_258 {dimension_numbers = #tpu.dot_dimension_numbers<[1], [0], [0], [1], [0, 0, 1, 1], [], []>} : vector<16x16xbf16>, vector<16x16xbf16>, vector<16x16xf32> -> vector<16x16xf32>
    %810 = tpu.concatenate %800, %803, %806, %809 in 1 : vector<16x16xf32>, vector<16x16xf32>, vector<16x16xf32>, vector<16x16xf32> -> vector<16x64xf32>
    %811 = tpu.concatenate %796, %810 in 0 : vector<16x64xf32>, vector<16x64xf32> -> vector<32x64xf32>
    %812 = arith.truncf %811 : vector<32x64xf32> to vector<32x64xbf16>
    %cst_259 = arith.constant dense<0.000000e+00> : vector<32x64xf32>
    %813 = tpu.matmul %812, %741, %cst_259 {dimension_numbers = #tpu.dot_dimension_numbers<[1], [0], [0], [1], [0, 0, 1, 1], [], []>} : vector<32x64xbf16>, vector<64x64xbf16>, vector<32x64xf32> -> vector<32x64xf32>
    %814 = vector.broadcast %742 : vector<1x64xf32> to vector<32x64xf32>
    %815 = arith.addf %813, %814 : vector<32x64xf32>
    %816 = arith.addf %721, %815 : vector<32x64xf32>
    %817 = vector.extract_strided_slice %611 {offsets = [7, 0], sizes = [1, 64], strides = [1, 1]} : vector<13x192xf32> to vector<1x64xf32>
    %818 = vector.extract_strided_slice %611 {offsets = [8, 0], sizes = [1, 64], strides = [1, 1]} : vector<13x192xf32> to vector<1x64xf32>
    %cst_260 = arith.constant dense<0.000000e+00> : vector<32xf32>
    %819 = vector.multi_reduction <add>, %816, %cst_260 [1] : vector<32x64xf32> to vector<32xf32>
    %820 = vector.shape_cast %819 : vector<32xf32> to vector<32x1xf32>
    %cst_261 = arith.constant 6.400000e+01 : f32
    %821 = vector.broadcast %cst_261 : f32 to vector<32x1xf32>
    %822 = arith.divf %820, %821 : vector<32x1xf32>
    %823 = vector.broadcast %822 : vector<32x1xf32> to vector<32x64xf32>
    %824 = arith.subf %816, %823 : vector<32x64xf32>
    %825 = arith.mulf %824, %824 : vector<32x64xf32>
    %cst_262 = arith.constant dense<0.000000e+00> : vector<32xf32>
    %826 = vector.multi_reduction <add>, %825, %cst_262 [1] : vector<32x64xf32> to vector<32xf32>
    %827 = vector.shape_cast %826 : vector<32xf32> to vector<32x1xf32>
    %cst_263 = arith.constant 6.400000e+01 : f32
    %828 = vector.broadcast %cst_263 : f32 to vector<32x1xf32>
    %829 = arith.divf %827, %828 : vector<32x1xf32>
    %cst_264 = arith.constant 9.99999974E-6 : f32
    %830 = vector.broadcast %cst_264 : f32 to vector<32x1xf32>
    %831 = arith.addf %829, %830 : vector<32x1xf32>
    %832 = math.rsqrt %831 : vector<32x1xf32>
    %833 = vector.broadcast %832 : vector<32x1xf32> to vector<32x64xf32>
    %834 = arith.mulf %824, %833 : vector<32x64xf32>
    %835 = vector.broadcast %817 : vector<1x64xf32> to vector<32x64xf32>
    %836 = arith.mulf %834, %835 : vector<32x64xf32>
    %837 = vector.broadcast %818 : vector<1x64xf32> to vector<32x64xf32>
    %838 = arith.addf %836, %837 : vector<32x64xf32>
    %c1_265 = arith.constant 1 : index
    %c0_266 = arith.constant 0 : index
    %c0_267 = arith.constant 0 : index
    %839 = vector.load %arg14[%c1_265, %c0_266, %c0_267] : memref<2x64x128xbf16, #tpu.memory_space<vmem>>, vector<1x64x128xbf16>
    %840 = vector.shape_cast %839 : vector<1x64x128xbf16> to vector<64x128xbf16>
    %841 = arith.truncf %838 : vector<32x64xf32> to vector<32x64xbf16>
    %cst_268 = arith.constant dense<0.000000e+00> : vector<32x128xf32>
    %842 = tpu.matmul %841, %840, %cst_268 {dimension_numbers = #tpu.dot_dimension_numbers<[1], [0], [0], [1], [0, 0, 1, 1], [], []>} : vector<32x64xbf16>, vector<64x128xbf16>, vector<32x128xf32> -> vector<32x128xf32>
    %843 = vector.extract_strided_slice %611 {offsets = [9, 0], sizes = [1, 128], strides = [1, 1]} : vector<13x192xf32> to vector<1x128xf32>
    %844 = vector.broadcast %843 : vector<1x128xf32> to vector<32x128xf32>
    %845 = arith.addf %842, %844 : vector<32x128xf32>
    %cst_269 = arith.constant 0.000000e+00 : f32
    %846 = vector.broadcast %cst_269 : f32 to vector<32x128xf32>
    %847 = arith.maximumf %845, %846 : vector<32x128xf32>
    %c1_270 = arith.constant 1 : index
    %c0_271 = arith.constant 0 : index
    %c0_272 = arith.constant 0 : index
    %848 = vector.load %arg15[%c1_270, %c0_271, %c0_272] : memref<2x128x64xbf16, #tpu.memory_space<vmem>>, vector<1x128x64xbf16>
    %849 = vector.shape_cast %848 : vector<1x128x64xbf16> to vector<128x64xbf16>
    %850 = arith.truncf %847 : vector<32x128xf32> to vector<32x128xbf16>
    %cst_273 = arith.constant dense<0.000000e+00> : vector<32x64xf32>
    %851 = tpu.matmul %850, %849, %cst_273 {dimension_numbers = #tpu.dot_dimension_numbers<[1], [0], [0], [1], [0, 0, 1, 1], [], []>} : vector<32x128xbf16>, vector<128x64xbf16>, vector<32x64xf32> -> vector<32x64xf32>
    %852 = vector.extract_strided_slice %611 {offsets = [10, 0], sizes = [1, 64], strides = [1, 1]} : vector<13x192xf32> to vector<1x64xf32>
    %853 = vector.broadcast %852 : vector<1x64xf32> to vector<32x64xf32>
    %854 = arith.addf %851, %853 : vector<32x64xf32>
    %855 = arith.addf %838, %854 : vector<32x64xf32>
    %856 = vector.extract_strided_slice %611 {offsets = [11, 0], sizes = [1, 64], strides = [1, 1]} : vector<13x192xf32> to vector<1x64xf32>
    %857 = vector.extract_strided_slice %611 {offsets = [12, 0], sizes = [1, 64], strides = [1, 1]} : vector<13x192xf32> to vector<1x64xf32>
    %cst_274 = arith.constant dense<0.000000e+00> : vector<32xf32>
    %858 = vector.multi_reduction <add>, %855, %cst_274 [1] : vector<32x64xf32> to vector<32xf32>
    %859 = vector.shape_cast %858 : vector<32xf32> to vector<32x1xf32>
    %cst_275 = arith.constant 6.400000e+01 : f32
    %860 = vector.broadcast %cst_275 : f32 to vector<32x1xf32>
    %861 = arith.divf %859, %860 : vector<32x1xf32>
    %862 = vector.broadcast %861 : vector<32x1xf32> to vector<32x64xf32>
    %863 = arith.subf %855, %862 : vector<32x64xf32>
    %864 = arith.mulf %863, %863 : vector<32x64xf32>
    %cst_276 = arith.constant dense<0.000000e+00> : vector<32xf32>
    %865 = vector.multi_reduction <add>, %864, %cst_276 [1] : vector<32x64xf32> to vector<32xf32>
    %866 = vector.shape_cast %865 : vector<32xf32> to vector<32x1xf32>
    %cst_277 = arith.constant 6.400000e+01 : f32
    %867 = vector.broadcast %cst_277 : f32 to vector<32x1xf32>
    %868 = arith.divf %866, %867 : vector<32x1xf32>
    %cst_278 = arith.constant 9.99999974E-6 : f32
    %869 = vector.broadcast %cst_278 : f32 to vector<32x1xf32>
    %870 = arith.addf %868, %869 : vector<32x1xf32>
    %871 = math.rsqrt %870 : vector<32x1xf32>
    %872 = vector.broadcast %871 : vector<32x1xf32> to vector<32x64xf32>
    %873 = arith.mulf %863, %872 : vector<32x64xf32>
    %874 = vector.broadcast %856 : vector<1x64xf32> to vector<32x64xf32>
    %875 = arith.mulf %873, %874 : vector<32x64xf32>
    %876 = vector.broadcast %857 : vector<1x64xf32> to vector<32x64xf32>
    %877 = arith.addf %875, %876 : vector<32x64xf32>
    %878 = vector.extract_strided_slice %17 {offsets = [2, 0], sizes = [1, 64], strides = [1, 1]} : vector<5x128xf32> to vector<1x64xf32>
    %879 = vector.extract_strided_slice %17 {offsets = [3, 0], sizes = [1, 64], strides = [1, 1]} : vector<5x128xf32> to vector<1x64xf32>
    %cst_279 = arith.constant dense<0.000000e+00> : vector<32xf32>
    %880 = vector.multi_reduction <add>, %877, %cst_279 [1] : vector<32x64xf32> to vector<32xf32>
    %881 = vector.shape_cast %880 : vector<32xf32> to vector<32x1xf32>
    %cst_280 = arith.constant 6.400000e+01 : f32
    %882 = vector.broadcast %cst_280 : f32 to vector<32x1xf32>
    %883 = arith.divf %881, %882 : vector<32x1xf32>
    %884 = vector.broadcast %883 : vector<32x1xf32> to vector<32x64xf32>
    %885 = arith.subf %877, %884 : vector<32x64xf32>
    %886 = arith.mulf %885, %885 : vector<32x64xf32>
    %cst_281 = arith.constant dense<0.000000e+00> : vector<32xf32>
    %887 = vector.multi_reduction <add>, %886, %cst_281 [1] : vector<32x64xf32> to vector<32xf32>
    %888 = vector.shape_cast %887 : vector<32xf32> to vector<32x1xf32>
    %cst_282 = arith.constant 6.400000e+01 : f32
    %889 = vector.broadcast %cst_282 : f32 to vector<32x1xf32>
    %890 = arith.divf %888, %889 : vector<32x1xf32>
    %cst_283 = arith.constant 9.99999974E-6 : f32
    %891 = vector.broadcast %cst_283 : f32 to vector<32x1xf32>
    %892 = arith.addf %890, %891 : vector<32x1xf32>
    %893 = math.rsqrt %892 : vector<32x1xf32>
    %894 = vector.broadcast %893 : vector<32x1xf32> to vector<32x64xf32>
    %895 = arith.mulf %885, %894 : vector<32x64xf32>
    %896 = vector.broadcast %878 : vector<1x64xf32> to vector<32x64xf32>
    %897 = arith.mulf %895, %896 : vector<32x64xf32>
    %898 = vector.broadcast %879 : vector<1x64xf32> to vector<32x64xf32>
    %899 = arith.addf %897, %898 : vector<32x64xf32>
    %c0_284 = arith.constant 0 : index
    %c0_285 = arith.constant 0 : index
    %900 = vector.load %arg16[%c0_284, %c0_285] : memref<64x128xbf16, #tpu.memory_space<vmem>>, vector<64x128xbf16>
    %901 = arith.truncf %899 : vector<32x64xf32> to vector<32x64xbf16>
    %cst_286 = arith.constant dense<0.000000e+00> : vector<32x128xf32>
    %902 = tpu.matmul %901, %900, %cst_286 {dimension_numbers = #tpu.dot_dimension_numbers<[1], [0], [0], [1], [0, 0, 1, 1], [], []>} : vector<32x64xbf16>, vector<64x128xbf16>, vector<32x128xf32> -> vector<32x128xf32>
    %903 = vector.extract_strided_slice %17 {offsets = [4, 0], sizes = [1, 128], strides = [1, 1]} : vector<5x128xf32> to vector<1x128xf32>
    %904 = vector.broadcast %903 : vector<1x128xf32> to vector<32x128xf32>
    %905 = arith.addf %902, %904 : vector<32x128xf32>
    %906 = tpu.iota {dimensions = array<i32: 1>} : vector<32x128xi32>
    %c32_i32 = arith.constant 32 : i32
    %907 = vector.broadcast %c32_i32 : i32 to vector<32x128xi32>
    %908 = arith.cmpi sge, %906, %907 : vector<32x128xi32>
    %c36_i32 = arith.constant 36 : i32
    %909 = vector.broadcast %c36_i32 : i32 to vector<32x128xi32>
    %910 = arith.cmpi slt, %906, %909 : vector<32x128xi32>
    %911 = arith.andi %908, %910 : vector<32x128xi1>
    %912 = arith.negf %905 : vector<32x128xf32>
    %913 = math.exp %912 : vector<32x128xf32>
    %cst_287 = arith.constant 1.000000e+00 : f32
    %914 = vector.broadcast %cst_287 : f32 to vector<32x128xf32>
    %915 = arith.addf %914, %913 : vector<32x128xf32>
    %916 = arith.divf %914, %915 : vector<32x128xf32>
    %917 = arith.select %911, %916, %905 : vector<32x128xi1>, vector<32x128xf32>
    %c0_288 = arith.constant 0 : index
    %c0_289 = arith.constant 0 : index
    %918 = vector.load %arg21[%c0_288, %c0_289] : memref<32x128xf32, #tpu.memory_space<vmem>>, vector<32x128xf32>
    tpu.vector_store %arg21[%c0_288, %c0_289], %917 {strides = array<i32>} : memref<32x128xf32, #tpu.memory_space<vmem>>, vector<32x128xf32>,
    return
  }
  func.func @transform_0(%arg0: i32) -> (i32, i32) {
    %c0_i32 = arith.constant 0 : i32
    %c0_i32_0 = arith.constant 0 : i32
    %c0_i32_1 = arith.constant 0 : i32
    return %c0_i32, %c0_i32_0 : i32, i32
  }
  func.func @transform_1(%arg0: i32) -> (i32, i32) {
    %c0_i32 = arith.constant 0 : i32
    %c0_i32_0 = arith.constant 0 : i32
    %c0_i32_1 = arith.constant 0 : i32
    return %c0_i32, %c0_i32_0 : i32, i32
  }
  func.func @transform_2(%arg0: i32) -> (i32, i32) {
    %c0_i32 = arith.constant 0 : i32
    %c0_i32_0 = arith.constant 0 : i32
    %c0_i32_1 = arith.constant 0 : i32
    return %c0_i32, %c0_i32_0 : i32, i32
  }
  func.func @transform_3(%arg0: i32) -> (i32, i32) {
    %c0_i32 = arith.constant 0 : i32
    %c0_i32_0 = arith.constant 0 : i32
    %c0_i32_1 = arith.constant 0 : i32
    return %c0_i32, %c0_i32_0 : i32, i32
  }
  func.func @transform_4(%arg0: i32) -> (i32, i32, i32) {
    %c0_i32 = arith.constant 0 : i32
    %c0_i32_0 = arith.constant 0 : i32
    %c0_i32_1 = arith.constant 0 : i32
    %c0_i32_2 = arith.constant 0 : i32
    return %c0_i32, %c0_i32_0, %c0_i32_1 : i32, i32, i32
  }
  func.func @transform_5(%arg0: i32) -> (i32, i32, i32) {
    %c0_i32 = arith.constant 0 : i32
    %c0_i32_0 = arith.constant 0 : i32
    %c0_i32_1 = arith.constant 0 : i32
    %c0_i32_2 = arith.constant 0 : i32
    return %c0_i32, %c0_i32_0, %c0_i32_1 : i32, i32, i32
  }
  func.func @transform_6(%arg0: i32) -> (i32, i32, i32) {
    %c0_i32 = arith.constant 0 : i32
    %c0_i32_0 = arith.constant 0 : i32
    %c0_i32_1 = arith.constant 0 : i32
    %c0_i32_2 = arith.constant 0 : i32
    return %c0_i32, %c0_i32_0, %c0_i32_1 : i32, i32, i32
  }
  func.func @transform_7(%arg0: i32) -> (i32, i32, i32) {
    %c0_i32 = arith.constant 0 : i32
    %c0_i32_0 = arith.constant 0 : i32
    %c0_i32_1 = arith.constant 0 : i32
    %c0_i32_2 = arith.constant 0 : i32
    return %c0_i32, %c0_i32_0, %c0_i32_1 : i32, i32, i32
  }
  func.func @transform_8(%arg0: i32) -> (i32, i32, i32) {
    %c0_i32 = arith.constant 0 : i32
    %c0_i32_0 = arith.constant 0 : i32
    %c0_i32_1 = arith.constant 0 : i32
    %c0_i32_2 = arith.constant 0 : i32
    return %c0_i32, %c0_i32_0, %c0_i32_1 : i32, i32, i32
  }
  func.func @transform_9(%arg0: i32) -> (i32, i32, i32) {
    %c0_i32 = arith.constant 0 : i32
    %c0_i32_0 = arith.constant 0 : i32
    %c0_i32_1 = arith.constant 0 : i32
    %c0_i32_2 = arith.constant 0 : i32
    return %c0_i32, %c0_i32_0, %c0_i32_1 : i32, i32, i32
  }
  func.func @transform_10(%arg0: i32) -> (i32, i32, i32) {
    %c0_i32 = arith.constant 0 : i32
    %c0_i32_0 = arith.constant 0 : i32
    %c0_i32_1 = arith.constant 0 : i32
    %c0_i32_2 = arith.constant 0 : i32
    return %c0_i32, %c0_i32_0, %c0_i32_1 : i32, i32, i32
  }
  func.func @transform_11(%arg0: i32) -> (i32, i32, i32) {
    %c0_i32 = arith.constant 0 : i32
    %c0_i32_0 = arith.constant 0 : i32
    %c0_i32_1 = arith.constant 0 : i32
    %c0_i32_2 = arith.constant 0 : i32
    return %c0_i32, %c0_i32_0, %c0_i32_1 : i32, i32, i32
  }
  func.func @transform_12(%arg0: i32) -> (i32, i32, i32) {
    %c0_i32 = arith.constant 0 : i32
    %c0_i32_0 = arith.constant 0 : i32
    %c0_i32_1 = arith.constant 0 : i32
    %c0_i32_2 = arith.constant 0 : i32
    return %c0_i32, %c0_i32_0, %c0_i32_1 : i32, i32, i32
  }
  func.func @transform_13(%arg0: i32) -> (i32, i32, i32) {
    %c0_i32 = arith.constant 0 : i32
    %c0_i32_0 = arith.constant 0 : i32
    %c0_i32_1 = arith.constant 0 : i32
    %c0_i32_2 = arith.constant 0 : i32
    return %c0_i32, %c0_i32_0, %c0_i32_1 : i32, i32, i32
  }
  func.func @transform_14(%arg0: i32) -> (i32, i32, i32) {
    %c0_i32 = arith.constant 0 : i32
    %c0_i32_0 = arith.constant 0 : i32
    %c0_i32_1 = arith.constant 0 : i32
    %c0_i32_2 = arith.constant 0 : i32
    return %c0_i32, %c0_i32_0, %c0_i32_1 : i32, i32, i32
  }
  func.func @transform_15(%arg0: i32) -> (i32, i32) {
    %c0_i32 = arith.constant 0 : i32
    %c0_i32_0 = arith.constant 0 : i32
    %c0_i32_1 = arith.constant 0 : i32
    return %c0_i32, %c0_i32_0 : i32, i32
  }
  func.func @transform_16(%arg0: i32) -> (i32, i32) {
    %c0_i32 = arith.constant 0 : i32
    %c0_i32_0 = arith.constant 0 : i32
    %c0_i32_1 = arith.constant 0 : i32
    return %c0_i32, %c0_i32_0 : i32, i32
  }
  func.func @transform_17(%arg0: i32) -> (i32, i32, i32) {
    %c0_i32 = arith.constant 0 : i32
    %c0_i32_0 = arith.constant 0 : i32
    %c0_i32_1 = arith.constant 0 : i32
    %c0_i32_2 = arith.constant 0 : i32
    return %c0_i32, %c0_i32_0, %c0_i32_1 : i32, i32, i32
  }
  func.func @transform_18(%arg0: i32) -> (i32, i32, i32) {
    %c0_i32 = arith.constant 0 : i32
    %c0_i32_0 = arith.constant 0 : i32
    %c0_i32_1 = arith.constant 0 : i32
    %c0_i32_2 = arith.constant 0 : i32
    return %c0_i32, %c0_i32_0, %c0_i32_1 : i32, i32, i32
  }
  func.func @transform_19(%arg0: i32) -> (i32, i32) {
    %c0_i32 = arith.constant 0 : i32
    %c0_i32_0 = arith.constant 0 : i32
    %c0_i32_1 = arith.constant 0 : i32
    return %c0_i32, %c0_i32_0 : i32, i32
  }
  func.func @transform_20(%arg0: i32) -> (i32, i32) {
    %c0_i32 = arith.constant 0 : i32
    %c0_i32_0 = arith.constant 0 : i32
    %c0_i32_1 = arith.constant 0 : i32
    return %c0_i32, %c0_i32_0 : i32, i32
  }
}

</mosaic_0001>

<bundles_post_ra>
// kernel: detr_forward.1
= control target key start
LH: loop header
LB: loop body
LE: loop exit
PB: predicated region body
PF: predicated region fallthrough
CT: control target
= control target key end

     0   :  { %vm2675_vm0 = vcmask 523264   ;;  %vm15218_vm1 = vmmov 0   ;;  %s15219_s30 = smov 112   ;;  %s15220_s21 = smov 64   ;;  %vm2750_vm2 = vcmask 130048   ;;  %vm3550_vm3 = vcmask 261120   ;;  %s18825_s2 = inlined_call_operand.vmem [shape: bf16[3072,128], index: 2, kind: input, shape index: {}]   ;;  %s18826_s0 = inlined_call_operand.vmem [shape: bf16[32,3072], index: 0, kind: input, shape index: {}]   ;;  %s18827_s16 = inlined_call_operand.vmem [shape: f32[2,128], index: 16, kind: input, shape index: {}]   ;;  %s18828_s3 = inlined_call_operand.vmem [shape: bf16[128,64], index: 3, kind: input, shape index: {}]   ;;  %s18829_s4 = inlined_call_operand.vmem [shape: bf16[2,64,192], index: 4, kind: input, shape index: {}]   ;;  %s18830_s1 = inlined_call_operand.vmem [shape: f32[32,64], index: 1, kind: input, shape index: {}]   ;;  %s18831_s17 = inlined_call_operand.vmem [shape: f32[2,8,192], index: 17, kind: input, shape index: {}]   ;;  %s18832_s5 = inlined_call_operand.vmem [shape: bf16[2,64,64], index: 5, kind: input, shape index: {}]   ;;  %s18833_s6 = inlined_call_operand.vmem [shape: bf16[2,64,128], index: 6, kind: input, shape index: {}]   ;;  %s18834_s7 = inlined_call_operand.vmem [shape: bf16[2,128,64], index: 7, kind: input, shape index: {}]   ;;  %s18835_s8 = inlined_call_operand.vmem [shape: bf16[2,64,192], index: 8, kind: input, shape index: {}]   ;;  %s18836_s18 = inlined_call_operand.vmem [shape: f32[2,13,192], index: 18, kind: input, shape index: {}]   ;;  %s18837_s9 = inlined_call_operand.vmem [shape: bf16[2,64,64], index: 9, kind: input, shape index: {}]   ;;  %s18838_s11 = inlined_call_operand.vmem [shape: bf16[2,64,128], index: 11, kind: input, shape index: {}]   ;;  %s18839_s10 = inlined_call_operand.vmem [shape: bf16[2,64,64], index: 10, kind: input, shape index: {}]   ;;  %s18840_s19 = inlined_call_operand.vmem [shape: f32[5,128], index: 19, kind: input, shape index: {}]   ;;  %s18841_s12 = inlined_call_operand.vmem [shape: bf16[2,64,64], index: 12, kind: input, shape index: {}]   ;;  %s18842_s13 = inlined_call_operand.vmem [shape: bf16[2,64,128], index: 13, kind: input, shape index: {}]   ;;  %s18843_s14 = inlined_call_operand.vmem [shape: bf16[2,128,64], index: 14, kind: input, shape index: {}]   ;;  %s18844_s15 = inlined_call_operand.vmem [shape: bf16[64,128], index: 15, kind: input, shape index: {}]   ;;  %s18845_s20 = inlined_call_operand.vmem [shape: f32[32,128], index: 20, kind: output, shape index: {}]  }
   0x1   :  { %18854 = sst [smem:[#allocation2_spill]] %s18825_s2  ;;  %s15222_s22 = smov 48   ;;  %vm3553_vm4 = vcmask 392192  }
   0x2   :  { %18855 = sst [smem:[#allocation3_spill]] %s18826_s0  ;;  %s18859_s23 = sld [smem:[#allocation2_spill]] }
   0x3   :  { %18856 = sst [smem:[#allocation4_spill]] %s18827_s16  ;;  %s18860_s29 = sld [smem:[#allocation3_spill]] }
   0x4   :  { %18857 = sst [smem:[#allocation5_spill]] %s18828_s3  ;;  %s18861_s28 = sld [smem:[#allocation4_spill]] }
   0x5   :  { %18858 = sst [smem:[#allocation6_spill]] %s18829_s4  ;;  %s18862_s2 = sld [smem:[#allocation5_spill]] }
   0x6   :  { %s18863_s0 = sld [smem:[#allocation6_spill]]  ;;  %s18852_s24 = smov 96  }
   0x7   :  { %s15224_s16 = smov 16   ;;  %s18850_s25 = smov 80  }
   0x8   :  { %v14372_v0 = vld [vmem:[%s18859_s23 + $0x40] sm:$0xff]   ;;  %v14376_v4 = vld [vmem:[%s18859_s23 + $0x48] sm:$0xff]   ;;  %v14380_v8 = vld [vmem:[%s18859_s23 + $0x50] sm:$0xff]   ;;  %s18864_s26 = smov 96  }
   0x9   :  { %v14373_v1 = vld [vmem:[%s18859_s23 + $0xc0] sm:$0xff]   ;;  %12658 = vmatprep.subr.bf16.mxu0 %v14372_v0  ;;  %v14377_v5 = vld [vmem:[%s18859_s23 + $0xc8] sm:$0xff]   ;;  %v14381_v9 = vld [vmem:[%s18859_s23 + $0xd0] sm:$0xff]  }
   0xa   :  { %v14374_v2 = vld [vmem:[%s18859_s23] sm:$0xff]   ;;  %12686 = vmatprep.subr.bf16.mxu1 %v14373_v1  ;;  %v14378_v6 = vld [vmem:[%s18859_s23 + $0x8] sm:$0xff]   ;;  %v14382_v10 = vld [vmem:[%s18859_s23 + $0x10] sm:$0xff]  }
   0xb   :  { %v14375_v3 = vld [vmem:[%s18859_s23 + $0x80] sm:$0xff]   ;;  %12659 = vmatpush3.bf16.msra.mxu0 %v14374_v2  ;;  %v14379_v7 = vld [vmem:[%s18859_s23 + $0x88] sm:$0xff]   ;;  %v14383_v11 = vld [vmem:[%s18859_s23 + $0x90] sm:$0xff]  }
   0xc   :  { %12687 = vmatpush3.bf16.msra.mxu1 %v14375_v3  ;;  %12660 = vmatprep.subr.bf16.mxu0 %v14376_v4  ;;  %v14384_v12 = vld [vmem:[%s18859_s23 + $0x58] sm:$0xff]   ;;  %v14388_v16 = vld [vmem:[%s18859_s23 + $0x60] sm:$0xff]   ;;  %v14392_v20 = vld [vmem:[%s18859_s23 + $0x68] sm:$0xff]  }
   0xd   :  { %12688 = vmatprep.subr.bf16.mxu1 %v14377_v5  ;;  %v14385_v13 = vld [vmem:[%s18859_s23 + $0xd8] sm:$0xff]   ;;  %v14389_v17 = vld [vmem:[%s18859_s23 + $0xe0] sm:$0xff]   ;;  %v14393_v21 = vld [vmem:[%s18859_s23 + $0xe8] sm:$0xff]  }
   0xe   :  { %v14386_v14 = vld [vmem:[%s18859_s23 + $0x18] sm:$0xff]   ;;  %v14390_v18 = vld [vmem:[%s18859_s23 + $0x20] sm:$0xff]   ;;  %v14394_v22 = vld [vmem:[%s18859_s23 + $0x28] sm:$0xff]  }
   0xf   :  { %12661 = vmatpush3.bf16.msra.mxu0 %v14378_v6  ;;  %v14387_v15 = vld [vmem:[%s18859_s23 + $0x98] sm:$0xff]   ;;  %v14391_v19 = vld [vmem:[%s18859_s23 + $0xa0] sm:$0xff]   ;;  %v14395_v23 = vld [vmem:[%s18859_s23 + $0xa8] sm:$0xff]  }
  0x10   :  { %12689 = vmatpush3.bf16.msra.mxu1 %v14379_v7  ;;  %12662 = vmatprep.subr.bf16.mxu0 %v14380_v8  ;;  %v14396_v24 = vld [vmem:[%s18859_s23 + $0x70] sm:$0xff]   ;;  %v14400_v28 = vld [vmem:[%s18859_s23 + $0x78] sm:$0xff]   ;;  %v67_v32 = vld [vmem:[%s18860_s29] sm:$0xff] }
  0x11   :  { %12690 = vmatprep.subr.bf16.mxu1 %v14381_v9  ;;  %v14397_v25 = vld [vmem:[%s18859_s23 + $0xf0] sm:$0xff]   ;;  %v14401_v29 = vld [vmem:[%s18859_s23 + $0xf8] sm:$0xff]   ;;  %v79_v33 = vld [vmem:[%s18860_s29 + $0x60] sm:$0xff] }
  0x12   :  { %v14398_v26 = vld [vmem:[%s18859_s23 + $0x30] sm:$0xff]   ;;  %v14402_v30 = vld [vmem:[%s18859_s23 + $0x38] sm:$0xff]   ;;  %v68_v34 = vld [vmem:[%s18860_s29 + $0x8] sm:$0xff]  ;;  %v12039_v35 = vcombine.low %v67_v32, %v79_v33  ;;  %v12040_v36 = vcombine.high %v67_v32, %v79_v33 }
  0x13   :  { %12663 = vmatpush3.bf16.msra.mxu0 %v14382_v10  ;;  %v14399_v27 = vld [vmem:[%s18859_s23 + $0xb0] sm:$0xff]   ;;  %v14403_v31 = vld [vmem:[%s18859_s23 + $0xb8] sm:$0xff]   ;;  %v80_v37 = vld [vmem:[%s18860_s29 + $0x68] sm:$0xff] }
  0x14   :  { %12691 = vmatpush3.bf16.msra.mxu1 %v14383_v11  ;;  %12664 = vmatprep.subr.bf16.mxu0 %v14384_v12  ;;  %v12041_v38 = vcombine.low %v68_v34, %v80_v37  ;;  %v12042_v39 = vcombine.high %v68_v34, %v80_v37  ;;  %v14404_v40 = vld [vmem:[%s18859_s23 + $0x140] sm:$0xff]   ;;  %v14408_v44 = vld [vmem:[%s18859_s23 + $0x148] sm:$0xff]   ;;  %v14412_v48 = vld [vmem:[%s18859_s23 + $0x150] sm:$0xff]  }
  0x15   :  { %12692 = vmatprep.subr.bf16.mxu1 %v14385_v13  ;;  %1927 = vmatprep.mubr.bf16.mxu0 %v12040_v36  ;;  %v14405_v41 = vld [vmem:[%s18859_s23 + $0x1c0] sm:$0xff]   ;;  %v14409_v45 = vld [vmem:[%s18859_s23 + $0x1c8] sm:$0xff]   ;;  %v14413_v49 = vld [vmem:[%s18859_s23 + $0x1d0] sm:$0xff]  }
  0x16   :  { %1976 = vmatprep.mubr.bf16.mxu1 %v12042_v39  ;;  %v14406_v42 = vld [vmem:[%s18859_s23 + $0x100] sm:$0xff]   ;;  %v14410_v46 = vld [vmem:[%s18859_s23 + $0x108] sm:$0xff]   ;;  %v14414_v50 = vld [vmem:[%s18859_s23 + $0x110] sm:$0xff]  }
  0x17   :  { %12665 = vmatpush3.bf16.msra.mxu0 %v14386_v14  ;;  %v14407_v43 = vld [vmem:[%s18859_s23 + $0x180] sm:$0xff]   ;;  %v14411_v47 = vld [vmem:[%s18859_s23 + $0x188] sm:$0xff]   ;;  %v14415_v51 = vld [vmem:[%s18859_s23 + $0x190] sm:$0xff]  }
  0x18   :  { %12693 = vmatpush3.bf16.msra.mxu1 %v14387_v15  ;;  %12666 = vmatprep.subr.bf16.mxu0 %v14388_v16  ;;  %v14416_v52 = vld [vmem:[%s18859_s23 + $0x158] sm:$0xff]   ;;  %v14420_v56 = vld [vmem:[%s18859_s23 + $0x160] sm:$0xff]   ;;  %v14424_v60 = vld [vmem:[%s18859_s23 + $0x168] sm:$0xff]  }
  0x19   :  { %12694 = vmatprep.subr.bf16.mxu1 %v14389_v17  ;;  %v14417_v53 = vld [vmem:[%s18859_s23 + $0x1d8] sm:$0xff]   ;;  %v14421_v57 = vld [vmem:[%s18859_s23 + $0x1e0] sm:$0xff]   ;;  %v14425_v61 = vld [vmem:[%s18859_s23 + $0x1e8] sm:$0xff]  }
  0x1a   :  { %v14418_v54 = vld [vmem:[%s18859_s23 + $0x118] sm:$0xff]   ;;  %v14422_v58 = vld [vmem:[%s18859_s23 + $0x120] sm:$0xff]   ;;  %v14426_v1 = vld [vmem:[%s18859_s23 + $0x128] sm:$0xff]  }
  0x1b   :  { %12667 = vmatpush3.bf16.msra.mxu0 %v14390_v18  ;;  %v14419_v55 = vld [vmem:[%s18859_s23 + $0x198] sm:$0xff]   ;;  %v14423_v59 = vld [vmem:[%s18859_s23 + $0x1a0] sm:$0xff]   ;;  %v14427_v3 = vld [vmem:[%s18859_s23 + $0x1a8] sm:$0xff]  }
  0x1c   :  { %12695 = vmatpush3.bf16.msra.mxu1 %v14391_v19  ;;  %12668 = vmatprep.subr.bf16.mxu0 %v14392_v20  ;;  %v91_v62 = vld [vmem:[%s18860_s29 + $0xc0] sm:$0xff]  ;;  %v92_v4 = vld [vmem:[%s18860_s29 + $0xc8] sm:$0xff]  ;;  %v14428_v8 = vld [vmem:[%s18859_s23 + $0x170] sm:$0xff]  }
  0x1d   :  { %12696 = vmatprep.subr.bf16.mxu1 %v14393_v21  ;;  %v103_v63 = vld [vmem:[%s18860_s29 + $0x120] sm:$0xff]  ;;  %v104_v5 = vld [vmem:[%s18860_s29 + $0x128] sm:$0xff]  ;;  %v14429_v9 = vld [vmem:[%s18859_s23 + $0x1f0] sm:$0xff]  }
  0x1e   :  { %v12064_v0 = vcombine.high %v91_v62, %v103_v63  ;;  %v12063_v2 = vcombine.low %v91_v62, %v103_v63  ;;  %v12066_v6 = vcombine.high %v92_v4, %v104_v5  ;;  %v12065_v7 = vcombine.low %v92_v4, %v104_v5  ;;  %v14430_v10 = vld [vmem:[%s18859_s23 + $0x130] sm:$0xff]   ;;  %v14432_v12 = vld [vmem:[%s18859_s23 + $0x178] sm:$0xff]   ;;  %v72_v4 = vld [vmem:[%s18860_s29 + $0x28] sm:$0xff] }
  0x1f   :  { %12669 = vmatpush3.bf16.msra.mxu0 %v14394_v22  ;;  %v14431_v11 = vld [vmem:[%s18859_s23 + $0x1b0] sm:$0xff]   ;;  %v14433_v13 = vld [vmem:[%s18859_s23 + $0x1f8] sm:$0xff]   ;;  %v84_v5 = vld [vmem:[%s18860_s29 + $0x88] sm:$0xff] }
  0x20   :  { %12697 = vmatpush3.bf16.msra.mxu1 %v14395_v23  ;;  %12670 = vmatprep.subr.bf16.mxu0 %v14396_v24  ;;  %v14434_v14 = vld [vmem:[%s18859_s23 + $0x138] sm:$0xff]   ;;  %v69_v16 = vld [vmem:[%s18860_s29 + $0x10] sm:$0xff]  ;;  %v14436_v24 = vld [vmem:[%s18859_s23 + $0x240] sm:$0xff]  }
  0x21   :  { %12698 = vmatprep.subr.bf16.mxu1 %v14397_v25  ;;  %v14435_v15 = vld [vmem:[%s18859_s23 + $0x1b8] sm:$0xff]   ;;  %v81_v17 = vld [vmem:[%s18860_s29 + $0x70] sm:$0xff]  ;;  %v14437_v25 = vld [vmem:[%s18859_s23 + $0x2c0] sm:$0xff]  }
  0x22   :  { %v70_v18 = vld [vmem:[%s18860_s29 + $0x18] sm:$0xff]  ;;  %v12043_v20 = vcombine.low %v69_v16, %v81_v17  ;;  %v12044_v21 = vcombine.high %v69_v16, %v81_v17  ;;  %v93_v32 = vld [vmem:[%s18860_s29 + $0xd0] sm:$0xff]  ;;  %v95_v16 = vld [vmem:[%s18860_s29 + $0xe0] sm:$0xff] }
  0x23   :  { %12671 = vmatpush3.bf16.msra.mxu0 %v14398_v26  ;;  %v82_v19 = vld [vmem:[%s18860_s29 + $0x78] sm:$0xff]  ;;  %v14438_v26 = vld [vmem:[%s18859_s23 + $0x200] sm:$0xff]   ;;  %v105_v33 = vld [vmem:[%s18860_s29 + $0x130] sm:$0xff] }
  0x24   :  { %12699 = vmatpush3.bf16.msra.mxu1 %v14399_v27  ;;  %12672 = vmatprep.subr.bf16.mxu0 %v14400_v28  ;;  %v12045_v22 = vcombine.low %v70_v18, %v82_v19  ;;  %v12046_v23 = vcombine.high %v70_v18, %v82_v19  ;;  %v14439_v27 = vld [vmem:[%s18859_s23 + $0x280] sm:$0xff]   ;;  %v14440_v28 = vld [vmem:[%s18859_s23 + $0x248] sm:$0xff]   ;;  %v12068_v34 = vcombine.high %v93_v32, %v105_v33  ;;  %v14444_v36 = vld [vmem:[%s18859_s23 + $0x250] sm:$0xff]  }
  0x25   :  { %12700 = vmatprep.subr.bf16.mxu1 %v14401_v29  ;;  %v14441_v29 = vld [vmem:[%s18859_s23 + $0x2c8] sm:$0xff]   ;;  %v14445_v37 = vld [vmem:[%s18859_s23 + $0x2d0] sm:$0xff]   ;;  %v106_v39 = vld [vmem:[%s18860_s29 + $0x138] sm:$0xff] }
  0x26   :  { %v14466_v62 = vld [vmem:[%s18859_s23 + $0x238] sm:$0xff]   ;;  %v107_v17 = vld [vmem:[%s18860_s29 + $0x140] sm:$0xff] }
  0x27   :  { %12673 = vmatpush3.bf16.msra.mxu0 %v14402_v30  ;;  %v14442_v30 = vld [vmem:[%s18859_s23 + $0x208] sm:$0xff]   ;;  %v14467_v63 = vld [vmem:[%s18859_s23 + $0x2b8] sm:$0xff]   ;;  %v12072_v18 = vcombine.high %v95_v16, %v107_v17  ;;  %v12071_v19 = vcombine.low %v95_v16, %v107_v17  ;;  %v14516_v16 = vld [vmem:[%s18859_s23 + $0x460] sm:$0xff]  }
  0x28   :  { %12701 = vmatpush3.bf16.msra.mxu1 %v14403_v31  ;;  %12714 = vmatprep.subr.bf16.mxu0 %v14404_v40  ;;  %v14443_v31 = vld [vmem:[%s18859_s23 + $0x288] sm:$0xff]   ;;  %v14517_v17 = vld [vmem:[%s18859_s23 + $0x4e0] sm:$0xff]  }
  0x29   :  { %12742 = vmatprep.subr.bf16.mxu1 %v14405_v41  ;;  %v14446_v41 = vld [vmem:[%s18859_s23 + $0x210] sm:$0xff]  }
  0x2a   :  { %1928 = vmatmul.mubr.bf16.vlgmr.msra.gmra.mrb[0].mxu0 %v12039_v35  ;;  %v12067_v35 = vcombine.low %v93_v32, %v105_v33  ;;  %v14484_v32 = vld [vmem:[%s18859_s23 + $0x360] sm:$0xff]  }
  0x2b   :  { %1977 = vmatmul.mubr.bf16.vlgmr.msra.gmra.mrb[0].mxu1 %v12041_v38  ;;  %12715 = vmatpush3.bf16.msra.mxu0 %v14406_v42  ;;  %v94_v38 = vld [vmem:[%s18860_s29 + $0xd8] sm:$0xff]  ;;  %v14485_v33 = vld [vmem:[%s18859_s23 + $0x3e0] sm:$0xff]  }
  0x2c   :  { %12743 = vmatpush3.bf16.msra.mxu1 %v14407_v43  ;;  %12716 = vmatprep.subr.bf16.mxu0 %v14408_v44  ;;  %v12070_v40 = vcombine.high %v94_v38, %v106_v39  ;;  %v12069_v42 = vcombine.low %v94_v38, %v106_v39  ;;  %v14447_v43 = vld [vmem:[%s18859_s23 + $0x290] sm:$0xff]   ;;  %v14448_v44 = vld [vmem:[%s18859_s23 + $0x258] sm:$0xff]   ;;  %v14490_v38 = vld [vmem:[%s18859_s23 + $0x328] sm:$0xff]  }
  0x2d   :  { %12744 = vmatprep.subr.bf16.mxu1 %v14409_v45  ;;  %1935 = vmatprep.mubr.bf16.mxu0 %v12064_v0  ;;  %v14449_v45 = vld [vmem:[%s18859_s23 + $0x2d8] sm:$0xff]   ;;  %v71_v0 = vld [vmem:[%s18860_s29 + $0x20] sm:$0xff]  ;;  %v14491_v39 = vld [vmem:[%s18859_s23 + $0x3a8] sm:$0xff]  }
  0x2e   :  { %1984 = vmatprep.mubr.bf16.mxu1 %v12066_v6  ;;  %v12049_v6 = vcombine.low %v72_v4, %v84_v5 }
  0x2f   :  { %12717 = vmatpush3.bf16.msra.mxu0 %v14410_v46  ;;  %v14450_v46 = vld [vmem:[%s18859_s23 + $0x218] sm:$0xff]  }
  0x30   :  { %12745 = vmatpush3.bf16.msra.mxu1 %v14411_v47  ;;  %12718 = vmatprep.subr.bf16.mxu0 %v14412_v48  ;;  %v14451_v47 = vld [vmem:[%s18859_s23 + $0x298] sm:$0xff]   ;;  %v14452_v48 = vld [vmem:[%s18859_s23 + $0x260] sm:$0xff]  }
  0x31   :  { %12746 = vmatprep.subr.bf16.mxu1 %v14413_v49  ;;  %v14453_v49 = vld [vmem:[%s18859_s23 + $0x2e0] sm:$0xff]  }
  0x32   :  { %1936 = vmatmul.mubr.bf16.gmra.mrb[4].mxu0 %v12063_v2 }
  0x33   :  { %12719 = vmatpush3.bf16.msra.mxu0 %v14414_v50  ;;  %1985 = vmatmul.mubr.bf16.gmra.mrb[4].mxu1 %v12065_v7  ;;  %v14454_v50 = vld [vmem:[%s18859_s23 + $0x220] sm:$0xff]   ;;  %v12050_v7 = vcombine.high %v72_v4, %v84_v5  ;;  %v14508_v4 = vld [vmem:[%s18859_s23 + $0x450] sm:$0xff]  }
  0x34   :  { %12747 = vmatpush3.bf16.msra.mxu1 %v14415_v51  ;;  %12720 = vmatprep.subr.bf16.mxu0 %v14416_v52  ;;  %v14455_v51 = vld [vmem:[%s18859_s23 + $0x2a0] sm:$0xff]   ;;  %v14456_v52 = vld [vmem:[%s18859_s23 + $0x268] sm:$0xff]   ;;  %v14509_v5 = vld [vmem:[%s18859_s23 + $0x4d0] sm:$0xff]  }
  0x35   :  { %12748 = vmatprep.subr.bf16.mxu1 %v14417_v53  ;;  %2025 = vmatprep.mubr.bf16.mxu0 %v12044_v21  ;;  %v14457_v53 = vld [vmem:[%s18859_s23 + $0x2e8] sm:$0xff]   ;;  %v14477_v21 = vld [vmem:[%s18859_s23 + $0x3d0] sm:$0xff]  }
  0x36   :  { %2074 = vmatprep.mubr.bf16.mxu1 %v12046_v23  ;;  %v108_v23 = vld [vmem:[%s18860_s29 + $0x148] sm:$0xff] }
  0x37   :  { %12721 = vmatpush3.bf16.msra.mxu0 %v14418_v54  ;;  %v14458_v54 = vld [vmem:[%s18859_s23 + $0x228] sm:$0xff]  }
  0x38   :  { %12749 = vmatpush3.bf16.msra.mxu1 %v14419_v55  ;;  %12722 = vmatprep.subr.bf16.mxu0 %v14420_v56  ;;  %v14459_v55 = vld [vmem:[%s18859_s23 + $0x2a8] sm:$0xff]   ;;  %v14460_v56 = vld [vmem:[%s18859_s23 + $0x270] sm:$0xff]  }
  0x39   :  { %12750 = vmatprep.subr.bf16.mxu1 %v14421_v57  ;;  %v14461_v57 = vld [vmem:[%s18859_s23 + $0x2f0] sm:$0xff]  }
  0x3b   :  { %12723 = vmatpush3.bf16.msra.mxu0 %v14422_v58  ;;  %v14462_v58 = vld [vmem:[%s18859_s23 + $0x230] sm:$0xff]  }
  0x3c   :  { %12751 = vmatpush3.bf16.msra.mxu1 %v14423_v59  ;;  %12724 = vmatprep.subr.bf16.mxu0 %v14424_v60  ;;  %v14463_v59 = vld [vmem:[%s18859_s23 + $0x2b0] sm:$0xff]   ;;  %v14464_v60 = vld [vmem:[%s18859_s23 + $0x278] sm:$0xff]  }
  0x3d   :  { %12752 = vmatprep.subr.bf16.mxu1 %v14425_v61  ;;  %v14465_v61 = vld [vmem:[%s18859_s23 + $0x2f8] sm:$0xff]  }
  0x3f   :  { %12725 = vmatpush3.bf16.msra.mxu0 %v14426_v1  ;;  %v83_v1 = vld [vmem:[%s18860_s29 + $0x80] sm:$0xff] }
  0x40   :  { %12753 = vmatpush3.bf16.msra.mxu1 %v14427_v3  ;;  %12726 = vmatprep.subr.bf16.mxu0 %v14428_v8  ;;  %v12047_v2 = vcombine.low %v71_v0, %v83_v1  ;;  %v12048_v3 = vcombine.high %v71_v0, %v83_v1  ;;  %v14468_v8 = vld [vmem:[%s18859_s23 + $0x340] sm:$0xff]   ;;  %v97_v0 = vld [vmem:[%s18860_s29 + $0xf0] sm:$0xff] }
  0x41   :  { %12754 = vmatprep.subr.bf16.mxu1 %v14429_v9  ;;  %v14469_v9 = vld [vmem:[%s18859_s23 + $0x3c0] sm:$0xff]   ;;  %v109_v1 = vld [vmem:[%s18860_s29 + $0x150] sm:$0xff] }
  0x43   :  { %12727 = vmatpush3.bf16.msra.mxu0 %v14430_v10  ;;  %v14470_v10 = vld [vmem:[%s18859_s23 + $0x300] sm:$0xff]  }
  0x44   :  { %12755 = vmatpush3.bf16.msra.mxu1 %v14431_v11  ;;  %12728 = vmatprep.subr.bf16.mxu0 %v14432_v12  ;;  %v14471_v11 = vld [vmem:[%s18859_s23 + $0x380] sm:$0xff]   ;;  %v14472_v12 = vld [vmem:[%s18859_s23 + $0x348] sm:$0xff]  }
  0x45   :  { %12756 = vmatprep.subr.bf16.mxu1 %v14433_v13  ;;  %v14473_v13 = vld [vmem:[%s18859_s23 + $0x3c8] sm:$0xff]  }
  0x47   :  { %12729 = vmatpush3.bf16.msra.mxu0 %v14434_v14  ;;  %v14474_v14 = vld [vmem:[%s18859_s23 + $0x308] sm:$0xff]  }
  0x48   :  { %12757 = vmatpush3.bf16.msra.mxu1 %v14435_v15  ;;  %12770 = vmatprep.subr.bf16.mxu0 %v14436_v24  ;;  %v14475_v15 = vld [vmem:[%s18859_s23 + $0x388] sm:$0xff]  }
  0x49   :  { %12798 = vmatprep.subr.bf16.mxu1 %v14437_v25  ;;  %v14478_v25 = vld [vmem:[%s18859_s23 + $0x310] sm:$0xff]  }
  0x4a   :  { %2026 = vmatmul.mubr.bf16.vlgmr.msra.gmra.mrb[8].mxu0 %v12043_v20  ;;  %v14476_v20 = vld [vmem:[%s18859_s23 + $0x350] sm:$0xff]  }
  0x4b   :  { %2075 = vmatmul.mubr.bf16.vlgmr.msra.gmra.mrb[8].mxu1 %v12045_v22  ;;  %12771 = vmatpush3.bf16.msra.mxu0 %v14438_v26  ;;  %v96_v22 = vld [vmem:[%s18860_s29 + $0xe8] sm:$0xff] }
  0x4c   :  { %12799 = vmatpush3.bf16.msra.mxu1 %v14439_v27  ;;  %12772 = vmatprep.subr.bf16.mxu0 %v14440_v28  ;;  %v12074_v24 = vcombine.high %v96_v22, %v108_v23  ;;  %v12073_v26 = vcombine.low %v96_v22, %v108_v23  ;;  %v14479_v27 = vld [vmem:[%s18859_s23 + $0x390] sm:$0xff]   ;;  %v14480_v28 = vld [vmem:[%s18859_s23 + $0x358] sm:$0xff]   ;;  %v14522_v22 = vld [vmem:[%s18859_s23 + $0x428] sm:$0xff]  }
  0x4d   :  { %12800 = vmatprep.subr.bf16.mxu1 %v14441_v29  ;;  %2033 = vmatprep.mubr.bf16.mxu0 %v12068_v34  ;;  %v14481_v29 = vld [vmem:[%s18859_s23 + $0x3d8] sm:$0xff]   ;;  %v14486_v34 = vld [vmem:[%s18859_s23 + $0x320] sm:$0xff]   ;;  %v14523_v23 = vld [vmem:[%s18859_s23 + $0x4a8] sm:$0xff]  }
  0x4e   :  { %2082 = vmatprep.mubr.bf16.mxu1 %v12070_v40  ;;  %v14492_v40 = vld [vmem:[%s18859_s23 + $0x370] sm:$0xff]  }
  0x4f   :  { %12773 = vmatpush3.bf16.msra.mxu0 %v14442_v30  ;;  %v14482_v30 = vld [vmem:[%s18859_s23 + $0x318] sm:$0xff]  }
  0x50   :  { %12801 = vmatpush3.bf16.msra.mxu1 %v14443_v31  ;;  %12774 = vmatprep.subr.bf16.mxu0 %v14444_v36  ;;  %v14483_v31 = vld [vmem:[%s18859_s23 + $0x398] sm:$0xff]   ;;  %v14488_v36 = vld [vmem:[%s18859_s23 + $0x368] sm:$0xff]  }
  0x51   :  { %12802 = vmatprep.subr.bf16.mxu1 %v14445_v37  ;;  %v14489_v37 = vld [vmem:[%s18859_s23 + $0x3e8] sm:$0xff]  }
  0x52   :  { %2034 = vmatmul.mubr.bf16.gmra.mrb[12].mxu0 %v12067_v35  ;;  %v14487_v35 = vld [vmem:[%s18859_s23 + $0x3a0] sm:$0xff]  }
  0x53   :  { %12775 = vmatpush3.bf16.msra.mxu0 %v14446_v41  ;;  %2083 = vmatmul.mubr.bf16.gmra.mrb[12].mxu1 %v12069_v42  ;;  %v14493_v41 = vld [vmem:[%s18859_s23 + $0x3f0] sm:$0xff]  }
  0x54   :  { %12803 = vmatpush3.bf16.msra.mxu1 %v14447_v43  ;;  %12776 = vmatprep.subr.bf16.mxu0 %v14448_v44  ;;  %v14494_v42 = vld [vmem:[%s18859_s23 + $0x330] sm:$0xff]   ;;  %v14496_v44 = vld [vmem:[%s18859_s23 + $0x378] sm:$0xff]  }
  0x55   :  { %12804 = vmatprep.subr.bf16.mxu1 %v14449_v45  ;;  %2123 = vmatprep.mubr.bf16.mxu0 %v12048_v3  ;;  %v14495_v43 = vld [vmem:[%s18859_s23 + $0x3b0] sm:$0xff]   ;;  %v14497_v45 = vld [vmem:[%s18859_s23 + $0x3f8] sm:$0xff]   ;;  %v12075_v3 = vcombine.low %v97_v0, %v109_v1 }
  0x56   :  { %2172 = vmatprep.mubr.bf16.mxu1 %v12050_v7  ;;  %v110_v7 = vld [vmem:[%s18860_s29 + $0x158] sm:$0xff] }
  0x57   :  { %12777 = vmatpush3.bf16.msra.mxu0 %v14450_v46  ;;  %v14498_v46 = vld [vmem:[%s18859_s23 + $0x338] sm:$0xff]  }
  0x58   :  { %12805 = vmatpush3.bf16.msra.mxu1 %v14451_v47  ;;  %12778 = vmatprep.subr.bf16.mxu0 %v14452_v48  ;;  %v14499_v47 = vld [vmem:[%s18859_s23 + $0x3b8] sm:$0xff]   ;;  %v73_v48 = vld [vmem:[%s18860_s29 + $0x30] sm:$0xff] }
  0x59   :  { %12806 = vmatprep.subr.bf16.mxu1 %v14453_v49  ;;  %v85_v49 = vld [vmem:[%s18860_s29 + $0x90] sm:$0xff] }
  0x5b   :  { %12779 = vmatpush3.bf16.msra.mxu0 %v14454_v50  ;;  %v74_v50 = vld [vmem:[%s18860_s29 + $0x38] sm:$0xff] }
  0x5c   :  { %12807 = vmatpush3.bf16.msra.mxu1 %v14455_v51  ;;  %12780 = vmatprep.subr.bf16.mxu0 %v14456_v52  ;;  %v12051_v51 = vcombine.low %v73_v48, %v85_v49  ;;  %v12052_v52 = vcombine.high %v73_v48, %v85_v49  ;;  %v99_v48 = vld [vmem:[%s18860_s29 + $0x100] sm:$0xff] }
  0x5d   :  { %12808 = vmatprep.subr.bf16.mxu1 %v14457_v53  ;;  %v86_v53 = vld [vmem:[%s18860_s29 + $0x98] sm:$0xff]  ;;  %v111_v49 = vld [vmem:[%s18860_s29 + $0x160] sm:$0xff] }
  0x5f   :  { %12781 = vmatpush3.bf16.msra.mxu0 %v14458_v54  ;;  %v12053_v54 = vcombine.low %v74_v50, %v86_v53 }
  0x60   :  { %12809 = vmatpush3.bf16.msra.mxu1 %v14459_v55  ;;  %12782 = vmatprep.subr.bf16.mxu0 %v14460_v56  ;;  %v12054_v55 = vcombine.high %v74_v50, %v86_v53  ;;  %v14500_v56 = vld [vmem:[%s18859_s23 + $0x440] sm:$0xff]   ;;  %v12080_v50 = vcombine.high %v99_v48, %v111_v49  ;;  %v14541_v53 = vld [vmem:[%s18859_s23 + $0x5d0] sm:$0xff]  }
  0x61   :  { %12810 = vmatprep.subr.bf16.mxu1 %v14461_v57  ;;  %v14501_v57 = vld [vmem:[%s18859_s23 + $0x4c0] sm:$0xff]  }
  0x63   :  { %12783 = vmatpush3.bf16.msra.mxu0 %v14462_v58  ;;  %v14502_v58 = vld [vmem:[%s18859_s23 + $0x400] sm:$0xff]  }
  0x64   :  { %12811 = vmatpush3.bf16.msra.mxu1 %v14463_v59  ;;  %12784 = vmatprep.subr.bf16.mxu0 %v14464_v60  ;;  %v14503_v59 = vld [vmem:[%s18859_s23 + $0x480] sm:$0xff]   ;;  %v14504_v60 = vld [vmem:[%s18859_s23 + $0x448] sm:$0xff]  }
  0x65   :  { %12812 = vmatprep.subr.bf16.mxu1 %v14465_v61  ;;  %v14505_v61 = vld [vmem:[%s18859_s23 + $0x4c8] sm:$0xff]  }
  0x67   :  { %12785 = vmatpush3.bf16.msra.mxu0 %v14466_v62  ;;  %v14506_v62 = vld [vmem:[%s18859_s23 + $0x408] sm:$0xff]  }
  0x68   :  { %12813 = vmatpush3.bf16.msra.mxu1 %v14467_v63  ;;  %12826 = vmatprep.subr.bf16.mxu0 %v14468_v8  ;;  %v14507_v63 = vld [vmem:[%s18859_s23 + $0x488] sm:$0xff]  }
  0x69   :  { %12854 = vmatprep.subr.bf16.mxu1 %v14469_v9  ;;  %v14510_v9 = vld [vmem:[%s18859_s23 + $0x410] sm:$0xff]  }
  0x6a   :  { %2124 = vmatmul.mubr.bf16.vlgmr.msra.gmra.mrb[16].mxu0 %v12047_v2  ;;  %v12076_v2 = vcombine.high %v97_v0, %v109_v1  ;;  %v14548_v0 = vld [vmem:[%s18859_s23 + $0x560] sm:$0xff]  }
  0x6b   :  { %2173 = vmatmul.mubr.bf16.vlgmr.msra.gmra.mrb[16].mxu1 %v12049_v6  ;;  %12827 = vmatpush3.bf16.msra.mxu0 %v14470_v10  ;;  %v98_v6 = vld [vmem:[%s18860_s29 + $0xf8] sm:$0xff]  ;;  %v14549_v1 = vld [vmem:[%s18859_s23 + $0x5e0] sm:$0xff]  }
  0x6c   :  { %12855 = vmatpush3.bf16.msra.mxu1 %v14471_v11  ;;  %12828 = vmatprep.subr.bf16.mxu0 %v14472_v12  ;;  %v12078_v8 = vcombine.high %v98_v6, %v110_v7  ;;  %v12077_v10 = vcombine.low %v98_v6, %v110_v7  ;;  %v14511_v11 = vld [vmem:[%s18859_s23 + $0x490] sm:$0xff]   ;;  %v14512_v12 = vld [vmem:[%s18859_s23 + $0x458] sm:$0xff]   ;;  %v14554_v6 = vld [vmem:[%s18859_s23 + $0x528] sm:$0xff]  }
  0x6d   :  { %12856 = vmatprep.subr.bf16.mxu1 %v14473_v13  ;;  %2131 = vmatprep.mubr.bf16.mxu0 %v12072_v18  ;;  %v14513_v13 = vld [vmem:[%s18859_s23 + $0x4d8] sm:$0xff]   ;;  %v14518_v18 = vld [vmem:[%s18859_s23 + $0x420] sm:$0xff]   ;;  %v14555_v7 = vld [vmem:[%s18859_s23 + $0x5a8] sm:$0xff]  }
  0x6e   :  { %2180 = vmatprep.mubr.bf16.mxu1 %v12074_v24  ;;  %v14524_v24 = vld [vmem:[%s18859_s23 + $0x470] sm:$0xff]  }
  0x6f   :  { %12829 = vmatpush3.bf16.msra.mxu0 %v14474_v14  ;;  %v14514_v14 = vld [vmem:[%s18859_s23 + $0x418] sm:$0xff]  }
  0x70   :  { %12857 = vmatpush3.bf16.msra.mxu1 %v14475_v15  ;;  %12830 = vmatprep.subr.bf16.mxu0 %v14476_v20  ;;  %v14515_v15 = vld [vmem:[%s18859_s23 + $0x498] sm:$0xff]   ;;  %v14520_v20 = vld [vmem:[%s18859_s23 + $0x468] sm:$0xff]  }
  0x71   :  { %12858 = vmatprep.subr.bf16.mxu1 %v14477_v21  ;;  %v14521_v21 = vld [vmem:[%s18859_s23 + $0x4e8] sm:$0xff]  }
  0x72   :  { %2132 = vmatmul.mubr.bf16.gmra.mrb[20].mxu0 %v12071_v19  ;;  %v14519_v19 = vld [vmem:[%s18859_s23 + $0x4a0] sm:$0xff]  }
  0x73   :  { %12831 = vmatpush3.bf16.msra.mxu0 %v14478_v25  ;;  %2181 = vmatmul.mubr.bf16.gmra.mrb[20].mxu1 %v12073_v26  ;;  %v14525_v25 = vld [vmem:[%s18859_s23 + $0x4f0] sm:$0xff]  }
  0x74   :  { %12859 = vmatpush3.bf16.msra.mxu1 %v14479_v27  ;;  %12832 = vmatprep.subr.bf16.mxu0 %v14480_v28  ;;  %v14526_v26 = vld [vmem:[%s18859_s23 + $0x430] sm:$0xff]   ;;  %v14528_v28 = vld [vmem:[%s18859_s23 + $0x478] sm:$0xff]  }
  0x75   :  { %12860 = vmatprep.subr.bf16.mxu1 %v14481_v29  ;;  %2221 = vmatprep.mubr.bf16.mxu0 %v12052_v52  ;;  %v14527_v27 = vld [vmem:[%s18859_s23 + $0x4b0] sm:$0xff]   ;;  %v14529_v29 = vld [vmem:[%s18859_s23 + $0x4f8] sm:$0xff]  }
  0x76   :  { %2270 = vmatprep.mubr.bf16.mxu1 %v12054_v55  ;;  %v14540_v52 = vld [vmem:[%s18859_s23 + $0x550] sm:$0xff]   ;;  %v112_v55 = vld [vmem:[%s18860_s29 + $0x168] sm:$0xff] }
  0x77   :  { %12833 = vmatpush3.bf16.msra.mxu0 %v14482_v30  ;;  %v14530_v30 = vld [vmem:[%s18859_s23 + $0x438] sm:$0xff]  }
  0x78   :  { %12861 = vmatpush3.bf16.msra.mxu1 %v14483_v31  ;;  %12834 = vmatprep.subr.bf16.mxu0 %v14484_v32  ;;  %v14531_v31 = vld [vmem:[%s18859_s23 + $0x4b8] sm:$0xff]   ;;  %v75_v32 = vld [vmem:[%s18860_s29 + $0x40] sm:$0xff] }
  0x79   :  { %12862 = vmatprep.subr.bf16.mxu1 %v14485_v33  ;;  %v87_v33 = vld [vmem:[%s18860_s29 + $0xa0] sm:$0xff] }
  0x7b   :  { %12835 = vmatpush3.bf16.msra.mxu0 %v14486_v34  ;;  %v76_v34 = vld [vmem:[%s18860_s29 + $0x48] sm:$0xff] }
  0x7c   :  { %12863 = vmatpush3.bf16.msra.mxu1 %v14487_v35  ;;  %12836 = vmatprep.subr.bf16.mxu0 %v14488_v36  ;;  %v88_v35 = vld [vmem:[%s18860_s29 + $0xa8] sm:$0xff]  ;;  %v12055_v36 = vcombine.low %v75_v32, %v87_v33 }
  0x7d   :  { %12864 = vmatprep.subr.bf16.mxu1 %v14489_v37  ;;  %v12056_v37 = vcombine.high %v75_v32, %v87_v33  ;;  %v499_v32 = vlaneseq }
  0x7f   :  { %12837 = vmatpush3.bf16.msra.mxu0 %v14490_v38  ;;  %v12057_v38 = vcombine.low %v76_v34, %v88_v35  ;;  %v16052_v33 = vshrl.u32 %v499_v32, 7 }
  0x80   :  { %12865 = vmatpush3.bf16.msra.mxu1 %v14491_v39  ;;  %12838 = vmatprep.subr.bf16.mxu0 %v14492_v40  ;;  %v12058_v39 = vcombine.high %v76_v34, %v88_v35  ;;  %v14532_v40 = vld [vmem:[%s18859_s23 + $0x540] sm:$0xff]  }
  0x81   :  { %12866 = vmatprep.subr.bf16.mxu1 %v14493_v41  ;;  %v14533_v41 = vld [vmem:[%s18859_s23 + $0x5c0] sm:$0xff]   ;;  %v16055_v34 = vsub.s32 0, %v16052_v33 }
  0x82   :  { %v16060_v35 = vld [vmem:[%s18861_s28] sm:$0x3] }
  0x83   :  { %12839 = vmatpush3.bf16.msra.mxu0 %v14494_v42  ;;  %v14534_v42 = vld [vmem:[%s18859_s23 + $0x500] sm:$0xff]  }
  0x84   :  { %12867 = vmatpush3.bf16.msra.mxu1 %v14495_v43  ;;  %12840 = vmatprep.subr.bf16.mxu0 %v14496_v44  ;;  %v14535_v43 = vld [vmem:[%s18859_s23 + $0x580] sm:$0xff]   ;;  %v14536_v44 = vld [vmem:[%s18859_s23 + $0x548] sm:$0xff]  }
  0x85   :  { %12868 = vmatprep.subr.bf16.mxu1 %v14497_v45  ;;  %v14537_v45 = vld [vmem:[%s18859_s23 + $0x5c8] sm:$0xff]  }
  0x87   :  { %12841 = vmatpush3.bf16.msra.mxu0 %v14498_v46  ;;  %v14538_v46 = vld [vmem:[%s18859_s23 + $0x508] sm:$0xff]  }
  0x88   :  { %12869 = vmatpush3.bf16.msra.mxu1 %v14499_v47  ;;  %12882 = vmatprep.subr.bf16.mxu0 %v14500_v56  ;;  %v14539_v47 = vld [vmem:[%s18859_s23 + $0x588] sm:$0xff]  }
  0x89   :  { %12910 = vmatprep.subr.bf16.mxu1 %v14501_v57  ;;  %v14542_v57 = vld [vmem:[%s18859_s23 + $0x510] sm:$0xff]  }
  0x8a   :  { %2222 = vmatmul.mubr.bf16.vlgmr.msra.gmra.mrb[24].mxu0 %v12051_v51  ;;  %v12079_v51 = vcombine.low %v99_v48, %v111_v49 }
  0x8b   :  { %2271 = vmatmul.mubr.bf16.vlgmr.msra.gmra.mrb[24].mxu1 %v12053_v54  ;;  %12883 = vmatpush3.bf16.msra.mxu0 %v14502_v58  ;;  %v100_v54 = vld [vmem:[%s18860_s29 + $0x108] sm:$0xff] }
  0x8c   :  { %12911 = vmatpush3.bf16.msra.mxu1 %v14503_v59  ;;  %12884 = vmatprep.subr.bf16.mxu0 %v14504_v60  ;;  %v12082_v56 = vcombine.high %v100_v54, %v112_v55  ;;  %v12081_v58 = vcombine.low %v100_v54, %v112_v55  ;;  %v14543_v59 = vld [vmem:[%s18859_s23 + $0x590] sm:$0xff]   ;;  %v14544_v60 = vld [vmem:[%s18859_s23 + $0x558] sm:$0xff]  }
  0x8d   :  { %12912 = vmatprep.subr.bf16.mxu1 %v14505_v61  ;;  %2229 = vmatprep.mubr.bf16.mxu0 %v12076_v2  ;;  %v14545_v61 = vld [vmem:[%s18859_s23 + $0x5d8] sm:$0xff]   ;;  %v14550_v2 = vld [vmem:[%s18859_s23 + $0x520] sm:$0xff]  }
  0x8e   :  { %2278 = vmatprep.mubr.bf16.mxu1 %v12078_v8  ;;  %v14556_v8 = vld [vmem:[%s18859_s23 + $0x570] sm:$0xff]  }
  0x8f   :  { %12885 = vmatpush3.bf16.msra.mxu0 %v14506_v62  ;;  %v14546_v62 = vld [vmem:[%s18859_s23 + $0x518] sm:$0xff]  }
  0x90   :  { %12913 = vmatpush3.bf16.msra.mxu1 %v14507_v63  ;;  %12886 = vmatprep.subr.bf16.mxu0 %v14508_v4  ;;  %v14547_v63 = vld [vmem:[%s18859_s23 + $0x598] sm:$0xff]   ;;  %v14552_v4 = vld [vmem:[%s18859_s23 + $0x568] sm:$0xff]  }
  0x91   :  { %12914 = vmatprep.subr.bf16.mxu1 %v14509_v5  ;;  %v14553_v5 = vld [vmem:[%s18859_s23 + $0x5e8] sm:$0xff]  }
  0x92   :  { %2230 = vmatmul.mubr.bf16.gmra.mrb[28].mxu0 %v12075_v3  ;;  %v14551_v3 = vld [vmem:[%s18859_s23 + $0x5a0] sm:$0xff]  }
  0x93   :  { %12887 = vmatpush3.bf16.msra.mxu0 %v14510_v9  ;;  %2279 = vmatmul.mubr.bf16.gmra.mrb[28].mxu1 %v12077_v10  ;;  %v14557_v9 = vld [vmem:[%s18859_s23 + $0x5f0] sm:$0xff]  }
  0x94   :  { %12915 = vmatpush3.bf16.msra.mxu1 %v14511_v11  ;;  %12888 = vmatprep.subr.bf16.mxu0 %v14512_v12  ;;  %v14558_v10 = vld [vmem:[%s18859_s23 + $0x530] sm:$0xff]   ;;  %v14560_v12 = vld [vmem:[%s18859_s23 + $0x578] sm:$0xff]  }
  0x95   :  { %12916 = vmatprep.subr.bf16.mxu1 %v14513_v13  ;;  %2319 = vmatprep.mubr.bf16.mxu0 %v12056_v37  ;;  %v14559_v11 = vld [vmem:[%s18859_s23 + $0x5b0] sm:$0xff]   ;;  %v14561_v13 = vld [vmem:[%s18859_s23 + $0x5f8] sm:$0xff]   ;;  %v502_v37 = vrot.slane %v16060_v35, %v16055_v34 }
  0x96   :  { %2368 = vmatprep.mubr.bf16.mxu1 %v12058_v39 }
  0x97   :  { %12889 = vmatpush3.bf16.msra.mxu0 %v14514_v14  ;;  %v14562_v14 = vld [vmem:[%s18859_s23 + $0x538] sm:$0xff]  }
  0x98   :  { %12917 = vmatpush3.bf16.msra.mxu1 %v14515_v15  ;;  %12890 = vmatprep.subr.bf16.mxu0 %v14516_v16  ;;  %v14563_v15 = vld [vmem:[%s18859_s23 + $0x5b8] sm:$0xff]   ;;  %v77_v16 = vld [vmem:[%s18860_s29 + $0x50] sm:$0xff]  ;;  %s15221_s23 = smov 32  }
  0x99   :  { %12918 = vmatprep.subr.bf16.mxu1 %v14517_v17  ;;  %v89_v17 = vld [vmem:[%s18860_s29 + $0xb0] sm:$0xff] }
  0x9b   :  { %12891 = vmatpush3.bf16.msra.mxu0 %v14518_v18  ;;  %v12059_v18 = vcombine.low %v77_v16, %v89_v17 }
  0x9c   :  { %12919 = vmatpush3.bf16.msra.mxu1 %v14519_v19  ;;  %12892 = vmatprep.subr.bf16.mxu0 %v14520_v20  ;;  %v12060_v19 = vcombine.high %v77_v16, %v89_v17  ;;  %v78_v20 = vld [vmem:[%s18860_s29 + $0x58] sm:$0xff] }
  0x9d   :  { %12920 = vmatprep.subr.bf16.mxu1 %v14521_v21  ;;  %v90_v21 = vld [vmem:[%s18860_s29 + $0xb8] sm:$0xff] }
  0x9f   :  { %12893 = vmatpush3.bf16.msra.mxu0 %v14522_v22  ;;  %v101_v22 = vld [vmem:[%s18860_s29 + $0x110] sm:$0xff] }
  0xa0   :  { %12921 = vmatpush3.bf16.msra.mxu1 %v14523_v23  ;;  %12894 = vmatprep.subr.bf16.mxu0 %v14524_v24  ;;  %v12061_v23 = vcombine.low %v78_v20, %v90_v21  ;;  %v12062_v24 = vcombine.high %v78_v20, %v90_v21 }
  0xa1   :  { %12922 = vmatprep.subr.bf16.mxu1 %v14525_v25  ;;  %v113_v25 = vld [vmem:[%s18860_s29 + $0x170] sm:$0xff] }
  0xa3   :  { %12895 = vmatpush3.bf16.msra.mxu0 %v14526_v26  ;;  %v102_v26 = vld [vmem:[%s18860_s29 + $0x118] sm:$0xff] }
  0xa4   :  { %12923 = vmatpush3.bf16.msra.mxu1 %v14527_v27  ;;  %12896 = vmatprep.subr.bf16.mxu0 %v14528_v28  ;;  %v114_v27 = vld [vmem:[%s18860_s29 + $0x178] sm:$0xff]  ;;  %v12084_v28 = vcombine.high %v101_v22, %v113_v25 }
  0xa5   :  { %12924 = vmatprep.subr.bf16.mxu1 %v14529_v29  ;;  %v12086_v29 = vcombine.high %v102_v26, %v114_v27 }
  0xa7   :  { %12897 = vmatpush3.bf16.msra.mxu0 %v14530_v30  ;;  %v12083_v30 = vcombine.low %v101_v22, %v113_v25 }
  0xa8   :  { %12925 = vmatpush3.bf16.msra.mxu1 %v14531_v31  ;;  %12938 = vmatprep.subr.bf16.mxu0 %v14532_v40  ;;  %v12085_v31 = vcombine.low %v102_v26, %v114_v27 }
  0xa9   :  { %12966 = vmatprep.subr.bf16.mxu1 %v14533_v41 }
  0xaa   :  { %2320 = vmatmul.mubr.bf16.vlgmr.msra.gmra.mrb[32].mxu0 %v12055_v36 }
  0xab   :  { %2369 = vmatmul.mubr.bf16.vlgmr.msra.gmra.mrb[32].mxu1 %v12057_v38  ;;  %12939 = vmatpush3.bf16.msra.mxu0 %v14534_v42 }
  0xac   :  { %12967 = vmatpush3.bf16.msra.mxu1 %v14535_v43  ;;  %12940 = vmatprep.subr.bf16.mxu0 %v14536_v44 }
  0xad   :  { %12968 = vmatprep.subr.bf16.mxu1 %v14537_v45  ;;  %2327 = vmatprep.mubr.bf16.mxu0 %v12080_v50 }
  0xae   :  { %2376 = vmatprep.mubr.bf16.mxu1 %v12082_v56 }
  0xaf   :  { %12941 = vmatpush3.bf16.msra.mxu0 %v14538_v46 }
  0xb0   :  { %12969 = vmatpush3.bf16.msra.mxu1 %v14539_v47  ;;  %12942 = vmatprep.subr.bf16.mxu0 %v14540_v52 }
  0xb1   :  { %12970 = vmatprep.subr.bf16.mxu1 %v14541_v53 }
  0xb2   :  { %2328 = vmatmul.mubr.bf16.gmra.mrb[36].mxu0 %v12079_v51 }
  0xb3   :  { %12943 = vmatpush3.bf16.msra.mxu0 %v14542_v57  ;;  %2377 = vmatmul.mubr.bf16.gmra.mrb[36].mxu1 %v12081_v58 }
  0xb4   :  { %12971 = vmatpush3.bf16.msra.mxu1 %v14543_v59  ;;  %12944 = vmatprep.subr.bf16.mxu0 %v14544_v60 }
  0xb5   :  { %12972 = vmatprep.subr.bf16.mxu1 %v14545_v61  ;;  %2417 = vmatprep.mubr.bf16.mxu0 %v12060_v19 }
  0xb6   :  { %2466 = vmatprep.mubr.bf16.mxu1 %v12062_v24 }
  0xb7   :  { %12945 = vmatpush3.bf16.msra.mxu0 %v14546_v62 }
  0xb8   :  { %12973 = vmatpush3.bf16.msra.mxu1 %v14547_v63  ;;  %12946 = vmatprep.subr.bf16.mxu0 %v14548_v0 }
  0xb9   :  { %12974 = vmatprep.subr.bf16.mxu1 %v14549_v1 }
  0xbb   :  { %12947 = vmatpush3.bf16.msra.mxu0 %v14550_v2  ;;  %v14564_v2 = vld [vmem:[%s18862_s2] sm:$0xff]  }
  0xbc   :  { %12975 = vmatpush3.bf16.msra.mxu1 %v14551_v3  ;;  %12948 = vmatprep.subr.bf16.mxu0 %v14552_v4 }
  0xbd   :  { %12976 = vmatprep.subr.bf16.mxu1 %v14553_v5  ;;  %v14565_v5 = vld [vmem:[%s18862_s2 + $0x8] sm:$0xff]  }
  0xbf   :  { %12949 = vmatpush3.bf16.msra.mxu0 %v14554_v6  ;;  %v14566_v6 = vld [vmem:[%s18862_s2 + $0x10] sm:$0xff]  }
  0xc0   :  { %12977 = vmatpush3.bf16.msra.mxu1 %v14555_v7  ;;  %12950 = vmatprep.subr.bf16.mxu0 %v14556_v8 }
  0xc1   :  { %12978 = vmatprep.subr.bf16.mxu1 %v14557_v9 }
  0xc3   :  { %12951 = vmatpush3.bf16.msra.mxu0 %v14558_v10 }
  0xc4   :  { %12979 = vmatpush3.bf16.msra.mxu1 %v14559_v11  ;;  %12952 = vmatprep.subr.bf16.mxu0 %v14560_v12 }
  0xc5   :  { %12980 = vmatprep.subr.bf16.mxu1 %v14561_v13 }
  0xc7   :  { %12953 = vmatpush3.bf16.msra.mxu0 %v14562_v14 }
  0xc8   :  { %12981 = vmatpush3.bf16.msra.mxu1 %v14563_v15  ;;  %13326 = vmatprep.subr.bf16.mxu0 %v14564_v2 }
  0xca   :  { %2418 = vmatmul.mubr.bf16.vlgmr.msra.gmra.mrb[40].mxu0 %v12059_v18 }
  0xcb   :  { %2467 = vmatmul.mubr.bf16.vlgmr.msra.gmra.mrb[40].mxu1 %v12061_v23  ;;  %2425 = vmatprep.mubr.bf16.mxu0 %v12084_v28  ;;  %v14567_v28 = vld [vmem:[%s18862_s2 + $0x18] sm:$0xff]  }
  0xcc   :  { %2474 = vmatprep.mubr.bf16.mxu1 %v12086_v29  ;;  %13327 = vmatpush3.bf16.msra.mxu0 %v14564_v2 }
  0xcd   :  { %13328 = vmatprep.subr.bf16.mxu0 %v14565_v5 }
  0xd0   :  { %13329 = vmatpush3.bf16.msra.mxu0 %v14565_v5 }
  0xd1   :  { %13330 = vmatprep.subr.bf16.mxu0 %v14566_v6 }
  0xd2   :  { %2426 = vmatmul.mubr.bf16.gmra.mrb[44].mxu0 %v12083_v30 }
  0xd3   :  { %2475 = vmatmul.mubr.bf16.gmra.mrb[44].mxu1 %v12085_v31 }
  0xd4   :  { %13331 = vmatpush3.bf16.msra.mxu0 %v14566_v6 }
  0xd5   :  { %13332 = vmatprep.subr.bf16.mxu0 %v14567_v28 }
  0xd8   :  { %13333 = vmatpush3.bf16.msra.mxu0 %v14567_v28 }
  0xfd   :  { %v12674_v36 = vpop.f32.mrb[0].mxu0 }
  0xfe   :  { %v12702_v38 = vpop.f32.mrb[0].mxu1  ;;  %v12675_v39 = vpop.f32.mrb[1].mxu0 }
  0xff   :  { %v12676_v40 = vadd.f32 %v12675_v39, %v12674_v36  ;;  %v12703_v41 = vpop.f32.mrb[1].mxu1  ;;  %v12677_v42 = vpop.f32.mrb[2].mxu0 }
 0x100   :  { %v12704_v43 = vadd.f32 %v12703_v41, %v12702_v38  ;;  %v12705_v44 = vpop.f32.mrb[2].mxu1  ;;  %v12678_v45 = vpop.f32.mrb[3].mxu0  ;;  %v14568_v41 = vld [vmem:[%s18862_s2 + $0x20] sm:$0xff]  }
 0x101   :  { %v1930_v46 = vadd.f32 %v12676_v40, %v502_v37  ;;  %v12679_v47 = vadd.f32 %v12678_v45, %v12677_v42  ;;  %v12706_v48 = vpop.f32.mrb[3].mxu1  ;;  %13334 = vmatprep.subr.bf16.mxu0 %v14568_v41 }
 0x102   :  { %v12707_v49 = vadd.f32 %v12706_v48, %v12705_v44  ;;  %13335 = vmatpush3.bf16.msra.mxu0 %v14568_v41  ;;  %v14571_v48 = vld [vmem:[%s18862_s2 + $0x38] sm:$0xff]  }
 0x103   :  { %v1979_v50 = vadd.f32 %v12704_v43, %v1930_v46  ;;  %v1933_v51 = vadd.f32 %v12679_v47, %v502_v37  ;;  %v14569_v46 = vld [vmem:[%s18862_s2 + $0x28] sm:$0xff]   ;;  %v14570_v47 = vld [vmem:[%s18862_s2 + $0x30] sm:$0xff]   ;;  %s18865_s2 = smov 80  }
 0x104   :  { %13336 = vmatprep.subr.bf16.mxu0 %v14569_v46 }
 0x105   :  { %v1982_v52 = vadd.f32 %v12707_v49, %v1933_v51  ;;  %v12680_v53 = vpop.f32.mrb[4].mxu0  ;;  %v14572_v49 = vld [vmem:[%s18863_s0] ss:$8 sps:$4 sm:$0xff]   ;;  %v14574_v51 = vld [vmem:[%s18863_s0 + $0x4] ss:$8 sps:$4 sm:$0xff]  }
 0x106   :  { %v12681_v54 = vpop.f32.mrb[5].mxu0  ;;  %v12708_v57 = vpop.f32.mrb[4].mxu1  ;;  %13337 = vmatpush3.bf16.msra.mxu0 %v14569_v46  ;;  %2682 = vmatprep.subr.bf16.mxu1 %v14574_v51 }
 0x107   :  { %v12682_v55 = vadd.f32 %v12681_v54, %v12680_v53  ;;  %v12683_v56 = vpop.f32.mrb[6].mxu0  ;;  %v12709_v61 = vpop.f32.mrb[5].mxu1  ;;  %13338 = vmatprep.subr.bf16.mxu0 %v14570_v47  ;;  %v14575_v54 = vld [vmem:[%s18863_s0 + $0x10] ss:$8 sps:$4 sm:$0xff]   ;;  %2683 = vmatpush1.bf16.msra.mxu1 %v14572_v49 }
 0x108   :  { %v12684_v58 = vpop.f32.mrb[7].mxu0  ;;  %v12710_v62 = vadd.f32 %v12709_v61, %v12708_v57  ;;  %v12711_v63 = vpop.f32.mrb[6].mxu1 }
 0x109   :  { %v1938_v59 = vadd.f32 %v12682_v55, %v502_v37  ;;  %v12685_v60 = vadd.f32 %v12684_v58, %v12683_v56  ;;  %v12712_v1 = vpop.f32.mrb[7].mxu1  ;;  %v14577_v55 = vld [vmem:[%s18863_s0 + $0x14] ss:$8 sps:$4 sm:$0xff]  }
 0x10a   :  { %v12713_v4 = vadd.f32 %v12712_v1, %v12711_v63  ;;  %13339 = vmatpush3.bf16.msra.mxu0 %v14570_v47  ;;  %2684 = vmatprep.subr.bf16.mxu1 %v14577_v55 }
 0x10b   :  { %v1941_v0 = vadd.f32 %v12685_v60, %v502_v37  ;;  %v1987_v3 = vadd.f32 %v12710_v62, %v1938_v59  ;;  %13340 = vmatprep.subr.bf16.mxu0 %v14571_v48  ;;  %2685 = vmatpush1.bf16.msra.mxu1 %v14575_v54 }
 0x10d   :  { %v1990_v7 = vadd.f32 %v12713_v4, %v1941_v0 }
 0x10e   :  { %13341 = vmatpush3.bf16.msra.mxu0 %v14571_v48 }
 0x11d   :  { %v12730_v8 = vpop.f32.mrb[8].mxu0 }
 0x11e   :  { %v12758_v9 = vpop.f32.mrb[8].mxu1  ;;  %v12731_v10 = vpop.f32.mrb[9].mxu0 }
 0x11f   :  { %v12759_v11 = vpop.f32.mrb[9].mxu1  ;;  %v12732_v12 = vadd.f32 %v12731_v10, %v12730_v8  ;;  %v12733_v14 = vpop.f32.mrb[10].mxu0 }
 0x120   :  { %v12760_v13 = vadd.f32 %v12759_v11, %v12758_v9  ;;  %v12761_v15 = vpop.f32.mrb[10].mxu1  ;;  %v12734_v16 = vpop.f32.mrb[11].mxu0 }
 0x121   :  { %v12762_v17 = vpop.f32.mrb[11].mxu1  ;;  %v2028_v18 = vadd.f32 %v12732_v12, %v1979_v50  ;;  %v12735_v19 = vadd.f32 %v12734_v16, %v12733_v14 }
 0x122   :  { %v12763_v20 = vadd.f32 %v12762_v17, %v12761_v15 }
 0x123   :  { %v2077_v21 = vadd.f32 %v12760_v13, %v2028_v18  ;;  %v2031_v22 = vadd.f32 %v12735_v19, %v1982_v52 }
 0x125   :  { %v2080_v23 = vadd.f32 %v12763_v20, %v2031_v22  ;;  %v12736_v24 = vpop.f32.mrb[12].mxu0 }
 0x126   :  { %v12737_v25 = vpop.f32.mrb[13].mxu0  ;;  %v12764_v31 = vpop.f32.mrb[12].mxu1 }
 0x127   :  { %v12738_v26 = vadd.f32 %v12737_v25, %v12736_v24  ;;  %v12739_v27 = vpop.f32.mrb[14].mxu0  ;;  %v12765_v37 = vpop.f32.mrb[13].mxu1 }
 0x128   :  { %v12740_v29 = vpop.f32.mrb[15].mxu0  ;;  %v12766_v39 = vadd.f32 %v12765_v37, %v12764_v31  ;;  %v12767_v40 = vpop.f32.mrb[14].mxu1 }
 0x129   :  { %v2036_v30 = vadd.f32 %v12738_v26, %v1987_v3  ;;  %v12741_v36 = vadd.f32 %v12740_v29, %v12739_v27  ;;  %v12768_v42 = vpop.f32.mrb[15].mxu1 }
 0x12a   :  { %v12769_v44 = vadd.f32 %v12768_v42, %v12767_v40 }
 0x12b   :  { %v2039_v38 = vadd.f32 %v12741_v36, %v1990_v7  ;;  %v2085_v43 = vadd.f32 %v12766_v39, %v2036_v30 }
 0x12d   :  { %v2088_v45 = vadd.f32 %v12769_v44, %v2039_v38 }
 0x13d   :  { %v12786_v50 = vpop.f32.mrb[16].mxu0 }
 0x13e   :  { %v12814_v52 = vpop.f32.mrb[16].mxu1  ;;  %v12787_v53 = vpop.f32.mrb[17].mxu0 }
 0x13f   :  { %v12788_v56 = vadd.f32 %v12787_v53, %v12786_v50  ;;  %v12815_v57 = vpop.f32.mrb[17].mxu1  ;;  %v12789_v58 = vpop.f32.mrb[18].mxu0 }
 0x140   :  { %v12816_v59 = vadd.f32 %v12815_v57, %v12814_v52  ;;  %v12817_v60 = vpop.f32.mrb[18].mxu1  ;;  %v12790_v61 = vpop.f32.mrb[19].mxu0 }
 0x141   :  { %v2126_v62 = vadd.f32 %v12788_v56, %v2077_v21  ;;  %v12791_v63 = vadd.f32 %v12790_v61, %v12789_v58  ;;  %v12818_v0 = vpop.f32.mrb[19].mxu1 }
 0x142   :  { %v12819_v1 = vadd.f32 %v12818_v0, %v12817_v60 }
 0x143   :  { %v2175_v2 = vadd.f32 %v12816_v59, %v2126_v62  ;;  %v2129_v3 = vadd.f32 %v12791_v63, %v2080_v23 }
 0x145   :  { %v2178_v4 = vadd.f32 %v12819_v1, %v2129_v3  ;;  %v12792_v5 = vpop.f32.mrb[20].mxu0 }
 0x146   :  { %v12793_v6 = vpop.f32.mrb[21].mxu0  ;;  %v12820_v9 = vpop.f32.mrb[20].mxu1 }
 0x147   :  { %v12794_v7 = vadd.f32 %v12793_v6, %v12792_v5  ;;  %v12795_v8 = vpop.f32.mrb[22].mxu0  ;;  %v12821_v13 = vpop.f32.mrb[21].mxu1 }
 0x148   :  { %v12796_v10 = vpop.f32.mrb[23].mxu0  ;;  %v12822_v14 = vadd.f32 %v12821_v13, %v12820_v9  ;;  %v12823_v15 = vpop.f32.mrb[22].mxu1 }
 0x149   :  { %v2134_v11 = vadd.f32 %v12794_v7, %v2085_v43  ;;  %v12797_v12 = vadd.f32 %v12796_v10, %v12795_v8  ;;  %v12824_v17 = vpop.f32.mrb[23].mxu1 }
 0x14a   :  { %v12825_v19 = vadd.f32 %v12824_v17, %v12823_v15 }
 0x14b   :  { %v2137_v16 = vadd.f32 %v12797_v12, %v2088_v45  ;;  %v2183_v18 = vadd.f32 %v12822_v14, %v2134_v11 }
 0x14d   :  { %v2186_v20 = vadd.f32 %v12825_v19, %v2137_v16 }
 0x15d   :  { %v12842_v21 = vpop.f32.mrb[24].mxu0 }
 0x15e   :  { %v12870_v22 = vpop.f32.mrb[24].mxu1  ;;  %v12843_v23 = vpop.f32.mrb[25].mxu0 }
 0x15f   :  { %v12844_v24 = vadd.f32 %v12843_v23, %v12842_v21  ;;  %v12871_v25 = vpop.f32.mrb[25].mxu1  ;;  %v12845_v26 = vpop.f32.mrb[26].mxu0 }
 0x160   :  { %v12872_v27 = vadd.f32 %v12871_v25, %v12870_v22  ;;  %v12873_v28 = vpop.f32.mrb[26].mxu1  ;;  %v12846_v29 = vpop.f32.mrb[27].mxu0 }
 0x161   :  { %v2224_v30 = vadd.f32 %v12844_v24, %v2175_v2  ;;  %v12847_v31 = vadd.f32 %v12846_v29, %v12845_v26  ;;  %v12874_v36 = vpop.f32.mrb[27].mxu1 }
 0x162   :  { %v12875_v37 = vadd.f32 %v12874_v36, %v12873_v28 }
 0x163   :  { %v2273_v38 = vadd.f32 %v12872_v27, %v2224_v30  ;;  %v2227_v39 = vadd.f32 %v12847_v31, %v2178_v4 }
 0x165   :  { %v2276_v40 = vadd.f32 %v12875_v37, %v2227_v39  ;;  %v12848_v41 = vpop.f32.mrb[28].mxu0 }
 0x166   :  { %v12849_v42 = vpop.f32.mrb[29].mxu0  ;;  %v12876_v47 = vpop.f32.mrb[28].mxu1 }
 0x167   :  { %v12850_v43 = vadd.f32 %v12849_v42, %v12848_v41  ;;  %v12851_v44 = vpop.f32.mrb[30].mxu0  ;;  %v12877_v49 = vpop.f32.mrb[29].mxu1 }
 0x168   :  { %v12852_v45 = vpop.f32.mrb[31].mxu0  ;;  %v12878_v51 = vadd.f32 %v12877_v49, %v12876_v47  ;;  %v12879_v52 = vpop.f32.mrb[30].mxu1 }
 0x169   :  { %v2232_v46 = vadd.f32 %v12850_v43, %v2183_v18  ;;  %v12853_v48 = vadd.f32 %v12852_v45, %v12851_v44  ;;  %v12880_v53 = vpop.f32.mrb[31].mxu1 }
 0x16a   :  { %v12881_v54 = vadd.f32 %v12880_v53, %v12879_v52 }
 0x16b   :  { %v2235_v50 = vadd.f32 %v12853_v48, %v2186_v20  ;;  %v2281_v55 = vadd.f32 %v12878_v51, %v2232_v46 }
 0x16d   :  { %v2284_v56 = vadd.f32 %v12881_v54, %v2235_v50 }
 0x17d   :  { %v12898_v57 = vpop.f32.mrb[32].mxu0 }
 0x17e   :  { %v12926_v58 = vpop.f32.mrb[32].mxu1  ;;  %v12899_v59 = vpop.f32.mrb[33].mxu0 }
 0x17f   :  { %v12927_v60 = vpop.f32.mrb[33].mxu1  ;;  %v12900_v61 = vadd.f32 %v12899_v59, %v12898_v57  ;;  %v12901_v63 = vpop.f32.mrb[34].mxu0 }
 0x180   :  { %v12928_v62 = vadd.f32 %v12927_v60, %v12926_v58  ;;  %v12929_v0 = vpop.f32.mrb[34].mxu1  ;;  %v12902_v1 = vpop.f32.mrb[35].mxu0 }
 0x181   :  { %v12930_v2 = vpop.f32.mrb[35].mxu1  ;;  %v2322_v3 = vadd.f32 %v12900_v61, %v2273_v38  ;;  %v12903_v4 = vadd.f32 %v12902_v1, %v12901_v63 }
 0x182   :  { %v12931_v5 = vadd.f32 %v12930_v2, %v12929_v0 }
 0x183   :  { %v2325_v6 = vadd.f32 %v12903_v4, %v2276_v40  ;;  %v2371_v7 = vadd.f32 %v12928_v62, %v2322_v3  ;;  %v14580_v3 = vld [vmem:[%s18863_s0 + $0x24] ss:$8 sps:$4 sm:$0xff]   ;;  %v14578_v4 = vld [vmem:[%s18863_s0 + $0x20] ss:$8 sps:$4 sm:$0xff]  }
 0x184   :  { %2686 = vmatprep.subr.bf16.mxu1 %v14580_v3 }
 0x185   :  { %v2374_v8 = vadd.f32 %v12931_v5, %v2325_v6  ;;  %v12904_v9 = vpop.f32.mrb[36].mxu0  ;;  %2687 = vmatpush1.bf16.msra.mxu1 %v14578_v4  ;;  %v14583_v5 = vld [vmem:[%s18863_s0 + $0x34] ss:$8 sps:$4 sm:$0xff]   ;;  %v14581_v6 = vld [vmem:[%s18863_s0 + $0x30] ss:$8 sps:$4 sm:$0xff]  }
 0x186   :  { %v12905_v10 = vpop.f32.mrb[37].mxu0  ;;  %v12932_v15 = vpop.f32.mrb[36].mxu1  ;;  %2688 = vmatprep.subr.bf16.mxu1 %v14583_v5 }
 0x187   :  { %v12906_v11 = vadd.f32 %v12905_v10, %v12904_v9  ;;  %v12907_v12 = vpop.f32.mrb[38].mxu0  ;;  %v12933_v17 = vpop.f32.mrb[37].mxu1 }
 0x188   :  { %v12908_v13 = vpop.f32.mrb[39].mxu0  ;;  %v12934_v19 = vadd.f32 %v12933_v17, %v12932_v15  ;;  %v12935_v20 = vpop.f32.mrb[38].mxu1 }
 0x189   :  { %v2330_v14 = vadd.f32 %v12906_v11, %v2281_v55  ;;  %v12909_v16 = vadd.f32 %v12908_v13, %v12907_v12  ;;  %v12936_v21 = vpop.f32.mrb[39].mxu1  ;;  %2689 = vmatpush1.bf16.msra.mxu1 %v14581_v6 }
 0x18a   :  { %v12937_v22 = vadd.f32 %v12936_v21, %v12935_v20  ;;  %v2609_v21 = vld [vmem:[%s18830_s1 + $0x18] sm:$0xff] }
 0x18b   :  { %v2333_v18 = vadd.f32 %v12909_v16, %v2284_v56  ;;  %v2379_v23 = vadd.f32 %v12934_v19, %v2330_v14  ;;  %v2606_v14 = vld [vmem:[%s18830_s1] sm:$0xff]  ;;  %v2607_v16 = vld [vmem:[%s18830_s1 + $0x8] sm:$0xff] }
 0x18d   :  { %v2382_v24 = vadd.f32 %v12937_v22, %v2333_v18 }
 0x19d   :  { %v12954_v25 = vpop.f32.mrb[40].mxu0 }
 0x19e   :  { %v12982_v26 = vpop.f32.mrb[40].mxu1  ;;  %v12955_v27 = vpop.f32.mrb[41].mxu0 }
 0x19f   :  { %v12956_v28 = vadd.f32 %v12955_v27, %v12954_v25  ;;  %v12983_v29 = vpop.f32.mrb[41].mxu1  ;;  %v12957_v30 = vpop.f32.mrb[42].mxu0  ;;  %v15217_v27 = vmov 0.0  }
 0x1a0   :  { %v12984_v31 = vadd.f32 %v12983_v29, %v12982_v26  ;;  %v12985_v36 = vpop.f32.mrb[42].mxu1  ;;  %v12958_v37 = vpop.f32.mrb[43].mxu0  ;;  %13346 = vmatprep.subr.bf16.mxu1 %v15217_v27  ;;  %13364 = vmatprep.subr.bf16.mxu0 %v15217_v27  ;;  %v2616_v29 = vld [vmem:[%s18831_s17 + $0x8] sm:$0xff] }
 0x1a1   :  { %v2420_v38 = vadd.f32 %v12956_v28, %v2371_v7  ;;  %v12959_v39 = vadd.f32 %v12958_v37, %v12957_v30  ;;  %v12986_v40 = vpop.f32.mrb[43].mxu1  ;;  %v15216_v7 = vmov 0   ;;  %v16156_v28 = vld [vmem:[%s18831_s17] sm:$0xff] }
 0x1a2   :  { %v12987_v41 = vadd.f32 %v12986_v40, %v12985_v36  ;;  %2714 = vmatprep.mubr.bf16.mxu1 %v15216_v7  ;;  %v2630_v30 = vrot.slane %v16156_v28, %v16055_v34  ;;  %v2634_v36 = vrot.slane %v2616_v29, %v16055_v34 }
 0x1a3   :  { %v2469_v42 = vadd.f32 %v12984_v31, %v2420_v38  ;;  %v2423_v43 = vadd.f32 %v12959_v39, %v2374_v8  ;;  %v16114_v8 = vsub.s32 1, %v16052_v33 }
 0x1a5   :  { %v2472_v44 = vadd.f32 %v12987_v41, %v2423_v43  ;;  %v12960_v45 = vpop.f32.mrb[44].mxu0  ;;  %v2483_v51 = vmax.f32 %v2469_v42, 0.0  ;;  %v2508_v9 = vrot.slane %v16060_v35, %v16114_v8 }
 0x1a6   :  { %v12988_v46 = vpop.f32.mrb[44].mxu1  ;;  %v12961_v47 = vpop.f32.mrb[45].mxu0 }
 0x1a7   :  { %v12962_v48 = vadd.f32 %v12961_v47, %v12960_v45  ;;  %v12989_v49 = vpop.f32.mrb[45].mxu1  ;;  %v12963_v50 = vpop.f32.mrb[46].mxu0  ;;  %v2484_v52 = vmax.f32 %v2472_v44, 0.0 }
 0x1a8   :  { %v12990_v53 = vadd.f32 %v12989_v49, %v12988_v46  ;;  %v12991_v54 = vpop.f32.mrb[46].mxu1  ;;  %v12964_v55 = vpop.f32.mrb[47].mxu0 }
 0x1a9   :  { %v2428_v56 = vadd.f32 %v12962_v48, %v2379_v23  ;;  %v12965_v57 = vadd.f32 %v12964_v55, %v12963_v50  ;;  %v12992_v58 = vpop.f32.mrb[47].mxu1  ;;  %v2503_v59 = vpack.c.bf16 %v2484_v52, %v2483_v51  ;;  %v2608_v23 = vld [vmem:[%s18830_s1 + $0x10] sm:$0xff] }
 0x1aa   :  { %v12993_v60 = vadd.f32 %v12992_v58, %v12991_v54 }
 0x1ab   :  { %v2477_v61 = vadd.f32 %v12990_v53, %v2428_v56  ;;  %v2431_v62 = vadd.f32 %v12965_v57, %v2382_v24  ;;  %13342 = vmatprep.mubr.bf16.mxu0 %v2503_v59 }
 0x1ad   :  { %v2480_v63 = vadd.f32 %v12993_v60, %v2431_v62  ;;  %v2485_v0 = vmax.f32 %v2477_v61, 0.0 }
 0x1af   :  { %v2486_v1 = vmax.f32 %v2480_v63, 0.0 }
 0x1b1   :  { %v2504_v2 = vpack.c.bf16 %v2486_v1, %v2485_v0 }
 0x1b3   :  { %13343 = vmatmul.mubr.bf16.vlgmr.msra.gmra.mrb[48].mxu0 %v2504_v2 }
 0x1b4   :  { %13366 = vmatprep.mubr.msk.bf16.mxu0 %vm15218_vm1, %v15217_v27 }
 0x286   :  { %v13344_v10 = vpop.f32.mrb[48].mxu0 }
 0x287   :  { %v2591_v11 = vpop.f32.mrb[49].mxu0  ;;  %v2600_v22 = vadd.f32 %v13344_v10, %v2508_v9 }
 0x288   :  { %v2592_v12 = vadd.f32 %v2591_v11, %v2508_v9  ;;  %v13345_v13 = vpop.f32.mrb[50].mxu0 }
 0x289   :  { %v2594_v15 = vpop.f32.mrb[51].mxu0  ;;  %v2603_v35 = vadd.f32 %v13345_v13, %v2508_v9  ;;  %v16143_v25 = vadd.f32 %v2608_v23, %v2600_v22 }
 0x28a   :  { %v2595_v17 = vadd.f32 %v2594_v15, %v2508_v9  ;;  %v16124_v18 = vadd.f32 %v2606_v14, %v2592_v12 }
 0x28b   :  { %v16141_v24 = vadd.f32 %v2609_v21, %v2603_v35 }
 0x28c   :  { %v16126_v19 = vadd.f32 %v2607_v16, %v2595_v17 }
 0x28d   :  { %v16147_v26 = vpack.c.bf16 %v16141_v24, %v16143_v25 }
 0x28e   :  { %v16130_v20 = vpack.c.bf16 %v16126_v19, %v16124_v18 }
 0x290   :  { %12295 = vmatmul.mubr.msk.bf16.vlgmr.msra.gmra.mrb[48].mxu1 %vm2675_vm0, %v16130_v20 }
 0x291   :  { %2724 = vmatprep.mubr.bf16.mxu1 %v15216_v7 }
 0x298   :  { %12296 = vmatmul.mubr.msk.bf16.gmra.mrb[52].mxu1 %vm2675_vm0, %v16147_v26 }
 0x299   :  { %13348 = vmatprep.mubr.msk.bf16.mxu1 %vm15218_vm1, %v15217_v27 }
 0x363   :  { %v2716_v31 = vpop.f32.mrb[48].mxu1 }
 0x364   :  { %v2718_v37 = vpop.f32.mrb[49].mxu1  ;;  %v2717_v39 = vadd.f32 %v2716_v31, %v2630_v30 }
 0x365   :  { %v2720_v38 = vpop.f32.mrb[50].mxu1  ;;  %v2719_v42 = vadd.f32 %v2718_v37, %v2634_v36 }
 0x366   :  { %v2721_v40 = vadd.f32 %v2720_v38, %v2630_v30  ;;  %v2722_v41 = vpop.f32.mrb[51].mxu1 }
 0x367   :  { %v2723_v43 = vadd.f32 %v2722_v41, %v2634_v36 }
 0x368   :  { %v2735_v44 = vpack.c.bf16 %v2721_v40, %v2717_v39 }
 0x369   :  { %v16168_v45 = vpack.c.bf16 %v2723_v43, %v2719_v42 }
 0x36a   :  { %2798 = vrot.lane.b32.xlu1 %v2735_v44, %s15219_s30  ;;  %2748 = vrot.lane.b32.xlu0 %v2735_v44, %s15220_s21 }
 0x36b   :  { %v2726_v46 = vpop.f32.mrb[52].mxu1 }
 0x36c   :  { %v2728_v47 = vpop.f32.mrb[53].mxu1  ;;  %v2727_v50 = vadd.f32 %v2726_v46, %v2630_v30 }
 0x36d   :  { %v2729_v48 = vadd.f32 %v2728_v47, %v2634_v36  ;;  %v2730_v49 = vpop.f32.mrb[54].mxu1 }
 0x36e   :  { %v2731_v51 = vadd.f32 %v2730_v49, %v2630_v30  ;;  %v2732_v52 = vpop.f32.mrb[55].mxu1  ;;  %2851 = vrot.lane.b32.xlu1 %v2735_v44, %s15221_s23  ;;  %2800 = vrot.lane.b32.xlu0 %v2735_v44, %s15222_s22 }
 0x36f   :  { %v2733_v53 = vadd.f32 %v2732_v52, %v2634_v36 }
 0x370   :  { %v2737_v54 = vpack.c.bf16 %v2731_v51, %v2727_v50 }
 0x371   :  { %v16174_v55 = vpack.c.bf16 %v2733_v53, %v2729_v48 }
 0x372   :  { %2849 = vrot.lane.b32.xlu1 %v2735_v44, %s18852_s24  ;;  %2902 = vrot.lane.b32.xlu0 %v2735_v44, %s15224_s16 }
 0x376   :  { %2900 = vrot.lane.b32.xlu1 %v2735_v44, %s18850_s25  ;;  %2952 = vrot.lane.b32.xlu0 %v2737_v54, %s15220_s21 }
 0x37a   :  { %3054 = vrot.lane.b32.xlu1 %v2737_v54, %s15221_s23  ;;  %3003 = vrot.lane.b32.xlu0 %v2737_v54, %s15222_s22 }
 0x37e   :  { %3105 = vrot.lane.b32.xlu1 %v2737_v54, %s15224_s16  ;;  %3001 = vrot.lane.b32.xlu0 %v2737_v54, %s15219_s30 }
 0x382   :  { %3103 = vrot.lane.b32.xlu1 %v2737_v54, %s18850_s25  ;;  %3052 = vrot.lane.b32.xlu0 %v2737_v54, %s18852_s24 }
 0x3dc   :  { %v2799_v56 = vpop.permute.xlu1 %2798  ;;  %v2749_v57 = vpop.permute.xlu0 %2748 }
 0x3dd   :  { %v2755_v58 = vsel %vm2750_vm2, %v2749_v57, 0 }
 0x3de   :  { %13347 = vmatpush3.bf16.xpose.msra.mxu1 %v2755_v58 }
 0x3df   :  { %13352 = vmatprep.subr.bf16.mxu1 %v15217_v27 }
 0x3e0   :  { %v2852_v59 = vpop.permute.xlu1 %2851  ;;  %v2801_v60 = vpop.permute.xlu0 %2800 }
 0x3e1   :  { %v2806_v63 = vsel %vm2750_vm2, %v2801_v60, 0  ;;  %v2857_v5 = vsel %vm2750_vm2, %v2852_v59, 0 }
 0x3e4   :  { %v2850_v61 = vpop.permute.xlu1 %2849  ;;  %v2903_v62 = vpop.permute.xlu0 %2902 }
 0x3e5   :  { %v2908_v0 = vsel %vm2750_vm2, %v2903_v62, 0  ;;  %13349 = vmatmul.mubr.msk.bf16.vlgmr.msra.gmra.mrb[56].mxu1 %vm2750_vm2, %v2735_v44 }
 0x3e6   :  { %13353 = vmatpush3.bf16.xpose.msra.mxu1 %v2806_v63  ;;  %13365 = vmatpush3.bf16.xpose.msra.mxu0 %v2908_v0 }
 0x3e7   :  { %13354 = vmatprep.mubr.msk.bf16.mxu1 %vm15218_vm1, %v15217_v27  ;;  %13358 = vmatprep.subr.bf16.mxu1 %v15217_v27 }
 0x3e8   :  { %v2901_v1 = vpop.permute.xlu1 %2900  ;;  %v2953_v2 = vpop.permute.xlu0 %2952  ;;  %13376 = vmatprep.subr.bf16.mxu0 %v15217_v27 }
 0x3e9   :  { %v2958_v11 = vsel %vm2750_vm2, %v2953_v2, 0 }
 0x3ec   :  { %v3055_v3 = vpop.permute.xlu1 %3054  ;;  %v3004_v4 = vpop.permute.xlu0 %3003 }
 0x3ed   :  { %v3009_v6 = vsel %vm2750_vm2, %v3004_v4, 0  ;;  %13355 = vmatmul.mubr.msk.bf16.vlgmr.msra.gmra.mrb[60].mxu1 %vm2750_vm2, %v2799_v56  ;;  %13367 = vmatmul.mubr.msk.bf16.vlgmr.msra.gmra.mrb[52].mxu0 %vm2750_vm2, %v2901_v1  ;;  %v3060_v14 = vsel %vm2750_vm2, %v3055_v3, 0 }
 0x3ee   :  { %13359 = vmatpush3.bf16.xpose.msra.mxu1 %v2857_v5  ;;  %13377 = vmatpush3.bf16.xpose.msra.mxu0 %v3009_v6 }
 0x3ef   :  { %13360 = vmatprep.mubr.msk.bf16.mxu1 %vm15218_vm1, %v15217_v27  ;;  %13378 = vmatprep.mubr.msk.bf16.mxu0 %vm15218_vm1, %v15217_v27 }
 0x3f0   :  { %13370 = vmatprep.subr.bf16.mxu1 %v15217_v27  ;;  %13388 = vmatprep.subr.bf16.mxu0 %v15217_v27  ;;  %v3106_v9 = vpop.permute.xlu1 %3105  ;;  %v3002_v10 = vpop.permute.xlu0 %3001 }
 0x3f1   :  { %v3111_v12 = vsel %vm2750_vm2, %v3106_v9, 0 }
 0x3f4   :  { %v3104_v13 = vpop.permute.xlu1 %3103  ;;  %v3053_v15 = vpop.permute.xlu0 %3052 }
 0x3f5   :  { %13361 = vmatmul.mubr.msk.bf16.vlgmr.msra.gmra.mrb[64].mxu1 %vm2750_vm2, %v2850_v61  ;;  %13379 = vmatmul.mubr.msk.bf16.vlgmr.msra.gmra.mrb[56].mxu0 %vm2750_vm2, %v3002_v10 }
 0x3f6   :  { %13371 = vmatpush3.bf16.xpose.msra.mxu1 %v2958_v11  ;;  %13389 = vmatpush3.bf16.xpose.msra.mxu0 %v3111_v12 }
 0x3f7   :  { %13372 = vmatprep.mubr.msk.bf16.mxu1 %vm15218_vm1, %v15217_v27  ;;  %13390 = vmatprep.mubr.msk.bf16.mxu0 %vm15218_vm1, %v15217_v27 }
 0x3f8   :  { %13382 = vmatprep.subr.bf16.mxu1 %v15217_v27  ;;  %13400 = vmatprep.subr.bf16.mxu0 %v15217_v27 }
 0x3fd   :  { %13373 = vmatmul.mubr.msk.bf16.vlgmr.msra.gmra.mrb[68].mxu1 %vm2750_vm2, %v2737_v54  ;;  %13391 = vmatmul.mubr.msk.bf16.vlgmr.msra.gmra.mrb[60].mxu0 %vm2750_vm2, %v3104_v13 }
 0x3fe   :  { %13383 = vmatpush3.bf16.xpose.msra.mxu1 %v3060_v14  ;;  %13384 = vmatprep.mubr.msk.bf16.mxu1 %vm15218_vm1, %v15217_v27 }
 0x3ff   :  { %13394 = vmatprep.subr.bf16.mxu1 %v15217_v27  ;;  %13402 = vmatprep.mubr.msk.bf16.mxu0 %vm15218_vm1, %v15217_v27 }
 0x405   :  { %13385 = vmatmul.mubr.msk.bf16.vlgmr.msra.gmra.mrb[72].mxu1 %vm2750_vm2, %v3053_v15 }
 0x406   :  { %13395 = vmatpush3.bf16.msra.mxu1 %v16168_v45  ;;  %13396 = vmatprep.mubr.msk.bf16.mxu1 %vm15218_vm1, %v15217_v27 }
 0x407   :  { %13406 = vmatprep.subr.bf16.mxu1 %v15217_v27 }
 0x4b8   :  { %v16228_v16 = vpop.f32.mrb[56].mxu1 }
 0x4b9   :  { %v13350_v17 = vpop.f32.mrb[57].mxu1  ;;  %v3154_v35 = vsel %vm2750_vm2, %v16228_v16, -inf }
 0x4ba   :  { %3155 = vmax.xlane.f32.xlu0 %v3154_v35  ;;  %v16232_v21 = vpop.f32.mrb[58].mxu1 }
 0x4bb   :  { %v13351_v22 = vpop.f32.mrb[59].mxu1  ;;  %v3157_v43 = vsel %vm2750_vm2, %v16232_v21, -inf }
 0x4c0   :  { %v16234_v23 = vpop.f32.mrb[60].mxu1  ;;  %v16236_v29 = vpop.f32.mrb[52].mxu0 }
 0x4c1   :  { %v13356_v30 = vpop.f32.mrb[61].mxu1  ;;  %v13368_v31 = vpop.f32.mrb[53].mxu0  ;;  %v3160_v36 = vsel %vm2750_vm2, %v16234_v23, -inf  ;;  %v3172_v37 = vsel %vm2750_vm2, %v16236_v29, -inf }
 0x4c2   :  { %3161 = vmax.xlane.f32.xlu0 %v3160_v36  ;;  %v16242_v38 = vpop.f32.mrb[62].mxu1  ;;  %3173 = vmax.xlane.f32.xlu1 %v3172_v37  ;;  %v16244_v39 = vpop.f32.mrb[54].mxu0 }
 0x4c3   :  { %v13357_v40 = vpop.f32.mrb[63].mxu1  ;;  %v13369_v41 = vpop.f32.mrb[55].mxu0  ;;  %v3163_v42 = vsel %vm2750_vm2, %v16242_v38, -inf  ;;  %v3175_v57 = vsel %vm2750_vm2, %v16244_v39, -inf }
 0x4c6   :  { %3164 = vmax.xlane.f32.xlu0 %v3163_v42  ;;  %3158 = vmax.xlane.f32.xlu1 %v3157_v43 }
 0x4c8   :  { %v16250_v44 = vpop.f32.mrb[64].mxu1  ;;  %v16252_v46 = vpop.f32.mrb[56].mxu0 }
 0x4c9   :  { %v13362_v47 = vpop.f32.mrb[65].mxu1  ;;  %v13380_v48 = vpop.f32.mrb[57].mxu0  ;;  %v3166_v49 = vsel %vm2750_vm2, %v16250_v44, -inf  ;;  %v3184_v56 = vsel %vm2750_vm2, %v16252_v46, -inf }
 0x4ca   :  { %v16256_v50 = vpop.f32.mrb[66].mxu1  ;;  %3167 = vmax.xlane.f32.xlu1 %v3166_v49  ;;  %v16258_v51 = vpop.f32.mrb[58].mxu0 }
 0x4cb   :  { %v13363_v52 = vpop.f32.mrb[67].mxu1  ;;  %v13381_v53 = vpop.f32.mrb[59].mxu0  ;;  %v3169_v54 = vsel %vm2750_vm2, %v16256_v50, -inf  ;;  %v3187_v5 = vsel %vm2750_vm2, %v16258_v51, -inf }
 0x4cc   :  { %3170 = vmax.xlane.f32.xlu0 %v3169_v54 }
 0x4ce   :  { %3185 = vmax.xlane.f32.xlu1 %v3184_v56 }
 0x4d0   :  { %3176 = vmax.xlane.f32.xlu0 %v3175_v57  ;;  %v16266_v58 = vpop.f32.mrb[68].mxu1  ;;  %v16268_v59 = vpop.f32.mrb[60].mxu0 }
 0x4d1   :  { %v13374_v60 = vpop.f32.mrb[69].mxu1  ;;  %v13392_v61 = vpop.f32.mrb[61].mxu0  ;;  %v3178_v62 = vsel %vm2750_vm2, %v16266_v58, -inf  ;;  %v3196_v4 = vsel %vm2750_vm2, %v16268_v59, -inf }
 0x4d2   :  { %v16272_v63 = vpop.f32.mrb[70].mxu1  ;;  %3179 = vmax.xlane.f32.xlu1 %v3178_v62  ;;  %v16274_v0 = vpop.f32.mrb[62].mxu0 }
 0x4d3   :  { %v13375_v1 = vpop.f32.mrb[71].mxu1  ;;  %v13393_v2 = vpop.f32.mrb[63].mxu0  ;;  %v3181_v3 = vsel %vm2750_vm2, %v16272_v63, -inf  ;;  %v3199_v14 = vsel %vm2750_vm2, %v16274_v0, -inf }
 0x4d4   :  { %3182 = vmax.xlane.f32.xlu0 %v3181_v3 }
 0x4d6   :  { %3197 = vmax.xlane.f32.xlu1 %v3196_v4 }
 0x4d8   :  { %3188 = vmax.xlane.f32.xlu0 %v3187_v5  ;;  %v16282_v6 = vpop.f32.mrb[72].mxu1 }
 0x4d9   :  { %v13386_v9 = vpop.f32.mrb[73].mxu1  ;;  %v3190_v10 = vsel %vm2750_vm2, %v16282_v6, -inf }
 0x4da   :  { %3191 = vmax.xlane.f32.xlu1 %v3190_v10  ;;  %v16286_v11 = vpop.f32.mrb[74].mxu1 }
 0x4db   :  { %v13387_v12 = vpop.f32.mrb[75].mxu1  ;;  %v3193_v13 = vsel %vm2750_vm2, %v16286_v11, -inf }
 0x4dc   :  { %3194 = vmax.xlane.f32.xlu0 %v3193_v13 }
 0x4e0   :  { %3200 = vmax.xlane.f32.xlu0 %v3199_v14 }
 0x4eb   :  { %3383 = vrot.lane.b32.xlu1 %v16168_v45, %s15219_s30 }
 0x4ef   :  { %3477 = vrot.lane.b32.xlu1 %v16168_v45, %s18850_s25 }
 0x4f3   :  { %3601 = vrot.lane.b32.xlu1 %v16174_v55, %s15219_s30 }
 0x4f6   :  { %3430 = vrot.lane.b32.xlu0 %v16168_v45, %s18852_s24 }
 0x547   :  { %v3156_v15 = vpop.xlane.xlu0 %3155 }
 0x548   :  { %v3202_v17 = vsub.f32 %v16228_v16, %v3156_v15 }
 0x54a   :  { %v3218_v35 = vmul.f32 1.442695, %v3202_v17 }
 0x54c   :  { %14712 = vpow2.f32 %v3218_v35 }
 0x54f   :  { %v3174_v22 = vpop.xlane.xlu1 %3173  ;;  %v3162_v30 = vpop.xlane.xlu0 %3161 }
 0x550   :  { %v3208_v31 = vsub.f32 %v16236_v29, %v3174_v22  ;;  %v3204_v36 = vsub.f32 %v16234_v23, %v3162_v30 }
 0x552   :  { %v3230_v37 = vmul.f32 1.442695, %v3208_v31  ;;  %v3222_v40 = vmul.f32 1.442695, %v3204_v36 }
 0x553   :  { %v3159_v41 = vpop.xlane.xlu1 %3158  ;;  %v3165_v43 = vpop.xlane.xlu0 %3164 }
 0x554   :  { %14714 = vpow2.f32 %v3230_v37  ;;  %v3203_v42 = vsub.f32 %v16232_v21, %v3159_v41  ;;  %v3205_v52 = vsub.f32 %v16242_v38, %v3165_v43 }
 0x555   :  { %14716 = vpow2.f32 %v3222_v40 }
 0x556   :  { %v16304_v47 = vpop.eup %14712  ;;  %v3220_v45 = vmul.f32 1.442695, %v3203_v42 }
 0x557   :  { %v3168_v16 = vpop.xlane.xlu1 %3167  ;;  %v3250_v48 = vsel %vm2750_vm2, %v16304_v47, 0.0 }
 0x558   :  { %14718 = vpow2.f32 %v3220_v45  ;;  %3251 = vadd.xlane.f32.xlu1 %v3250_v48  ;;  %v3206_v29 = vsub.f32 %v16250_v44, %v3168_v16  ;;  %v3224_v44 = vmul.f32 1.442695, %v3205_v52 }
 0x559   :  { %v3171_v23 = vpop.xlane.xlu0 %3170 }
 0x55a   :  { %v3226_v21 = vmul.f32 1.442695, %v3206_v29  ;;  %v3207_v9 = vsub.f32 %v16256_v50, %v3171_v23 }
 0x55b   :  { %v3186_v49 = vpop.xlane.xlu1 %3185 }
 0x55c   :  { %v3212_v53 = vsub.f32 %v16252_v46, %v3186_v49  ;;  %v3228_v17 = vmul.f32 1.442695, %v3207_v9 }
 0x55d   :  { %v3177_v54 = vpop.xlane.xlu0 %3176 }
 0x55e   :  { %v16311_v56 = vpop.eup %14714  ;;  %v3238_v57 = vmul.f32 1.442695, %v3212_v53  ;;  %v3209_v60 = vsub.f32 %v16244_v39, %v3177_v54 }
 0x55f   :  { %v3180_v61 = vpop.xlane.xlu1 %3179  ;;  %v3268_v62 = vsel %vm2750_vm2, %v16311_v56, 0.0  ;;  %v16316_v1 = vpop.eup %14716 }
 0x560   :  { %14720 = vpow2.f32 %v3238_v57  ;;  %v3232_v2 = vmul.f32 1.442695, %v3209_v60  ;;  %3269 = vadd.xlane.f32.xlu1 %v3268_v62  ;;  %v3210_v38 = vsub.f32 %v16266_v58, %v3180_v61  ;;  %v3256_v5 = vsel %vm2750_vm2, %v16316_v1, 0.0 }
 0x561   :  { %14722 = vpow2.f32 %v3226_v21  ;;  %v3183_v46 = vpop.xlane.xlu0 %3182 }
 0x562   :  { %v16319_v3 = vpop.eup %14718  ;;  %14724 = vpow2.f32 %v3232_v2  ;;  %v3234_v12 = vmul.f32 1.442695, %v3210_v38 }
 0x563   :  { %v3198_v4 = vpop.xlane.xlu1 %3197  ;;  %v3253_v39 = vsel %vm2750_vm2, %v16319_v3, 0.0  ;;  %14726 = vpow2.f32 %v3224_v44 }
 0x564   :  { %v3216_v10 = vsub.f32 %v16268_v59, %v3198_v4  ;;  %3254 = vadd.xlane.f32.xlu0 %v3253_v39  ;;  %3257 = vadd.xlane.f32.xlu1 %v3256_v5 }
 0x565   :  { %v3189_v58 = vpop.xlane.xlu0 %3188 }
 0x566   :  { %v3246_v13 = vmul.f32 1.442695, %v3216_v10  ;;  %v3213_v14 = vsub.f32 %v16258_v51, %v3189_v58  ;;  %v3211_v51 = vsub.f32 %v16272_v63, %v3183_v46 }
 0x567   :  { %v3192_v15 = vpop.xlane.xlu1 %3191 }
 0x568   :  { %14728 = vpow2.f32 %v3246_v13  ;;  %v3240_v35 = vmul.f32 1.442695, %v3213_v14  ;;  %v3214_v22 = vsub.f32 %v16282_v6, %v3192_v15  ;;  %v3236_v16 = vmul.f32 1.442695, %v3211_v51 }
 0x569   :  { %14730 = vpow2.f32 %v3234_v12  ;;  %v3195_v30 = vpop.xlane.xlu0 %3194 }
 0x56a   :  { %v16329_v31 = vpop.eup %14720  ;;  %14732 = vpow2.f32 %v3240_v35  ;;  %v3242_v50 = vmul.f32 1.442695, %v3214_v22  ;;  %v3215_v63 = vsub.f32 %v16286_v11, %v3195_v30 }
 0x56b   :  { %v16331_v59 = vpop.eup %14722  ;;  %v3384_v36 = vpop.permute.xlu1 %3383  ;;  %v3280_v37 = vsel %vm2750_vm2, %v16329_v31, 0.0  ;;  %14734 = vpow2.f32 %v3228_v17 }
 0x56c   :  { %v16335_v40 = vpop.eup %14724  ;;  %13401 = vmatpush3.bf16.msra.mxu0 %v3384_v36  ;;  %3281 = vadd.xlane.f32.xlu1 %v3280_v37  ;;  %14736 = vpow2.f32 %v3242_v50  ;;  %v3262_v45 = vsel %vm2750_vm2, %v16331_v59, 0.0  ;;  %v3244_v53 = vmul.f32 1.442695, %v3215_v63 }
 0x56d   :  { %v3201_v6 = vpop.xlane.xlu0 %3200  ;;  %v3271_v41 = vsel %vm2750_vm2, %v16335_v40, 0.0  ;;  %13412 = vmatprep.subr.bf16.mxu0 %v15217_v27  ;;  %v16341_v42 = vpop.eup %14726 }
 0x56e   :  { %v3217_v43 = vsub.f32 %v16274_v0, %v3201_v6  ;;  %3272 = vadd.xlane.f32.xlu0 %v3271_v41  ;;  %v3259_v29 = vsel %vm2750_vm2, %v16341_v42, 0.0 }
 0x56f   :  { %v3478_v39 = vpop.permute.xlu1 %3477 }
 0x570   :  { %v3248_v48 = vmul.f32 1.442695, %v3217_v43  ;;  %3263 = vadd.xlane.f32.xlu1 %v3262_v45 }
 0x571   :  { %v3431_v10 = vpop.permute.xlu0 %3430 }
 0x572   :  { %v16349_v23 = vpop.eup %14728  ;;  %14738 = vpow2.f32 %v3248_v48  ;;  %3260 = vadd.xlane.f32.xlu0 %v3259_v29 }
 0x573   :  { %v16351_v49 = vpop.eup %14730  ;;  %v3292_v0 = vsel %vm2750_vm2, %v16349_v23, 0.0  ;;  %14740 = vpow2.f32 %v3236_v16  ;;  %v16385_v5 = vpop.permute.xlu1 %3601 }
 0x574   :  { %v16355_v52 = vpop.eup %14732  ;;  %3293 = vadd.xlane.f32.xlu1 %v3292_v0  ;;  %v3274_v54 = vsel %vm2750_vm2, %v16351_v49, 0.0  ;;  %14742 = vpow2.f32 %v3244_v53 }
 0x575   :  { %v3283_v11 = vsel %vm2750_vm2, %v16355_v52, 0.0  ;;  %v16359_v21 = vpop.eup %14734 }
 0x576   :  { %3284 = vadd.xlane.f32.xlu0 %v3283_v11  ;;  %v16363_v57 = vpop.eup %14736  ;;  %v3265_v60 = vsel %vm2750_vm2, %v16359_v21, 0.0 }
 0x577   :  { %v3286_v61 = vsel %vm2750_vm2, %v16363_v57, 0.0 }
 0x578   :  { %3275 = vadd.xlane.f32.xlu1 %v3274_v54 }
 0x57a   :  { %3266 = vadd.xlane.f32.xlu0 %v3265_v60 }
 0x57c   :  { %v16369_v62 = vpop.eup %14738  ;;  %3287 = vadd.xlane.f32.xlu1 %v3286_v61 }
 0x57d   :  { %v3295_v44 = vsel %vm2750_vm2, %v16369_v62, 0.0  ;;  %v16373_v2 = vpop.eup %14740 }
 0x57e   :  { %3296 = vadd.xlane.f32.xlu0 %v3295_v44  ;;  %v3277_v38 = vsel %vm2750_vm2, %v16373_v2, 0.0  ;;  %v16377_v46 = vpop.eup %14742 }
 0x57f   :  { %v3289_v4 = vsel %vm2750_vm2, %v16377_v46, 0.0 }
 0x582   :  { %3278 = vadd.xlane.f32.xlu0 %v3277_v38 }
 0x586   :  { %3290 = vadd.xlane.f32.xlu0 %v3289_v4 }
 0x58d   :  { %3695 = vrot.lane.b32.xlu1 %v16174_v55, %s18850_s25 }
 0x59c   :  { %3648 = vrot.lane.b32.xlu0 %v16174_v55, %s18852_s24 }
 0x5e5   :  { %v3252_v9 = vpop.xlane.xlu1 %3251 }
 0x5e6   :  { %14744 = vrcp.f32 %v3252_v9 }
 0x5ed   :  { %v3270_v12 = vpop.xlane.xlu1 %3269 }
 0x5f0   :  { %v14745_v15 = vpop.eup %14744 }
 0x5f1   :  { %v3255_v58 = vpop.xlane.xlu0 %3254  ;;  %v3258_v13 = vpop.xlane.xlu1 %3257  ;;  %v3314_v22 = vmul.f32 %v14745_v15, %v16304_v47 }
 0x5f2   :  { %14746 = vrcp.f32 %v3255_v58 }
 0x5f3   :  { %14748 = vrcp.f32 %v3258_v13 }
 0x5f9   :  { %v3282_v14 = vpop.xlane.xlu1 %3281 }
 0x5fb   :  { %v3273_v17 = vpop.xlane.xlu0 %3272 }
 0x5fc   :  { %v14747_v35 = vpop.eup %14746 }
 0x5fd   :  { %v3315_v30 = vmul.f32 %v14747_v35, %v16319_v3  ;;  %v3264_v50 = vpop.xlane.xlu1 %3263  ;;  %v14749_v41 = vpop.eup %14748 }
 0x5fe   :  { %v3316_v43 = vmul.f32 %v14749_v41, %v16316_v1 }
 0x5ff   :  { %v3261_v36 = vpop.xlane.xlu0 %3260  ;;  %v3330_v37 = vpack.c.bf16 %v3315_v30, %v3314_v22 }
 0x600   :  { %14750 = vrcp.f32 %v3261_v36 }
 0x601   :  { %13397 = vmatmul.mubr.msk.bf16.vlgmr.msra.gmra.mrb[76].mxu1 %vm2750_vm2, %v3330_v37  ;;  %14752 = vrcp.f32 %v3273_v17  ;;  %v3294_v6 = vpop.xlane.xlu1 %3293 }
 0x602   :  { %13407 = vmatpush3.bf16.msra.mxu1 %v3431_v10  ;;  %13408 = vmatprep.mubr.msk.bf16.mxu1 %vm15218_vm1, %v15217_v27  ;;  %14754 = vrcp.f32 %v3270_v12 }
 0x603   :  { %v3285_v51 = vpop.xlane.xlu0 %3284  ;;  %13418 = vmatprep.subr.bf16.mxu1 %v15217_v27  ;;  %14756 = vrcp.f32 %v3264_v50 }
 0x605   :  { %v3276_v16 = vpop.xlane.xlu1 %3275 }
 0x607   :  { %v3267_v47 = vpop.xlane.xlu0 %3266 }
 0x608   :  { %14758 = vrcp.f32 %v3267_v47 }
 0x609   :  { %14760 = vrcp.f32 %v3285_v51  ;;  %v3288_v44 = vpop.xlane.xlu1 %3287 }
 0x60a   :  { %v14751_v3 = vpop.eup %14750  ;;  %14762 = vrcp.f32 %v3282_v14 }
 0x60b   :  { %v3317_v45 = vmul.f32 %v14751_v3, %v16341_v42  ;;  %v3297_v63 = vpop.xlane.xlu0 %3296  ;;  %v14753_v29 = vpop.eup %14752  ;;  %14764 = vrcp.f32 %v3276_v16 }
 0x60c   :  { %v14755_v0 = vpop.eup %14754  ;;  %v3321_v1 = vmul.f32 %v14753_v29, %v16335_v40  ;;  %v14585_v29 = vld [vmem:[%s18832_s5 + $0x8] sm:$0xff]  }
 0x60d   :  { %v3331_v48 = vpack.c.bf16 %v3317_v45, %v3316_v43  ;;  %v14757_v11 = vpop.eup %14756  ;;  %v3320_v54 = vmul.f32 %v14755_v0, %v16311_v56  ;;  %v3696_v15 = vpop.permute.xlu1 %3695  ;;  %v14586_v0 = vld [vmem:[%s18832_s5 + $0x10] sm:$0xff]  }
 0x60e   :  { %v3318_v60 = vmul.f32 %v14757_v11, %v16331_v59 }
 0x60f   :  { %13403 = vmatmul.mubr.msk.bf16.vlgmr.msra.gmra.mrb[64].mxu0 %vm2750_vm2, %v3331_v48  ;;  %v3279_v53 = vpop.xlane.xlu0 %3278 }
 0x610   :  { %13413 = vmatpush3.bf16.msra.mxu0 %v3478_v39  ;;  %14766 = vrcp.f32 %v3279_v53  ;;  %13414 = vmatprep.mubr.msk.bf16.mxu0 %vm15218_vm1, %v15217_v27  ;;  %v3333_v39 = vpack.c.bf16 %v3321_v1, %v3320_v54 }
 0x611   :  { %13424 = vmatprep.subr.bf16.mxu0 %v15217_v27  ;;  %14768 = vrcp.f32 %v3297_v63 }
 0x612   :  { %v14759_v42 = vpop.eup %14758 }
 0x613   :  { %v3319_v61 = vmul.f32 %v14759_v42, %v16359_v21  ;;  %v3291_v38 = vpop.xlane.xlu0 %3290  ;;  %v14761_v9 = vpop.eup %14760 }
 0x614   :  { %14770 = vrcp.f32 %v3291_v38  ;;  %v14763_v10 = vpop.eup %14762  ;;  %v3325_v56 = vmul.f32 %v14761_v9, %v16355_v52 }
 0x615   :  { %14772 = vrcp.f32 %v3294_v6  ;;  %v3332_v4 = vpack.c.bf16 %v3319_v61, %v3318_v60  ;;  %v14765_v40 = vpop.eup %14764  ;;  %v3324_v21 = vmul.f32 %v14763_v10, %v16329_v31 }
 0x616   :  { %14774 = vrcp.f32 %v3288_v44  ;;  %v3322_v12 = vmul.f32 %v14765_v40, %v16351_v49 }
 0x617   :  { %13409 = vmatmul.mubr.msk.bf16.vlgmr.msra.gmra.mrb[80].mxu1 %vm2750_vm2, %v3332_v4  ;;  %13415 = vmatmul.mubr.msk.bf16.vlgmr.msra.gmra.mrb[68].mxu0 %vm2750_vm2, %v3333_v39  ;;  %v3335_v52 = vpack.c.bf16 %v3325_v56, %v3324_v21  ;;  %v3649_v17 = vpop.permute.xlu0 %3648  ;;  %v14587_v39 = vld [vmem:[%s18832_s5 + $0x18] sm:$0xff]  }
 0x618   :  { %13419 = vmatpush3.bf16.msra.mxu1 %v16174_v55  ;;  %13425 = vmatpush3.bf16.msra.mxu0 %v16385_v5 }
 0x619   :  { %13420 = vmatprep.mubr.msk.bf16.mxu1 %vm15218_vm1, %v15217_v27  ;;  %13426 = vmatprep.mubr.msk.bf16.mxu0 %vm15218_vm1, %v15217_v27 }
 0x61a   :  { %v14767_v59 = vpop.eup %14766  ;;  %13430 = vmatprep.subr.bf16.mxu1 %v15217_v27  ;;  %13436 = vmatprep.subr.bf16.mxu0 %v15217_v27 }
 0x61b   :  { %v3323_v55 = vmul.f32 %v14767_v59, %v16373_v2  ;;  %v14769_v5 = vpop.eup %14768 }
 0x61c   :  { %v3329_v31 = vmul.f32 %v14769_v5, %v16369_v62 }
 0x61d   :  { %v3334_v58 = vpack.c.bf16 %v3323_v55, %v3322_v12 }
 0x61e   :  { %v14771_v13 = vpop.eup %14770 }
 0x61f   :  { %v14773_v14 = vpop.eup %14772  ;;  %13421 = vmatmul.mubr.msk.bf16.vlgmr.msra.gmra.mrb[84].mxu1 %vm2750_vm2, %v3334_v58  ;;  %13427 = vmatmul.mubr.msk.bf16.vlgmr.msra.gmra.mrb[72].mxu0 %vm2750_vm2, %v3335_v52  ;;  %v3327_v49 = vmul.f32 %v14771_v13, %v16377_v46 }
 0x620   :  { %v14775_v35 = vpop.eup %14774  ;;  %13431 = vmatpush3.bf16.msra.mxu1 %v3649_v17  ;;  %13437 = vmatpush3.bf16.msra.mxu0 %v3696_v15  ;;  %v3328_v2 = vmul.f32 %v14773_v14, %v16349_v23  ;;  %v14584_v23 = vld [vmem:[%s18832_s5] sm:$0xff]  }
 0x621   :  { %13432 = vmatprep.mubr.msk.bf16.mxu1 %vm15218_vm1, %v15217_v27  ;;  %13438 = vmatprep.mubr.msk.bf16.mxu0 %vm15218_vm1, %v15217_v27  ;;  %v3326_v22 = vmul.f32 %v14775_v35, %v16363_v57 }
 0x622   :  { %v3337_v50 = vpack.c.bf16 %v3329_v31, %v3328_v2  ;;  %13442 = vmatprep.subr.bf16.mxu1 %v14584_v23 }
 0x623   :  { %v3336_v30 = vpack.c.bf16 %v3327_v49, %v3326_v22 }
 0x627   :  { %13433 = vmatmul.mubr.msk.bf16.vlgmr.msra.gmra.mrb[88].mxu1 %vm2750_vm2, %v3336_v30  ;;  %13439 = vmatmul.mubr.msk.bf16.vlgmr.msra.gmra.mrb[76].mxu0 %vm2750_vm2, %v3337_v50 }
 0x628   :  { %13443 = vmatpush3.bf16.msra.mxu1 %v14584_v23 }
 0x629   :  { %13444 = vmatprep.subr.bf16.mxu1 %v14585_v29 }
 0x62c   :  { %13445 = vmatpush3.bf16.msra.mxu1 %v14585_v29 }
 0x62d   :  { %13446 = vmatprep.subr.bf16.mxu1 %v14586_v0 }
 0x630   :  { %13447 = vmatpush3.bf16.msra.mxu1 %v14586_v0 }
 0x631   :  { %13448 = vmatprep.subr.bf16.mxu1 %v14587_v39 }
 0x634   :  { %13449 = vmatpush3.bf16.msra.mxu1 %v14587_v39 }
 0x6d4   :  { %v16429_v36 = vpop.f32.mrb[76].mxu1 }
 0x6d5   :  { %v13398_v62 = vpop.f32.mrb[77].mxu1 }
 0x6d6   :  { %v16431_v46 = vpop.f32.mrb[78].mxu1 }
 0x6d7   :  { %v13399_v37 = vpop.f32.mrb[79].mxu1 }
 0x6e2   :  { %v3423_v51 = vpop.f32.mrb[64].mxu0 }
 0x6e3   :  { %v13404_v6 = vpop.f32.mrb[65].mxu0 }
 0x6e4   :  { %v3426_v47 = vpop.f32.mrb[66].mxu0 }
 0x6e5   :  { %v14192_v41 = vpack.i.bf16 %v3426_v47, %v3423_v51  ;;  %v13405_v3 = vpop.f32.mrb[67].mxu0 }
 0x6e7   :  { %14193 = vrot.lane.b32.xlu0 %v14192_v41, %s15224_s16 }
 0x6ea   :  { %v3470_v57 = vpop.f32.mrb[80].mxu1  ;;  %v3517_v43 = vpop.f32.mrb[68].mxu0 }
 0x6eb   :  { %v13410_v45 = vpop.f32.mrb[81].mxu1  ;;  %v13416_v16 = vpop.f32.mrb[69].mxu0 }
 0x6ec   :  { %v3473_v63 = vpop.f32.mrb[82].mxu1  ;;  %v3520_v48 = vpop.f32.mrb[70].mxu0 }
 0x6ed   :  { %v14197_v53 = vpack.i.bf16 %v3473_v63, %v3470_v57  ;;  %v14202_v11 = vpack.i.bf16 %v3520_v48, %v3517_v43  ;;  %v13411_v1 = vpop.f32.mrb[83].mxu1  ;;  %v13417_v42 = vpop.f32.mrb[71].mxu0 }
 0x6ef   :  { %14198 = vrot.lane.b32.xlu1 %v14197_v53, %s15221_s23 }
 0x6f2   :  { %v3593_v54 = vpop.f32.mrb[84].mxu1  ;;  %v3641_v60 = vpop.f32.mrb[72].mxu0 }
 0x6f3   :  { %v13428_v61 = vpop.f32.mrb[73].mxu0  ;;  %14203 = vrot.lane.b32.xlu1 %v14202_v11, %s15222_s22  ;;  %v13422_v44 = vpop.f32.mrb[85].mxu1 }
 0x6f4   :  { %v3596_v38 = vpop.f32.mrb[86].mxu1  ;;  %v3644_v4 = vpop.f32.mrb[74].mxu0  ;;  %v3777_v61 = vrot.slane %v16156_v28, %v16114_v8 }
 0x6f5   :  { %v14207_v9 = vpack.i.bf16 %v3644_v4, %v3641_v60  ;;  %v13423_v10 = vpop.f32.mrb[87].mxu1  ;;  %v13429_v40 = vpop.f32.mrb[75].mxu0 }
 0x6f7   :  { %14208 = vrot.lane.b32.xlu0 %v14207_v9, %s15224_s16 }
 0x6fa   :  { %v3688_v56 = vpop.f32.mrb[88].mxu1  ;;  %v3735_v59 = vpop.f32.mrb[76].mxu0 }
 0x6fb   :  { %v13434_v21 = vpop.f32.mrb[89].mxu1  ;;  %v13440_v12 = vpop.f32.mrb[77].mxu0 }
 0x6fc   :  { %v3691_v55 = vpop.f32.mrb[90].mxu1  ;;  %v3738_v5 = vpop.f32.mrb[78].mxu0 }
 0x6fd   :  { %v14212_v58 = vpack.i.bf16 %v3691_v55, %v3688_v56  ;;  %v14217_v52 = vpack.i.bf16 %v3738_v5, %v3735_v59  ;;  %v13435_v13 = vpop.f32.mrb[91].mxu1  ;;  %v13441_v14 = vpop.f32.mrb[79].mxu0 }
 0x6ff   :  { %14218 = vrot.lane.b32.xlu1 %v14217_v52, %s15222_s22  ;;  %14213 = vrot.lane.b32.xlu0 %v14212_v58, %s15221_s23 }
 0x759   :  { %v14194_v15 = vpop.permute.xlu0 %14193 }
 0x75a   :  { %v14196_v35 = vunpack.i.h.bf16 %v14194_v15  ;;  %v14195_v31 = vunpack.i.l.bf16 %v14194_v15 }
 0x75c   :  { %v3549_v30 = vsel %vm2750_vm2, %v16431_v46, %v14196_v35  ;;  %v3548_v50 = vsel %vm2750_vm2, %v16429_v36, %v14195_v31 }
 0x761   :  { %v14199_v17 = vpop.permute.xlu1 %14198 }
 0x762   :  { %v14201_v49 = vunpack.i.h.bf16 %v14199_v17  ;;  %v14200_v2 = vunpack.i.l.bf16 %v14199_v17 }
 0x764   :  { %v3551_v51 = vsel %vm3550_vm3, %v3548_v50, %v14200_v2  ;;  %v3552_v6 = vsel %vm3550_vm3, %v3549_v30, %v14201_v49 }
 0x765   :  { %v14204_v22 = vpop.permute.xlu1 %14203 }
 0x766   :  { %v14206_v62 = vunpack.i.h.bf16 %v14204_v22  ;;  %v14205_v37 = vunpack.i.l.bf16 %v14204_v22 }
 0x768   :  { %v3554_v47 = vsel %vm3553_vm4, %v3551_v51, %v14205_v37  ;;  %v3555_v41 = vsel %vm3553_vm4, %v3552_v6, %v14206_v62 }
 0x769   :  { %v3772_v3 = vpack.c.bf16 %v3555_v41, %v3554_v47  ;;  %v14209_v23 = vpop.permute.xlu0 %14208 }
 0x76a   :  { %v14211_v57 = vunpack.i.h.bf16 %v14209_v23  ;;  %v14210_v43 = vunpack.i.l.bf16 %v14209_v23 }
 0x76b   :  { %13450 = vmatprep.mubr.msk.bf16.mxu1 %vm2675_vm0, %v3772_v3 }
 0x76c   :  { %v3767_v29 = vsel %vm2750_vm2, %v3596_v38, %v14211_v57  ;;  %v3766_v0 = vsel %vm2750_vm2, %v3593_v54, %v14210_v43  ;;  %v14588_v57 = vld [vmem:[%s18833_s6] sm:$0xff]   ;;  %v14589_v43 = vld [vmem:[%s18833_s6 + $0x8] sm:$0xff]  }
 0x76d   :  { %13454 = vmatprep.subr.bf16.mxu0 %v14588_v57 }
 0x76e   :  { %13455 = vmatpush3.bf16.msra.mxu0 %v14588_v57 }
 0x76f   :  { %13456 = vmatprep.subr.bf16.mxu0 %v14589_v43 }
 0x771   :  { %v14219_v46 = vpop.permute.xlu1 %14218  ;;  %v14214_v45 = vpop.permute.xlu0 %14213 }
 0x772   :  { %v14221_v16 = vunpack.i.h.bf16 %v14219_v46  ;;  %v14220_v36 = vunpack.i.l.bf16 %v14219_v46  ;;  %v14216_v63 = vunpack.i.h.bf16 %v14214_v45  ;;  %v14215_v48 = vunpack.i.l.bf16 %v14214_v45  ;;  %13457 = vmatpush3.bf16.msra.mxu0 %v14589_v43  ;;  %v14590_v46 = vld [vmem:[%s18833_s6 + $0x10] sm:$0xff]   ;;  %v14591_v45 = vld [vmem:[%s18833_s6 + $0x18] sm:$0xff]  }
 0x773   :  { %13458 = vmatprep.subr.bf16.mxu0 %v14590_v46 }
 0x774   :  { %v3768_v53 = vsel %vm3550_vm3, %v3766_v0, %v14215_v48  ;;  %v3769_v11 = vsel %vm3550_vm3, %v3767_v29, %v14216_v63  ;;  %v14594_v63 = vld [vmem:[%s18834_s7 + $0x10] sm:$0xff]   ;;  %v14595_v48 = vld [vmem:[%s18834_s7 + $0x18] sm:$0xff]   ;;  %v14596_v29 = vld [vmem:[%s18834_s7 + $0x20] sm:$0xff]  }
 0x775   :  { %v3770_v1 = vsel %vm3553_vm4, %v3768_v53, %v14220_v36  ;;  %v3771_v42 = vsel %vm3553_vm4, %v3769_v11, %v14221_v16  ;;  %v14592_v16 = vld [vmem:[%s18834_s7] sm:$0xff]   ;;  %v14593_v36 = vld [vmem:[%s18834_s7 + $0x8] sm:$0xff]  }
 0x776   :  { %v3773_v60 = vpack.c.bf16 %v3771_v42, %v3770_v1  ;;  %13459 = vmatpush3.bf16.msra.mxu0 %v14590_v46  ;;  %13466 = vmatprep.subr.bf16.mxu1 %v14592_v16  ;;  %v14597_v0 = vld [vmem:[%s18834_s7 + $0x28] sm:$0xff]  }
 0x777   :  { %13460 = vmatprep.subr.bf16.mxu0 %v14591_v45 }
 0x778   :  { %13451 = vmatmul.mubr.msk.bf16.vlgmr.msra.gmra.mrb[92].mxu1 %vm2675_vm0, %v3773_v60 }
 0x779   :  { %13467 = vmatpush3.bf16.msra.mxu1 %v14592_v16 }
 0x77a   :  { %13461 = vmatpush3.bf16.msra.mxu0 %v14591_v45  ;;  %13468 = vmatprep.subr.bf16.mxu1 %v14593_v36 }
 0x77d   :  { %13469 = vmatpush3.bf16.msra.mxu1 %v14593_v36 }
 0x77e   :  { %13470 = vmatprep.subr.bf16.mxu1 %v14594_v63 }
 0x781   :  { %13471 = vmatpush3.bf16.msra.mxu1 %v14594_v63 }
 0x782   :  { %13472 = vmatprep.subr.bf16.mxu1 %v14595_v48 }
 0x785   :  { %13473 = vmatpush3.bf16.msra.mxu1 %v14595_v48 }
 0x786   :  { %13474 = vmatprep.subr.bf16.mxu1 %v14596_v29 }
 0x789   :  { %13475 = vmatpush3.bf16.msra.mxu1 %v14596_v29 }
 0x78a   :  { %13476 = vmatprep.subr.bf16.mxu1 %v14597_v0 }
 0x78d   :  { %13477 = vmatpush3.bf16.msra.mxu1 %v14597_v0 }
 0x84b   :  { %v13452_v44 = vpop.f32.mrb[92].mxu1 }
 0x84c   :  { %v3842_v4 = vpop.f32.mrb[93].mxu1  ;;  %v3851_v39 = vadd.f32 %v13452_v44, %v3777_v61 }
 0x84d   :  { %v3843_v38 = vadd.f32 %v3842_v4, %v3777_v61  ;;  %v13453_v9 = vpop.f32.mrb[94].mxu1 }
 0x84e   :  { %v3845_v54 = vpop.f32.mrb[95].mxu1  ;;  %v3854_v56 = vadd.f32 %v13453_v9, %v3777_v61  ;;  %v3859_v12 = vadd.f32 %v3851_v39, %v16143_v25 }
 0x84f   :  { %v3846_v10 = vadd.f32 %v3845_v54, %v3777_v61  ;;  %v3857_v40 = vadd.f32 %v3843_v38, %v16124_v18  ;;  %v16528_v54 = vsub.s32 2, %v16052_v33 }
 0x850   :  { %v3867_v28 = vsel %vm2675_vm0, %v3859_v12, 0.0  ;;  %v3860_v5 = vadd.f32 %v3854_v56, %v16141_v24 }
 0x851   :  { %v3861_v59 = vsel %vm2675_vm0, %v3857_v40, 0.0  ;;  %v3858_v21 = vadd.f32 %v3846_v10, %v16126_v19 }
 0x852   :  { %3862 = vadd.xlane.f32.xlu0 %v3861_v59  ;;  %v3870_v58 = vsel %vm2675_vm0, %v3860_v5, 0.0  ;;  %v16538_v59 = vsub.s32 3, %v16052_v33 }
 0x853   :  { %v3864_v55 = vsel %vm2675_vm0, %v3858_v21, 0.0 }
 0x854   :  { %3865 = vadd.xlane.f32.xlu1 %v3864_v55 }
 0x856   :  { %3868 = vadd.xlane.f32.xlu0 %v3867_v28 }
 0x85a   :  { %3871 = vadd.xlane.f32.xlu0 %v3870_v58 }
 0x8df   :  { %v3863_v52 = vpop.xlane.xlu0 %3862 }
 0x8e0   :  { %v3874_v13 = vmul.f32 0.015625, %v3863_v52 }
 0x8e1   :  { %v3866_v14 = vpop.xlane.xlu1 %3865 }
 0x8e2   :  { %v16477_v15 = vsub.f32 %v3857_v40, %v3874_v13  ;;  %v3875_v17 = vmul.f32 0.015625, %v3866_v14  ;;  %v16533_v40 = vld [vmem:[%s18831_s17] sm:$0xff] }
 0x8e3   :  { %v3869_v35 = vpop.xlane.xlu0 %3868  ;;  %v3917_v56 = vrot.slane %v16533_v40, %v16528_v54  ;;  %v3925_v58 = vrot.slane %v16533_v40, %v16538_v59 }
 0x8e4   :  { %v16479_v31 = vsub.f32 %v3858_v21, %v3875_v17  ;;  %v3876_v49 = vmul.f32 0.015625, %v3869_v35  ;;  %v3882_v2 = vmul.f32 %v16477_v15, %v16477_v15 }
 0x8e6   :  { %v16483_v22 = vsub.f32 %v3859_v12, %v3876_v49  ;;  %v3886_v30 = vsel %vm2675_vm0, %v3882_v2, 0.0  ;;  %v3883_v50 = vmul.f32 %v16479_v31, %v16479_v31 }
 0x8e7   :  { %3887 = vadd.xlane.f32.xlu1 %v3886_v30  ;;  %v3872_v62 = vpop.xlane.xlu0 %3871 }
 0x8e8   :  { %v3877_v37 = vmul.f32 0.015625, %v3872_v62  ;;  %v3889_v51 = vsel %vm2675_vm0, %v3883_v50, 0.0  ;;  %v3884_v6 = vmul.f32 %v16483_v22, %v16483_v22 }
 0x8e9   :  { %3890 = vadd.xlane.f32.xlu0 %v3889_v51  ;;  %v14599_v51 = vld [vmem:[%s18834_s7 + $0x38] sm:$0xff]  }
 0x8ea   :  { %v16491_v47 = vsub.f32 %v3860_v5, %v3877_v37  ;;  %v3892_v41 = vsel %vm2675_vm0, %v3884_v6, 0.0  ;;  %v16557_v6 = vsub.s32 4, %v16052_v33 }
 0x8eb   :  { %3893 = vadd.xlane.f32.xlu1 %v3892_v41 }
 0x8ec   :  { %v3885_v3 = vmul.f32 %v16491_v47, %v16491_v47 }
 0x8ee   :  { %v3895_v23 = vsel %vm2675_vm0, %v3885_v3, 0.0 }
 0x8ef   :  { %3896 = vadd.xlane.f32.xlu0 %v3895_v23 }
 0x974   :  { %v3888_v53 = vpop.xlane.xlu1 %3887 }
 0x975   :  { %v3898_v11 = vmul.f32 0.015625, %v3888_v53 }
 0x976   :  { %v3891_v1 = vpop.xlane.xlu0 %3890 }
 0x977   :  { %v3902_v42 = vadd.f32 1e-05, %v3898_v11  ;;  %v3899_v60 = vmul.f32 0.015625, %v3891_v1  ;;  %v16564_v11 = vsub.s32 5, %v16052_v33 }
 0x978   :  { %v3894_v61 = vpop.xlane.xlu1 %3893 }
 0x979   :  { %14776 = vrsqrt.f32 %v3902_v42  ;;  %v3903_v44 = vadd.f32 1e-05, %v3899_v60  ;;  %v3900_v4 = vmul.f32 0.015625, %v3894_v61  ;;  %v4048_v1 = vrot.slane %v16533_v40, %v16564_v11 }
 0x97b   :  { %14778 = vrsqrt.f32 %v3903_v44  ;;  %v3904_v39 = vadd.f32 1e-05, %v3900_v4 }
 0x97c   :  { %v3897_v38 = vpop.xlane.xlu0 %3896 }
 0x97d   :  { %14780 = vrsqrt.f32 %v3904_v39  ;;  %v3901_v9 = vmul.f32 0.015625, %v3897_v38 }
 0x97f   :  { %v3905_v10 = vadd.f32 1e-05, %v3901_v9 }
 0x981   :  { %14782 = vrsqrt.f32 %v3905_v10 }
 0x983   :  { %v14777_v21 = vpop.eup %14776 }
 0x984   :  { %v3910_v12 = vmul.f32 %v14777_v21, %v16477_v15 }
 0x985   :  { %v14779_v55 = vpop.eup %14778 }
 0x986   :  { %v3911_v28 = vmul.f32 %v14779_v55, %v16479_v31  ;;  %v3918_v5 = vmul.f32 %v3917_v56, %v3910_v12 }
 0x987   :  { %v14781_v52 = vpop.eup %14780 }
 0x988   :  { %v3912_v13 = vmul.f32 %v14781_v52, %v16483_v22  ;;  %v3919_v14 = vmul.f32 %v3917_v56, %v3911_v28  ;;  %v3926_v17 = vadd.f32 %v3925_v58, %v3918_v5  ;;  %v14598_v22 = vld [vmem:[%s18834_s7 + $0x30] sm:$0xff]  }
 0x989   :  { %13478 = vmatprep.subr.bf16.mxu1 %v14598_v22 }
 0x98a   :  { %v3927_v35 = vadd.f32 %v3925_v58, %v3919_v14  ;;  %v3920_v2 = vmul.f32 %v3917_v56, %v3912_v13  ;;  %13479 = vmatpush3.bf16.msra.mxu1 %v14598_v22 }
 0x98b   :  { %v14783_v49 = vpop.eup %14782  ;;  %13480 = vmatprep.subr.bf16.mxu1 %v14599_v51 }
 0x98c   :  { %v3913_v30 = vmul.f32 %v14783_v49, %v16491_v47  ;;  %v3938_v50 = vpack.c.bf16 %v3927_v35, %v3926_v17  ;;  %v3928_v15 = vadd.f32 %v3925_v58, %v3920_v2  ;;  %v3943_v47 = vrot.slane %v16533_v40, %v16557_v6 }
 0x98e   :  { %v3921_v62 = vmul.f32 %v3917_v56, %v3913_v30  ;;  %13462 = vmatprep.mubr.msk.bf16.mxu0 %vm2675_vm0, %v3938_v50  ;;  %13481 = vmatpush3.bf16.msra.mxu1 %v14599_v51 }
 0x98f   :  { %13492 = vmatprep.subr.bf16.mxu1 %v15217_v27 }
 0x990   :  { %v3929_v31 = vadd.f32 %v3925_v58, %v3921_v62 }
 0x992   :  { %v3939_v37 = vpack.c.bf16 %v3929_v31, %v3928_v15 }
 0x994   :  { %13463 = vmatmul.mubr.msk.bf16.vlgmr.msra.gmra.mrb[80].mxu0 %vm2675_vm0, %v3939_v37 }
 0x995   :  { %4318 = vmatprep.mubr.bf16.mxu0 %v15216_v7 }
 0xa67   :  { %v13464_v41 = vpop.f32.mrb[80].mxu0 }
 0xa68   :  { %v4017_v3 = vadd.f32 %v13464_v41, %v3943_v47  ;;  %v4008_v23 = vpop.f32.mrb[81].mxu0 }
 0xa69   :  { %v4009_v57 = vadd.f32 %v4008_v23, %v3943_v47  ;;  %v13465_v43 = vpop.f32.mrb[82].mxu0 }
 0xa6a   :  { %v4020_v46 = vadd.f32 %v13465_v43, %v3943_v47  ;;  %v4011_v45 = vpop.f32.mrb[83].mxu0  ;;  %v4025_v36 = vmax.f32 %v4017_v3, 0.0  ;;  %v14602_v43 = vld [vmem:[%s18863_s0 + $0x44] ss:$8 sps:$4 sm:$0xff]  }
 0xa6b   :  { %v4012_v16 = vadd.f32 %v4011_v45, %v3943_v47  ;;  %v4023_v48 = vmax.f32 %v4009_v57, 0.0  ;;  %4286 = vmatprep.subr.bf16.mxu0 %v14602_v43  ;;  %v14605_v45 = vld [vmem:[%s18863_s0 + $0x54] ss:$8 sps:$4 sm:$0xff]  }
 0xa6c   :  { %v4026_v63 = vmax.f32 %v4020_v46, 0.0  ;;  %v14600_v46 = vld [vmem:[%s18863_s0 + $0x40] ss:$8 sps:$4 sm:$0xff]  }
 0xa6d   :  { %v4024_v29 = vmax.f32 %v4012_v16, 0.0  ;;  %4287 = vmatpush1.bf16.msra.mxu0 %v14600_v46  ;;  %v14603_v16 = vld [vmem:[%s18863_s0 + $0x50] ss:$8 sps:$4 sm:$0xff]  }
 0xa6e   :  { %v4044_v0 = vpack.c.bf16 %v4026_v63, %v4025_v36  ;;  %4288 = vmatprep.subr.bf16.mxu0 %v14605_v45  ;;  %v14608_v36 = vld [vmem:[%s18863_s0 + $0x64] ss:$8 sps:$4 sm:$0xff]   ;;  %v14606_v63 = vld [vmem:[%s18863_s0 + $0x60] ss:$8 sps:$4 sm:$0xff]  }
 0xa6f   :  { %v4043_v53 = vpack.c.bf16 %v4024_v29, %v4023_v48  ;;  %v14611_v48 = vld [vmem:[%s18863_s0 + $0x74] ss:$8 sps:$4 sm:$0xff]   ;;  %v14609_v29 = vld [vmem:[%s18863_s0 + $0x70] ss:$8 sps:$4 sm:$0xff]  }
 0xa71   :  { %13482 = vmatprep.mubr.bf16.mxu1 %v4043_v53  ;;  %4289 = vmatpush1.bf16.msra.mxu0 %v14603_v16 }
 0xa72   :  { %13483 = vmatmul.mubr.bf16.vlgmr.msra.gmra.mrb[96].mxu1 %v4044_v0  ;;  %4290 = vmatprep.subr.bf16.mxu0 %v14608_v36 }
 0xa73   :  { %13494 = vmatprep.mubr.msk.bf16.mxu1 %vm15218_vm1, %v15217_v27 }
 0xa75   :  { %4291 = vmatpush1.bf16.msra.mxu0 %v14606_v63 }
 0xa76   :  { %4292 = vmatprep.subr.bf16.mxu0 %v14611_v48 }
 0xa79   :  { %4293 = vmatpush1.bf16.msra.mxu0 %v14609_v29 }
 0xa7a   :  { %13486 = vmatprep.subr.bf16.mxu0 %v15217_v27 }
 0xb45   :  { %v13484_v42 = vpop.f32.mrb[96].mxu1 }
 0xb46   :  { %v4131_v60 = vpop.f32.mrb[97].mxu1  ;;  %v4140_v61 = vadd.f32 %v13484_v42, %v4048_v1 }
 0xb47   :  { %v4132_v44 = vadd.f32 %v4131_v60, %v4048_v1  ;;  %v13485_v4 = vpop.f32.mrb[98].mxu1 }
 0xb48   :  { %v4134_v39 = vpop.f32.mrb[99].mxu1  ;;  %v4143_v38 = vadd.f32 %v13485_v4, %v4048_v1  ;;  %v4148_v12 = vadd.f32 %v4140_v61, %v3928_v15 }
 0xb49   :  { %v4135_v9 = vadd.f32 %v4134_v39, %v4048_v1  ;;  %v4146_v10 = vadd.f32 %v4132_v44, %v3926_v17 }
 0xb4a   :  { %v4149_v28 = vadd.f32 %v4143_v38, %v3929_v31  ;;  %v4156_v5 = vsel %vm2675_vm0, %v4148_v12, 0.0 }
 0xb4b   :  { %v4150_v56 = vsel %vm2675_vm0, %v4146_v10, 0.0  ;;  %v4147_v21 = vadd.f32 %v4135_v9, %v3927_v35 }
 0xb4c   :  { %4151 = vadd.xlane.f32.xlu1 %v4150_v56  ;;  %v4159_v58 = vsel %vm2675_vm0, %v4149_v28, 0.0  ;;  %v16602_v56 = vsub.s32 6, %v16052_v33 }
 0xb4d   :  { %v4153_v55 = vsel %vm2675_vm0, %v4147_v21, 0.0 }
 0xb4e   :  { %4154 = vadd.xlane.f32.xlu0 %v4153_v55 }
 0xb50   :  { %4157 = vadd.xlane.f32.xlu1 %v4156_v5 }
 0xb52   :  { %4160 = vadd.xlane.f32.xlu0 %v4159_v58 }
 0xbd9   :  { %v4152_v52 = vpop.xlane.xlu1 %4151 }
 0xbda   :  { %v4162_v13 = vmul.f32 0.015625, %v4152_v52 }
 0xbdb   :  { %v4155_v14 = vpop.xlane.xlu0 %4154 }
 0xbdc   :  { %v4166_v49 = vsub.f32 %v4146_v10, %v4162_v13  ;;  %v4163_v17 = vmul.f32 0.015625, %v4155_v14 }
 0xbdd   :  { %v4158_v2 = vpop.xlane.xlu1 %4157 }
 0xbde   :  { %v4167_v30 = vsub.f32 %v4147_v21, %v4163_v17  ;;  %v4164_v35 = vmul.f32 0.015625, %v4158_v2  ;;  %v4170_v50 = vmul.f32 %v4166_v49, %v4166_v49  ;;  %v4205_v21 = vrot.slane %v16533_v40, %v16602_v56 }
 0xbdf   :  { %v4161_v62 = vpop.xlane.xlu0 %4160 }
 0xbe0   :  { %v4168_v15 = vsub.f32 %v4148_v12, %v4164_v35  ;;  %v4165_v37 = vmul.f32 0.015625, %v4161_v62  ;;  %v4174_v31 = vsel %vm2675_vm0, %v4170_v50, 0.0  ;;  %v4171_v22 = vmul.f32 %v4167_v30, %v4167_v30 }
 0xbe1   :  { %4175 = vadd.xlane.f32.xlu1 %v4174_v31  ;;  %v16607_v12 = vsub.s32 7, %v16052_v33 }
 0xbe2   :  { %v4169_v51 = vsub.f32 %v4149_v28, %v4165_v37  ;;  %v4177_v47 = vsel %vm2675_vm0, %v4171_v22, 0.0  ;;  %v4172_v41 = vmul.f32 %v4168_v15, %v4168_v15 }
 0xbe3   :  { %4178 = vadd.xlane.f32.xlu0 %v4177_v47  ;;  %v4213_v13 = vrot.slane %v16533_v40, %v16607_v12 }
 0xbe4   :  { %v4180_v3 = vsel %vm2675_vm0, %v4172_v41, 0.0  ;;  %v4173_v23 = vmul.f32 %v4169_v51, %v4169_v51 }
 0xbe5   :  { %4181 = vadd.xlane.f32.xlu1 %v4180_v3 }
 0xbe6   :  { %v4183_v57 = vsel %vm2675_vm0, %v4173_v23, 0.0 }
 0xbe7   :  { %4184 = vadd.xlane.f32.xlu0 %v4183_v57 }
 0xc6e   :  { %v4176_v0 = vpop.xlane.xlu1 %4175 }
 0xc6f   :  { %v4186_v53 = vmul.f32 0.015625, %v4176_v0 }
 0xc70   :  { %v4179_v1 = vpop.xlane.xlu0 %4178 }
 0xc71   :  { %v4190_v42 = vadd.f32 1e-05, %v4186_v53  ;;  %v4187_v60 = vmul.f32 0.015625, %v4179_v1 }
 0xc72   :  { %v4182_v61 = vpop.xlane.xlu1 %4181 }
 0xc73   :  { %14784 = vrsqrt.f32 %v4190_v42  ;;  %v4191_v44 = vadd.f32 1e-05, %v4187_v60  ;;  %v4188_v4 = vmul.f32 0.015625, %v4182_v61 }
 0xc74   :  { %v4185_v39 = vpop.xlane.xlu0 %4184 }
 0xc75   :  { %14786 = vrsqrt.f32 %v4191_v44  ;;  %v4192_v38 = vadd.f32 1e-05, %v4188_v4  ;;  %v4189_v9 = vmul.f32 0.015625, %v4185_v39 }
 0xc77   :  { %14788 = vrsqrt.f32 %v4192_v38  ;;  %v4193_v10 = vadd.f32 1e-05, %v4189_v9 }
 0xc79   :  { %14790 = vrsqrt.f32 %v4193_v10 }
 0xc7d   :  { %v14785_v55 = vpop.eup %14784 }
 0xc7e   :  { %v4198_v28 = vmul.f32 %v14785_v55, %v4166_v49 }
 0xc7f   :  { %v14787_v5 = vpop.eup %14786 }
 0xc80   :  { %v4206_v58 = vmul.f32 %v4205_v21, %v4198_v28  ;;  %v4199_v52 = vmul.f32 %v14787_v5, %v4167_v30 }
 0xc81   :  { %v14789_v14 = vpop.eup %14788 }
 0xc82   :  { %v4207_v17 = vmul.f32 %v4205_v21, %v4199_v52  ;;  %v16611_v35 = vadd.f32 %v4213_v13, %v4206_v58  ;;  %v4200_v62 = vmul.f32 %v14789_v14, %v4168_v15  ;;  %v16631_v15 = vld [vmem:[%s18831_s17 + $0x10] sm:$0xff] }
 0xc83   :  { %v14791_v2 = vpop.eup %14790  ;;  %v4235_v47 = vrot.slane %v16631_v15, %v16055_v34 }
 0xc84   :  { %v16613_v50 = vadd.f32 %v4213_v13, %v4207_v17  ;;  %v4201_v37 = vmul.f32 %v14791_v2, %v4169_v51  ;;  %v4208_v49 = vmul.f32 %v4205_v21, %v4200_v62  ;;  %v12334_v51 = vld [vmem:[%s18831_s17 + $0x18] sm:$0xff] }
 0xc85   :  { %v4239_v3 = vrot.slane %v12334_v51, %v16055_v34 }
 0xc86   :  { %v4230_v33 = vpack.c.bf16 %v16613_v50, %v16611_v35  ;;  %v4209_v31 = vmul.f32 %v4205_v21, %v4201_v37  ;;  %v16621_v40 = vadd.f32 %v4213_v13, %v4208_v49 }
 0xc88   :  { %12351 = vmatmul.mubr.msk.bf16.vlgmr.msra.gmra.mrb[84].mxu0 %vm2675_vm0, %v4230_v33  ;;  %v16619_v30 = vadd.f32 %v4213_v13, %v4209_v31 }
 0xc89   :  { %4328 = vmatprep.mubr.bf16.mxu0 %v15216_v7 }
 0xc8a   :  { %v4231_v22 = vpack.c.bf16 %v16619_v30, %v16621_v40 }
 0xc90   :  { %12352 = vmatmul.mubr.msk.bf16.gmra.mrb[88].mxu0 %vm2675_vm0, %v4231_v22 }
 0xc91   :  { %13488 = vmatprep.mubr.msk.bf16.mxu0 %vm15218_vm1, %v15217_v27 }
 0xd5b   :  { %v4320_v41 = vpop.f32.mrb[84].mxu0 }
 0xd5c   :  { %v4322_v23 = vpop.f32.mrb[85].mxu0  ;;  %v4321_v43 = vadd.f32 %v4320_v41, %v4235_v47 }
 0xd5d   :  { %v4324_v57 = vpop.f32.mrb[86].mxu0  ;;  %v4323_v16 = vadd.f32 %v4322_v23, %v4239_v3 }
 0xd5e   :  { %v4325_v46 = vadd.f32 %v4324_v57, %v4235_v47  ;;  %v4326_v45 = vpop.f32.mrb[87].mxu0 }
 0xd5f   :  { %v4327_v36 = vadd.f32 %v4326_v45, %v4239_v3 }
 0xd60   :  { %v4339_v63 = vpack.c.bf16 %v4325_v46, %v4321_v43 }
 0xd61   :  { %v16639_v48 = vpack.c.bf16 %v4327_v36, %v4323_v16 }
 0xd62   :  { %4404 = vrot.lane.b32.xlu0 %v4339_v63, %s15222_s22  ;;  %4353 = vrot.lane.b32.xlu1 %v4339_v63, %s15220_s21 }
 0xd63   :  { %v4330_v29 = vpop.f32.mrb[88].mxu0 }
 0xd64   :  { %v4332_v0 = vpop.f32.mrb[89].mxu0  ;;  %v4331_v42 = vadd.f32 %v4330_v29, %v4235_v47 }
 0xd65   :  { %v4333_v53 = vadd.f32 %v4332_v0, %v4239_v3  ;;  %v4334_v1 = vpop.f32.mrb[90].mxu0 }
 0xd66   :  { %v4335_v60 = vadd.f32 %v4334_v1, %v4235_v47  ;;  %4506 = vrot.lane.b32.xlu0 %v4339_v63, %s15224_s16  ;;  %4455 = vrot.lane.b32.xlu1 %v4339_v63, %s15221_s23  ;;  %v4336_v61 = vpop.f32.mrb[91].mxu0 }
 0xd67   :  { %v4337_v44 = vadd.f32 %v4336_v61, %v4239_v3 }
 0xd68   :  { %v4341_v4 = vpack.c.bf16 %v4335_v60, %v4331_v42 }
 0xd69   :  { %v16645_v39 = vpack.c.bf16 %v4337_v44, %v4333_v53 }
 0xd6a   :  { %4402 = vrot.lane.b32.xlu1 %v4339_v63, %s15219_s30  ;;  %4556 = vrot.lane.b32.xlu0 %v4341_v4, %s15220_s21 }
 0xd6e   :  { %4453 = vrot.lane.b32.xlu1 %v4339_v63, %s18864_s26  ;;  %4607 = vrot.lane.b32.xlu0 %v4341_v4, %s15222_s22 }
 0xd72   :  { %4504 = vrot.lane.b32.xlu1 %v4339_v63, %s18865_s2  ;;  %4605 = vrot.lane.b32.xlu0 %v4341_v4, %s15219_s30 }
 0xd76   :  { %4658 = vrot.lane.b32.xlu1 %v4341_v4, %s15221_s23  ;;  %4656 = vrot.lane.b32.xlu0 %v4341_v4, %s18864_s26 }
 0xd7a   :  { %4709 = vrot.lane.b32.xlu1 %v4341_v4, %s15224_s16 }
 0xd7e   :  { %4707 = vrot.lane.b32.xlu1 %v4341_v4, %s18865_s2 }
 0xdd4   :  { %v4405_v38 = vpop.permute.xlu0 %4404  ;;  %v4354_v9 = vpop.permute.xlu1 %4353 }
 0xdd5   :  { %v4410_v10 = vsel %vm2750_vm2, %v4405_v38, 0  ;;  %v4359_v21 = vsel %vm2750_vm2, %v4354_v9, 0 }
 0xdd6   :  { %13487 = vmatpush3.bf16.xpose.msra.mxu0 %v4359_v21  ;;  %13493 = vmatpush3.bf16.xpose.msra.mxu1 %v4410_v10 }
 0xdd7   :  { %13498 = vmatprep.subr.bf16.mxu0 %v15217_v27  ;;  %13504 = vmatprep.subr.bf16.mxu1 %v15217_v27 }
 0xdd8   :  { %v4507_v55 = vpop.permute.xlu0 %4506  ;;  %v4456_v28 = vpop.permute.xlu1 %4455 }
 0xdd9   :  { %v4512_v52 = vsel %vm2750_vm2, %v4507_v55, 0  ;;  %v4461_v13 = vsel %vm2750_vm2, %v4456_v28, 0 }
 0xddc   :  { %v4557_v5 = vpop.permute.xlu0 %4556  ;;  %v4403_v58 = vpop.permute.xlu1 %4402 }
 0xddd   :  { %13489 = vmatmul.mubr.msk.bf16.vlgmr.msra.gmra.mrb[92].mxu0 %vm2750_vm2, %v4339_v63  ;;  %13495 = vmatmul.mubr.msk.bf16.vlgmr.msra.gmra.mrb[100].mxu1 %vm2750_vm2, %v4403_v58  ;;  %v4562_v62 = vsel %vm2750_vm2, %v4557_v5, 0 }
 0xdde   :  { %13499 = vmatpush3.bf16.xpose.msra.mxu0 %v4461_v13  ;;  %13505 = vmatpush3.bf16.xpose.msra.mxu1 %v4512_v52 }
 0xddf   :  { %13500 = vmatprep.mubr.msk.bf16.mxu0 %vm15218_vm1, %v15217_v27  ;;  %13506 = vmatprep.mubr.msk.bf16.mxu1 %vm15218_vm1, %v15217_v27 }
 0xde0   :  { %v4454_v14 = vpop.permute.xlu1 %4453  ;;  %13510 = vmatprep.subr.bf16.mxu0 %v15217_v27  ;;  %13516 = vmatprep.subr.bf16.mxu1 %v15217_v27  ;;  %v4608_v17 = vpop.permute.xlu0 %4607 }
 0xde1   :  { %v4613_v37 = vsel %vm2750_vm2, %v4608_v17, 0 }
 0xde4   :  { %v4505_v2 = vpop.permute.xlu1 %4504  ;;  %v4606_v31 = vpop.permute.xlu0 %4605 }
 0xde5   :  { %13501 = vmatmul.mubr.msk.bf16.vlgmr.msra.gmra.mrb[96].mxu0 %vm2750_vm2, %v4454_v14  ;;  %13507 = vmatmul.mubr.msk.bf16.vlgmr.msra.gmra.mrb[104].mxu1 %vm2750_vm2, %v4505_v2 }
 0xde6   :  { %13511 = vmatpush3.bf16.xpose.msra.mxu0 %v4562_v62  ;;  %13517 = vmatpush3.bf16.xpose.msra.mxu1 %v4613_v37 }
 0xde7   :  { %13512 = vmatprep.mubr.msk.bf16.mxu0 %vm15218_vm1, %v15217_v27  ;;  %13518 = vmatprep.mubr.msk.bf16.mxu1 %vm15218_vm1, %v15217_v27 }
 0xde8   :  { %v4659_v33 = vpop.permute.xlu1 %4658  ;;  %13522 = vmatprep.subr.bf16.mxu0 %v15217_v27  ;;  %13528 = vmatprep.subr.bf16.mxu1 %v15217_v27  ;;  %v4657_v47 = vpop.permute.xlu0 %4656 }
 0xde9   :  { %v4664_v22 = vsel %vm2750_vm2, %v4659_v33, 0 }
 0xdec   :  { %v4710_v49 = vpop.permute.xlu1 %4709 }
 0xded   :  { %v4715_v51 = vsel %vm2750_vm2, %v4710_v49, 0  ;;  %13513 = vmatmul.mubr.msk.bf16.vlgmr.msra.gmra.mrb[100].mxu0 %vm2750_vm2, %v4341_v4  ;;  %13519 = vmatmul.mubr.msk.bf16.vlgmr.msra.gmra.mrb[108].mxu1 %vm2750_vm2, %v4606_v31 }
 0xdee   :  { %13523 = vmatpush3.bf16.xpose.msra.mxu0 %v4664_v22  ;;  %13529 = vmatpush3.bf16.xpose.msra.mxu1 %v4715_v51 }
 0xdef   :  { %13524 = vmatprep.mubr.msk.bf16.mxu0 %vm15218_vm1, %v15217_v27  ;;  %13530 = vmatprep.mubr.msk.bf16.mxu1 %vm15218_vm1, %v15217_v27 }
 0xdf0   :  { %13534 = vmatprep.subr.bf16.mxu0 %v15217_v27  ;;  %13540 = vmatprep.subr.bf16.mxu1 %v15217_v27  ;;  %v4708_v41 = vpop.permute.xlu1 %4707 }
 0xdf5   :  { %13525 = vmatmul.mubr.msk.bf16.vlgmr.msra.gmra.mrb[104].mxu0 %vm2750_vm2, %v4657_v47  ;;  %13531 = vmatmul.mubr.msk.bf16.vlgmr.msra.gmra.mrb[112].mxu1 %vm2750_vm2, %v4708_v41 }
 0xdf6   :  { %13535 = vmatpush3.bf16.msra.mxu0 %v16639_v48  ;;  %13536 = vmatprep.mubr.msk.bf16.mxu0 %vm15218_vm1, %v15217_v27 }
 0xdf7   :  { %13546 = vmatprep.subr.bf16.mxu0 %v15217_v27  ;;  %13542 = vmatprep.mubr.msk.bf16.mxu1 %vm15218_vm1, %v15217_v27 }
 0xeb0   :  { %v16699_v3 = vpop.f32.mrb[92].mxu0  ;;  %v16701_v23 = vpop.f32.mrb[100].mxu1 }
 0xeb1   :  { %v13490_v57 = vpop.f32.mrb[93].mxu0  ;;  %v13496_v43 = vpop.f32.mrb[101].mxu1  ;;  %v4758_v46 = vsel %vm2750_vm2, %v16699_v3, -inf  ;;  %v4764_v0 = vsel %vm2750_vm2, %v16701_v23, -inf }
 0xeb2   :  { %4759 = vmax.xlane.f32.xlu0 %v4758_v46  ;;  %v16705_v45 = vpop.f32.mrb[94].mxu0  ;;  %v16707_v16 = vpop.f32.mrb[102].mxu1 }
 0xeb3   :  { %v13491_v36 = vpop.f32.mrb[95].mxu0  ;;  %v13497_v63 = vpop.f32.mrb[103].mxu1  ;;  %v4761_v29 = vsel %vm2750_vm2, %v16705_v45, -inf  ;;  %v4767_v61 = vsel %vm2750_vm2, %v16707_v16, -inf }
 0xeb4   :  { %4762 = vmax.xlane.f32.xlu1 %v4761_v29 }
 0xeb6   :  { %4765 = vmax.xlane.f32.xlu0 %v4764_v0 }
 0xeb8   :  { %v16713_v53 = vpop.f32.mrb[96].mxu0  ;;  %v16715_v1 = vpop.f32.mrb[104].mxu1 }
 0xeb9   :  { %v13502_v42 = vpop.f32.mrb[97].mxu0  ;;  %v13508_v60 = vpop.f32.mrb[105].mxu1  ;;  %v4770_v44 = vsel %vm2750_vm2, %v16713_v53, -inf  ;;  %v4776_v55 = vsel %vm2750_vm2, %v16715_v1, -inf }
 0xeba   :  { %4768 = vmax.xlane.f32.xlu0 %v4767_v61  ;;  %4771 = vmax.xlane.f32.xlu1 %v4770_v44  ;;  %v16721_v4 = vpop.f32.mrb[98].mxu0  ;;  %v16723_v38 = vpop.f32.mrb[106].mxu1 }
 0xebb   :  { %v13503_v9 = vpop.f32.mrb[99].mxu0  ;;  %v13509_v10 = vpop.f32.mrb[107].mxu1  ;;  %v4773_v21 = vsel %vm2750_vm2, %v16721_v4, -inf  ;;  %v4779_v14 = vsel %vm2750_vm2, %v16723_v38, -inf }
 0xebe   :  { %4774 = vmax.xlane.f32.xlu0 %v4773_v21  ;;  %4777 = vmax.xlane.f32.xlu1 %v4776_v55 }
 0xec0   :  { %v16729_v28 = vpop.f32.mrb[100].mxu0  ;;  %v16731_v5 = vpop.f32.mrb[108].mxu1 }
 0xec1   :  { %v13514_v58 = vpop.f32.mrb[101].mxu0  ;;  %v13520_v52 = vpop.f32.mrb[109].mxu1  ;;  %v4782_v13 = vsel %vm2750_vm2, %v16729_v28, -inf  ;;  %v4788_v31 = vsel %vm2750_vm2, %v16731_v5, -inf }
 0xec2   :  { %v16737_v17 = vpop.f32.mrb[102].mxu0  ;;  %4783 = vmax.xlane.f32.xlu1 %v4782_v13  ;;  %4780 = vmax.xlane.f32.xlu0 %v4779_v14  ;;  %v16739_v2 = vpop.f32.mrb[110].mxu1 }
 0xec3   :  { %v13515_v62 = vpop.f32.mrb[103].mxu0  ;;  %v13521_v37 = vpop.f32.mrb[111].mxu1  ;;  %v4785_v33 = vsel %vm2750_vm2, %v16737_v17, -inf  ;;  %v4791_v41 = vsel %vm2750_vm2, %v16739_v2, -inf }
 0xec6   :  { %4786 = vmax.xlane.f32.xlu0 %v4785_v33  ;;  %4789 = vmax.xlane.f32.xlu1 %v4788_v31 }
 0xec8   :  { %v16745_v49 = vpop.f32.mrb[104].mxu0  ;;  %v16747_v22 = vpop.f32.mrb[112].mxu1 }
 0xec9   :  { %v13526_v51 = vpop.f32.mrb[105].mxu0  ;;  %v13532_v47 = vpop.f32.mrb[113].mxu1  ;;  %v4794_v57 = vsel %vm2750_vm2, %v16745_v49, -inf  ;;  %v4800_v0 = vsel %vm2750_vm2, %v16747_v22, -inf }
 0xeca   :  { %4792 = vmax.xlane.f32.xlu0 %v4791_v41  ;;  %4795 = vmax.xlane.f32.xlu1 %v4794_v57  ;;  %v16753_v43 = vpop.f32.mrb[106].mxu0  ;;  %v16755_v46 = vpop.f32.mrb[114].mxu1 }
 0xecb   :  { %v13527_v36 = vpop.f32.mrb[107].mxu0  ;;  %v13533_v63 = vpop.f32.mrb[115].mxu1  ;;  %v4797_v29 = vsel %vm2750_vm2, %v16753_v43, -inf  ;;  %v4803_v42 = vsel %vm2750_vm2, %v16755_v46, -inf }
 0xece   :  { %4798 = vmax.xlane.f32.xlu0 %v4797_v29  ;;  %4801 = vmax.xlane.f32.xlu1 %v4800_v0 }
 0xed2   :  { %4804 = vmax.xlane.f32.xlu0 %v4803_v42 }
 0xedf   :  { %4987 = vrot.lane.b32.xlu1 %v16639_v48, %s15219_s30 }
 0xee3   :  { %5081 = vrot.lane.b32.xlu1 %v16639_v48, %s18865_s2 }
 0xee7   :  { %5203 = vrot.lane.b32.xlu1 %v16645_v39, %s15219_s30 }
 0xee8   :  { %5034 = vrot.lane.b32.xlu0 %v16639_v48, %s18864_s26 }
 0xf3f   :  { %v4760_v60 = vpop.xlane.xlu0 %4759 }
 0xf40   :  { %v4806_v61 = vsub.f32 %v16699_v3, %v4760_v60 }
 0xf41   :  { %v4763_v44 = vpop.xlane.xlu1 %4762 }
 0xf42   :  { %v4822_v9 = vmul.f32 1.442695, %v4806_v61  ;;  %v4807_v10 = vsub.f32 %v16705_v45, %v4763_v44 }
 0xf43   :  { %v4766_v21 = vpop.xlane.xlu0 %4765 }
 0xf44   :  { %14792 = vpow2.f32 %v4822_v9  ;;  %v4824_v55 = vmul.f32 1.442695, %v4807_v10  ;;  %v4808_v58 = vsub.f32 %v16701_v23, %v4766_v21 }
 0xf46   :  { %14794 = vpow2.f32 %v4824_v55  ;;  %v4826_v52 = vmul.f32 1.442695, %v4808_v58 }
 0xf47   :  { %v4769_v13 = vpop.xlane.xlu0 %4768  ;;  %v4772_v14 = vpop.xlane.xlu1 %4771 }
 0xf48   :  { %14796 = vpow2.f32 %v4826_v52  ;;  %v4809_v62 = vsub.f32 %v16707_v16, %v4769_v13  ;;  %v4810_v48 = vsub.f32 %v16713_v53, %v4772_v14 }
 0xf4a   :  { %v4828_v37 = vmul.f32 1.442695, %v4809_v62  ;;  %v4830_v3 = vmul.f32 1.442695, %v4810_v48 }
 0xf4b   :  { %v4775_v33 = vpop.xlane.xlu0 %4774  ;;  %v4778_v31 = vpop.xlane.xlu1 %4777 }
 0xf4c   :  { %14798 = vpow2.f32 %v4828_v37  ;;  %v4811_v45 = vsub.f32 %v16721_v4, %v4775_v33  ;;  %v4812_v51 = vsub.f32 %v16715_v1, %v4778_v31 }
 0xf4d   :  { %14800 = vpow2.f32 %v4830_v3 }
 0xf4e   :  { %v16778_v23 = vpop.eup %14792  ;;  %v4832_v47 = vmul.f32 1.442695, %v4811_v45  ;;  %v4834_v41 = vmul.f32 1.442695, %v4812_v51 }
 0xf4f   :  { %v4781_v57 = vpop.xlane.xlu0 %4780  ;;  %v4784_v36 = vpop.xlane.xlu1 %4783  ;;  %v4854_v16 = vsel %vm2750_vm2, %v16778_v23, 0.0 }
 0xf50   :  { %v16782_v53 = vpop.eup %14794  ;;  %14802 = vpow2.f32 %v4832_v47  ;;  %v4813_v63 = vsub.f32 %v16723_v38, %v4781_v57  ;;  %v4814_v29 = vsub.f32 %v16729_v28, %v4784_v36  ;;  %4855 = vadd.xlane.f32.xlu1 %v4854_v16 }
 0xf51   :  { %14804 = vpow2.f32 %v4834_v41  ;;  %v4857_v1 = vsel %vm2750_vm2, %v16782_v53, 0.0 }
 0xf52   :  { %v16788_v4 = vpop.eup %14796  ;;  %v4836_v0 = vmul.f32 1.442695, %v4813_v63  ;;  %v4838_v42 = vmul.f32 1.442695, %v4814_v29  ;;  %4858 = vadd.xlane.f32.xlu0 %v4857_v1 }
 0xf53   :  { %v4787_v60 = vpop.xlane.xlu0 %4786  ;;  %v4790_v61 = vpop.xlane.xlu1 %4789  ;;  %v4860_v44 = vsel %vm2750_vm2, %v16788_v4, 0.0 }
 0xf54   :  { %14806 = vpow2.f32 %v4836_v0  ;;  %v4815_v38 = vsub.f32 %v16737_v17, %v4787_v60  ;;  %v4816_v28 = vsub.f32 %v16731_v5, %v4790_v61  ;;  %4861 = vadd.xlane.f32.xlu1 %v4860_v44 }
 0xf55   :  { %14808 = vpow2.f32 %v4838_v42 }
 0xf56   :  { %v16794_v9 = vpop.eup %14798  ;;  %v4840_v10 = vmul.f32 1.442695, %v4815_v38  ;;  %v4842_v21 = vmul.f32 1.442695, %v4816_v28 }
 0xf57   :  { %v16796_v55 = vpop.eup %14800  ;;  %v4793_v58 = vpop.xlane.xlu0 %4792  ;;  %v4863_v13 = vsel %vm2750_vm2, %v16794_v9, 0.0 }
 0xf58   :  { %v4796_v52 = vpop.xlane.xlu1 %4795  ;;  %14810 = vpow2.f32 %v4840_v10  ;;  %v4817_v14 = vsub.f32 %v16739_v2, %v4793_v58  ;;  %4864 = vadd.xlane.f32.xlu0 %v4863_v13  ;;  %v4866_v5 = vsel %vm2750_vm2, %v16796_v55, 0.0 }
 0xf59   :  { %v4818_v17 = vsub.f32 %v16745_v49, %v4796_v52  ;;  %14812 = vpow2.f32 %v4842_v21  ;;  %4867 = vadd.xlane.f32.xlu1 %v4866_v5 }
 0xf5a   :  { %v16804_v62 = vpop.eup %14802  ;;  %v4844_v48 = vmul.f32 1.442695, %v4817_v14 }
 0xf5b   :  { %v4846_v37 = vmul.f32 1.442695, %v4818_v17  ;;  %v16806_v3 = vpop.eup %14804  ;;  %v4799_v33 = vpop.xlane.xlu0 %4798  ;;  %v4869_v45 = vsel %vm2750_vm2, %v16804_v62, 0.0 }
 0xf5c   :  { %v4802_v31 = vpop.xlane.xlu1 %4801  ;;  %14814 = vpow2.f32 %v4844_v48  ;;  %v4819_v2 = vsub.f32 %v16753_v43, %v4799_v33  ;;  %4870 = vadd.xlane.f32.xlu0 %v4869_v45  ;;  %v4872_v51 = vsel %vm2750_vm2, %v16806_v3, 0.0 }
 0xf5d   :  { %v4820_v49 = vsub.f32 %v16747_v22, %v4802_v31  ;;  %14816 = vpow2.f32 %v4846_v37  ;;  %4873 = vadd.xlane.f32.xlu1 %v4872_v51 }
 0xf5e   :  { %v16814_v47 = vpop.eup %14806  ;;  %v4848_v41 = vmul.f32 1.442695, %v4819_v2 }
 0xf5f   :  { %v4850_v57 = vmul.f32 1.442695, %v4820_v49  ;;  %v16816_v36 = vpop.eup %14808  ;;  %v4805_v16 = vpop.xlane.xlu0 %4804  ;;  %v4875_v29 = vsel %vm2750_vm2, %v16814_v47, 0.0 }
 0xf60   :  { %v4988_v63 = vpop.permute.xlu1 %4987  ;;  %14818 = vpow2.f32 %v4848_v41  ;;  %v4821_v22 = vsub.f32 %v16755_v46, %v4805_v16  ;;  %4876 = vadd.xlane.f32.xlu0 %v4875_v29  ;;  %v4878_v43 = vsel %vm2750_vm2, %v16816_v36, 0.0 }
 0xf61   :  { %13541 = vmatpush3.bf16.msra.mxu1 %v4988_v63  ;;  %14820 = vpow2.f32 %v4850_v57  ;;  %4879 = vadd.xlane.f32.xlu1 %v4878_v43 }
 0xf62   :  { %13552 = vmatprep.subr.bf16.mxu1 %v15217_v27  ;;  %v16824_v1 = vpop.eup %14810  ;;  %v4852_v0 = vmul.f32 1.442695, %v4821_v22 }
 0xf63   :  { %v16826_v42 = vpop.eup %14812  ;;  %v4881_v60 = vsel %vm2750_vm2, %v16824_v1, 0.0  ;;  %v5035_v48 = vpop.permute.xlu0 %5034 }
 0xf64   :  { %14822 = vpow2.f32 %v4852_v0  ;;  %4882 = vadd.xlane.f32.xlu0 %v4881_v60  ;;  %v4884_v46 = vsel %vm2750_vm2, %v16826_v42, 0.0  ;;  %v5082_v17 = vpop.permute.xlu1 %5081 }
 0xf65   :  { %4885 = vadd.xlane.f32.xlu1 %v4884_v46 }
 0xf66   :  { %v16832_v61 = vpop.eup %14814 }
 0xf67   :  { %v16834_v44 = vpop.eup %14816  ;;  %v4887_v38 = vsel %vm2750_vm2, %v16832_v61, 0.0 }
 0xf68   :  { %4888 = vadd.xlane.f32.xlu0 %v4887_v38  ;;  %v4890_v28 = vsel %vm2750_vm2, %v16834_v44, 0.0  ;;  %v16856_v5 = vpop.permute.xlu1 %5203 }
 0xf69   :  { %4891 = vadd.xlane.f32.xlu1 %v4890_v28 }
 0xf6a   :  { %v16840_v10 = vpop.eup %14818 }
 0xf6b   :  { %v16842_v21 = vpop.eup %14820  ;;  %v4893_v58 = vsel %vm2750_vm2, %v16840_v10, 0.0 }
 0xf6c   :  { %4894 = vadd.xlane.f32.xlu0 %v4893_v58  ;;  %v4896_v52 = vsel %vm2750_vm2, %v16842_v21, 0.0 }
 0xf6d   :  { %4897 = vadd.xlane.f32.xlu1 %v4896_v52 }
 0xf6e   :  { %v16848_v13 = vpop.eup %14822 }
 0xf6f   :  { %v4899_v14 = vsel %vm2750_vm2, %v16848_v13, 0.0 }
 0xf70   :  { %4900 = vadd.xlane.f32.xlu0 %v4899_v14 }
 0xf7e   :  { %5297 = vrot.lane.b32.xlu1 %v16645_v39, %s18865_s2 }
 0xf86   :  { %5250 = vrot.lane.b32.xlu0 %v16645_v39, %s18864_s26 }
 0xfdd   :  { %v4856_v37 = vpop.xlane.xlu1 %4855 }
 0xfde   :  { %14824 = vrcp.f32 %v4856_v37 }
 0xfdf   :  { %v4859_v33 = vpop.xlane.xlu0 %4858 }
 0xfe0   :  { %14826 = vrcp.f32 %v4859_v33 }
 0xfe1   :  { %v4862_v31 = vpop.xlane.xlu1 %4861 }
 0xfe2   :  { %14828 = vrcp.f32 %v4862_v31 }
 0xfe5   :  { %v4865_v45 = vpop.xlane.xlu0 %4864 }
 0xfe6   :  { %14830 = vrcp.f32 %v4865_v45  ;;  %v4868_v2 = vpop.xlane.xlu1 %4867 }
 0xfe7   :  { %14832 = vrcp.f32 %v4868_v2 }
 0xfe8   :  { %v14825_v49 = vpop.eup %14824 }
 0xfe9   :  { %v4871_v51 = vpop.xlane.xlu0 %4870  ;;  %v4918_v16 = vmul.f32 %v14825_v49, %v16778_v23 }
 0xfea   :  { %v14827_v41 = vpop.eup %14826  ;;  %14834 = vrcp.f32 %v4871_v51  ;;  %v4874_v57 = vpop.xlane.xlu1 %4873 }
 0xfeb   :  { %v4919_v63 = vmul.f32 %v14827_v41, %v16782_v53  ;;  %14836 = vrcp.f32 %v4874_v57 }
 0xfec   :  { %v14829_v43 = vpop.eup %14828 }
 0xfed   :  { %v4877_v29 = vpop.xlane.xlu0 %4876  ;;  %v4934_v22 = vpack.c.bf16 %v4919_v63, %v4918_v16  ;;  %v4920_v46 = vmul.f32 %v14829_v43, %v16788_v4 }
 0xfee   :  { %14838 = vrcp.f32 %v4877_v29  ;;  %v4880_v0 = vpop.xlane.xlu1 %4879 }
 0xfef   :  { %13537 = vmatmul.mubr.msk.bf16.vlgmr.msra.gmra.mrb[108].mxu0 %vm2750_vm2, %v4934_v22  ;;  %14840 = vrcp.f32 %v4880_v0 }
 0xff0   :  { %v14831_v60 = vpop.eup %14830  ;;  %13547 = vmatpush3.bf16.msra.mxu0 %v5035_v48  ;;  %13548 = vmatprep.mubr.msk.bf16.mxu0 %vm15218_vm1, %v15217_v27 }
 0xff1   :  { %v4921_v23 = vmul.f32 %v14831_v60, %v16794_v9  ;;  %v4883_v38 = vpop.xlane.xlu0 %4882  ;;  %13558 = vmatprep.subr.bf16.mxu0 %v15217_v27  ;;  %v14833_v53 = vpop.eup %14832 }
 0xff2   :  { %14842 = vrcp.f32 %v4883_v38  ;;  %v4886_v28 = vpop.xlane.xlu1 %4885  ;;  %v4922_v14 = vmul.f32 %v14833_v53, %v16796_v55 }
 0xff3   :  { %v4935_v58 = vpack.c.bf16 %v4921_v23, %v4920_v46  ;;  %14844 = vrcp.f32 %v4886_v28 }
 0xff4   :  { %v14835_v52 = vpop.eup %14834 }
 0xff5   :  { %v4923_v48 = vmul.f32 %v14835_v52, %v16804_v62  ;;  %v4889_v37 = vpop.xlane.xlu0 %4888  ;;  %13543 = vmatmul.mubr.msk.bf16.vlgmr.msra.gmra.mrb[116].mxu1 %vm2750_vm2, %v4935_v58  ;;  %v14837_v33 = vpop.eup %14836 }
 0xff6   :  { %14846 = vrcp.f32 %v4889_v37  ;;  %13553 = vmatpush3.bf16.msra.mxu1 %v5082_v17  ;;  %v4892_v4 = vpop.xlane.xlu1 %4891  ;;  %13554 = vmatprep.mubr.msk.bf16.mxu1 %vm15218_vm1, %v15217_v27  ;;  %v4924_v45 = vmul.f32 %v14837_v33, %v16806_v3  ;;  %v14612_v37 = vld [vmem:[%s18832_s5 + $0x20] sm:$0xff]  }
 0xff7   :  { %v4936_v9 = vpack.c.bf16 %v4923_v48, %v4922_v14  ;;  %13564 = vmatprep.subr.bf16.mxu1 %v15217_v27  ;;  %14848 = vrcp.f32 %v4892_v4 }
 0xff8   :  { %v14839_v31 = vpop.eup %14838 }
 0xff9   :  { %v4925_v55 = vmul.f32 %v14839_v31, %v16814_v47  ;;  %v4895_v62 = vpop.xlane.xlu0 %4894  ;;  %13549 = vmatmul.mubr.msk.bf16.vlgmr.msra.gmra.mrb[112].mxu0 %vm2750_vm2, %v4936_v9  ;;  %v14841_v2 = vpop.eup %14840 }
 0xffa   :  { %14850 = vrcp.f32 %v4895_v62  ;;  %13559 = vmatpush3.bf16.msra.mxu0 %v16645_v39  ;;  %v4898_v17 = vpop.xlane.xlu1 %4897  ;;  %13560 = vmatprep.mubr.msk.bf16.mxu0 %vm15218_vm1, %v15217_v27  ;;  %v4926_v3 = vmul.f32 %v14841_v2, %v16816_v36  ;;  %v14613_v2 = vld [vmem:[%s18832_s5 + $0x28] sm:$0xff]  }
 0xffb   :  { %v4937_v49 = vpack.c.bf16 %v4925_v55, %v4924_v45  ;;  %13570 = vmatprep.subr.bf16.mxu0 %v15217_v27  ;;  %14852 = vrcp.f32 %v4898_v17 }
 0xffc   :  { %v14843_v51 = vpop.eup %14842 }
 0xffd   :  { %v4927_v47 = vmul.f32 %v14843_v51, %v16824_v1  ;;  %v4901_v41 = vpop.xlane.xlu0 %4900  ;;  %13555 = vmatmul.mubr.msk.bf16.vlgmr.msra.gmra.mrb[120].mxu1 %vm2750_vm2, %v4937_v49  ;;  %v14845_v57 = vpop.eup %14844 }
 0xffe   :  { %14854 = vrcp.f32 %v4901_v41  ;;  %13565 = vmatpush3.bf16.msra.mxu1 %v16856_v5  ;;  %13566 = vmatprep.mubr.msk.bf16.mxu1 %vm15218_vm1, %v15217_v27  ;;  %v4928_v63 = vmul.f32 %v14845_v57, %v16826_v42  ;;  %v5298_v60 = vpop.permute.xlu1 %5297  ;;  %v14614_v41 = vld [vmem:[%s18832_s5 + $0x30] sm:$0xff]  }
 0xfff   :  { %v4938_v39 = vpack.c.bf16 %v4927_v47, %v4926_v3  ;;  %13576 = vmatprep.subr.bf16.mxu1 %v15217_v27 }
0x1000   :  { %v14847_v16 = vpop.eup %14846 }
0x1001   :  { %v4929_v36 = vmul.f32 %v14847_v16, %v16832_v61  ;;  %v5251_v29 = vpop.permute.xlu0 %5250  ;;  %13561 = vmatmul.mubr.msk.bf16.vlgmr.msra.gmra.mrb[116].mxu0 %vm2750_vm2, %v4938_v39  ;;  %v14849_v1 = vpop.eup %14848 }
0x1002   :  { %13571 = vmatpush3.bf16.msra.mxu0 %v5251_v29  ;;  %13572 = vmatprep.mubr.msk.bf16.mxu0 %vm15218_vm1, %v15217_v27  ;;  %v4930_v43 = vmul.f32 %v14849_v1, %v16834_v44 }
0x1003   :  { %v4939_v5 = vpack.c.bf16 %v4929_v36, %v4928_v63  ;;  %13582 = vmatprep.subr.bf16.mxu0 %v14612_v37  ;;  %v14615_v36 = vld [vmem:[%s18832_s5 + $0x38] sm:$0xff]  }
0x1004   :  { %v14851_v22 = vpop.eup %14850 }
0x1005   :  { %v4931_v0 = vmul.f32 %v14851_v22, %v16840_v10  ;;  %13567 = vmatmul.mubr.msk.bf16.vlgmr.msra.gmra.mrb[124].mxu1 %vm2750_vm2, %v4939_v5  ;;  %v14853_v42 = vpop.eup %14852 }
0x1006   :  { %13577 = vmatpush3.bf16.msra.mxu1 %v5298_v60  ;;  %13578 = vmatprep.mubr.msk.bf16.mxu1 %vm15218_vm1, %v15217_v27  ;;  %v4932_v23 = vmul.f32 %v14853_v42, %v16842_v21 }
0x1007   :  { %v4940_v61 = vpack.c.bf16 %v4931_v0, %v4930_v43 }
0x1008   :  { %v14855_v46 = vpop.eup %14854 }
0x1009   :  { %v4933_v38 = vmul.f32 %v14855_v46, %v16848_v13  ;;  %13573 = vmatmul.mubr.msk.bf16.vlgmr.msra.gmra.mrb[120].mxu0 %vm2750_vm2, %v4940_v61 }
0x100a   :  { %13583 = vmatpush3.bf16.msra.mxu0 %v14612_v37 }
0x100b   :  { %v4941_v53 = vpack.c.bf16 %v4933_v38, %v4932_v23  ;;  %13584 = vmatprep.subr.bf16.mxu0 %v14613_v2 }
0x100d   :  { %13579 = vmatmul.mubr.msk.bf16.vlgmr.msra.gmra.mrb[128].mxu1 %vm2750_vm2, %v4941_v53 }
0x100e   :  { %13585 = vmatpush3.bf16.msra.mxu0 %v14613_v2 }
0x100f   :  { %13586 = vmatprep.subr.bf16.mxu0 %v14614_v41 }
0x1012   :  { %13587 = vmatpush3.bf16.msra.mxu0 %v14614_v41 }
0x1013   :  { %13588 = vmatprep.subr.bf16.mxu0 %v14615_v36 }
0x1016   :  { %13589 = vmatpush3.bf16.msra.mxu0 %v14615_v36 }
0x10c2   :  { %v16900_v44 = vpop.f32.mrb[108].mxu0 }
0x10c3   :  { %v13538_v10 = vpop.f32.mrb[109].mxu0 }
0x10c4   :  { %v4982_v28 = vpop.f32.mrb[110].mxu0 }
0x10c5   :  { %v13539_v58 = vpop.f32.mrb[111].mxu0 }
0x10c8   :  { %v5027_v52 = vpop.f32.mrb[116].mxu1 }
0x10c9   :  { %v13544_v14 = vpop.f32.mrb[117].mxu1 }
0x10ca   :  { %v5030_v48 = vpop.f32.mrb[118].mxu1 }
0x10cb   :  { %v14222_v21 = vpack.i.bf16 %v5030_v48, %v5027_v52  ;;  %v13545_v33 = vpop.f32.mrb[119].mxu1 }
0x10cc   :  { %v5074_v13 = vpop.f32.mrb[112].mxu0 }
0x10cd   :  { %14223 = vrot.lane.b32.xlu0 %v14222_v21, %s15224_s16  ;;  %v13550_v4 = vpop.f32.mrb[113].mxu0 }
0x10ce   :  { %v5077_v9 = vpop.f32.mrb[114].mxu0 }
0x10cf   :  { %v14227_v31 = vpack.i.bf16 %v5077_v9, %v5074_v13  ;;  %v13551_v45 = vpop.f32.mrb[115].mxu0 }
0x10d0   :  { %v5121_v55 = vpop.f32.mrb[120].mxu1 }
0x10d1   :  { %14228 = vrot.lane.b32.xlu1 %v14227_v31, %s15221_s23  ;;  %v13556_v62 = vpop.f32.mrb[121].mxu1 }
0x10d2   :  { %v5124_v17 = vpop.f32.mrb[122].mxu1 }
0x10d3   :  { %v14232_v49 = vpack.i.bf16 %v5124_v17, %v5121_v55  ;;  %v13557_v51 = vpop.f32.mrb[123].mxu1 }
0x10d4   :  { %v5195_v3 = vpop.f32.mrb[116].mxu0 }
0x10d5   :  { %14233 = vrot.lane.b32.xlu1 %v14232_v49, %s15222_s22  ;;  %v13562_v47 = vpop.f32.mrb[117].mxu0 }
0x10d6   :  { %v5198_v57 = vpop.f32.mrb[118].mxu0 }
0x10d7   :  { %v13563_v39 = vpop.f32.mrb[119].mxu0 }
0x10d8   :  { %v5243_v16 = vpop.f32.mrb[124].mxu1 }
0x10d9   :  { %v13568_v63 = vpop.f32.mrb[125].mxu1 }
0x10da   :  { %v5246_v29 = vpop.f32.mrb[126].mxu1 }
0x10db   :  { %v14237_v1 = vpack.i.bf16 %v5246_v29, %v5243_v16  ;;  %v13569_v5 = vpop.f32.mrb[127].mxu1 }
0x10dc   :  { %v5290_v22 = vpop.f32.mrb[120].mxu0 }
0x10dd   :  { %14238 = vrot.lane.b32.xlu0 %v14237_v1, %s15224_s16  ;;  %v13574_v43 = vpop.f32.mrb[121].mxu0 }
0x10de   :  { %v5293_v0 = vpop.f32.mrb[122].mxu0 }
0x10df   :  { %v14242_v60 = vpack.i.bf16 %v5293_v0, %v5290_v22  ;;  %v13575_v42 = vpop.f32.mrb[123].mxu0  ;;  %v5379_v0 = vrot.slane %v16631_v15, %v16114_v8 }
0x10e0   :  { %v5337_v61 = vpop.f32.mrb[128].mxu1 }
0x10e1   :  { %14243 = vrot.lane.b32.xlu0 %v14242_v60, %s15221_s23  ;;  %v13580_v46 = vpop.f32.mrb[129].mxu1 }
0x10e2   :  { %v5340_v23 = vpop.f32.mrb[130].mxu1 }
0x10e3   :  { %v14247_v38 = vpack.i.bf16 %v5340_v23, %v5337_v61  ;;  %v13581_v53 = vpop.f32.mrb[131].mxu1 }
0x10e5   :  { %14248 = vrot.lane.b32.xlu1 %v14247_v38, %s15222_s22 }
0x113f   :  { %v14224_v10 = vpop.permute.xlu0 %14223 }
0x1140   :  { %v14226_v52 = vunpack.i.h.bf16 %v14224_v10  ;;  %v14225_v14 = vunpack.i.l.bf16 %v14224_v10 }
0x1142   :  { %v5153_v33 = vsel %vm2750_vm2, %v4982_v28, %v14226_v52  ;;  %v5152_v13 = vsel %vm2750_vm2, %v16900_v44, %v14225_v14 }
0x1143   :  { %v14229_v58 = vpop.permute.xlu1 %14228 }
0x1144   :  { %v14231_v48 = vunpack.i.h.bf16 %v14229_v58  ;;  %v14230_v37 = vunpack.i.l.bf16 %v14229_v58 }
0x1146   :  { %v5155_v31 = vsel %vm3550_vm3, %v5153_v33, %v14231_v48  ;;  %v5154_v45 = vsel %vm3550_vm3, %v5152_v13, %v14230_v37 }
0x1147   :  { %v14234_v21 = vpop.permute.xlu1 %14233 }
0x1148   :  { %v14236_v4 = vunpack.i.h.bf16 %v14234_v21  ;;  %v14235_v9 = vunpack.i.l.bf16 %v14234_v21 }
0x114a   :  { %v5156_v55 = vsel %vm3553_vm4, %v5154_v45, %v14235_v9  ;;  %v5157_v62 = vsel %vm3553_vm4, %v5155_v31, %v14236_v4 }
0x114b   :  { %v5374_v2 = vpack.c.bf16 %v5157_v62, %v5156_v55 }
0x114d   :  { %13590 = vmatprep.mubr.msk.bf16.mxu0 %vm2675_vm0, %v5374_v2 }
0x114f   :  { %v14239_v17 = vpop.permute.xlu0 %14238 }
0x1150   :  { %v14241_v51 = vunpack.i.h.bf16 %v14239_v17  ;;  %v14240_v28 = vunpack.i.l.bf16 %v14239_v17 }
0x1152   :  { %v5369_v39 = vsel %vm2750_vm2, %v5198_v57, %v14241_v51  ;;  %v5368_v16 = vsel %vm2750_vm2, %v5195_v3, %v14240_v28 }
0x1153   :  { %v14244_v49 = vpop.permute.xlu0 %14243 }
0x1154   :  { %v14246_v47 = vunpack.i.h.bf16 %v14244_v49  ;;  %v14245_v41 = vunpack.i.l.bf16 %v14244_v49 }
0x1156   :  { %v5371_v29 = vsel %vm3550_vm3, %v5369_v39, %v14246_v47  ;;  %v5370_v1 = vsel %vm3550_vm3, %v5368_v16, %v14245_v41  ;;  %v14617_v39 = vld [vmem:[%s18833_s6 + $0x28] sm:$0xff]   ;;  %v14618_v16 = vld [vmem:[%s18833_s6 + $0x30] sm:$0xff]  }
0x1157   :  { %v14249_v44 = vpop.permute.xlu1 %14248 }
0x1158   :  { %v14251_v63 = vunpack.i.h.bf16 %v14249_v44  ;;  %v14250_v36 = vunpack.i.l.bf16 %v14249_v44  ;;  %v14616_v44 = vld [vmem:[%s18833_s6 + $0x20] sm:$0xff]  }
0x1159   :  { %13594 = vmatprep.subr.bf16.mxu1 %v14616_v44 }
0x115a   :  { %v5373_v5 = vsel %vm3553_vm4, %v5371_v29, %v14251_v63  ;;  %v5372_v22 = vsel %vm3553_vm4, %v5370_v1, %v14250_v36  ;;  %13595 = vmatpush3.bf16.msra.mxu1 %v14616_v44  ;;  %v14619_v63 = vld [vmem:[%s18833_s6 + $0x38] sm:$0xff]   ;;  %v14622_v36 = vld [vmem:[%s18835_s8 + $0x4] ss:$8 sps:$4 sm:$0xff]  }
0x115b   :  { %v5375_v43 = vpack.c.bf16 %v5373_v5, %v5372_v22  ;;  %13596 = vmatprep.subr.bf16.mxu1 %v14617_v39  ;;  %v14632_v29 = vld [vmem:[%s18834_s7 + $0x40] sm:$0xff]   ;;  %v14633_v1 = vld [vmem:[%s18834_s7 + $0x48] sm:$0xff]   ;;  %v14634_v5 = vld [vmem:[%s18834_s7 + $0x50] sm:$0xff]  }
0x115c   :  { %13606 = vmatprep.subr.bf16.mxu0 %v14632_v29  ;;  %v14635_v22 = vld [vmem:[%s18834_s7 + $0x58] sm:$0xff]   ;;  %v14628_v44 = vld [vmem:[%s18835_s8 + $0x24] ss:$8 sps:$4 sm:$0xff]  }
0x115d   :  { %13591 = vmatmul.mubr.msk.bf16.vlgmr.msra.gmra.mrb[124].mxu0 %vm2675_vm0, %v5375_v43  ;;  %v14636_v43 = vld [vmem:[%s18834_s7 + $0x60] sm:$0xff]  }
0x115e   :  { %13597 = vmatpush3.bf16.msra.mxu1 %v14617_v39  ;;  %13607 = vmatpush3.bf16.msra.mxu0 %v14632_v29  ;;  %v14626_v39 = vld [vmem:[%s18835_s8 + $0x20] ss:$8 sps:$4 sm:$0xff]   ;;  %v14639_v29 = vld [vmem:[%s18834_s7 + $0x78] sm:$0xff]  }
0x115f   :  { %13598 = vmatprep.subr.bf16.mxu1 %v14618_v16  ;;  %13608 = vmatprep.subr.bf16.mxu0 %v14633_v1 }
0x1162   :  { %13599 = vmatpush3.bf16.msra.mxu1 %v14618_v16  ;;  %13609 = vmatpush3.bf16.msra.mxu0 %v14633_v1  ;;  %v14631_v16 = vld [vmem:[%s18835_s8 + $0x34] ss:$8 sps:$4 sm:$0xff]  }
0x1163   :  { %13600 = vmatprep.subr.bf16.mxu1 %v14619_v63  ;;  %13610 = vmatprep.subr.bf16.mxu0 %v14634_v5 }
0x1166   :  { %13601 = vmatpush3.bf16.msra.mxu1 %v14619_v63  ;;  %13611 = vmatpush3.bf16.msra.mxu0 %v14634_v5  ;;  %v14629_v63 = vld [vmem:[%s18835_s8 + $0x30] ss:$8 sps:$4 sm:$0xff]  }
0x1167   :  { %5948 = vmatprep.subr.bf16.mxu1 %v14622_v36  ;;  %13612 = vmatprep.subr.bf16.mxu0 %v14635_v22  ;;  %v14638_v36 = vld [vmem:[%s18834_s7 + $0x70] sm:$0xff]  }
0x116a   :  { %13613 = vmatpush3.bf16.msra.mxu0 %v14635_v22 }
0x116b   :  { %13614 = vmatprep.subr.bf16.mxu0 %v14636_v43 }
0x116e   :  { %13615 = vmatpush3.bf16.msra.mxu0 %v14636_v43 }
0x1230   :  { %v13592_v60 = vpop.f32.mrb[124].mxu0 }
0x1231   :  { %v5444_v57 = vpop.f32.mrb[125].mxu0  ;;  %v5453_v42 = vadd.f32 %v13592_v60, %v5379_v0 }
0x1232   :  { %v5445_v3 = vadd.f32 %v5444_v57, %v5379_v0  ;;  %v13593_v61 = vpop.f32.mrb[126].mxu0 }
0x1233   :  { %v5447_v46 = vpop.f32.mrb[127].mxu0  ;;  %v5461_v53 = vadd.f32 %v5453_v42, %v16621_v40  ;;  %v5456_v10 = vadd.f32 %v13593_v61, %v5379_v0 }
0x1234   :  { %v5459_v23 = vadd.f32 %v5445_v3, %v16611_v35  ;;  %v5448_v38 = vadd.f32 %v5447_v46, %v5379_v0  ;;  %v14637_v0 = vld [vmem:[%s18834_s7 + $0x68] sm:$0xff]  }
0x1235   :  { %v5462_v15 = vadd.f32 %v5456_v10, %v16619_v30  ;;  %v5469_v48 = vsel %vm2675_vm0, %v5461_v53, 0.0  ;;  %13616 = vmatprep.subr.bf16.mxu0 %v14637_v0 }
0x1236   :  { %v5460_v58 = vadd.f32 %v5448_v38, %v16613_v50  ;;  %v5463_v52 = vsel %vm2675_vm0, %v5459_v23, 0.0  ;;  %13617 = vmatpush3.bf16.msra.mxu0 %v14637_v0 }
0x1237   :  { %5464 = vadd.xlane.f32.xlu0 %v5463_v52  ;;  %v5472_v37 = vsel %vm2675_vm0, %v5462_v15, 0.0  ;;  %13618 = vmatprep.subr.bf16.mxu0 %v14638_v36 }
0x1238   :  { %v5466_v14 = vsel %vm2675_vm0, %v5460_v58, 0.0 }
0x1239   :  { %5467 = vadd.xlane.f32.xlu1 %v5466_v14  ;;  %v15209_v14 = vld [vmem:[%s18831_s17 + $0x10] sm:$0xff] }
0x123a   :  { %13619 = vmatpush3.bf16.msra.mxu0 %v14638_v36 }
0x123b   :  { %5470 = vadd.xlane.f32.xlu0 %v5469_v48  ;;  %13620 = vmatprep.subr.bf16.mxu0 %v14639_v29 }
0x123e   :  { %13621 = vmatpush3.bf16.msra.mxu0 %v14639_v29 }
0x123f   :  { %5473 = vadd.xlane.f32.xlu0 %v5472_v37  ;;  %13632 = vmatprep.subr.bf16.mxu0 %v15217_v27 }
0x12c4   :  { %v5465_v35 = vpop.xlane.xlu0 %5464 }
0x12c5   :  { %v5475_v21 = vmul.f32 0.015625, %v5465_v35 }
0x12c6   :  { %v5468_v40 = vpop.xlane.xlu1 %5467 }
0x12c7   :  { %v16945_v33 = vsub.f32 %v5459_v23, %v5475_v21  ;;  %v5476_v50 = vmul.f32 0.015625, %v5468_v40 }
0x12c8   :  { %v5471_v13 = vpop.xlane.xlu0 %5470 }
0x12c9   :  { %v16947_v4 = vsub.f32 %v5460_v58, %v5476_v50  ;;  %v5477_v9 = vmul.f32 0.015625, %v5471_v13  ;;  %v5483_v31 = vmul.f32 %v16945_v33, %v16945_v33  ;;  %v5526_v50 = vrot.slane %v15209_v14, %v16538_v59 }
0x12cb   :  { %v16951_v30 = vsub.f32 %v5461_v53, %v5477_v9  ;;  %v5487_v45 = vsel %vm2675_vm0, %v5483_v31, 0.0  ;;  %v5484_v55 = vmul.f32 %v16947_v4, %v16947_v4 }
0x12cc   :  { %5488 = vadd.xlane.f32.xlu1 %v5487_v45  ;;  %v5474_v62 = vpop.xlane.xlu0 %5473 }
0x12cd   :  { %v5478_v2 = vmul.f32 0.015625, %v5474_v62  ;;  %v5490_v17 = vsel %vm2675_vm0, %v5484_v55, 0.0  ;;  %v5485_v49 = vmul.f32 %v16951_v30, %v16951_v30 }
0x12ce   :  { %5491 = vadd.xlane.f32.xlu0 %v5490_v17 }
0x12cf   :  { %v16959_v51 = vsub.f32 %v5462_v15, %v5478_v2  ;;  %v5493_v28 = vsel %vm2675_vm0, %v5485_v49, 0.0  ;;  %v5518_v15 = vrot.slane %v15209_v14, %v16528_v54 }
0x12d0   :  { %5494 = vadd.xlane.f32.xlu1 %v5493_v28 }
0x12d1   :  { %v5486_v47 = vmul.f32 %v16959_v51, %v16959_v51 }
0x12d3   :  { %v5496_v41 = vsel %vm2675_vm0, %v5486_v47, 0.0 }
0x12d4   :  { %5497 = vadd.xlane.f32.xlu0 %v5496_v41  ;;  %v14623_v41 = vld [vmem:[%s18835_s8 + $0x10] ss:$8 sps:$4 sm:$0xff]  }
0x1359   :  { %v5489_v60 = vpop.xlane.xlu1 %5488 }
0x135a   :  { %v5499_v57 = vmul.f32 0.015625, %v5489_v60 }
0x135b   :  { %v5492_v42 = vpop.xlane.xlu0 %5491 }
0x135c   :  { %v5503_v3 = vadd.f32 1e-05, %v5499_v57  ;;  %v5500_v61 = vmul.f32 0.015625, %v5492_v42 }
0x135d   :  { %v5495_v46 = vpop.xlane.xlu1 %5494 }
0x135e   :  { %14856 = vrsqrt.f32 %v5503_v3  ;;  %v5504_v23 = vadd.f32 1e-05, %v5500_v61  ;;  %v5501_v38 = vmul.f32 0.015625, %v5495_v46 }
0x1360   :  { %14858 = vrsqrt.f32 %v5504_v23  ;;  %v5505_v53 = vadd.f32 1e-05, %v5501_v38 }
0x1361   :  { %v5498_v10 = vpop.xlane.xlu0 %5497 }
0x1362   :  { %14860 = vrsqrt.f32 %v5505_v53  ;;  %v5502_v58 = vmul.f32 0.015625, %v5498_v10  ;;  %v5889_v53 = vld [vmem:[%s18836_s18] sm:$0xff]  ;;  %v5890_v10 = vld [vmem:[%s18836_s18 + $0x8] sm:$0xff] }
0x1364   :  { %v5506_v52 = vadd.f32 1e-05, %v5502_v58  ;;  %v5903_v58 = vrot.slane %v5889_v53, %v16055_v34 }
0x1366   :  { %14862 = vrsqrt.f32 %v5506_v52 }
0x1368   :  { %v14857_v48 = vpop.eup %14856 }
0x1369   :  { %v5511_v37 = vmul.f32 %v14857_v48, %v16945_v33 }
0x136a   :  { %v14859_v35 = vpop.eup %14858 }
0x136b   :  { %v5512_v21 = vmul.f32 %v14859_v35, %v16947_v4  ;;  %v5519_v40 = vmul.f32 %v5518_v15, %v5511_v37 }
0x136c   :  { %v14861_v13 = vpop.eup %14860 }
0x136d   :  { %v5513_v9 = vmul.f32 %v14861_v13, %v16951_v30  ;;  %v5520_v31 = vmul.f32 %v5518_v15, %v5512_v21  ;;  %v17006_v45 = vadd.f32 %v5526_v50, %v5519_v40  ;;  %v14620_v30 = vld [vmem:[%s18835_s8] ss:$8 sps:$4 sm:$0xff]  }
0x136f   :  { %v17008_v55 = vadd.f32 %v5526_v50, %v5520_v31  ;;  %v5521_v2 = vmul.f32 %v5518_v15, %v5513_v9 }
0x1370   :  { %v14863_v62 = vpop.eup %14862 }
0x1371   :  { %v5514_v17 = vmul.f32 %v14863_v62, %v16959_v51  ;;  %v5540_v33 = vpack.c.bf16 %v17008_v55, %v17006_v45  ;;  %v17014_v4 = vadd.f32 %v5526_v50, %v5521_v2  ;;  %v14625_v51 = vld [vmem:[%s18835_s8 + $0x14] ss:$8 sps:$4 sm:$0xff]  }
0x1373   :  { %v5522_v49 = vmul.f32 %v5518_v15, %v5514_v17  ;;  %13602 = vmatprep.mubr.msk.bf16.mxu1 %vm2675_vm0, %v5540_v33 }
0x1375   :  { %v17016_v28 = vadd.f32 %v5526_v50, %v5522_v49 }
0x1377   :  { %v5541_v47 = vpack.c.bf16 %v17016_v28, %v17014_v4 }
0x1379   :  { %13603 = vmatmul.mubr.msk.bf16.vlgmr.msra.gmra.mrb[132].mxu1 %vm2675_vm0, %v5541_v47 }
0x137a   :  { %5949 = vmatpush1.bf16.msra.mxu1 %v14620_v30  ;;  %5980 = vmatprep.mubr.bf16.mxu1 %v15216_v7 }
0x137b   :  { %5950 = vmatprep.subr.bf16.mxu1 %v14625_v51 }
0x137e   :  { %5951 = vmatpush1.bf16.msra.mxu1 %v14623_v41 }
0x137f   :  { %5952 = vmatprep.subr.bf16.mxu1 %v14628_v44 }
0x1382   :  { %5953 = vmatpush1.bf16.msra.mxu1 %v14626_v39 }
0x1383   :  { %5954 = vmatprep.subr.bf16.mxu1 %v14631_v16 }
0x1386   :  { %5955 = vmatpush1.bf16.msra.mxu1 %v14629_v63 }
0x1387   :  { %13626 = vmatprep.subr.bf16.mxu1 %v15217_v27 }
0x1389   :  { %12429 = vmatmul.mubr.msk.bf16.vlgmr.msra.gmra.mrb[136].mxu1 %vm2675_vm0, %v16130_v20  ;;  %v5545_v20 = vrot.slane %v15209_v14, %v16557_v6  ;;  %v5907_v14 = vrot.slane %v5890_v10, %v16055_v34 }
0x138a   :  { %5990 = vmatprep.mubr.bf16.mxu1 %v15216_v7 }
0x1391   :  { %12430 = vmatmul.mubr.msk.bf16.gmra.mrb[140].mxu1 %vm2675_vm0, %v16147_v26 }
0x1392   :  { %13628 = vmatprep.mubr.msk.bf16.mxu1 %vm15218_vm1, %v15217_v27 }
0x144c   :  { %v13604_v26 = vpop.f32.mrb[132].mxu1 }
0x144d   :  { %v5619_v1 = vadd.f32 %v13604_v26, %v5545_v20  ;;  %v5610_v5 = vpop.f32.mrb[133].mxu1 }
0x144e   :  { %v5611_v22 = vadd.f32 %v5610_v5, %v5545_v20  ;;  %v13605_v43 = vpop.f32.mrb[134].mxu1 }
0x144f   :  { %v5622_v0 = vadd.f32 %v13605_v43, %v5545_v20  ;;  %v5613_v60 = vpop.f32.mrb[135].mxu1  ;;  %v5627_v42 = vmax.f32 %v5619_v1, 0.0 }
0x1450   :  { %v5614_v57 = vadd.f32 %v5613_v60, %v5545_v20  ;;  %v5625_v61 = vmax.f32 %v5611_v22, 0.0 }
0x1451   :  { %v5628_v3 = vmax.f32 %v5622_v0, 0.0 }
0x1452   :  { %v5626_v46 = vmax.f32 %v5614_v57, 0.0 }
0x1453   :  { %v5647_v23 = vpack.c.bf16 %v5628_v3, %v5627_v42 }
0x1454   :  { %v5646_v38 = vpack.c.bf16 %v5626_v46, %v5625_v61 }
0x1456   :  { %13622 = vmatprep.mubr.bf16.mxu0 %v5646_v38 }
0x1457   :  { %13623 = vmatmul.mubr.bf16.vlgmr.msra.gmra.mrb[128].mxu0 %v5647_v23 }
0x1458   :  { %13634 = vmatprep.mubr.msk.bf16.mxu0 %vm15218_vm1, %v15217_v27 }
0x145c   :  { %v5982_v52 = vpop.f32.mrb[136].mxu1 }
0x145d   :  { %v5984_v15 = vpop.f32.mrb[137].mxu1  ;;  %v5983_v37 = vadd.f32 %v5982_v52, %v5903_v58 }
0x145e   :  { %v5986_v48 = vpop.f32.mrb[138].mxu1  ;;  %v5985_v40 = vadd.f32 %v5984_v15, %v5907_v14 }
0x145f   :  { %v5987_v35 = vadd.f32 %v5986_v48, %v5903_v58  ;;  %v5988_v21 = vpop.f32.mrb[139].mxu1 }
0x1460   :  { %v5989_v50 = vadd.f32 %v5988_v21, %v5907_v14 }
0x1461   :  { %v6001_v13 = vpack.c.bf16 %v5987_v35, %v5983_v37 }
0x1462   :  { %v17069_v9 = vpack.c.bf16 %v5989_v50, %v5985_v40 }
0x1463   :  { %6065 = vrot.lane.b32.xlu0 %v6001_v13, %s15222_s22  ;;  %6014 = vrot.lane.b32.xlu1 %v6001_v13, %s15220_s21 }
0x1464   :  { %v5992_v31 = vpop.f32.mrb[140].mxu1 }
0x1465   :  { %v5994_v62 = vpop.f32.mrb[141].mxu1  ;;  %v5993_v33 = vadd.f32 %v5992_v31, %v5903_v58 }
0x1466   :  { %v5995_v2 = vadd.f32 %v5994_v62, %v5907_v14  ;;  %v5996_v17 = vpop.f32.mrb[142].mxu1 }
0x1467   :  { %v5997_v49 = vadd.f32 %v5996_v17, %v5903_v58  ;;  %v5998_v30 = vpop.f32.mrb[143].mxu1  ;;  %6167 = vrot.lane.b32.xlu0 %v6001_v13, %s15224_s16  ;;  %6116 = vrot.lane.b32.xlu1 %v6001_v13, %s15221_s23 }
0x1468   :  { %v5999_v47 = vadd.f32 %v5998_v30, %v5907_v14 }
0x1469   :  { %v6003_v51 = vpack.c.bf16 %v5997_v49, %v5993_v33 }
0x146a   :  { %v17075_v41 = vpack.c.bf16 %v5999_v47, %v5995_v2 }
0x146b   :  { %6217 = vrot.lane.b32.xlu0 %v6003_v51, %s15220_s21  ;;  %6063 = vrot.lane.b32.xlu1 %v6001_v13, %s15219_s30 }
0x146f   :  { %6268 = vrot.lane.b32.xlu0 %v6003_v51, %s15222_s22  ;;  %6114 = vrot.lane.b32.xlu1 %v6001_v13, %s18864_s26 }
0x1473   :  { %6266 = vrot.lane.b32.xlu0 %v6003_v51, %s15219_s30  ;;  %6165 = vrot.lane.b32.xlu1 %v6001_v13, %s18865_s2 }
0x1477   :  { %6317 = vrot.lane.b32.xlu0 %v6003_v51, %s18864_s26  ;;  %6319 = vrot.lane.b32.xlu1 %v6003_v51, %s15221_s23 }
0x147b   :  { %6370 = vrot.lane.b32.xlu1 %v6003_v51, %s15224_s16 }
0x147f   :  { %6368 = vrot.lane.b32.xlu1 %v6003_v51, %s18865_s2 }
0x14d5   :  { %v6066_v44 = vpop.permute.xlu0 %6065  ;;  %v6015_v39 = vpop.permute.xlu1 %6014 }
0x14d6   :  { %v6071_v16 = vsel %vm2750_vm2, %v6066_v44, 0  ;;  %v6020_v63 = vsel %vm2750_vm2, %v6015_v39, 0 }
0x14d7   :  { %13627 = vmatpush3.bf16.xpose.msra.mxu1 %v6020_v63  ;;  %13633 = vmatpush3.bf16.xpose.msra.mxu0 %v6071_v16 }
0x14d8   :  { %13638 = vmatprep.subr.bf16.mxu1 %v15217_v27  ;;  %13644 = vmatprep.subr.bf16.mxu0 %v15217_v27 }
0x14d9   :  { %v6168_v36 = vpop.permute.xlu0 %6167  ;;  %v6117_v29 = vpop.permute.xlu1 %6116 }
0x14da   :  { %v6173_v1 = vsel %vm2750_vm2, %v6168_v36, 0  ;;  %v6122_v5 = vsel %vm2750_vm2, %v6117_v29, 0 }
0x14dd   :  { %v6218_v20 = vpop.permute.xlu0 %6217  ;;  %v6064_v26 = vpop.permute.xlu1 %6063 }
0x14de   :  { %13629 = vmatmul.mubr.msk.bf16.vlgmr.msra.gmra.mrb[144].mxu1 %vm2750_vm2, %v6001_v13  ;;  %13635 = vmatmul.mubr.msk.bf16.vlgmr.msra.gmra.mrb[132].mxu0 %vm2750_vm2, %v6064_v26  ;;  %v6223_v60 = vsel %vm2750_vm2, %v6218_v20, 0 }
0x14df   :  { %13639 = vmatpush3.bf16.xpose.msra.mxu1 %v6122_v5  ;;  %13645 = vmatpush3.bf16.xpose.msra.mxu0 %v6173_v1 }
0x14e0   :  { %13640 = vmatprep.mubr.msk.bf16.mxu1 %vm15218_vm1, %v15217_v27  ;;  %13646 = vmatprep.mubr.msk.bf16.mxu0 %vm15218_vm1, %v15217_v27 }
0x14e1   :  { %v6115_v22 = vpop.permute.xlu1 %6114  ;;  %13650 = vmatprep.subr.bf16.mxu1 %v15217_v27  ;;  %13656 = vmatprep.subr.bf16.mxu0 %v15217_v27  ;;  %v6269_v43 = vpop.permute.xlu0 %6268 }
0x14e2   :  { %v6274_v57 = vsel %vm2750_vm2, %v6269_v43, 0 }
0x14e5   :  { %v6166_v0 = vpop.permute.xlu1 %6165  ;;  %v6267_v3 = vpop.permute.xlu0 %6266 }
0x14e6   :  { %13641 = vmatmul.mubr.msk.bf16.vlgmr.msra.gmra.mrb[148].mxu1 %vm2750_vm2, %v6115_v22  ;;  %13647 = vmatmul.mubr.msk.bf16.vlgmr.msra.gmra.mrb[136].mxu0 %vm2750_vm2, %v6166_v0 }
0x14e7   :  { %13651 = vmatpush3.bf16.xpose.msra.mxu1 %v6223_v60  ;;  %13657 = vmatpush3.bf16.xpose.msra.mxu0 %v6274_v57 }
0x14e8   :  { %13652 = vmatprep.mubr.msk.bf16.mxu1 %vm15218_vm1, %v15217_v27  ;;  %13658 = vmatprep.mubr.msk.bf16.mxu0 %vm15218_vm1, %v15217_v27 }
0x14e9   :  { %v6320_v42 = vpop.permute.xlu1 %6319  ;;  %13662 = vmatprep.subr.bf16.mxu1 %v15217_v27  ;;  %13668 = vmatprep.subr.bf16.mxu0 %v15217_v27  ;;  %v6318_v38 = vpop.permute.xlu0 %6317 }
0x14ea   :  { %v6325_v46 = vsel %vm2750_vm2, %v6320_v42, 0 }
0x14ed   :  { %v6371_v61 = vpop.permute.xlu1 %6370 }
0x14ee   :  { %v6376_v23 = vsel %vm2750_vm2, %v6371_v61, 0  ;;  %13653 = vmatmul.mubr.msk.bf16.vlgmr.msra.gmra.mrb[152].mxu1 %vm2750_vm2, %v6003_v51  ;;  %13659 = vmatmul.mubr.msk.bf16.vlgmr.msra.gmra.mrb[140].mxu0 %vm2750_vm2, %v6267_v3 }
0x14ef   :  { %13663 = vmatpush3.bf16.xpose.msra.mxu1 %v6325_v46  ;;  %13669 = vmatpush3.bf16.xpose.msra.mxu0 %v6376_v23 }
0x14f0   :  { %13664 = vmatprep.mubr.msk.bf16.mxu1 %vm15218_vm1, %v15217_v27  ;;  %13670 = vmatprep.mubr.msk.bf16.mxu0 %vm15218_vm1, %v15217_v27 }
0x14f1   :  { %13674 = vmatprep.subr.bf16.mxu1 %v15217_v27  ;;  %13680 = vmatprep.subr.bf16.mxu0 %v15217_v27  ;;  %v6369_v53 = vpop.permute.xlu1 %6368 }
0x14f6   :  { %13665 = vmatmul.mubr.msk.bf16.vlgmr.msra.gmra.mrb[156].mxu1 %vm2750_vm2, %v6318_v38  ;;  %13671 = vmatmul.mubr.msk.bf16.vlgmr.msra.gmra.mrb[144].mxu0 %vm2750_vm2, %v6369_v53 }
0x14f7   :  { %13675 = vmatpush3.bf16.msra.mxu1 %v17069_v9  ;;  %13676 = vmatprep.mubr.msk.bf16.mxu1 %vm15218_vm1, %v15217_v27 }
0x14f8   :  { %13686 = vmatprep.subr.bf16.mxu1 %v15217_v27  ;;  %13682 = vmatprep.mubr.msk.bf16.mxu0 %vm15218_vm1, %v15217_v27 }
0x152a   :  { %v17129_v10 = vpop.f32.mrb[128].mxu0 }
0x152b   :  { %v17131_v58 = vpop.f32.mrb[129].mxu0 }
0x152c   :  { %v17133_v52 = vpop.f32.mrb[130].mxu0 }
0x152d   :  { %v17135_v14 = vpop.f32.mrb[131].mxu0 }
0x15b1   :  { %v17137_v15 = vpop.f32.mrb[144].mxu1  ;;  %v17139_v48 = vpop.f32.mrb[132].mxu0 }
0x15b2   :  { %v13630_v37 = vpop.f32.mrb[145].mxu1  ;;  %v13636_v35 = vpop.f32.mrb[133].mxu0  ;;  %v6419_v21 = vsel %vm2750_vm2, %v17137_v15, -inf  ;;  %v6425_v2 = vsel %vm2750_vm2, %v17139_v48, -inf }
0x15b3   :  { %6420 = vmax.xlane.f32.xlu0 %v6419_v21  ;;  %v17143_v40 = vpop.f32.mrb[146].mxu1  ;;  %v17145_v50 = vpop.f32.mrb[134].mxu0 }
0x15b4   :  { %v13631_v13 = vpop.f32.mrb[147].mxu1  ;;  %v13637_v31 = vpop.f32.mrb[135].mxu0  ;;  %v6422_v62 = vsel %vm2750_vm2, %v17143_v40, -inf  ;;  %v6428_v51 = vsel %vm2750_vm2, %v17145_v50, -inf }
0x15b5   :  { %6423 = vmax.xlane.f32.xlu1 %v6422_v62 }
0x15b7   :  { %6426 = vmax.xlane.f32.xlu0 %v6425_v2 }
0x15b9   :  { %v17151_v17 = vpop.f32.mrb[148].mxu1  ;;  %v17153_v33 = vpop.f32.mrb[136].mxu0 }
0x15ba   :  { %v13642_v49 = vpop.f32.mrb[149].mxu1  ;;  %v13648_v30 = vpop.f32.mrb[137].mxu0  ;;  %v6431_v47 = vsel %vm2750_vm2, %v17151_v17, -inf  ;;  %v6437_v29 = vsel %vm2750_vm2, %v17153_v33, -inf }
0x15bb   :  { %6432 = vmax.xlane.f32.xlu1 %v6431_v47  ;;  %v17159_v44 = vpop.f32.mrb[150].mxu1  ;;  %6429 = vmax.xlane.f32.xlu0 %v6428_v51  ;;  %v17161_v39 = vpop.f32.mrb[138].mxu0 }
0x15bc   :  { %v13643_v16 = vpop.f32.mrb[151].mxu1  ;;  %v13649_v63 = vpop.f32.mrb[139].mxu0  ;;  %v6434_v36 = vsel %vm2750_vm2, %v17159_v44, -inf  ;;  %v6440_v43 = vsel %vm2750_vm2, %v17161_v39, -inf }
0x15bf   :  { %6435 = vmax.xlane.f32.xlu0 %v6434_v36  ;;  %6438 = vmax.xlane.f32.xlu1 %v6437_v29 }
0x15c1   :  { %v17167_v20 = vpop.f32.mrb[152].mxu1  ;;  %v17169_v26 = vpop.f32.mrb[140].mxu0 }
0x15c2   :  { %v13654_v1 = vpop.f32.mrb[153].mxu1  ;;  %v13660_v5 = vpop.f32.mrb[141].mxu0  ;;  %v6443_v22 = vsel %vm2750_vm2, %v17167_v20, -inf  ;;  %v6449_v61 = vsel %vm2750_vm2, %v17169_v26, -inf }
0x15c3   :  { %v17175_v0 = vpop.f32.mrb[154].mxu1  ;;  %6444 = vmax.xlane.f32.xlu1 %v6443_v22  ;;  %6441 = vmax.xlane.f32.xlu0 %v6440_v43  ;;  %v17177_v60 = vpop.f32.mrb[142].mxu0 }
0x15c4   :  { %v13655_v57 = vpop.f32.mrb[155].mxu1  ;;  %v13661_v42 = vpop.f32.mrb[143].mxu0  ;;  %v6446_v3 = vsel %vm2750_vm2, %v17175_v0, -inf  ;;  %v6452_v35 = vsel %vm2750_vm2, %v17177_v60, -inf }
0x15c7   :  { %6447 = vmax.xlane.f32.xlu0 %v6446_v3  ;;  %6450 = vmax.xlane.f32.xlu1 %v6449_v61 }
0x15c9   :  { %v17183_v46 = vpop.f32.mrb[156].mxu1  ;;  %v17185_v23 = vpop.f32.mrb[144].mxu0 }
0x15ca   :  { %v13666_v38 = vpop.f32.mrb[157].mxu1  ;;  %v13672_v53 = vpop.f32.mrb[145].mxu0  ;;  %v6455_v37 = vsel %vm2750_vm2, %v17183_v46, -inf  ;;  %v6461_v49 = vsel %vm2750_vm2, %v17185_v23, -inf }
0x15cb   :  { %v17191_v21 = vpop.f32.mrb[158].mxu1  ;;  %6456 = vmax.xlane.f32.xlu1 %v6455_v37  ;;  %6453 = vmax.xlane.f32.xlu0 %v6452_v35  ;;  %v17193_v13 = vpop.f32.mrb[146].mxu0 }
0x15cc   :  { %v13667_v31 = vpop.f32.mrb[159].mxu1  ;;  %v13673_v62 = vpop.f32.mrb[147].mxu0  ;;  %v6458_v2 = vsel %vm2750_vm2, %v17191_v21, -inf  ;;  %v6464_v30 = vsel %vm2750_vm2, %v17193_v13, -inf }
0x15cf   :  { %6459 = vmax.xlane.f32.xlu0 %v6458_v2  ;;  %6462 = vmax.xlane.f32.xlu1 %v6461_v49 }
0x15d3   :  { %6465 = vmax.xlane.f32.xlu0 %v6464_v30 }
0x15e0   :  { %6648 = vrot.lane.b32.xlu1 %v17069_v9, %s15219_s30 }
0x15e4   :  { %6742 = vrot.lane.b32.xlu1 %v17069_v9, %s18865_s2 }
0x15e8   :  { %6864 = vrot.lane.b32.xlu1 %v17075_v41, %s15219_s30 }
0x15e9   :  { %6695 = vrot.lane.b32.xlu0 %v17069_v9, %s18864_s26 }
0x1640   :  { %v6421_v47 = vpop.xlane.xlu0 %6420 }
0x1641   :  { %v6467_v51 = vsub.f32 %v17137_v15, %v6421_v47 }
0x1642   :  { %v6424_v16 = vpop.xlane.xlu1 %6423 }
0x1643   :  { %v6483_v63 = vmul.f32 1.442695, %v6467_v51  ;;  %v6468_v36 = vsub.f32 %v17143_v40, %v6424_v16 }
0x1644   :  { %v6427_v29 = vpop.xlane.xlu0 %6426 }
0x1645   :  { %14864 = vpow2.f32 %v6483_v63  ;;  %v6485_v1 = vmul.f32 1.442695, %v6468_v36  ;;  %v6469_v5 = vsub.f32 %v17139_v48, %v6427_v29 }
0x1647   :  { %14866 = vpow2.f32 %v6485_v1  ;;  %v6487_v22 = vmul.f32 1.442695, %v6469_v5 }
0x1648   :  { %v6433_v43 = vpop.xlane.xlu1 %6432  ;;  %v6430_v57 = vpop.xlane.xlu0 %6429 }
0x1649   :  { %14868 = vpow2.f32 %v6487_v22  ;;  %v6471_v42 = vsub.f32 %v17151_v17, %v6433_v43  ;;  %v6470_v9 = vsub.f32 %v17145_v50, %v6430_v57 }
0x164b   :  { %v6491_v3 = vmul.f32 1.442695, %v6471_v42  ;;  %v6489_v15 = vmul.f32 1.442695, %v6470_v9 }
0x164c   :  { %v6436_v61 = vpop.xlane.xlu0 %6435  ;;  %v6439_v38 = vpop.xlane.xlu1 %6438 }
0x164d   :  { %14870 = vpow2.f32 %v6491_v3  ;;  %v6472_v40 = vsub.f32 %v17159_v44, %v6436_v61  ;;  %v6473_v53 = vsub.f32 %v17153_v33, %v6439_v38 }
0x164e   :  { %14872 = vpow2.f32 %v6489_v15 }
0x164f   :  { %v17216_v48 = vpop.eup %14864  ;;  %v6493_v37 = vmul.f32 1.442695, %v6472_v40  ;;  %v6495_v35 = vmul.f32 1.442695, %v6473_v53 }
0x1650   :  { %v6445_v31 = vpop.xlane.xlu1 %6444  ;;  %v6442_v62 = vpop.xlane.xlu0 %6441  ;;  %v6515_v17 = vsel %vm2750_vm2, %v17216_v48, 0.0 }
0x1651   :  { %v17220_v50 = vpop.eup %14866  ;;  %14874 = vpow2.f32 %v6493_v37  ;;  %v6475_v2 = vsub.f32 %v17167_v20, %v6445_v31  ;;  %v6474_v49 = vsub.f32 %v17161_v39, %v6442_v62  ;;  %6516 = vadd.xlane.f32.xlu1 %v6515_v17 }
0x1652   :  { %14876 = vpow2.f32 %v6495_v35  ;;  %v6518_v33 = vsel %vm2750_vm2, %v17220_v50, 0.0 }
0x1653   :  { %v17226_v44 = vpop.eup %14868  ;;  %v6499_v30 = vmul.f32 1.442695, %v6475_v2  ;;  %v6497_v47 = vmul.f32 1.442695, %v6474_v49  ;;  %6519 = vadd.xlane.f32.xlu0 %v6518_v33 }
0x1654   :  { %v6448_v51 = vpop.xlane.xlu0 %6447  ;;  %v6451_v16 = vpop.xlane.xlu1 %6450  ;;  %v6521_v63 = vsel %vm2750_vm2, %v17226_v44, 0.0 }
0x1655   :  { %14878 = vpow2.f32 %v6499_v30  ;;  %v6476_v20 = vsub.f32 %v17175_v0, %v6448_v51  ;;  %v6477_v39 = vsub.f32 %v17169_v26, %v6451_v16  ;;  %6522 = vadd.xlane.f32.xlu1 %v6521_v63 }
0x1656   :  { %14880 = vpow2.f32 %v6497_v47 }
0x1657   :  { %v17232_v36 = vpop.eup %14870  ;;  %v6501_v29 = vmul.f32 1.442695, %v6476_v20  ;;  %v6503_v1 = vmul.f32 1.442695, %v6477_v39 }
0x1658   :  { %v17234_v5 = vpop.eup %14872  ;;  %v6457_v22 = vpop.xlane.xlu1 %6456  ;;  %v6527_v57 = vsel %vm2750_vm2, %v17232_v36, 0.0 }
0x1659   :  { %v6454_v43 = vpop.xlane.xlu0 %6453  ;;  %14882 = vpow2.f32 %v6501_v29  ;;  %v6479_v42 = vsub.f32 %v17183_v46, %v6457_v22  ;;  %6528 = vadd.xlane.f32.xlu1 %v6527_v57  ;;  %v6524_v26 = vsel %vm2750_vm2, %v17234_v5, 0.0 }
0x165a   :  { %v6478_v0 = vsub.f32 %v17177_v60, %v6454_v43  ;;  %14884 = vpow2.f32 %v6503_v1  ;;  %6525 = vadd.xlane.f32.xlu0 %v6524_v26 }
0x165b   :  { %v17242_v9 = vpop.eup %14874  ;;  %v6507_v3 = vmul.f32 1.442695, %v6479_v42 }
0x165c   :  { %v6505_v15 = vmul.f32 1.442695, %v6478_v0  ;;  %v17244_v61 = vpop.eup %14876  ;;  %v6463_v40 = vpop.xlane.xlu1 %6462  ;;  %v6530_v53 = vsel %vm2750_vm2, %v17242_v9, 0.0 }
0x165d   :  { %v6460_v38 = vpop.xlane.xlu0 %6459  ;;  %14886 = vpow2.f32 %v6507_v3  ;;  %v6481_v46 = vsub.f32 %v17185_v23, %v6463_v40  ;;  %v6533_v37 = vsel %vm2750_vm2, %v17244_v61, 0.0 }
0x165e   :  { %v6480_v60 = vsub.f32 %v17191_v21, %v6460_v38  ;;  %14888 = vpow2.f32 %v6505_v15  ;;  %6534 = vadd.xlane.f32.xlu1 %v6533_v37  ;;  %6531 = vadd.xlane.f32.xlu0 %v6530_v53 }
0x165f   :  { %v17252_v35 = vpop.eup %14878  ;;  %v6511_v62 = vmul.f32 1.442695, %v6481_v46 }
0x1660   :  { %v6509_v31 = vmul.f32 1.442695, %v6480_v60  ;;  %v17254_v17 = vpop.eup %14880  ;;  %v6649_v2 = vpop.permute.xlu1 %6648  ;;  %v6539_v33 = vsel %vm2750_vm2, %v17252_v35, 0.0 }
0x1661   :  { %v6466_v49 = vpop.xlane.xlu0 %6465  ;;  %13681 = vmatpush3.bf16.msra.mxu0 %v6649_v2  ;;  %v6536_v21 = vsel %vm2750_vm2, %v17254_v17, 0.0 }
0x1662   :  { %14890 = vpow2.f32 %v6509_v31  ;;  %v6482_v23 = vsub.f32 %v17193_v13, %v6466_v49  ;;  %6540 = vadd.xlane.f32.xlu1 %v6539_v33  ;;  %6537 = vadd.xlane.f32.xlu0 %v6536_v21 }
0x1663   :  { %14892 = vpow2.f32 %v6511_v62  ;;  %v17261_v30 = vpop.eup %14882  ;;  %13692 = vmatprep.subr.bf16.mxu0 %v15217_v27 }
0x1664   :  { %v6513_v47 = vmul.f32 1.442695, %v6482_v23  ;;  %v17264_v51 = vpop.eup %14884  ;;  %v6542_v16 = vsel %vm2750_vm2, %v17261_v30, 0.0  ;;  %v6743_v26 = vpop.permute.xlu1 %6742 }
0x1665   :  { %v6545_v13 = vsel %vm2750_vm2, %v17264_v51, 0.0  ;;  %v6696_v15 = vpop.permute.xlu0 %6695 }
0x1666   :  { %14894 = vpow2.f32 %v6513_v47  ;;  %6546 = vadd.xlane.f32.xlu1 %v6545_v13  ;;  %6543 = vadd.xlane.f32.xlu0 %v6542_v16 }
0x1667   :  { %v17270_v63 = vpop.eup %14886 }
0x1668   :  { %v17272_v20 = vpop.eup %14888  ;;  %v6551_v39 = vsel %vm2750_vm2, %v17270_v63, 0.0  ;;  %v17294_v3 = vpop.permute.xlu1 %6864 }
0x1669   :  { %v6548_v29 = vsel %vm2750_vm2, %v17272_v20, 0.0 }
0x166a   :  { %6552 = vadd.xlane.f32.xlu1 %v6551_v39  ;;  %6549 = vadd.xlane.f32.xlu0 %v6548_v29 }
0x166c   :  { %v17278_v1 = vpop.eup %14890 }
0x166d   :  { %v17280_v22 = vpop.eup %14892  ;;  %v6554_v43 = vsel %vm2750_vm2, %v17278_v1, 0.0 }
0x166e   :  { %v6557_v57 = vsel %vm2750_vm2, %v17280_v22, 0.0  ;;  %6555 = vadd.xlane.f32.xlu0 %v6554_v43 }
0x166f   :  { %6558 = vadd.xlane.f32.xlu1 %v6557_v57 }
0x1670   :  { %v17286_v42 = vpop.eup %14894 }
0x1671   :  { %v6560_v0 = vsel %vm2750_vm2, %v17286_v42, 0.0 }
0x1672   :  { %6561 = vadd.xlane.f32.xlu0 %v6560_v0 }
0x1680   :  { %6958 = vrot.lane.b32.xlu1 %v17075_v41, %s18865_s2 }
0x1688   :  { %6911 = vrot.lane.b32.xlu0 %v17075_v41, %s18864_s26 }
0x16de   :  { %v6517_v38 = vpop.xlane.xlu1 %6516 }
0x16df   :  { %14896 = vrcp.f32 %v6517_v38 }
0x16e0   :  { %v6520_v40 = vpop.xlane.xlu0 %6519 }
0x16e1   :  { %14898 = vrcp.f32 %v6520_v40 }
0x16e2   :  { %v6523_v53 = vpop.xlane.xlu1 %6522 }
0x16e3   :  { %14900 = vrcp.f32 %v6523_v53 }
0x16e6   :  { %v6529_v60 = vpop.xlane.xlu1 %6528 }
0x16e7   :  { %v6526_v46 = vpop.xlane.xlu0 %6525 }
0x16e8   :  { %14902 = vrcp.f32 %v6526_v46 }
0x16e9   :  { %v14897_v37 = vpop.eup %14896  ;;  %14904 = vrcp.f32 %v6529_v60 }
0x16ea   :  { %v6579_v49 = vmul.f32 %v14897_v37, %v17216_v48 }
0x16eb   :  { %v14899_v31 = vpop.eup %14898  ;;  %v6535_v62 = vpop.xlane.xlu1 %6534 }
0x16ec   :  { %v6532_v2 = vpop.xlane.xlu0 %6531  ;;  %v6580_v33 = vmul.f32 %v14899_v31, %v17220_v50 }
0x16ed   :  { %14906 = vrcp.f32 %v6532_v2  ;;  %v14901_v16 = vpop.eup %14900 }
0x16ee   :  { %v6595_v23 = vpack.c.bf16 %v6580_v33, %v6579_v49  ;;  %14908 = vrcp.f32 %v6535_v62  ;;  %v6581_v48 = vmul.f32 %v14901_v16, %v17226_v44 }
0x16ef   :  { %v6541_v21 = vpop.xlane.xlu1 %6540 }
0x16f0   :  { %v6538_v47 = vpop.xlane.xlu0 %6537  ;;  %13677 = vmatmul.mubr.msk.bf16.vlgmr.msra.gmra.mrb[160].mxu1 %vm2750_vm2, %v6595_v23 }
0x16f1   :  { %14910 = vrcp.f32 %v6538_v47  ;;  %13687 = vmatpush3.bf16.msra.mxu1 %v6696_v15  ;;  %13688 = vmatprep.mubr.msk.bf16.mxu1 %vm15218_vm1, %v15217_v27 }
0x16f2   :  { %v14903_v13 = vpop.eup %14902  ;;  %13698 = vmatprep.subr.bf16.mxu1 %v15217_v27  ;;  %14912 = vrcp.f32 %v6541_v21 }
0x16f3   :  { %v6582_v50 = vmul.f32 %v14903_v13, %v17234_v5  ;;  %v6547_v39 = vpop.xlane.xlu1 %6546  ;;  %v14905_v43 = vpop.eup %14904 }
0x16f4   :  { %v6544_v29 = vpop.xlane.xlu0 %6543  ;;  %v6583_v40 = vmul.f32 %v14905_v43, %v17232_v36 }
0x16f5   :  { %14914 = vrcp.f32 %v6544_v29  ;;  %v6596_v57 = vpack.c.bf16 %v6582_v50, %v6581_v48 }
0x16f6   :  { %14916 = vrcp.f32 %v6547_v39 }
0x16f7   :  { %v14907_v0 = vpop.eup %14906  ;;  %v6553_v38 = vpop.xlane.xlu1 %6552  ;;  %13683 = vmatmul.mubr.msk.bf16.vlgmr.msra.gmra.mrb[148].mxu0 %vm2750_vm2, %v6596_v57 }
0x16f8   :  { %v6550_v15 = vpop.xlane.xlu0 %6549  ;;  %v6584_v53 = vmul.f32 %v14907_v0, %v17242_v9  ;;  %13693 = vmatpush3.bf16.msra.mxu0 %v6743_v26  ;;  %13694 = vmatprep.mubr.msk.bf16.mxu0 %vm15218_vm1, %v15217_v27  ;;  %v14909_v44 = vpop.eup %14908 }
0x16f9   :  { %14918 = vrcp.f32 %v6550_v15  ;;  %13704 = vmatprep.subr.bf16.mxu0 %v15217_v27  ;;  %v6585_v31 = vmul.f32 %v14909_v44, %v17244_v61 }
0x16fa   :  { %v6597_v5 = vpack.c.bf16 %v6584_v53, %v6583_v40  ;;  %14920 = vrcp.f32 %v6553_v38 }
0x16fb   :  { %v14911_v60 = vpop.eup %14910 }
0x16fc   :  { %v6559_v46 = vpop.xlane.xlu1 %6558  ;;  %v6556_v37 = vpop.xlane.xlu0 %6555  ;;  %v6586_v62 = vmul.f32 %v14911_v60, %v17254_v17  ;;  %13689 = vmatmul.mubr.msk.bf16.vlgmr.msra.gmra.mrb[164].mxu1 %vm2750_vm2, %v6597_v5 }
0x16fd   :  { %v14913_v36 = vpop.eup %14912  ;;  %13699 = vmatpush3.bf16.msra.mxu1 %v17075_v41  ;;  %14922 = vrcp.f32 %v6556_v37  ;;  %13700 = vmatprep.mubr.msk.bf16.mxu1 %vm15218_vm1, %v15217_v27 }
0x16fe   :  { %14924 = vrcp.f32 %v6559_v46  ;;  %v6598_v9 = vpack.c.bf16 %v6586_v62, %v6585_v31  ;;  %13710 = vmatprep.subr.bf16.mxu1 %v15217_v27  ;;  %v6587_v49 = vmul.f32 %v14913_v36, %v17252_v35  ;;  %v14641_v62 = vld [vmem:[%s18837_s9 + $0x8] sm:$0xff]  }
0x16ff   :  { %v14915_v26 = vpop.eup %14914 }
0x1700   :  { %v6562_v2 = vpop.xlane.xlu0 %6561  ;;  %v6588_v61 = vmul.f32 %v14915_v26, %v17261_v30  ;;  %13695 = vmatmul.mubr.msk.bf16.vlgmr.msra.gmra.mrb[152].mxu0 %vm2750_vm2, %v6598_v9  ;;  %v14917_v17 = vpop.eup %14916 }
0x1701   :  { %14926 = vrcp.f32 %v6562_v2  ;;  %13705 = vmatpush3.bf16.msra.mxu0 %v17294_v3  ;;  %13706 = vmatprep.mubr.msk.bf16.mxu0 %vm15218_vm1, %v15217_v27  ;;  %v6589_v21 = vmul.f32 %v14917_v17, %v17264_v51  ;;  %v6959_v50 = vpop.permute.xlu1 %6958 }
0x1702   :  { %v6599_v41 = vpack.c.bf16 %v6588_v61, %v6587_v49  ;;  %13716 = vmatprep.subr.bf16.mxu0 %v15217_v27  ;;  %v14642_v61 = vld [vmem:[%s18837_s9 + $0x10] sm:$0xff]  }
0x1703   :  { %v14919_v33 = vpop.eup %14918 }
0x1704   :  { %v6912_v23 = vpop.permute.xlu0 %6911  ;;  %v6590_v35 = vmul.f32 %v14919_v33, %v17272_v20  ;;  %13701 = vmatmul.mubr.msk.bf16.vlgmr.msra.gmra.mrb[168].mxu1 %vm2750_vm2, %v6599_v41  ;;  %v14921_v30 = vpop.eup %14920 }
0x1705   :  { %13711 = vmatpush3.bf16.msra.mxu1 %v6912_v23  ;;  %13712 = vmatprep.mubr.msk.bf16.mxu1 %vm15218_vm1, %v15217_v27  ;;  %v6591_v13 = vmul.f32 %v14921_v30, %v17270_v63 }
0x1706   :  { %v6600_v3 = vpack.c.bf16 %v6590_v35, %v6589_v21  ;;  %v14643_v21 = vld [vmem:[%s18837_s9 + $0x18] sm:$0xff]  }
0x1707   :  { %v14923_v47 = vpop.eup %14922 }
0x1708   :  { %v14925_v16 = vpop.eup %14924  ;;  %v6592_v48 = vmul.f32 %v14923_v47, %v17278_v1  ;;  %13707 = vmatmul.mubr.msk.bf16.vlgmr.msra.gmra.mrb[156].mxu0 %vm2750_vm2, %v6600_v3 }
0x1709   :  { %13717 = vmatpush3.bf16.msra.mxu0 %v6959_v50  ;;  %13718 = vmatprep.mubr.msk.bf16.mxu0 %vm15218_vm1, %v15217_v27  ;;  %v6593_v39 = vmul.f32 %v14925_v16, %v17280_v22  ;;  %v14640_v22 = vld [vmem:[%s18837_s9] sm:$0xff]  }
0x170a   :  { %v6601_v20 = vpack.c.bf16 %v6592_v48, %v6591_v13  ;;  %13722 = vmatprep.subr.bf16.mxu1 %v14640_v22 }
0x170b   :  { %v14927_v51 = vpop.eup %14926 }
0x170c   :  { %v6594_v29 = vmul.f32 %v14927_v51, %v17286_v42  ;;  %13713 = vmatmul.mubr.msk.bf16.vlgmr.msra.gmra.mrb[172].mxu1 %vm2750_vm2, %v6601_v20 }
0x170d   :  { %13723 = vmatpush3.bf16.msra.mxu1 %v14640_v22 }
0x170e   :  { %v6602_v43 = vpack.c.bf16 %v6594_v29, %v6593_v39  ;;  %13724 = vmatprep.subr.bf16.mxu1 %v14641_v62 }
0x1710   :  { %13719 = vmatmul.mubr.msk.bf16.vlgmr.msra.gmra.mrb[160].mxu0 %vm2750_vm2, %v6602_v43 }
0x1711   :  { %13725 = vmatpush3.bf16.msra.mxu1 %v14641_v62 }
0x1712   :  { %13726 = vmatprep.subr.bf16.mxu1 %v14642_v61 }
0x1715   :  { %13727 = vmatpush3.bf16.msra.mxu1 %v14642_v61 }
0x1716   :  { %13728 = vmatprep.subr.bf16.mxu1 %v14643_v21 }
0x1719   :  { %13729 = vmatpush3.bf16.msra.mxu1 %v14643_v21 }
0x17c3   :  { %v17338_v63 = vpop.f32.mrb[160].mxu1 }
0x17c4   :  { %v13678_v1 = vpop.f32.mrb[161].mxu1 }
0x17c5   :  { %v17340_v57 = vpop.f32.mrb[162].mxu1 }
0x17c6   :  { %v13679_v0 = vpop.f32.mrb[163].mxu1 }
0x17c7   :  { %v17367_v0 = vld [vmem:[%s18831_s17 + $0x10] sm:$0xff] }
0x17ca   :  { %v6688_v38 = vpop.f32.mrb[148].mxu0 }
0x17cb   :  { %v13684_v15 = vpop.f32.mrb[149].mxu0 }
0x17cc   :  { %v6691_v40 = vpop.f32.mrb[150].mxu0 }
0x17cd   :  { %v14252_v53 = vpack.i.bf16 %v6691_v40, %v6688_v38  ;;  %v13685_v44 = vpop.f32.mrb[151].mxu0  ;;  %v5651_v38 = vrot.slane %v17367_v0, %v16564_v11 }
0x17cf   :  { %v6735_v42 = vpop.f32.mrb[164].mxu1  ;;  %14253 = vrot.lane.b32.xlu0 %v14252_v53, %s15224_s16  ;;  %v5735_v15 = vadd.f32 %v17131_v58, %v5651_v38  ;;  %v5743_v40 = vadd.f32 %v17129_v10, %v5651_v38  ;;  %v5746_v22 = vadd.f32 %v17133_v52, %v5651_v38 }
0x17d0   :  { %v13690_v5 = vpop.f32.mrb[165].mxu1 }
0x17d1   :  { %v6738_v60 = vpop.f32.mrb[166].mxu1  ;;  %v5749_v53 = vadd.f32 %v5735_v15, %v17006_v45  ;;  %v5751_v44 = vadd.f32 %v5743_v40, %v17014_v4  ;;  %v5738_v5 = vadd.f32 %v17135_v14, %v5651_v38 }
0x17d2   :  { %v14257_v46 = vpack.i.bf16 %v6738_v60, %v6735_v42  ;;  %v13691_v37 = vpop.f32.mrb[167].mxu1  ;;  %v5752_v60 = vadd.f32 %v5746_v22, %v17016_v28 }
0x17d3   :  { %v6782_v31 = vpop.f32.mrb[152].mxu0  ;;  %v5753_v42 = vsel %vm2675_vm0, %v5749_v53, 0.0  ;;  %v5750_v37 = vadd.f32 %v5738_v5, %v17008_v55 }
0x17d4   :  { %14258 = vrot.lane.b32.xlu1 %v14257_v46, %s15221_s23  ;;  %v13696_v36 = vpop.f32.mrb[153].mxu0  ;;  %v5759_v46 = vsel %vm2675_vm0, %v5751_v44, 0.0  ;;  %v5762_v10 = vsel %vm2675_vm0, %v5752_v60, 0.0 }
0x17d5   :  { %v6785_v9 = vpop.f32.mrb[154].mxu0  ;;  %v5756_v45 = vsel %vm2675_vm0, %v5750_v37, 0.0 }
0x17d6   :  { %v14262_v26 = vpack.i.bf16 %v6785_v9, %v6782_v31  ;;  %v13697_v2 = vpop.f32.mrb[155].mxu0 }
0x17d7   :  { %v17350_v49 = vpop.f32.mrb[168].mxu1 }
0x17d8   :  { %v13702_v17 = vpop.f32.mrb[169].mxu1  ;;  %14263 = vrot.lane.b32.xlu1 %v14262_v26, %s15222_s22 }
0x17d9   :  { %v17356_v41 = vpop.f32.mrb[170].mxu1 }
0x17da   :  { %v13703_v33 = vpop.f32.mrb[171].mxu1 }
0x17db   :  { %v6904_v23 = vpop.f32.mrb[156].mxu0 }
0x17dc   :  { %v13708_v35 = vpop.f32.mrb[157].mxu0 }
0x17dd   :  { %v6907_v30 = vpop.f32.mrb[158].mxu0 }
0x17de   :  { %v14267_v3 = vpack.i.bf16 %v6907_v30, %v6904_v23  ;;  %v13709_v47 = vpop.f32.mrb[159].mxu0 }
0x17df   :  { %v6951_v16 = vpop.f32.mrb[172].mxu1 }
0x17e0   :  { %v13714_v13 = vpop.f32.mrb[173].mxu1  ;;  %14268 = vrot.lane.b32.xlu0 %v14267_v3, %s15224_s16 }
0x17e1   :  { %v6954_v48 = vpop.f32.mrb[174].mxu1 }
0x17e2   :  { %v14272_v50 = vpack.i.bf16 %v6954_v48, %v6951_v16  ;;  %v13715_v51 = vpop.f32.mrb[175].mxu1 }
0x17e3   :  { %v6998_v20 = vpop.f32.mrb[160].mxu0 }
0x17e4   :  { %14273 = vrot.lane.b32.xlu0 %v14272_v50, %s15221_s23  ;;  %v13720_v39 = vpop.f32.mrb[161].mxu0 }
0x17e5   :  { %v7001_v29 = vpop.f32.mrb[162].mxu0 }
0x17e6   :  { %v14277_v43 = vpack.i.bf16 %v7001_v29, %v6998_v20  ;;  %v13721_v1 = vpop.f32.mrb[163].mxu0 }
0x17e8   :  { %14278 = vrot.lane.b32.xlu1 %v14277_v43, %s15222_s22 }
0x1803   :  { %5754 = vadd.xlane.f32.xlu0 %v5753_v42 }
0x1807   :  { %5760 = vadd.xlane.f32.xlu0 %v5759_v46 }
0x180b   :  { %5763 = vadd.xlane.f32.xlu0 %v5762_v10 }
0x180c   :  { %5757 = vadd.xlane.f32.xlu1 %v5756_v45 }
0x1841   :  { %v14254_v4 = vpop.permute.xlu0 %14253 }
0x1842   :  { %v14256_v52 = vunpack.i.h.bf16 %v14254_v4  ;;  %v14255_v31 = vunpack.i.l.bf16 %v14254_v4 }
0x1844   :  { %v6814_v28 = vsel %vm2750_vm2, %v17340_v57, %v14256_v52  ;;  %v6813_v55 = vsel %vm2750_vm2, %v17338_v63, %v14255_v31 }
0x1846   :  { %v14259_v58 = vpop.permute.xlu1 %14258 }
0x1847   :  { %v14261_v62 = vunpack.i.h.bf16 %v14259_v58  ;;  %v14260_v14 = vunpack.i.l.bf16 %v14259_v58 }
0x1849   :  { %v6815_v2 = vsel %vm3550_vm3, %v6813_v55, %v14260_v14  ;;  %v6816_v61 = vsel %vm3550_vm3, %v6814_v28, %v14261_v62 }
0x184a   :  { %v14264_v36 = vpop.permute.xlu1 %14263 }
0x184b   :  { %v14266_v9 = vunpack.i.h.bf16 %v14264_v36  ;;  %v14265_v26 = vunpack.i.l.bf16 %v14264_v36 }
0x184d   :  { %v6818_v17 = vsel %vm3553_vm4, %v6816_v61, %v14266_v9  ;;  %v6817_v33 = vsel %vm3553_vm4, %v6815_v2, %v14265_v26 }
0x184e   :  { %v7035_v23 = vpack.c.bf16 %v6818_v17, %v6817_v33 }
0x1850   :  { %13730 = vmatprep.mubr.msk.bf16.mxu1 %vm2675_vm0, %v7035_v23 }
0x1852   :  { %v14269_v21 = vpop.permute.xlu0 %14268 }
0x1853   :  { %v14271_v30 = vunpack.i.h.bf16 %v14269_v21  ;;  %v14270_v57 = vunpack.i.l.bf16 %v14269_v21  ;;  %v5808_v21 = vrot.slane %v17367_v0, %v16602_v56 }
0x1855   :  { %v7030_v16 = vsel %vm2750_vm2, %v17356_v41, %v14271_v30  ;;  %v7029_v13 = vsel %vm2750_vm2, %v17350_v49, %v14270_v57 }
0x1856   :  { %v14274_v35 = vpop.permute.xlu0 %14273 }
0x1857   :  { %v14276_v3 = vunpack.i.h.bf16 %v14274_v35  ;;  %v14275_v47 = vunpack.i.l.bf16 %v14274_v35 }
0x1859   :  { %v7031_v51 = vsel %vm3550_vm3, %v7029_v13, %v14275_v47  ;;  %v7032_v20 = vsel %vm3550_vm3, %v7030_v16, %v14276_v3  ;;  %v17412_v13 = vld [vmem:[%s18836_s18] sm:$0xff] }
0x185a   :  { %v14279_v63 = vpop.permute.xlu1 %14278 }
0x185b   :  { %v14281_v48 = vunpack.i.h.bf16 %v14279_v63  ;;  %v14280_v50 = vunpack.i.l.bf16 %v14279_v63  ;;  %v5816_v63 = vrot.slane %v17367_v0, %v16607_v12 }
0x185d   :  { %v7034_v39 = vsel %vm3553_vm4, %v7032_v20, %v14281_v48  ;;  %v7033_v29 = vsel %vm3553_vm4, %v7031_v51, %v14280_v50  ;;  %v7040_v48 = vrot.slane %v17412_v13, %v16114_v8 }
0x185e   :  { %v7036_v43 = vpack.c.bf16 %v7034_v39, %v7033_v29 }
0x1860   :  { %13731 = vmatmul.mubr.msk.bf16.vlgmr.msra.gmra.mrb[176].mxu1 %vm2675_vm0, %v7036_v43 }
0x1890   :  { %v5755_v1 = vpop.xlane.xlu0 %5754 }
0x1891   :  { %v5765_v38 = vmul.f32 0.015625, %v5755_v1 }
0x1893   :  { %v5769_v15 = vsub.f32 %v5749_v53, %v5765_v38 }
0x1894   :  { %v5761_v41 = vpop.xlane.xlu0 %5760 }
0x1895   :  { %v5767_v40 = vmul.f32 0.015625, %v5761_v41  ;;  %v5773_v22 = vmul.f32 %v5769_v15, %v5769_v15 }
0x1897   :  { %v5771_v49 = vsub.f32 %v5751_v44, %v5767_v40  ;;  %v5777_v42 = vsel %vm2675_vm0, %v5773_v22, 0.0 }
0x1898   :  { %5778 = vadd.xlane.f32.xlu1 %v5777_v42  ;;  %v5764_v5 = vpop.xlane.xlu0 %5763 }
0x1899   :  { %v5768_v46 = vmul.f32 0.015625, %v5764_v5  ;;  %v5758_v10 = vpop.xlane.xlu1 %5757  ;;  %v5775_v45 = vmul.f32 %v5771_v49, %v5771_v49 }
0x189a   :  { %v5766_v4 = vmul.f32 0.015625, %v5758_v10 }
0x189b   :  { %v5783_v58 = vsel %vm2675_vm0, %v5775_v45, 0.0  ;;  %v5772_v52 = vsub.f32 %v5752_v60, %v5768_v46 }
0x189c   :  { %v5770_v31 = vsub.f32 %v5750_v37, %v5766_v4  ;;  %5784 = vadd.xlane.f32.xlu1 %v5783_v58 }
0x189d   :  { %v5776_v14 = vmul.f32 %v5772_v52, %v5772_v52 }
0x189e   :  { %v5774_v62 = vmul.f32 %v5770_v31, %v5770_v31 }
0x189f   :  { %v5786_v44 = vsel %vm2675_vm0, %v5776_v14, 0.0 }
0x18a0   :  { %v5780_v53 = vsel %vm2675_vm0, %v5774_v62, 0.0 }
0x18a1   :  { %5781 = vadd.xlane.f32.xlu0 %v5780_v53 }
0x18a5   :  { %5787 = vadd.xlane.f32.xlu0 %v5786_v44 }
0x1925   :  { %v5779_v36 = vpop.xlane.xlu1 %5778 }
0x1926   :  { %v5789_v28 = vmul.f32 0.015625, %v5779_v36 }
0x1928   :  { %v5793_v55 = vadd.f32 1e-05, %v5789_v28 }
0x1929   :  { %v5785_v9 = vpop.xlane.xlu1 %5784 }
0x192a   :  { %14928 = vrsqrt.f32 %v5793_v55  ;;  %v5791_v26 = vmul.f32 0.015625, %v5785_v9 }
0x192c   :  { %v5795_v2 = vadd.f32 1e-05, %v5791_v26 }
0x192e   :  { %14930 = vrsqrt.f32 %v5795_v2  ;;  %v5782_v61 = vpop.xlane.xlu0 %5781 }
0x192f   :  { %v5790_v60 = vmul.f32 0.015625, %v5782_v61 }
0x1931   :  { %v5794_v37 = vadd.f32 1e-05, %v5790_v60 }
0x1932   :  { %v5788_v17 = vpop.xlane.xlu0 %5787 }
0x1933   :  { %14932 = vrsqrt.f32 %v5794_v37  ;;  %v5792_v33 = vmul.f32 0.015625, %v5788_v17  ;;  %v13732_v23 = vpop.f32.mrb[176].mxu1 }
0x1934   :  { %v14929_v35 = vpop.eup %14928  ;;  %v7105_v30 = vpop.f32.mrb[177].mxu1  ;;  %v7114_v41 = vadd.f32 %v13732_v23, %v7040_v48 }
0x1935   :  { %v5796_v57 = vadd.f32 1e-05, %v5792_v33  ;;  %v13733_v3 = vpop.f32.mrb[178].mxu1  ;;  %v5801_v47 = vmul.f32 %v14929_v35, %v5769_v15  ;;  %v7106_v29 = vadd.f32 %v7105_v30, %v7040_v48 }
0x1936   :  { %v7108_v16 = vpop.f32.mrb[179].mxu1  ;;  %v7117_v53 = vadd.f32 %v13733_v3, %v7040_v48 }
0x1937   :  { %14934 = vrsqrt.f32 %v5796_v57  ;;  %v5809_v50 = vmul.f32 %v5808_v21, %v5801_v47  ;;  %v7120_v40 = vadd.f32 %v7106_v29, %v16124_v18  ;;  %v7109_v4 = vadd.f32 %v7108_v16, %v7040_v48 }
0x1938   :  { %v14931_v51 = vpop.eup %14930 }
0x1939   :  { %v5817_v20 = vadd.f32 %v5816_v63, %v5809_v50  ;;  %v5803_v39 = vmul.f32 %v14931_v51, %v5771_v49  ;;  %v7122_v49 = vadd.f32 %v7114_v41, %v16143_v25  ;;  %v7124_v45 = vsel %vm2675_vm0, %v7120_v40, 0.0 }
0x193a   :  { %v7121_v14 = vadd.f32 %v7109_v4, %v16126_v19  ;;  %v7123_v25 = vadd.f32 %v7117_v53, %v16141_v24  ;;  %v14645_v4 = vld [vmem:[%s18838_s11 + $0x8] sm:$0xff]   ;;  %v14650_v53 = vld [vmem:[%s18839_s10 + $0x10] sm:$0xff]  }
0x193b   :  { %v5821_v43 = vsel %vm2675_vm0, %v5817_v20, 0.0  ;;  %v5811_v1 = vmul.f32 %v5808_v21, %v5803_v39  ;;  %v7130_v18 = vsel %vm2675_vm0, %v7122_v49, 0.0 }
0x193c   :  { %5822 = vadd.xlane.f32.xlu1 %v5821_v43  ;;  %v7133_v36 = vsel %vm2675_vm0, %v7123_v25, 0.0 }
0x193d   :  { %v14933_v0 = vpop.eup %14932  ;;  %v5819_v38 = vadd.f32 %v5816_v63, %v5811_v1 }
0x193e   :  { %v5802_v15 = vmul.f32 %v14933_v0, %v5770_v31 }
0x193f   :  { %v5827_v22 = vsel %vm2675_vm0, %v5819_v38, 0.0 }
0x1940   :  { %5828 = vadd.xlane.f32.xlu1 %v5827_v22  ;;  %v5810_v42 = vmul.f32 %v5808_v21, %v5802_v15 }
0x1941   :  { %v14935_v5 = vpop.eup %14934 }
0x1942   :  { %v5818_v46 = vadd.f32 %v5816_v63, %v5810_v42  ;;  %v5804_v10 = vmul.f32 %v14935_v5, %v5772_v52  ;;  %v7127_v52 = vsel %vm2675_vm0, %v7121_v14, 0.0 }
0x1944   :  { %7125 = vadd.xlane.f32.xlu1 %v7124_v45  ;;  %v5824_v58 = vsel %vm2675_vm0, %v5818_v46, 0.0  ;;  %v5812_v62 = vmul.f32 %v5808_v21, %v5804_v10  ;;  %v14644_v45 = vld [vmem:[%s18838_s11] sm:$0xff]  }
0x1945   :  { %5825 = vadd.xlane.f32.xlu0 %v5824_v58  ;;  %13746 = vmatprep.subr.bf16.mxu1 %v14644_v45  ;;  %v14646_v58 = vld [vmem:[%s18839_s10] sm:$0xff]  }
0x1946   :  { %v5820_v31 = vadd.f32 %v5816_v63, %v5812_v62  ;;  %13747 = vmatpush3.bf16.msra.mxu1 %v14644_v45  ;;  %v14647_v62 = vld [vmem:[%s18838_s11 + $0x10] sm:$0xff]   ;;  %13734 = vmatprep.subr.bf16.mxu0 %v14646_v58 }
0x1947   :  { %13748 = vmatprep.subr.bf16.mxu1 %v14645_v4  ;;  %13735 = vmatpush3.bf16.msra.mxu0 %v14646_v58  ;;  %v7179_v58 = vrot.slane %v17412_v13, %v16528_v54 }
0x1948   :  { %7131 = vadd.xlane.f32.xlu1 %v7130_v18  ;;  %v5830_v44 = vsel %vm2675_vm0, %v5820_v31, 0.0  ;;  %v14649_v18 = vld [vmem:[%s18838_s11 + $0x18] sm:$0xff]  }
0x1949   :  { %5831 = vadd.xlane.f32.xlu0 %v5830_v44 }
0x194a   :  { %13749 = vmatpush3.bf16.msra.mxu1 %v14645_v4 }
0x194b   :  { %13750 = vmatprep.subr.bf16.mxu1 %v14647_v62 }
0x194d   :  { %7128 = vadd.xlane.f32.xlu0 %v7127_v52 }
0x194e   :  { %13751 = vmatpush3.bf16.msra.mxu1 %v14647_v62 }
0x194f   :  { %13752 = vmatprep.subr.bf16.mxu1 %v14649_v18 }
0x1951   :  { %7134 = vadd.xlane.f32.xlu0 %v7133_v36 }
0x1952   :  { %13753 = vmatpush3.bf16.msra.mxu1 %v14649_v18 }
0x1953   :  { %13770 = vmatprep.subr.bf16.mxu1 %v15217_v27 }
0x19c9   :  { %v5823_v28 = vpop.xlane.xlu1 %5822 }
0x19ca   :  { %v5833_v55 = vmul.f32 0.015625, %v5823_v28 }
0x19cc   :  { %v17428_v9 = vsub.f32 %v5817_v20, %v5833_v55 }
0x19cd   :  { %v5829_v26 = vpop.xlane.xlu1 %5828 }
0x19ce   :  { %v5835_v2 = vmul.f32 0.015625, %v5829_v26  ;;  %v5841_v19 = vmul.f32 %v17428_v9, %v17428_v9 }
0x19d0   :  { %v17432_v61 = vsub.f32 %v5819_v38, %v5835_v2  ;;  %v5845_v60 = vsel %vm2675_vm0, %v5841_v19, 0.0 }
0x19d1   :  { %5846 = vadd.xlane.f32.xlu1 %v5845_v60  ;;  %v7126_v24 = vpop.xlane.xlu1 %7125 }
0x19d2   :  { %v7136_v37 = vmul.f32 0.015625, %v7126_v24  ;;  %v5826_v17 = vpop.xlane.xlu0 %5825  ;;  %v5843_v33 = vmul.f32 %v17432_v61, %v17432_v61 }
0x19d3   :  { %v5834_v23 = vmul.f32 0.015625, %v5826_v17 }
0x19d4   :  { %v17437_v21 = vsub.f32 %v7120_v40, %v7136_v37  ;;  %v5851_v35 = vsel %vm2675_vm0, %v5843_v33, 0.0 }
0x19d5   :  { %v17440_v30 = vsub.f32 %v5818_v46, %v5834_v23  ;;  %5852 = vadd.xlane.f32.xlu1 %v5851_v35  ;;  %v7132_v57 = vpop.xlane.xlu1 %7131 }
0x19d6   :  { %v7138_v3 = vmul.f32 0.015625, %v7132_v57  ;;  %v5832_v47 = vpop.xlane.xlu0 %5831  ;;  %v7144_v63 = vmul.f32 %v17437_v21, %v17437_v21 }
0x19d7   :  { %v5836_v16 = vmul.f32 0.015625, %v5832_v47  ;;  %v5842_v48 = vmul.f32 %v17440_v30, %v17440_v30 }
0x19d8   :  { %v17446_v50 = vsub.f32 %v7122_v49, %v7138_v3  ;;  %v7148_v51 = vsel %vm2675_vm0, %v7144_v63, 0.0 }
0x19d9   :  { %v17449_v20 = vsub.f32 %v5820_v31, %v5836_v16  ;;  %7149 = vadd.xlane.f32.xlu1 %v7148_v51  ;;  %v5848_v39 = vsel %vm2675_vm0, %v5842_v48, 0.0  ;;  %v14648_v31 = vld [vmem:[%s18839_s10 + $0x8] sm:$0xff]   ;;  %v2614_v16 = vld [vmem:[%s18840_s19] sm:$0x1f] }
0x19da   :  { %5849 = vadd.xlane.f32.xlu0 %v5848_v39  ;;  %v7129_v29 = vpop.xlane.xlu0 %7128  ;;  %v7146_v43 = vmul.f32 %v17446_v50, %v17446_v50  ;;  %13736 = vmatprep.subr.bf16.mxu0 %v14648_v31 }
0x19db   :  { %v7137_v1 = vmul.f32 0.015625, %v7129_v29  ;;  %v5844_v0 = vmul.f32 %v17449_v20, %v17449_v20  ;;  %13737 = vmatpush3.bf16.msra.mxu0 %v14648_v31  ;;  %v5876_v29 = vrot.slane %v2614_v16, %v16055_v34 }
0x19dc   :  { %v7154_v38 = vsel %vm2675_vm0, %v7146_v43, 0.0  ;;  %13738 = vmatprep.subr.bf16.mxu0 %v14650_v53 }
0x19dd   :  { %v17457_v15 = vsub.f32 %v7121_v14, %v7137_v1  ;;  %7155 = vadd.xlane.f32.xlu1 %v7154_v38  ;;  %v5854_v41 = vsel %vm2675_vm0, %v5844_v0, 0.0  ;;  %v14651_v14 = vld [vmem:[%s18839_s10 + $0x18] sm:$0xff]  }
0x19de   :  { %5855 = vadd.xlane.f32.xlu0 %v5854_v41  ;;  %v7135_v40 = vpop.xlane.xlu0 %7134 }
0x19df   :  { %v7139_v22 = vmul.f32 0.015625, %v7135_v40  ;;  %v7145_v42 = vmul.f32 %v17457_v15, %v17457_v15  ;;  %13739 = vmatpush3.bf16.msra.mxu0 %v14650_v53 }
0x19e0   :  { %13740 = vmatprep.subr.bf16.mxu0 %v14651_v14 }
0x19e1   :  { %v17462_v5 = vsub.f32 %v7123_v25, %v7139_v22  ;;  %v7151_v46 = vsel %vm2675_vm0, %v7145_v42, 0.0 }
0x19e2   :  { %7152 = vadd.xlane.f32.xlu0 %v7151_v46  ;;  %v5884_v46 = vrot.slane %v2614_v16, %v16114_v8 }
0x19e3   :  { %v7147_v10 = vmul.f32 %v17462_v5, %v17462_v5  ;;  %13741 = vmatpush3.bf16.msra.mxu0 %v14651_v14 }
0x19e4   :  { %13758 = vmatprep.subr.bf16.mxu0 %v15217_v27 }
0x19e5   :  { %v7157_v49 = vsel %vm2675_vm0, %v7147_v10, 0.0 }
0x19e6   :  { %7158 = vadd.xlane.f32.xlu0 %v7157_v49 }
0x1a5e   :  { %v5847_v44 = vpop.xlane.xlu1 %5846 }
0x1a5f   :  { %v5857_v25 = vmul.f32 0.015625, %v5847_v44 }
0x1a61   :  { %v5861_v52 = vadd.f32 1e-05, %v5857_v25  ;;  %v7187_v25 = vrot.slane %v17412_v13, %v16538_v59 }
0x1a62   :  { %v5853_v36 = vpop.xlane.xlu1 %5852 }
0x1a63   :  { %v5859_v28 = vmul.f32 0.015625, %v5853_v36  ;;  %14936 = vrsqrt.f32 %v5861_v52 }
0x1a65   :  { %v5863_v55 = vadd.f32 1e-05, %v5859_v28 }
0x1a66   :  { %v7150_v26 = vpop.xlane.xlu1 %7149 }
0x1a67   :  { %v7160_v2 = vmul.f32 0.015625, %v7150_v26  ;;  %v5850_v19 = vpop.xlane.xlu0 %5849  ;;  %14938 = vrsqrt.f32 %v5863_v55 }
0x1a68   :  { %v5858_v60 = vmul.f32 0.015625, %v5850_v19 }
0x1a69   :  { %v7164_v24 = vadd.f32 1e-05, %v7160_v2 }
0x1a6a   :  { %v5862_v37 = vadd.f32 1e-05, %v5858_v60  ;;  %v7156_v17 = vpop.xlane.xlu1 %7155 }
0x1a6b   :  { %v7162_v33 = vmul.f32 0.015625, %v7156_v17  ;;  %v5856_v23 = vpop.xlane.xlu0 %5855 }
0x1a6c   :  { %14940 = vrsqrt.f32 %v5862_v37  ;;  %v5860_v35 = vmul.f32 0.015625, %v5856_v23 }
0x1a6d   :  { %14942 = vrsqrt.f32 %v7164_v24  ;;  %v7166_v57 = vadd.f32 1e-05, %v7162_v33  ;;  %v14937_v63 = vpop.eup %14936  ;;  %v7300_v33 = vrot.slane %v17412_v13, %v16564_v11 }
0x1a6e   :  { %v5864_v3 = vadd.f32 1e-05, %v5860_v35  ;;  %v5869_v1 = vmul.f32 %v14937_v63, %v17428_v9 }
0x1a6f   :  { %v7153_v47 = vpop.xlane.xlu0 %7152 }
0x1a70   :  { %14944 = vrsqrt.f32 %v5864_v3  ;;  %v7161_v48 = vmul.f32 0.015625, %v7153_v47  ;;  %v5877_v42 = vmul.f32 %v5876_v29, %v5869_v1 }
0x1a71   :  { %14946 = vrsqrt.f32 %v7166_v57  ;;  %v14939_v39 = vpop.eup %14938 }
0x1a72   :  { %v7165_v51 = vadd.f32 1e-05, %v7161_v48  ;;  %v5871_v41 = vmul.f32 %v14939_v39, %v17432_v61  ;;  %v5885_v62 = vadd.f32 %v5884_v46, %v5877_v42 }
0x1a73   :  { %v7159_v43 = vpop.xlane.xlu0 %7158 }
0x1a74   :  { %14948 = vrsqrt.f32 %v7165_v51  ;;  %v7163_v0 = vmul.f32 0.015625, %v7159_v43  ;;  %v5879_v4 = vmul.f32 %v5876_v29, %v5871_v41 }
0x1a76   :  { %v14941_v38 = vpop.eup %14940  ;;  %v7167_v40 = vadd.f32 1e-05, %v7163_v0  ;;  %v5887_v44 = vadd.f32 %v5884_v46, %v5879_v4 }
0x1a77   :  { %v5870_v22 = vmul.f32 %v14941_v38, %v17440_v30  ;;  %v14943_v10 = vpop.eup %14942 }
0x1a78   :  { %14950 = vrsqrt.f32 %v7167_v40  ;;  %v7172_v61 = vmul.f32 %v14943_v10, %v17437_v21 }
0x1a79   :  { %v5878_v49 = vmul.f32 %v5876_v29, %v5870_v22 }
0x1a7a   :  { %v14945_v45 = vpop.eup %14944  ;;  %v7180_v28 = vmul.f32 %v7179_v58, %v7172_v61 }
0x1a7b   :  { %v5872_v9 = vmul.f32 %v14945_v45, %v17449_v20  ;;  %v5886_v31 = vadd.f32 %v5884_v46, %v5878_v49  ;;  %v14947_v18 = vpop.eup %14946 }
0x1a7c   :  { %v7174_v52 = vmul.f32 %v14947_v18, %v17446_v50  ;;  %v17519_v60 = vadd.f32 %v7187_v25, %v7180_v28 }
0x1a7d   :  { %v5880_v53 = vmul.f32 %v5876_v29, %v5872_v9  ;;  %v17506_v30 = vpack.c.bf16 %v5886_v31, %v5885_v62  ;;  %v7205_v29 = vrot.slane %v17412_v13, %v16557_v6 }
0x1a7e   :  { %v14949_v14 = vpop.eup %14948  ;;  %v7182_v2 = vmul.f32 %v7179_v58, %v7174_v52 }
0x1a7f   :  { %13754 = vmatprep.mubr.msk.bf16.mxu1 %vm2675_vm0, %v17506_v30  ;;  %v5888_v36 = vadd.f32 %v5884_v46, %v5880_v53  ;;  %v7173_v20 = vmul.f32 %v14949_v14, %v17457_v15 }
0x1a80   :  { %v17528_v37 = vadd.f32 %v7187_v25, %v7182_v2 }
0x1a81   :  { %v17514_v55 = vpack.c.bf16 %v5888_v36, %v5887_v44  ;;  %v7181_v21 = vmul.f32 %v7179_v58, %v7173_v20 }
0x1a82   :  { %v14951_v26 = vpop.eup %14950 }
0x1a83   :  { %v7175_v19 = vmul.f32 %v14951_v26, %v17462_v5  ;;  %13755 = vmatmul.mubr.msk.bf16.vlgmr.msra.gmra.mrb[180].mxu1 %vm2675_vm0, %v17514_v55  ;;  %v17521_v50 = vadd.f32 %v7187_v25, %v7181_v21 }
0x1a84   :  { %13772 = vmatprep.mubr.msk.bf16.mxu1 %vm15218_vm1, %v15217_v27 }
0x1a85   :  { %v7183_v24 = vmul.f32 %v7179_v58, %v7175_v19  ;;  %v7200_v15 = vpack.c.bf16 %v17521_v50, %v17519_v60 }
0x1a87   :  { %13742 = vmatprep.mubr.msk.bf16.mxu0 %vm2675_vm0, %v7200_v15  ;;  %v17530_v17 = vadd.f32 %v7187_v25, %v7183_v24 }
0x1a89   :  { %v7201_v5 = vpack.c.bf16 %v17530_v17, %v17528_v37 }
0x1a8b   :  { %13743 = vmatmul.mubr.msk.bf16.vlgmr.msra.gmra.mrb[164].mxu0 %vm2675_vm0, %v7201_v5 }
0x1a8c   :  { %13760 = vmatprep.mubr.msk.bf16.mxu0 %vm15218_vm1, %v15217_v27 }
0x1b56   :  { %v13756_v23 = vpop.f32.mrb[180].mxu1 }
0x1b57   :  { %v7365_v35 = vpop.f32.mrb[181].mxu1  ;;  %v7374_v3 = vadd.f32 %v13756_v23, %v7300_v33 }
0x1b58   :  { %v13757_v57 = vpop.f32.mrb[182].mxu1  ;;  %v7366_v16 = vadd.f32 %v7365_v35, %v7300_v33 }
0x1b59   :  { %v7377_v47 = vadd.f32 %v13757_v57, %v7300_v33  ;;  %v7368_v63 = vpop.f32.mrb[183].mxu1 }
0x1b5a   :  { %v7369_v48 = vadd.f32 %v7368_v63, %v7300_v33 }
0x1b5b   :  { %v17539_v51 = vpack.c.bf16 %v7377_v47, %v7374_v3 }
0x1b5c   :  { %v17541_v39 = vpack.c.bf16 %v7369_v48, %v7366_v16 }
0x1b5d   :  { %v7596_v31 = vsel %vm2750_vm2, %v17539_v51, 0 }
0x1b5e   :  { %7492 = vrot.lane.b32.xlu0 %v17541_v39, %s18864_s26  ;;  %7441 = vrot.lane.b32.xlu1 %v17541_v39, %s15219_s30  ;;  %v13744_v43 = vpop.f32.mrb[164].mxu0  ;;  %v7394_v1 = vsel %vm2750_vm2, %v17541_v39, 0 }
0x1b5f   :  { %v7270_v0 = vpop.f32.mrb[165].mxu0  ;;  %13759 = vmatpush3.bf16.xpose.msra.mxu0 %v7394_v1  ;;  %v7279_v41 = vadd.f32 %v13744_v43, %v7205_v29 }
0x1b60   :  { %v13745_v38 = vpop.f32.mrb[166].mxu0  ;;  %13764 = vmatprep.subr.bf16.mxu0 %v15217_v27  ;;  %v7271_v42 = vadd.f32 %v7270_v0, %v7205_v29 }
0x1b61   :  { %v7282_v40 = vadd.f32 %v13745_v38, %v7205_v29  ;;  %v7273_v22 = vpop.f32.mrb[167].mxu0 }
0x1b62   :  { %v7274_v13 = vadd.f32 %v7273_v22, %v7205_v29 }
0x1b63   :  { %v7286_v46 = vpack.c.bf16 %v7282_v40, %v7279_v41 }
0x1b64   :  { %v7285_v10 = vpack.c.bf16 %v7274_v13, %v7271_v42 }
0x1b66   :  { %7490 = vrot.lane.b32.xlu0 %v7285_v10, %s18864_s26  ;;  %7438 = vrot.lane.b32.xlu1 %v7285_v10, %s15219_s30 }
0x1b67   :  { %13761 = vmatmul.mubr.msk.bf16.vlgmr.msra.gmra.mrb[168].mxu0 %vm2750_vm2, %v7285_v10 }
0x1b68   :  { %13766 = vmatprep.mubr.msk.bf16.mxu0 %vm15218_vm1, %v15217_v27 }
0x1b6a   :  { %7643 = vrot.lane.b32.xlu0 %v17539_v51, %s15219_s30  ;;  %7543 = vrot.lane.b32.xlu1 %v17541_v39, %s18865_s2 }
0x1b6e   :  { %7640 = vrot.lane.b32.xlu0 %v7286_v46, %s15219_s30  ;;  %7541 = vrot.lane.b32.xlu1 %v7285_v10, %s18865_s2 }
0x1b72   :  { %7692 = vrot.lane.b32.xlu0 %v7286_v46, %s18864_s26  ;;  %7694 = vrot.lane.b32.xlu1 %v17539_v51, %s18864_s26 }
0x1b76   :  { %7745 = vrot.lane.b32.xlu1 %v17539_v51, %s18865_s2 }
0x1b7a   :  { %7743 = vrot.lane.b32.xlu1 %v7286_v46, %s18865_s2 }
0x1b7e   :  { %7978 = vrot.lane.b32.xlu1 %v17541_v39, %s15220_s21 }
0x1bd0   :  { %v7442_v49 = vpop.permute.xlu1 %7441  ;;  %v7493_v45 = vpop.permute.xlu0 %7492 }
0x1bd1   :  { %v7447_v4 = vsel %vm2750_vm2, %v7442_v49, 0  ;;  %v7498_v58 = vsel %vm2750_vm2, %v7493_v45, 0 }
0x1bd2   :  { %13765 = vmatpush3.bf16.xpose.msra.mxu0 %v7447_v4  ;;  %13771 = vmatpush3.bf16.xpose.msra.mxu1 %v7498_v58 }
0x1bd3   :  { %13782 = vmatprep.subr.bf16.mxu1 %v15217_v27  ;;  %13776 = vmatprep.subr.bf16.mxu0 %v15217_v27 }
0x1bd8   :  { %v7439_v9 = vpop.permute.xlu1 %7438  ;;  %v7491_v62 = vpop.permute.xlu0 %7490 }
0x1bd9   :  { %13767 = vmatmul.mubr.msk.bf16.vlgmr.msra.gmra.mrb[172].mxu0 %vm2750_vm2, %v7439_v9  ;;  %13773 = vmatmul.mubr.msk.bf16.vlgmr.msra.gmra.mrb[184].mxu1 %vm2750_vm2, %v7491_v62 }
0x1bda   :  { %13783 = vmatpush3.bf16.xpose.msra.mxu1 %v7596_v31  ;;  %13784 = vmatprep.mubr.msk.bf16.mxu1 %vm15218_vm1, %v15217_v27 }
0x1bdb   :  { %13778 = vmatprep.mubr.msk.bf16.mxu0 %vm15218_vm1, %v15217_v27  ;;  %13794 = vmatprep.subr.bf16.mxu1 %v15217_v27 }
0x1bdc   :  { %v7544_v61 = vpop.permute.xlu1 %7543  ;;  %v7644_v53 = vpop.permute.xlu0 %7643 }
0x1bdd   :  { %v7549_v18 = vsel %vm2750_vm2, %v7544_v61, 0  ;;  %v7649_v25 = vsel %vm2750_vm2, %v7644_v53, 0 }
0x1bde   :  { %13777 = vmatpush3.bf16.xpose.msra.mxu0 %v7549_v18 }
0x1bdf   :  { %13788 = vmatprep.subr.bf16.mxu0 %v15217_v27 }
0x1be0   :  { %v7542_v14 = vpop.permute.xlu1 %7541  ;;  %v7641_v36 = vpop.permute.xlu0 %7640 }
0x1be1   :  { %13785 = vmatmul.mubr.msk.bf16.vlgmr.msra.gmra.mrb[188].mxu1 %vm2750_vm2, %v7286_v46 }
0x1be2   :  { %13796 = vmatprep.mubr.msk.bf16.mxu1 %vm15218_vm1, %v15217_v27 }
0x1be4   :  { %v7695_v44 = vpop.permute.xlu1 %7694  ;;  %v7693_v28 = vpop.permute.xlu0 %7692 }
0x1be5   :  { %v7700_v52 = vsel %vm2750_vm2, %v7695_v44, 0  ;;  %13779 = vmatmul.mubr.msk.bf16.vlgmr.msra.gmra.mrb[176].mxu0 %vm2750_vm2, %v7542_v14 }
0x1be6   :  { %13789 = vmatpush3.bf16.xpose.msra.mxu0 %v7649_v25  ;;  %13795 = vmatpush3.bf16.xpose.msra.mxu1 %v7700_v52 }
0x1be7   :  { %13790 = vmatprep.mubr.msk.bf16.mxu0 %vm15218_vm1, %v15217_v27  ;;  %13800 = vmatprep.subr.bf16.mxu0 %v15217_v27 }
0x1be8   :  { %v7746_v20 = vpop.permute.xlu1 %7745  ;;  %13806 = vmatprep.subr.bf16.mxu1 %v15217_v27 }
0x1be9   :  { %v7751_v26 = vsel %vm2750_vm2, %v7746_v20, 0 }
0x1bec   :  { %v7744_v21 = vpop.permute.xlu1 %7743 }
0x1bed   :  { %13791 = vmatmul.mubr.msk.bf16.vlgmr.msra.gmra.mrb[180].mxu0 %vm2750_vm2, %v7641_v36  ;;  %13797 = vmatmul.mubr.msk.bf16.vlgmr.msra.gmra.mrb[192].mxu1 %vm2750_vm2, %v7693_v28 }
0x1bee   :  { %13801 = vmatpush3.bf16.xpose.msra.mxu0 %v7751_v26  ;;  %13802 = vmatprep.mubr.msk.bf16.mxu0 %vm15218_vm1, %v15217_v27 }
0x1bef   :  { %13812 = vmatprep.subr.bf16.mxu0 %v15217_v27  ;;  %13808 = vmatprep.mubr.msk.bf16.mxu1 %vm15218_vm1, %v15217_v27 }
0x1bf0   :  { %v7979_v2 = vpop.permute.xlu1 %7978 }
0x1bf1   :  { %13807 = vmatpush3.bf16.msra.mxu1 %v7979_v2 }
0x1bf2   :  { %13818 = vmatprep.subr.bf16.mxu1 %v15217_v27 }
0x1bf5   :  { %13803 = vmatmul.mubr.msk.bf16.vlgmr.msra.gmra.mrb[184].mxu0 %vm2750_vm2, %v7744_v21 }
0x1bf6   :  { %13814 = vmatprep.mubr.msk.bf16.mxu0 %vm15218_vm1, %v15217_v27 }
0x1c3a   :  { %v17608_v19 = vpop.f32.mrb[168].mxu0 }
0x1c3b   :  { %v13762_v24 = vpop.f32.mrb[169].mxu0  ;;  %v7794_v15 = vsel %vm2750_vm2, %v17608_v19, -inf }
0x1c3c   :  { %7795 = vmax.xlane.f32.xlu0 %v7794_v15  ;;  %v17612_v5 = vpop.f32.mrb[170].mxu0 }
0x1c3d   :  { %v13763_v33 = vpop.f32.mrb[171].mxu0  ;;  %v7797_v23 = vsel %vm2750_vm2, %v17612_v5, -inf }
0x1c3e   :  { %7798 = vmax.xlane.f32.xlu1 %v7797_v23 }
0x1cac   :  { %v17616_v35 = vpop.f32.mrb[172].mxu0  ;;  %v17618_v57 = vpop.f32.mrb[184].mxu1 }
0x1cad   :  { %v13768_v3 = vpop.f32.mrb[173].mxu0  ;;  %v13774_v47 = vpop.f32.mrb[185].mxu1  ;;  %v7800_v63 = vsel %vm2750_vm2, %v17616_v35, -inf  ;;  %v7806_v16 = vsel %vm2750_vm2, %v17618_v57, -inf }
0x1cae   :  { %7801 = vmax.xlane.f32.xlu0 %v7800_v63  ;;  %v17624_v48 = vpop.f32.mrb[174].mxu0  ;;  %7807 = vmax.xlane.f32.xlu1 %v7806_v16  ;;  %v17626_v29 = vpop.f32.mrb[186].mxu1 }
0x1caf   :  { %v13769_v43 = vpop.f32.mrb[175].mxu0  ;;  %v13775_v1 = vpop.f32.mrb[187].mxu1  ;;  %v7803_v0 = vsel %vm2750_vm2, %v17624_v48, -inf  ;;  %v7809_v40 = vsel %vm2750_vm2, %v17626_v29, -inf }
0x1cb2   :  { %7804 = vmax.xlane.f32.xlu0 %v7803_v0 }
0x1cb4   :  { %v17630_v38 = vpop.f32.mrb[188].mxu1 }
0x1cb5   :  { %v13786_v41 = vpop.f32.mrb[189].mxu1  ;;  %v7818_v58 = vsel %vm2750_vm2, %v17630_v38, -inf }
0x1cb6   :  { %7810 = vmax.xlane.f32.xlu0 %v7809_v40  ;;  %v17634_v22 = vpop.f32.mrb[190].mxu1 }
0x1cb7   :  { %v13787_v42 = vpop.f32.mrb[191].mxu1  ;;  %v7821_v9 = vsel %vm2750_vm2, %v17634_v22, -inf }
0x1cb8   :  { %v17636_v13 = vpop.f32.mrb[176].mxu0 }
0x1cb9   :  { %v13780_v46 = vpop.f32.mrb[177].mxu0  ;;  %v7812_v10 = vsel %vm2750_vm2, %v17636_v13, -inf }
0x1cba   :  { %v17640_v49 = vpop.f32.mrb[178].mxu0  ;;  %7813 = vmax.xlane.f32.xlu1 %v7812_v10 }
0x1cbb   :  { %v13781_v45 = vpop.f32.mrb[179].mxu0  ;;  %v7815_v4 = vsel %vm2750_vm2, %v17640_v49, -inf }
0x1cbc   :  { %7816 = vmax.xlane.f32.xlu0 %v7815_v4 }
0x1cbe   :  { %7819 = vmax.xlane.f32.xlu1 %v7818_v58 }
0x1cc0   :  { %7822 = vmax.xlane.f32.xlu0 %v7821_v9  ;;  %v17648_v62 = vpop.f32.mrb[180].mxu0  ;;  %v17650_v31 = vpop.f32.mrb[192].mxu1 }
0x1cc1   :  { %v13792_v61 = vpop.f32.mrb[181].mxu0  ;;  %v13798_v18 = vpop.f32.mrb[193].mxu1  ;;  %v7824_v53 = vsel %vm2750_vm2, %v17648_v62, -inf  ;;  %v7830_v20 = vsel %vm2750_vm2, %v17650_v31, -inf }
0x1cc2   :  { %7825 = vmax.xlane.f32.xlu1 %v7824_v53  ;;  %v17654_v14 = vpop.f32.mrb[182].mxu0  ;;  %v17656_v44 = vpop.f32.mrb[194].mxu1 }
0x1cc3   :  { %v13793_v25 = vpop.f32.mrb[183].mxu0  ;;  %v13799_v52 = vpop.f32.mrb[195].mxu1  ;;  %v7827_v36 = vsel %vm2750_vm2, %v17654_v14, -inf  ;;  %v7833_v28 = vsel %vm2750_vm2, %v17656_v44, -inf }
0x1cc4   :  { %7828 = vmax.xlane.f32.xlu0 %v7827_v36 }
0x1cc6   :  { %7831 = vmax.xlane.f32.xlu1 %v7830_v20 }
0x1cc8   :  { %v17664_v21 = vpop.f32.mrb[184].mxu0  ;;  %7834 = vmax.xlane.f32.xlu0 %v7833_v28 }
0x1cc9   :  { %v13804_v26 = vpop.f32.mrb[185].mxu0  ;;  %v7836_v2 = vsel %vm2750_vm2, %v17664_v21, -inf  ;;  %v7796_v3 = vpop.xlane.xlu0 %7795 }
0x1cca   :  { %v17668_v24 = vpop.f32.mrb[186].mxu0  ;;  %7837 = vmax.xlane.f32.xlu1 %v7836_v2  ;;  %v7842_v63 = vsub.f32 %v17608_v19, %v7796_v3 }
0x1ccb   :  { %v13805_v15 = vpop.f32.mrb[187].mxu0  ;;  %v7839_v33 = vsel %vm2750_vm2, %v17668_v24, -inf  ;;  %v7799_v23 = vpop.xlane.xlu1 %7798 }
0x1ccc   :  { %7840 = vmax.xlane.f32.xlu0 %v7839_v33  ;;  %v7843_v47 = vsub.f32 %v17612_v5, %v7799_v23  ;;  %v7858_v43 = vmul.f32 1.442695, %v7842_v63 }
0x1cce   :  { %v7860_v16 = vmul.f32 1.442695, %v7843_v47 }
0x1cd0   :  { %14952 = vpow2.f32 %v7860_v16 }
0x1cd1   :  { %14954 = vpow2.f32 %v7858_v43 }
0x1cda   :  { %v17684_v1 = vpop.eup %14952 }
0x1cdb   :  { %8072 = vrot.lane.b32.xlu1 %v17541_v39, %s15221_s23  ;;  %v17686_v0 = vpop.eup %14954 }
0x1cdc   :  { %v7890_v41 = vsel %vm2750_vm2, %v17686_v0, 0.0 }
0x1cdf   :  { %8119 = vrot.lane.b32.xlu1 %v17541_v39, %s15224_s16 }
0x1ce2   :  { %8025 = vrot.lane.b32.xlu0 %v17541_v39, %s15222_s22  ;;  %v7893_v39 = vsel %vm2750_vm2, %v17684_v1, 0.0 }
0x1ce3   :  { %8243 = vrot.lane.b32.xlu1 %v17539_v51, %s15222_s22 }
0x1ce6   :  { %8196 = vrot.lane.b32.xlu0 %v17539_v51, %s15220_s21 }
0x1d05   :  { %7894 = vadd.xlane.f32.xlu0 %v7893_v39 }
0x1d07   :  { %7891 = vadd.xlane.f32.xlu1 %v7890_v41 }
0x1d3b   :  { %v7808_v40 = vpop.xlane.xlu1 %7807  ;;  %v7802_v5 = vpop.xlane.xlu0 %7801 }
0x1d3c   :  { %v7846_v19 = vsub.f32 %v17618_v57, %v7808_v40  ;;  %v7844_v42 = vsub.f32 %v17616_v35, %v7802_v5 }
0x1d3e   :  { %v7862_v46 = vmul.f32 1.442695, %v7844_v42  ;;  %v7866_v10 = vmul.f32 1.442695, %v7846_v19 }
0x1d3f   :  { %v7805_v45 = vpop.xlane.xlu0 %7804 }
0x1d40   :  { %v7845_v4 = vsub.f32 %v17624_v48, %v7805_v45  ;;  %14956 = vpow2.f32 %v7862_v46 }
0x1d41   :  { %14958 = vpow2.f32 %v7866_v10 }
0x1d42   :  { %v7864_v58 = vmul.f32 1.442695, %v7845_v4 }
0x1d43   :  { %v7811_v9 = vpop.xlane.xlu0 %7810 }
0x1d44   :  { %14960 = vpow2.f32 %v7864_v58  ;;  %v7847_v61 = vsub.f32 %v17626_v29, %v7811_v9 }
0x1d46   :  { %v7868_v18 = vmul.f32 1.442695, %v7847_v61 }
0x1d47   :  { %v7814_v53 = vpop.xlane.xlu1 %7813 }
0x1d48   :  { %14962 = vpow2.f32 %v7868_v18  ;;  %v7848_v25 = vsub.f32 %v17636_v13, %v7814_v53 }
0x1d49   :  { %v7817_v57 = vpop.xlane.xlu0 %7816 }
0x1d4a   :  { %v7870_v52 = vmul.f32 1.442695, %v7848_v25  ;;  %v7849_v35 = vsub.f32 %v17640_v49, %v7817_v57  ;;  %v17698_v36 = vpop.eup %14956 }
0x1d4b   :  { %v7820_v20 = vpop.xlane.xlu1 %7819  ;;  %v7896_v26 = vsel %vm2750_vm2, %v17698_v36, 0.0  ;;  %v17703_v29 = vpop.eup %14958 }
0x1d4c   :  { %14964 = vpow2.f32 %v7870_v52  ;;  %v7872_v48 = vmul.f32 1.442695, %v7849_v35  ;;  %v7850_v28 = vsub.f32 %v17630_v38, %v7820_v20  ;;  %7897 = vadd.xlane.f32.xlu1 %v7896_v26  ;;  %v7902_v47 = vsel %vm2750_vm2, %v17703_v29, 0.0 }
0x1d4d   :  { %v7823_v2 = vpop.xlane.xlu0 %7822 }
0x1d4e   :  { %v17705_v15 = vpop.eup %14960  ;;  %14966 = vpow2.f32 %v7872_v48  ;;  %v7874_v13 = vmul.f32 1.442695, %v7850_v28  ;;  %v7851_v49 = vsub.f32 %v17634_v22, %v7823_v2 }
0x1d4f   :  { %v7826_v33 = vpop.xlane.xlu1 %7825  ;;  %v7899_v23 = vsel %vm2750_vm2, %v17705_v15, 0.0 }
0x1d50   :  { %14968 = vpow2.f32 %v7874_v13  ;;  %v7876_v3 = vmul.f32 1.442695, %v7851_v49  ;;  %v7852_v38 = vsub.f32 %v17648_v62, %v7826_v33  ;;  %7900 = vadd.xlane.f32.xlu0 %v7899_v23  ;;  %7903 = vadd.xlane.f32.xlu1 %v7902_v47 }
0x1d51   :  { %v7829_v63 = vpop.xlane.xlu0 %7828 }
0x1d52   :  { %v17713_v16 = vpop.eup %14962  ;;  %14970 = vpow2.f32 %v7876_v3  ;;  %v7878_v43 = vmul.f32 1.442695, %v7852_v38  ;;  %v7853_v22 = vsub.f32 %v17654_v14, %v7829_v63 }
0x1d53   :  { %v7832_v39 = vpop.xlane.xlu1 %7831  ;;  %v7905_v41 = vsel %vm2750_vm2, %v17713_v16, 0.0 }
0x1d54   :  { %14972 = vpow2.f32 %v7878_v43  ;;  %v7880_v40 = vmul.f32 1.442695, %v7853_v22  ;;  %v7854_v62 = vsub.f32 %v17650_v31, %v7832_v39  ;;  %7906 = vadd.xlane.f32.xlu0 %v7905_v41 }
0x1d55   :  { %v7835_v5 = vpop.xlane.xlu0 %7834 }
0x1d56   :  { %v17719_v19 = vpop.eup %14964  ;;  %14974 = vpow2.f32 %v7880_v40  ;;  %v7882_v42 = vmul.f32 1.442695, %v7854_v62  ;;  %v7855_v46 = vsub.f32 %v17656_v44, %v7835_v5 }
0x1d57   :  { %v7838_v10 = vpop.xlane.xlu1 %7837  ;;  %v7908_v14 = vsel %vm2750_vm2, %v17719_v19, 0.0 }
0x1d58   :  { %v17724_v45 = vpop.eup %14966  ;;  %14976 = vpow2.f32 %v7882_v42  ;;  %v7884_v4 = vmul.f32 1.442695, %v7855_v46  ;;  %v7856_v58 = vsub.f32 %v17664_v21, %v7838_v10  ;;  %7909 = vadd.xlane.f32.xlu1 %v7908_v14 }
0x1d59   :  { %v7841_v31 = vpop.xlane.xlu0 %7840  ;;  %v7911_v9 = vsel %vm2750_vm2, %v17724_v45, 0.0 }
0x1d5a   :  { %v17729_v61 = vpop.eup %14968  ;;  %14978 = vpow2.f32 %v7884_v4  ;;  %v7886_v18 = vmul.f32 1.442695, %v7856_v58  ;;  %v7857_v44 = vsub.f32 %v17668_v24, %v7841_v31  ;;  %7912 = vadd.xlane.f32.xlu0 %v7911_v9 }
0x1d5b   :  { %v7914_v53 = vsel %vm2750_vm2, %v17729_v61, 0.0  ;;  %v8073_v38 = vpop.permute.xlu1 %8072 }
0x1d5c   :  { %v17734_v25 = vpop.eup %14970  ;;  %14980 = vpow2.f32 %v7886_v18  ;;  %v7888_v57 = vmul.f32 1.442695, %v7857_v44  ;;  %7915 = vadd.xlane.f32.xlu1 %v7914_v53 }
0x1d5d   :  { %v8026_v21 = vpop.permute.xlu0 %8025  ;;  %v7917_v52 = vsel %vm2750_vm2, %v17734_v25, 0.0 }
0x1d5e   :  { %v17738_v35 = vpop.eup %14972  ;;  %14982 = vpow2.f32 %v7888_v57  ;;  %7918 = vadd.xlane.f32.xlu0 %v7917_v52  ;;  %13813 = vmatpush3.bf16.msra.mxu0 %v8026_v21 }
0x1d5f   :  { %v7920_v24 = vsel %vm2750_vm2, %v17738_v35, 0.0  ;;  %13824 = vmatprep.subr.bf16.mxu0 %v15217_v27  ;;  %v8120_v47 = vpop.permute.xlu1 %8119 }
0x1d60   :  { %v17743_v20 = vpop.eup %14974  ;;  %7921 = vadd.xlane.f32.xlu1 %v7920_v24 }
0x1d61   :  { %v7923_v48 = vsel %vm2750_vm2, %v17743_v20, 0.0  ;;  %v8197_v63 = vpop.permute.xlu0 %8196 }
0x1d62   :  { %v17747_v28 = vpop.eup %14976  ;;  %7924 = vadd.xlane.f32.xlu0 %v7923_v48 }
0x1d63   :  { %v7926_v26 = vsel %vm2750_vm2, %v17747_v28, 0.0  ;;  %v17767_v43 = vpop.permute.xlu1 %8243 }
0x1d64   :  { %v17751_v2 = vpop.eup %14978  ;;  %7927 = vadd.xlane.f32.xlu1 %v7926_v26 }
0x1d65   :  { %v7929_v13 = vsel %vm2750_vm2, %v17751_v2, 0.0 }
0x1d66   :  { %v17755_v49 = vpop.eup %14980  ;;  %7930 = vadd.xlane.f32.xlu0 %v7929_v13 }
0x1d67   :  { %v7932_v33 = vsel %vm2750_vm2, %v17755_v49, 0.0 }
0x1d68   :  { %v17759_v23 = vpop.eup %14982  ;;  %7933 = vadd.xlane.f32.xlu1 %v7932_v33 }
0x1d69   :  { %v7935_v3 = vsel %vm2750_vm2, %v17759_v23, 0.0 }
0x1d6a   :  { %7936 = vadd.xlane.f32.xlu0 %v7935_v3 }
0x1d79   :  { %8337 = vrot.lane.b32.xlu1 %v17539_v51, %s15224_s16 }
0x1d80   :  { %8290 = vrot.lane.b32.xlu0 %v17539_v51, %s15221_s23 }
0x1d92   :  { %v7895_v22 = vpop.xlane.xlu0 %7894 }
0x1d93   :  { %14984 = vrcp.f32 %v7895_v22 }
0x1d94   :  { %v7892_v39 = vpop.xlane.xlu1 %7891 }
0x1d95   :  { %14986 = vrcp.f32 %v7892_v39 }
0x1d9d   :  { %v14985_v41 = vpop.eup %14984 }
0x1d9e   :  { %v7955_v62 = vmul.f32 %v14985_v41, %v17684_v1 }
0x1d9f   :  { %v14987_v40 = vpop.eup %14986 }
0x1da0   :  { %v7954_v5 = vmul.f32 %v14987_v40, %v17686_v0 }
0x1da2   :  { %v7970_v42 = vpack.c.bf16 %v7955_v62, %v7954_v5 }
0x1da4   :  { %13809 = vmatmul.mubr.msk.bf16.vlgmr.msra.gmra.mrb[196].mxu1 %vm2750_vm2, %v7970_v42 }
0x1da5   :  { %13819 = vmatpush3.bf16.msra.mxu1 %v8073_v38  ;;  %13820 = vmatprep.mubr.msk.bf16.mxu1 %vm15218_vm1, %v15217_v27 }
0x1da6   :  { %13830 = vmatprep.subr.bf16.mxu1 %v15217_v27 }
0x1dd9   :  { %v7898_v51 = vpop.xlane.xlu1 %7897 }
0x1dda   :  { %14988 = vrcp.f32 %v7898_v51 }
0x1ddd   :  { %v7901_v46 = vpop.xlane.xlu0 %7900  ;;  %v7904_v10 = vpop.xlane.xlu1 %7903 }
0x1dde   :  { %14990 = vrcp.f32 %v7901_v46 }
0x1ddf   :  { %14992 = vrcp.f32 %v7904_v10 }
0x1de1   :  { %v7907_v14 = vpop.xlane.xlu0 %7906 }
0x1de2   :  { %14994 = vrcp.f32 %v7907_v14 }
0x1de4   :  { %v14989_v4 = vpop.eup %14988 }
0x1de5   :  { %v7910_v1 = vpop.xlane.xlu1 %7909  ;;  %v7956_v31 = vmul.f32 %v14989_v4, %v17698_v36 }
0x1de6   :  { %14996 = vrcp.f32 %v7910_v1 }
0x1de7   :  { %v7913_v0 = vpop.xlane.xlu0 %7912 }
0x1de8   :  { %v14991_v58 = vpop.eup %14990  ;;  %14998 = vrcp.f32 %v7913_v0 }
0x1de9   :  { %v7957_v9 = vmul.f32 %v14991_v58, %v17705_v15  ;;  %v7916_v18 = vpop.xlane.xlu1 %7915  ;;  %v14993_v44 = vpop.eup %14992 }
0x1dea   :  { %15000 = vrcp.f32 %v7916_v18  ;;  %v7958_v52 = vmul.f32 %v14993_v44, %v17703_v29 }
0x1deb   :  { %v7919_v53 = vpop.xlane.xlu0 %7918  ;;  %v7971_v57 = vpack.c.bf16 %v7957_v9, %v7956_v31 }
0x1dec   :  { %v14995_v21 = vpop.eup %14994  ;;  %15002 = vrcp.f32 %v7919_v53 }
0x1ded   :  { %v7959_v24 = vmul.f32 %v14995_v21, %v17713_v16  ;;  %v7922_v48 = vpop.xlane.xlu1 %7921  ;;  %13815 = vmatmul.mubr.msk.bf16.vlgmr.msra.gmra.mrb[188].mxu0 %vm2750_vm2, %v7971_v57 }
0x1dee   :  { %15004 = vrcp.f32 %v7922_v48  ;;  %13825 = vmatpush3.bf16.msra.mxu0 %v8120_v47  ;;  %13826 = vmatprep.mubr.msk.bf16.mxu0 %vm15218_vm1, %v15217_v27 }
0x1def   :  { %v7925_v36 = vpop.xlane.xlu0 %7924  ;;  %v7972_v15 = vpack.c.bf16 %v7959_v24, %v7958_v52  ;;  %13836 = vmatprep.subr.bf16.mxu0 %v15217_v27 }
0x1df0   :  { %v14997_v26 = vpop.eup %14996  ;;  %15006 = vrcp.f32 %v7925_v36 }
0x1df1   :  { %v7928_v13 = vpop.xlane.xlu1 %7927  ;;  %13821 = vmatmul.mubr.msk.bf16.vlgmr.msra.gmra.mrb[200].mxu1 %vm2750_vm2, %v7972_v15  ;;  %v7960_v16 = vmul.f32 %v14997_v26, %v17719_v19  ;;  %v14653_v26 = vld [vmem:[%s18841_s12 + $0x8] sm:$0xff]  }
0x1df2   :  { %v14999_v29 = vpop.eup %14998  ;;  %15008 = vrcp.f32 %v7928_v13  ;;  %13831 = vmatpush3.bf16.msra.mxu1 %v8197_v63  ;;  %13832 = vmatprep.mubr.msk.bf16.mxu1 %vm15218_vm1, %v15217_v27 }
0x1df3   :  { %v7961_v33 = vmul.f32 %v14999_v29, %v17724_v45  ;;  %v7931_v3 = vpop.xlane.xlu0 %7930  ;;  %13842 = vmatprep.subr.bf16.mxu1 %v15217_v27 }
0x1df4   :  { %v15001_v38 = vpop.eup %15000  ;;  %15010 = vrcp.f32 %v7931_v3 }
0x1df5   :  { %v7934_v47 = vpop.xlane.xlu1 %7933  ;;  %v7973_v22 = vpack.c.bf16 %v7961_v33, %v7960_v16  ;;  %v7962_v41 = vmul.f32 %v15001_v38, %v17729_v61  ;;  %v14654_v38 = vld [vmem:[%s18841_s12 + $0x10] sm:$0xff]  }
0x1df6   :  { %v15003_v39 = vpop.eup %15002  ;;  %15012 = vrcp.f32 %v7934_v47 }
0x1df7   :  { %v7963_v63 = vmul.f32 %v15003_v39, %v17734_v25  ;;  %13827 = vmatmul.mubr.msk.bf16.vlgmr.msra.gmra.mrb[192].mxu0 %vm2750_vm2, %v7973_v22  ;;  %v7937_v40 = vpop.xlane.xlu0 %7936 }
0x1df8   :  { %v15005_v62 = vpop.eup %15004  ;;  %13837 = vmatpush3.bf16.msra.mxu0 %v17767_v43  ;;  %15014 = vrcp.f32 %v7937_v40  ;;  %13838 = vmatprep.mubr.msk.bf16.mxu0 %vm15218_vm1, %v15217_v27 }
0x1df9   :  { %v7974_v19 = vpack.c.bf16 %v7963_v63, %v7962_v41  ;;  %13848 = vmatprep.subr.bf16.mxu0 %v15217_v27  ;;  %v7964_v5 = vmul.f32 %v15005_v62, %v17738_v35  ;;  %v8338_v14 = vpop.permute.xlu1 %8337  ;;  %v14655_v63 = vld [vmem:[%s18841_s12 + $0x18] sm:$0xff]  }
0x1dfa   :  { %v15007_v45 = vpop.eup %15006 }
0x1dfb   :  { %v7965_v61 = vmul.f32 %v15007_v45, %v17743_v20  ;;  %13833 = vmatmul.mubr.msk.bf16.vlgmr.msra.gmra.mrb[204].mxu1 %vm2750_vm2, %v7974_v19  ;;  %v8291_v25 = vpop.permute.xlu0 %8290 }
0x1dfc   :  { %v15009_v42 = vpop.eup %15008  ;;  %13843 = vmatpush3.bf16.msra.mxu1 %v8291_v25  ;;  %13844 = vmatprep.mubr.msk.bf16.mxu1 %vm15218_vm1, %v15217_v27 }
0x1dfd   :  { %v7975_v43 = vpack.c.bf16 %v7965_v61, %v7964_v5  ;;  %v7966_v46 = vmul.f32 %v15009_v42, %v17747_v28 }
0x1dfe   :  { %v15011_v51 = vpop.eup %15010 }
0x1dff   :  { %v7967_v10 = vmul.f32 %v15011_v51, %v17751_v2  ;;  %13839 = vmatmul.mubr.msk.bf16.vlgmr.msra.gmra.mrb[196].mxu0 %vm2750_vm2, %v7975_v43 }
0x1e00   :  { %v15013_v35 = vpop.eup %15012  ;;  %13849 = vmatpush3.bf16.msra.mxu0 %v8338_v14  ;;  %13850 = vmatprep.mubr.msk.bf16.mxu0 %vm15218_vm1, %v15217_v27 }
0x1e01   :  { %v7976_v20 = vpack.c.bf16 %v7967_v10, %v7966_v46  ;;  %v7968_v4 = vmul.f32 %v15013_v35, %v17755_v49 }
0x1e02   :  { %v15015_v1 = vpop.eup %15014 }
0x1e03   :  { %v7969_v0 = vmul.f32 %v15015_v1, %v17759_v23  ;;  %13845 = vmatmul.mubr.msk.bf16.vlgmr.msra.gmra.mrb[208].mxu1 %vm2750_vm2, %v7976_v20  ;;  %v14652_v23 = vld [vmem:[%s18841_s12] sm:$0xff]  }
0x1e04   :  { %13854 = vmatprep.subr.bf16.mxu1 %v14652_v23 }
0x1e05   :  { %v7977_v58 = vpack.c.bf16 %v7969_v0, %v7968_v4  ;;  %13855 = vmatpush3.bf16.msra.mxu1 %v14652_v23 }
0x1e06   :  { %13856 = vmatprep.subr.bf16.mxu1 %v14653_v26 }
0x1e07   :  { %13851 = vmatmul.mubr.msk.bf16.vlgmr.msra.gmra.mrb[200].mxu0 %vm2750_vm2, %v7977_v58 }
0x1e09   :  { %13857 = vmatpush3.bf16.msra.mxu1 %v14653_v26 }
0x1e0a   :  { %13858 = vmatprep.subr.bf16.mxu1 %v14654_v38 }
0x1e0d   :  { %13859 = vmatpush3.bf16.msra.mxu1 %v14654_v38 }
0x1e0e   :  { %13860 = vmatprep.subr.bf16.mxu1 %v14655_v63 }
0x1e11   :  { %13861 = vmatpush3.bf16.msra.mxu1 %v14655_v63 }
0x1e77   :  { %v17810_v28 = vpop.f32.mrb[196].mxu1 }
0x1e78   :  { %v13810_v2 = vpop.f32.mrb[197].mxu1 }
0x1e79   :  { %v17812_v31 = vpop.f32.mrb[198].mxu1 }
0x1e7a   :  { %v13811_v9 = vpop.f32.mrb[199].mxu1 }
0x1ec0   :  { %v8065_v18 = vpop.f32.mrb[188].mxu0 }
0x1ec1   :  { %v13816_v44 = vpop.f32.mrb[189].mxu0 }
0x1ec2   :  { %v8068_v53 = vpop.f32.mrb[190].mxu0 }
0x1ec3   :  { %v14282_v57 = vpack.i.bf16 %v8068_v53, %v8065_v18  ;;  %v13817_v21 = vpop.f32.mrb[191].mxu0 }
0x1ec4   :  { %v8112_v52 = vpop.f32.mrb[200].mxu1 }
0x1ec5   :  { %14283 = vrot.lane.b32.xlu0 %v14282_v57, %s15224_s16  ;;  %v13822_v49 = vpop.f32.mrb[201].mxu1 }
0x1ec6   :  { %v8115_v24 = vpop.f32.mrb[202].mxu1 }
0x1ec7   :  { %v14287_v48 = vpack.i.bf16 %v8115_v24, %v8112_v52  ;;  %v13823_v36 = vpop.f32.mrb[203].mxu1 }
0x1ec9   :  { %14288 = vrot.lane.b32.xlu1 %v14287_v48, %s15221_s23 }
0x1eca   :  { %v8159_v15 = vpop.f32.mrb[192].mxu0 }
0x1ecb   :  { %v13828_v13 = vpop.f32.mrb[193].mxu0 }
0x1ecc   :  { %v8162_v29 = vpop.f32.mrb[194].mxu0 }
0x1ecd   :  { %v14292_v16 = vpack.i.bf16 %v8162_v29, %v8159_v15  ;;  %v13829_v33 = vpop.f32.mrb[195].mxu0 }
0x1ece   :  { %v8236_v3 = vpop.f32.mrb[204].mxu1 }
0x1ecf   :  { %14293 = vrot.lane.b32.xlu1 %v14292_v16, %s15222_s22  ;;  %v13834_v47 = vpop.f32.mrb[205].mxu1 }
0x1ed0   :  { %v8239_v22 = vpop.f32.mrb[206].mxu1 }
0x1ed1   :  { %v13835_v39 = vpop.f32.mrb[207].mxu1 }
0x1ed2   :  { %v8283_v41 = vpop.f32.mrb[196].mxu0 }
0x1ed3   :  { %v13840_v40 = vpop.f32.mrb[197].mxu0 }
0x1ed4   :  { %v8286_v62 = vpop.f32.mrb[198].mxu0 }
0x1ed5   :  { %v14297_v19 = vpack.i.bf16 %v8286_v62, %v8283_v41  ;;  %v13841_v45 = vpop.f32.mrb[199].mxu0  ;;  %v17851_v62 = vld [vmem:[%s18836_s18] sm:$0xff] }
0x1ed6   :  { %v8330_v5 = vpop.f32.mrb[208].mxu1 }
0x1ed7   :  { %14298 = vrot.lane.b32.xlu0 %v14297_v19, %s15224_s16  ;;  %v13846_v61 = vpop.f32.mrb[209].mxu1 }
0x1ed8   :  { %v8333_v25 = vpop.f32.mrb[210].mxu1 }
0x1ed9   :  { %v14302_v42 = vpack.i.bf16 %v8333_v25, %v8330_v5  ;;  %v13847_v43 = vpop.f32.mrb[211].mxu1 }
0x1eda   :  { %v8377_v51 = vpop.f32.mrb[200].mxu0 }
0x1edb   :  { %v13852_v46 = vpop.f32.mrb[201].mxu0  ;;  %14303 = vrot.lane.b32.xlu0 %v14302_v42, %s15221_s23 }
0x1edc   :  { %v8380_v10 = vpop.f32.mrb[202].mxu0 }
0x1edd   :  { %v14307_v14 = vpack.i.bf16 %v8380_v10, %v8377_v51  ;;  %v13853_v35 = vpop.f32.mrb[203].mxu0 }
0x1edf   :  { %14308 = vrot.lane.b32.xlu1 %v14307_v14, %s15222_s22 }
0x1f37   :  { %v14284_v20 = vpop.permute.xlu0 %14283 }
0x1f38   :  { %v14286_v4 = vunpack.i.h.bf16 %v14284_v20  ;;  %v14285_v0 = vunpack.i.l.bf16 %v14284_v20 }
0x1f3a   :  { %v8191_v18 = vsel %vm2750_vm2, %v17812_v31, %v14286_v4  ;;  %v8190_v44 = vsel %vm2750_vm2, %v17810_v28, %v14285_v0 }
0x1f3b   :  { %v14289_v1 = vpop.permute.xlu1 %14288 }
0x1f3c   :  { %v14291_v58 = vunpack.i.h.bf16 %v14289_v1  ;;  %v14290_v2 = vunpack.i.l.bf16 %v14289_v1 }
0x1f3e   :  { %v8192_v21 = vsel %vm3550_vm3, %v8190_v44, %v14290_v2  ;;  %v8193_v52 = vsel %vm3550_vm3, %v8191_v18, %v14291_v58 }
0x1f41   :  { %v14294_v9 = vpop.permute.xlu1 %14293 }
0x1f42   :  { %v14296_v53 = vunpack.i.h.bf16 %v14294_v9  ;;  %v14295_v57 = vunpack.i.l.bf16 %v14294_v9 }
0x1f44   :  { %v8194_v49 = vsel %vm3553_vm4, %v8192_v21, %v14295_v57  ;;  %v8195_v23 = vsel %vm3553_vm4, %v8193_v52, %v14296_v53 }
0x1f45   :  { %v8414_v24 = vpack.c.bf16 %v8195_v23, %v8194_v49 }
0x1f47   :  { %13862 = vmatprep.mubr.msk.bf16.mxu1 %vm2675_vm0, %v8414_v24 }
0x1f49   :  { %v14299_v48 = vpop.permute.xlu0 %14298 }
0x1f4a   :  { %v14301_v15 = vunpack.i.h.bf16 %v14299_v48  ;;  %v14300_v31 = vunpack.i.l.bf16 %v14299_v48 }
0x1f4c   :  { %v8409_v29 = vsel %vm2750_vm2, %v8239_v22, %v14301_v15  ;;  %v8408_v16 = vsel %vm2750_vm2, %v8236_v3, %v14300_v31  ;;  %v8419_v3 = vrot.slane %v17851_v62, %v16602_v56  ;;  %v14656_v31 = vld [vmem:[%s18842_s13] sm:$0xff]  }
0x1f4d   :  { %v14304_v36 = vpop.permute.xlu0 %14303  ;;  %13866 = vmatprep.subr.bf16.mxu0 %v14656_v31 }
0x1f4e   :  { %v14306_v26 = vunpack.i.h.bf16 %v14304_v36  ;;  %v14305_v13 = vunpack.i.l.bf16 %v14304_v36  ;;  %13867 = vmatpush3.bf16.msra.mxu0 %v14656_v31 }
0x1f50   :  { %v8410_v47 = vsel %vm3550_vm3, %v8408_v16, %v14305_v13  ;;  %v8411_v39 = vsel %vm3550_vm3, %v8409_v29, %v14306_v26  ;;  %v14657_v26 = vld [vmem:[%s18842_s13 + $0x8] sm:$0xff]   ;;  %v14658_v13 = vld [vmem:[%s18842_s13 + $0x10] sm:$0xff]   ;;  %v14660_v29 = vld [vmem:[%s18843_s14] sm:$0xff]  }
0x1f51   :  { %v14309_v28 = vpop.permute.xlu1 %14308  ;;  %13868 = vmatprep.subr.bf16.mxu0 %v14657_v26  ;;  %v14661_v16 = vld [vmem:[%s18843_s14 + $0x8] sm:$0xff]   ;;  %13878 = vmatprep.subr.bf16.mxu1 %v14660_v29 }
0x1f52   :  { %v14311_v33 = vunpack.i.h.bf16 %v14309_v28  ;;  %v14310_v38 = vunpack.i.l.bf16 %v14309_v28  ;;  %13869 = vmatpush3.bf16.msra.mxu0 %v14657_v26  ;;  %v14659_v28 = vld [vmem:[%s18842_s13 + $0x18] sm:$0xff]  }
0x1f53   :  { %13870 = vmatprep.subr.bf16.mxu0 %v14658_v13 }
0x1f54   :  { %v8412_v41 = vsel %vm3553_vm4, %v8410_v47, %v14310_v38  ;;  %v8413_v63 = vsel %vm3553_vm4, %v8411_v39, %v14311_v33  ;;  %v14662_v33 = vld [vmem:[%s18843_s14 + $0x10] sm:$0xff]   ;;  %v14663_v38 = vld [vmem:[%s18843_s14 + $0x18] sm:$0xff]   ;;  %v14664_v47 = vld [vmem:[%s18843_s14 + $0x20] sm:$0xff]  }
0x1f55   :  { %v8415_v40 = vpack.c.bf16 %v8413_v63, %v8412_v41  ;;  %v14665_v39 = vld [vmem:[%s18843_s14 + $0x28] sm:$0xff]  }
0x1f56   :  { %13871 = vmatpush3.bf16.msra.mxu0 %v14658_v13 }
0x1f57   :  { %13863 = vmatmul.mubr.msk.bf16.vlgmr.msra.gmra.mrb[212].mxu1 %vm2675_vm0, %v8415_v40  ;;  %13872 = vmatprep.subr.bf16.mxu0 %v14659_v28 }
0x1f58   :  { %13879 = vmatpush3.bf16.msra.mxu1 %v14660_v29 }
0x1f59   :  { %13880 = vmatprep.subr.bf16.mxu1 %v14661_v16 }
0x1f5a   :  { %13873 = vmatpush3.bf16.msra.mxu0 %v14659_v28 }
0x1f5c   :  { %13881 = vmatpush3.bf16.msra.mxu1 %v14661_v16 }
0x1f5d   :  { %13882 = vmatprep.subr.bf16.mxu1 %v14662_v33 }
0x1f60   :  { %13883 = vmatpush3.bf16.msra.mxu1 %v14662_v33 }
0x1f61   :  { %13884 = vmatprep.subr.bf16.mxu1 %v14663_v38 }
0x1f64   :  { %13885 = vmatpush3.bf16.msra.mxu1 %v14663_v38 }
0x1f65   :  { %13886 = vmatprep.subr.bf16.mxu1 %v14664_v47 }
0x1f68   :  { %13887 = vmatpush3.bf16.msra.mxu1 %v14664_v47 }
0x1f69   :  { %13888 = vmatprep.subr.bf16.mxu1 %v14665_v39 }
0x1f6c   :  { %13889 = vmatpush3.bf16.msra.mxu1 %v14665_v39 }
0x202a   :  { %v13864_v22 = vpop.f32.mrb[212].mxu1 }
0x202b   :  { %v8484_v19 = vpop.f32.mrb[213].mxu1  ;;  %v8493_v45 = vadd.f32 %v13864_v22, %v8419_v3 }
0x202c   :  { %v8485_v5 = vadd.f32 %v8484_v19, %v8419_v3  ;;  %v13865_v61 = vpop.f32.mrb[214].mxu1 }
0x202d   :  { %v8487_v25 = vpop.f32.mrb[215].mxu1  ;;  %v8501_v51 = vadd.f32 %v8493_v45, %v17528_v37  ;;  %v8496_v46 = vadd.f32 %v13865_v61, %v8419_v3 }
0x202e   :  { %v8499_v42 = vadd.f32 %v8485_v5, %v17519_v60  ;;  %v8488_v43 = vadd.f32 %v8487_v25, %v8419_v3 }
0x202f   :  { %v8502_v20 = vadd.f32 %v8496_v46, %v17530_v17  ;;  %v8509_v1 = vsel %vm2675_vm0, %v8501_v51, 0.0 }
0x2030   :  { %v8500_v10 = vadd.f32 %v8488_v43, %v17521_v50  ;;  %v8503_v14 = vsel %vm2675_vm0, %v8499_v42, 0.0 }
0x2031   :  { %8504 = vadd.xlane.f32.xlu0 %v8503_v14  ;;  %v8512_v4 = vsel %vm2675_vm0, %v8502_v20, 0.0 }
0x2032   :  { %v8506_v35 = vsel %vm2675_vm0, %v8500_v10, 0.0 }
0x2033   :  { %8507 = vadd.xlane.f32.xlu1 %v8506_v35 }
0x2035   :  { %8510 = vadd.xlane.f32.xlu0 %v8509_v1 }
0x2039   :  { %8513 = vadd.xlane.f32.xlu0 %v8512_v4 }
0x20be   :  { %v8505_v60 = vpop.xlane.xlu0 %8504 }
0x20bf   :  { %v8515_v0 = vmul.f32 0.015625, %v8505_v60 }
0x20c0   :  { %v8508_v37 = vpop.xlane.xlu1 %8507 }
0x20c1   :  { %v17863_v58 = vsub.f32 %v8499_v42, %v8515_v0  ;;  %v8516_v50 = vmul.f32 0.015625, %v8508_v37 }
0x20c2   :  { %v8511_v2 = vpop.xlane.xlu0 %8510 }
0x20c3   :  { %v17865_v9 = vsub.f32 %v8500_v10, %v8516_v50  ;;  %v8517_v18 = vmul.f32 0.015625, %v8511_v2  ;;  %v8523_v44 = vmul.f32 %v17863_v58, %v17863_v58  ;;  %v17918_v10 = vld [vmem:[%s18836_s18 + $0x10] sm:$0x1f] }
0x20c4   :  { %v8566_v4 = vrot.slane %v17918_v10, %v16055_v34  ;;  %v8689_v39 = vrot.slane %v17918_v10, %v16528_v54 }
0x20c5   :  { %v17869_v17 = vsub.f32 %v8501_v51, %v8517_v18  ;;  %v8527_v53 = vsel %vm2675_vm0, %v8523_v44, 0.0  ;;  %v8524_v57 = vmul.f32 %v17865_v9, %v17865_v9  ;;  %v8558_v51 = vrot.slane %v17851_v62, %v16607_v12 }
0x20c6   :  { %8528 = vadd.xlane.f32.xlu1 %v8527_v53  ;;  %v8514_v21 = vpop.xlane.xlu0 %8513 }
0x20c7   :  { %v8518_v52 = vmul.f32 0.015625, %v8514_v21  ;;  %v8530_v49 = vsel %vm2675_vm0, %v8524_v57, 0.0  ;;  %v8525_v23 = vmul.f32 %v17869_v17, %v17869_v17 }
0x20c8   :  { %8531 = vadd.xlane.f32.xlu0 %v8530_v49  ;;  %v8584_v49 = vrot.slane %v17918_v10, %v16114_v8 }
0x20c9   :  { %v17877_v24 = vsub.f32 %v8502_v20, %v8518_v52  ;;  %v8533_v48 = vsel %vm2675_vm0, %v8525_v23, 0.0  ;;  %v14667_v52 = vld [vmem:[%s18843_s14 + $0x38] sm:$0xff]  }
0x20ca   :  { %8534 = vadd.xlane.f32.xlu1 %v8533_v48 }
0x20cb   :  { %v8526_v36 = vmul.f32 %v17877_v24, %v17877_v24 }
0x20cd   :  { %v8536_v15 = vsel %vm2675_vm0, %v8526_v36, 0.0 }
0x20ce   :  { %8537 = vadd.xlane.f32.xlu0 %v8536_v15 }
0x2153   :  { %v8529_v41 = vpop.xlane.xlu1 %8528 }
0x2154   :  { %v8539_v63 = vmul.f32 0.015625, %v8529_v41 }
0x2155   :  { %v8532_v40 = vpop.xlane.xlu0 %8531 }
0x2156   :  { %v8543_v3 = vadd.f32 1e-05, %v8539_v63  ;;  %v8540_v22 = vmul.f32 0.015625, %v8532_v40 }
0x2157   :  { %v8535_v19 = vpop.xlane.xlu1 %8534 }
0x2158   :  { %15016 = vrsqrt.f32 %v8543_v3  ;;  %v8544_v45 = vadd.f32 1e-05, %v8540_v22  ;;  %v8541_v5 = vmul.f32 0.015625, %v8535_v19 }
0x215a   :  { %15018 = vrsqrt.f32 %v8544_v45  ;;  %v8545_v61 = vadd.f32 1e-05, %v8541_v5 }
0x215b   :  { %v8538_v25 = vpop.xlane.xlu0 %8537 }
0x215c   :  { %15020 = vrsqrt.f32 %v8545_v61  ;;  %v8542_v42 = vmul.f32 0.015625, %v8538_v25 }
0x215e   :  { %v8546_v43 = vadd.f32 1e-05, %v8542_v42 }
0x2160   :  { %15022 = vrsqrt.f32 %v8546_v43 }
0x2162   :  { %v15017_v46 = vpop.eup %15016 }
0x2163   :  { %v8551_v14 = vmul.f32 %v15017_v46, %v17863_v58 }
0x2164   :  { %v15019_v35 = vpop.eup %15018 }
0x2165   :  { %v8552_v20 = vmul.f32 %v15019_v35, %v17865_v9  ;;  %v8559_v1 = vmul.f32 %v8558_v51, %v8551_v14 }
0x2166   :  { %v15021_v60 = vpop.eup %15020 }
0x2167   :  { %v8553_v0 = vmul.f32 %v15021_v60, %v17869_v17  ;;  %v8560_v37 = vmul.f32 %v8558_v51, %v8552_v20  ;;  %v8567_v62 = vadd.f32 %v8566_v4, %v8559_v1  ;;  %v14666_v17 = vld [vmem:[%s18843_s14 + $0x30] sm:$0xff]  }
0x2168   :  { %13890 = vmatprep.subr.bf16.mxu1 %v14666_v17 }
0x2169   :  { %v8568_v50 = vadd.f32 %v8566_v4, %v8560_v37  ;;  %v8561_v18 = vmul.f32 %v8558_v51, %v8553_v0  ;;  %13891 = vmatpush3.bf16.msra.mxu1 %v14666_v17 }
0x216a   :  { %v15023_v2 = vpop.eup %15022  ;;  %13892 = vmatprep.subr.bf16.mxu1 %v14667_v52 }
0x216b   :  { %v8554_v44 = vmul.f32 %v15023_v2, %v17877_v24  ;;  %v8579_v53 = vpack.c.bf16 %v8568_v50, %v8567_v62  ;;  %v8569_v58 = vadd.f32 %v8566_v4, %v8561_v18 }
0x216d   :  { %v8562_v57 = vmul.f32 %v8558_v51, %v8554_v44  ;;  %13874 = vmatprep.mubr.msk.bf16.mxu0 %vm2675_vm0, %v8579_v53  ;;  %13893 = vmatpush3.bf16.msra.mxu1 %v14667_v52 }
0x216e   :  { %13904 = vmatprep.subr.bf16.mxu1 %v15217_v27 }
0x216f   :  { %v8570_v9 = vadd.f32 %v8566_v4, %v8562_v57 }
0x2171   :  { %v8580_v21 = vpack.c.bf16 %v8570_v9, %v8569_v58 }
0x2173   :  { %13875 = vmatmul.mubr.msk.bf16.vlgmr.msra.gmra.mrb[204].mxu0 %vm2675_vm0, %v8580_v21 }
0x2174   :  { %8960 = vmatprep.mubr.bf16.mxu0 %v15216_v7 }
0x2246   :  { %v13876_v23 = vpop.f32.mrb[204].mxu0 }
0x2247   :  { %v8658_v24 = vadd.f32 %v13876_v23, %v8584_v49  ;;  %v8649_v48 = vpop.f32.mrb[205].mxu0 }
0x2248   :  { %v8650_v36 = vadd.f32 %v8649_v48, %v8584_v49  ;;  %v13877_v15 = vpop.f32.mrb[206].mxu0  ;;  %v14668_v48 = vld [vmem:[%s18835_s8 + $0x40] ss:$8 sps:$4 sm:$0xff]  }
0x2249   :  { %v8661_v31 = vadd.f32 %v13877_v15, %v8584_v49  ;;  %v8652_v26 = vpop.f32.mrb[207].mxu0  ;;  %v8666_v28 = vmax.f32 %v8658_v24, 0.0  ;;  %v14670_v24 = vld [vmem:[%s18835_s8 + $0x44] ss:$8 sps:$4 sm:$0xff]   ;;  %v14671_v15 = vld [vmem:[%s18835_s8 + $0x50] ss:$8 sps:$4 sm:$0xff]  }
0x224a   :  { %v8653_v13 = vadd.f32 %v8652_v26, %v8584_v49  ;;  %v8664_v16 = vmax.f32 %v8650_v36, 0.0  ;;  %8928 = vmatprep.subr.bf16.mxu0 %v14670_v24  ;;  %v14673_v36 = vld [vmem:[%s18835_s8 + $0x54] ss:$8 sps:$4 sm:$0xff]   ;;  %v14674_v26 = vld [vmem:[%s18835_s8 + $0x60] ss:$8 sps:$4 sm:$0xff]  }
0x224b   :  { %v8667_v29 = vmax.f32 %v8661_v31, 0.0  ;;  %8929 = vmatpush1.bf16.msra.mxu0 %v14668_v48  ;;  %v14676_v31 = vld [vmem:[%s18835_s8 + $0x64] ss:$8 sps:$4 sm:$0xff]  }
0x224c   :  { %v8665_v33 = vmax.f32 %v8653_v13, 0.0  ;;  %8930 = vmatprep.subr.bf16.mxu0 %v14673_v36  ;;  %v14677_v13 = vld [vmem:[%s18835_s8 + $0x70] ss:$8 sps:$4 sm:$0xff]  }
0x224d   :  { %v8685_v38 = vpack.c.bf16 %v8667_v29, %v8666_v28  ;;  %v14679_v28 = vld [vmem:[%s18835_s8 + $0x74] ss:$8 sps:$4 sm:$0xff]  }
0x224e   :  { %v8684_v47 = vpack.c.bf16 %v8665_v33, %v8664_v16 }
0x224f   :  { %8931 = vmatpush1.bf16.msra.mxu0 %v14671_v15 }
0x2250   :  { %13894 = vmatprep.mubr.bf16.mxu1 %v8684_v47  ;;  %8932 = vmatprep.subr.bf16.mxu0 %v14676_v31 }
0x2251   :  { %13895 = vmatmul.mubr.bf16.vlgmr.msra.gmra.mrb[216].mxu1 %v8685_v38 }
0x2252   :  { %13906 = vmatprep.mubr.msk.bf16.mxu1 %vm15218_vm1, %v15217_v27 }
0x2253   :  { %8933 = vmatpush1.bf16.msra.mxu0 %v14674_v26 }
0x2254   :  { %8934 = vmatprep.subr.bf16.mxu0 %v14679_v28 }
0x2257   :  { %8935 = vmatpush1.bf16.msra.mxu0 %v14677_v13 }
0x2258   :  { %13898 = vmatprep.subr.bf16.mxu0 %v15217_v27 }
0x2324   :  { %v13896_v41 = vpop.f32.mrb[216].mxu1 }
0x2325   :  { %v8772_v63 = vpop.f32.mrb[217].mxu1  ;;  %v8781_v40 = vadd.f32 %v13896_v41, %v8689_v39 }
0x2326   :  { %v8773_v3 = vadd.f32 %v8772_v63, %v8689_v39  ;;  %v13897_v22 = vpop.f32.mrb[218].mxu1 }
0x2327   :  { %v8775_v19 = vpop.f32.mrb[219].mxu1  ;;  %v8784_v5 = vadd.f32 %v13897_v22, %v8689_v39  ;;  %v8789_v25 = vadd.f32 %v8781_v40, %v8569_v58 }
0x2328   :  { %v8787_v45 = vadd.f32 %v8773_v3, %v8567_v62  ;;  %v8776_v61 = vadd.f32 %v8775_v19, %v8689_v39 }
0x2329   :  { %v8790_v51 = vadd.f32 %v8784_v5, %v8570_v9  ;;  %v8797_v14 = vsel %vm2675_vm0, %v8789_v25, 0.0 }
0x232a   :  { %v8788_v42 = vadd.f32 %v8776_v61, %v8568_v50  ;;  %v8791_v43 = vsel %vm2675_vm0, %v8787_v45, 0.0 }
0x232b   :  { %8792 = vadd.xlane.f32.xlu1 %v8791_v43  ;;  %v8800_v35 = vsel %vm2675_vm0, %v8790_v51, 0.0 }
0x232c   :  { %v8794_v46 = vsel %vm2675_vm0, %v8788_v42, 0.0 }
0x232d   :  { %8795 = vadd.xlane.f32.xlu0 %v8794_v46 }
0x232f   :  { %8798 = vadd.xlane.f32.xlu1 %v8797_v14 }
0x2331   :  { %8801 = vadd.xlane.f32.xlu0 %v8800_v35 }
0x23b8   :  { %v8793_v20 = vpop.xlane.xlu1 %8792 }
0x23b9   :  { %v8803_v1 = vmul.f32 0.015625, %v8793_v20 }
0x23ba   :  { %v8796_v4 = vpop.xlane.xlu0 %8795 }
0x23bb   :  { %v8807_v60 = vsub.f32 %v8787_v45, %v8803_v1  ;;  %v8804_v0 = vmul.f32 0.015625, %v8796_v4  ;;  %v8846_v45 = vrot.slane %v17918_v10, %v16538_v59 }
0x23bc   :  { %v8799_v37 = vpop.xlane.xlu1 %8798 }
0x23bd   :  { %v8808_v62 = vsub.f32 %v8788_v42, %v8804_v0  ;;  %v8805_v50 = vmul.f32 0.015625, %v8799_v37  ;;  %v8811_v2 = vmul.f32 %v8807_v60, %v8807_v60 }
0x23be   :  { %v8802_v18 = vpop.xlane.xlu0 %8801 }
0x23bf   :  { %v8809_v44 = vsub.f32 %v8789_v25, %v8805_v50  ;;  %v8806_v53 = vmul.f32 0.015625, %v8802_v18  ;;  %v8815_v57 = vsel %vm2675_vm0, %v8811_v2, 0.0  ;;  %v8812_v58 = vmul.f32 %v8808_v62, %v8808_v62  ;;  %v17999_v18 = vld [vmem:[%s18836_s18 + $0x20] sm:$0xff] }
0x23c0   :  { %8816 = vadd.xlane.f32.xlu1 %v8815_v57 }
0x23c1   :  { %v8810_v9 = vsub.f32 %v8790_v51, %v8806_v53  ;;  %v8818_v21 = vsel %vm2675_vm0, %v8812_v58, 0.0  ;;  %v8813_v17 = vmul.f32 %v8809_v44, %v8809_v44  ;;  %v8854_v51 = vrot.slane %v17918_v10, %v16557_v6 }
0x23c2   :  { %8819 = vadd.xlane.f32.xlu0 %v8818_v21 }
0x23c3   :  { %v8821_v52 = vsel %vm2675_vm0, %v8813_v17, 0.0  ;;  %v8814_v49 = vmul.f32 %v8810_v9, %v8810_v9 }
0x23c4   :  { %8822 = vadd.xlane.f32.xlu1 %v8821_v52 }
0x23c5   :  { %v8824_v23 = vsel %vm2675_vm0, %v8814_v49, 0.0 }
0x23c6   :  { %8825 = vadd.xlane.f32.xlu0 %v8824_v23 }
0x244d   :  { %v8817_v29 = vpop.xlane.xlu1 %8816 }
0x244e   :  { %v8827_v16 = vmul.f32 0.015625, %v8817_v29 }
0x244f   :  { %v8820_v33 = vpop.xlane.xlu0 %8819 }
0x2450   :  { %v8831_v38 = vadd.f32 1e-05, %v8827_v16  ;;  %v8828_v47 = vmul.f32 0.015625, %v8820_v33 }
0x2451   :  { %v8823_v39 = vpop.xlane.xlu1 %8822 }
0x2452   :  { %15024 = vrsqrt.f32 %v8831_v38  ;;  %v8832_v41 = vadd.f32 1e-05, %v8828_v47  ;;  %v8829_v63 = vmul.f32 0.015625, %v8823_v39 }
0x2453   :  { %v8826_v40 = vpop.xlane.xlu0 %8825 }
0x2454   :  { %15026 = vrsqrt.f32 %v8832_v41  ;;  %v8833_v3 = vadd.f32 1e-05, %v8829_v63  ;;  %v8830_v22 = vmul.f32 0.015625, %v8826_v40 }
0x2456   :  { %15028 = vrsqrt.f32 %v8833_v3  ;;  %v8834_v19 = vadd.f32 1e-05, %v8830_v22 }
0x2458   :  { %15030 = vrsqrt.f32 %v8834_v19 }
0x245c   :  { %v15025_v5 = vpop.eup %15024 }
0x245d   :  { %v8839_v61 = vmul.f32 %v15025_v5, %v8807_v60 }
0x245e   :  { %v15027_v25 = vpop.eup %15026 }
0x245f   :  { %v8847_v42 = vmul.f32 %v8846_v45, %v8839_v61  ;;  %v8840_v43 = vmul.f32 %v15027_v25, %v8808_v62 }
0x2460   :  { %v15029_v46 = vpop.eup %15028 }
0x2461   :  { %v8848_v14 = vmul.f32 %v8846_v45, %v8840_v43  ;;  %v17979_v20 = vadd.f32 %v8854_v51, %v8847_v42  ;;  %v8841_v4 = vmul.f32 %v15029_v46, %v8809_v44  ;;  %v8877_v44 = vrot.slane %v17999_v18, %v16055_v34 }
0x2462   :  { %v15031_v35 = vpop.eup %15030 }
0x2463   :  { %v17981_v1 = vadd.f32 %v8854_v51, %v8848_v14  ;;  %v8842_v0 = vmul.f32 %v15031_v35, %v8810_v9  ;;  %v8849_v60 = vmul.f32 %v8846_v45, %v8841_v4 }
0x2465   :  { %v8872_v37 = vpack.c.bf16 %v17981_v1, %v17979_v20  ;;  %v8850_v50 = vmul.f32 %v8846_v45, %v8842_v0  ;;  %v17989_v10 = vadd.f32 %v8854_v51, %v8849_v60 }
0x2467   :  { %12520 = vmatmul.mubr.msk.bf16.vlgmr.msra.gmra.mrb[208].mxu0 %vm2675_vm0, %v8872_v37  ;;  %v17987_v62 = vadd.f32 %v8854_v51, %v8850_v50 }
0x2468   :  { %8970 = vmatprep.mubr.bf16.mxu0 %v15216_v7  ;;  %v12502_v7 = vld [vmem:[%s18836_s18 + $0x28] sm:$0xff] }
0x2469   :  { %v8873_v2 = vpack.c.bf16 %v17987_v62, %v17989_v10  ;;  %v8881_v57 = vrot.slane %v12502_v7, %v16055_v34 }
0x246f   :  { %12521 = vmatmul.mubr.msk.bf16.gmra.mrb[212].mxu0 %vm2675_vm0, %v8873_v2 }
0x2470   :  { %13900 = vmatprep.mubr.msk.bf16.mxu0 %vm15218_vm1, %v15217_v27 }
0x253a   :  { %v8962_v53 = vpop.f32.mrb[208].mxu0 }
0x253b   :  { %v8964_v58 = vpop.f32.mrb[209].mxu0  ;;  %v8963_v21 = vadd.f32 %v8962_v53, %v8877_v44 }
0x253c   :  { %v8966_v9 = vpop.f32.mrb[210].mxu0  ;;  %v8965_v49 = vadd.f32 %v8964_v58, %v8881_v57 }
0x253d   :  { %v8967_v17 = vadd.f32 %v8966_v9, %v8877_v44  ;;  %v8968_v52 = vpop.f32.mrb[211].mxu0 }
0x253e   :  { %v8969_v23 = vadd.f32 %v8968_v52, %v8881_v57 }
0x253f   :  { %v8981_v24 = vpack.c.bf16 %v8967_v17, %v8963_v21 }
0x2540   :  { %v18007_v48 = vpack.c.bf16 %v8969_v23, %v8965_v49 }
0x2541   :  { %9046 = vrot.lane.b32.xlu0 %v8981_v24, %s15222_s22  ;;  %8995 = vrot.lane.b32.xlu1 %v8981_v24, %s15220_s21 }
0x2542   :  { %v8972_v36 = vpop.f32.mrb[212].mxu0 }
0x2543   :  { %v8974_v15 = vpop.f32.mrb[213].mxu0  ;;  %v8973_v13 = vadd.f32 %v8972_v36, %v8877_v44 }
0x2544   :  { %v8975_v31 = vadd.f32 %v8974_v15, %v8881_v57  ;;  %v8976_v26 = vpop.f32.mrb[214].mxu0 }
0x2545   :  { %v8977_v28 = vadd.f32 %v8976_v26, %v8877_v44  ;;  %9148 = vrot.lane.b32.xlu0 %v8981_v24, %s15224_s16  ;;  %9097 = vrot.lane.b32.xlu1 %v8981_v24, %s15221_s23  ;;  %v8978_v29 = vpop.f32.mrb[215].mxu0 }
0x2546   :  { %v8979_v16 = vadd.f32 %v8978_v29, %v8881_v57 }
0x2547   :  { %v8983_v33 = vpack.c.bf16 %v8977_v28, %v8973_v13 }
0x2548   :  { %v18013_v38 = vpack.c.bf16 %v8979_v16, %v8975_v31 }
0x2549   :  { %9044 = vrot.lane.b32.xlu1 %v8981_v24, %s15219_s30  ;;  %9198 = vrot.lane.b32.xlu0 %v8983_v33, %s15220_s21 }
0x254d   :  { %9095 = vrot.lane.b32.xlu1 %v8981_v24, %s18864_s26  ;;  %9249 = vrot.lane.b32.xlu0 %v8983_v33, %s15222_s22 }
0x2551   :  { %9146 = vrot.lane.b32.xlu1 %v8981_v24, %s18865_s2  ;;  %9247 = vrot.lane.b32.xlu0 %v8983_v33, %s15219_s30 }
0x2555   :  { %9300 = vrot.lane.b32.xlu1 %v8983_v33, %s15221_s23  ;;  %9298 = vrot.lane.b32.xlu0 %v8983_v33, %s18864_s26 }
0x2559   :  { %9351 = vrot.lane.b32.xlu1 %v8983_v33, %s15224_s16 }
0x255d   :  { %9349 = vrot.lane.b32.xlu1 %v8983_v33, %s18865_s2 }
0x25b3   :  { %v9047_v47 = vpop.permute.xlu0 %9046  ;;  %v8996_v39 = vpop.permute.xlu1 %8995 }
0x25b4   :  { %v9052_v41 = vsel %vm2750_vm2, %v9047_v47, 0  ;;  %v9001_v63 = vsel %vm2750_vm2, %v8996_v39, 0 }
0x25b5   :  { %13899 = vmatpush3.bf16.xpose.msra.mxu0 %v9001_v63  ;;  %13905 = vmatpush3.bf16.xpose.msra.mxu1 %v9052_v41 }
0x25b6   :  { %13910 = vmatprep.subr.bf16.mxu0 %v15217_v27  ;;  %13916 = vmatprep.subr.bf16.mxu1 %v15217_v27 }
0x25b7   :  { %v9149_v40 = vpop.permute.xlu0 %9148  ;;  %v9098_v3 = vpop.permute.xlu1 %9097 }
0x25b8   :  { %v9154_v45 = vsel %vm2750_vm2, %v9149_v40, 0  ;;  %v9103_v5 = vsel %vm2750_vm2, %v9098_v3, 0 }
0x25bb   :  { %v9199_v22 = vpop.permute.xlu0 %9198  ;;  %v9045_v19 = vpop.permute.xlu1 %9044 }
0x25bc   :  { %13901 = vmatmul.mubr.msk.bf16.vlgmr.msra.gmra.mrb[216].mxu0 %vm2750_vm2, %v8981_v24  ;;  %13907 = vmatmul.mubr.msk.bf16.vlgmr.msra.gmra.mrb[220].mxu1 %vm2750_vm2, %v9045_v19  ;;  %v9204_v43 = vsel %vm2750_vm2, %v9199_v22, 0 }
0x25bd   :  { %13911 = vmatpush3.bf16.xpose.msra.mxu0 %v9103_v5  ;;  %13917 = vmatpush3.bf16.xpose.msra.mxu1 %v9154_v45 }
0x25be   :  { %13912 = vmatprep.mubr.msk.bf16.mxu0 %vm15218_vm1, %v15217_v27  ;;  %13918 = vmatprep.mubr.msk.bf16.mxu1 %vm15218_vm1, %v15217_v27 }
0x25bf   :  { %v9096_v61 = vpop.permute.xlu1 %9095  ;;  %13922 = vmatprep.subr.bf16.mxu0 %v15217_v27  ;;  %13928 = vmatprep.subr.bf16.mxu1 %v15217_v27  ;;  %v9250_v25 = vpop.permute.xlu0 %9249 }
0x25c0   :  { %v9255_v51 = vsel %vm2750_vm2, %v9250_v25, 0 }
0x25c3   :  { %v9147_v42 = vpop.permute.xlu1 %9146  ;;  %v9248_v14 = vpop.permute.xlu0 %9247 }
0x25c4   :  { %13913 = vmatmul.mubr.msk.bf16.vlgmr.msra.gmra.mrb[220].mxu0 %vm2750_vm2, %v9096_v61  ;;  %13919 = vmatmul.mubr.msk.bf16.vlgmr.msra.gmra.mrb[224].mxu1 %vm2750_vm2, %v9147_v42 }
0x25c5   :  { %13923 = vmatpush3.bf16.xpose.msra.mxu0 %v9204_v43  ;;  %13929 = vmatpush3.bf16.xpose.msra.mxu1 %v9255_v51 }
0x25c6   :  { %13924 = vmatprep.mubr.msk.bf16.mxu0 %vm15218_vm1, %v15217_v27  ;;  %13930 = vmatprep.mubr.msk.bf16.mxu1 %vm15218_vm1, %v15217_v27 }
0x25c7   :  { %v9301_v46 = vpop.permute.xlu1 %9300  ;;  %13934 = vmatprep.subr.bf16.mxu0 %v15217_v27  ;;  %13940 = vmatprep.subr.bf16.mxu1 %v15217_v27  ;;  %v9299_v37 = vpop.permute.xlu0 %9298 }
0x25c8   :  { %v9306_v4 = vsel %vm2750_vm2, %v9301_v46, 0 }
0x25cb   :  { %v9352_v35 = vpop.permute.xlu1 %9351 }
0x25cc   :  { %v9357_v0 = vsel %vm2750_vm2, %v9352_v35, 0  ;;  %13925 = vmatmul.mubr.msk.bf16.vlgmr.msra.gmra.mrb[224].mxu0 %vm2750_vm2, %v8983_v33  ;;  %13931 = vmatmul.mubr.msk.bf16.vlgmr.msra.gmra.mrb[228].mxu1 %vm2750_vm2, %v9248_v14 }
0x25cd   :  { %13935 = vmatpush3.bf16.xpose.msra.mxu0 %v9306_v4  ;;  %13941 = vmatpush3.bf16.xpose.msra.mxu1 %v9357_v0 }
0x25ce   :  { %13936 = vmatprep.mubr.msk.bf16.mxu0 %vm15218_vm1, %v15217_v27  ;;  %13942 = vmatprep.mubr.msk.bf16.mxu1 %vm15218_vm1, %v15217_v27 }
0x25cf   :  { %13946 = vmatprep.subr.bf16.mxu0 %v15217_v27  ;;  %13952 = vmatprep.subr.bf16.mxu1 %v15217_v27  ;;  %v9350_v50 = vpop.permute.xlu1 %9349 }
0x25d4   :  { %13937 = vmatmul.mubr.msk.bf16.vlgmr.msra.gmra.mrb[228].mxu0 %vm2750_vm2, %v9299_v37  ;;  %13943 = vmatmul.mubr.msk.bf16.vlgmr.msra.gmra.mrb[232].mxu1 %vm2750_vm2, %v9350_v50 }
0x25d5   :  { %13947 = vmatpush3.bf16.msra.mxu0 %v18007_v48  ;;  %13948 = vmatprep.mubr.msk.bf16.mxu0 %vm15218_vm1, %v15217_v27 }
0x25d6   :  { %13958 = vmatprep.subr.bf16.mxu0 %v15217_v27  ;;  %13954 = vmatprep.mubr.msk.bf16.mxu1 %vm15218_vm1, %v15217_v27 }
0x268f   :  { %v18067_v60 = vpop.f32.mrb[216].mxu0  ;;  %v18069_v2 = vpop.f32.mrb[220].mxu1 }
0x2690   :  { %v13902_v7 = vpop.f32.mrb[217].mxu0  ;;  %v13908_v44 = vpop.f32.mrb[221].mxu1  ;;  %v9400_v53 = vsel %vm2750_vm2, %v18067_v60, -inf  ;;  %v9406_v52 = vsel %vm2750_vm2, %v18069_v2, -inf }
0x2691   :  { %9401 = vmax.xlane.f32.xlu0 %v9400_v53  ;;  %v18073_v57 = vpop.f32.mrb[218].mxu0  ;;  %v18075_v58 = vpop.f32.mrb[222].mxu1 }
0x2692   :  { %v13903_v9 = vpop.f32.mrb[219].mxu0  ;;  %v13909_v21 = vpop.f32.mrb[223].mxu1  ;;  %v9403_v17 = vsel %vm2750_vm2, %v18073_v57, -inf  ;;  %v9409_v15 = vsel %vm2750_vm2, %v18075_v58, -inf }
0x2693   :  { %9404 = vmax.xlane.f32.xlu1 %v9403_v17 }
0x2695   :  { %9407 = vmax.xlane.f32.xlu0 %v9406_v52 }
0x2697   :  { %v18081_v49 = vpop.f32.mrb[220].mxu0  ;;  %v18083_v23 = vpop.f32.mrb[224].mxu1 }
0x2698   :  { %v13914_v24 = vpop.f32.mrb[221].mxu0  ;;  %v13920_v36 = vpop.f32.mrb[225].mxu1  ;;  %v9412_v31 = vsel %vm2750_vm2, %v18081_v49, -inf  ;;  %v9418_v33 = vsel %vm2750_vm2, %v18083_v23, -inf }
0x2699   :  { %9410 = vmax.xlane.f32.xlu0 %v9409_v15  ;;  %9413 = vmax.xlane.f32.xlu1 %v9412_v31  ;;  %v18089_v26 = vpop.f32.mrb[222].mxu0  ;;  %v18091_v13 = vpop.f32.mrb[226].mxu1 }
0x269a   :  { %v13915_v28 = vpop.f32.mrb[223].mxu0  ;;  %v13921_v29 = vpop.f32.mrb[227].mxu1  ;;  %v9415_v16 = vsel %vm2750_vm2, %v18089_v26, -inf  ;;  %v9421_v3 = vsel %vm2750_vm2, %v18091_v13, -inf }
0x269d   :  { %9416 = vmax.xlane.f32.xlu0 %v9415_v16  ;;  %9419 = vmax.xlane.f32.xlu1 %v9418_v33 }
0x269f   :  { %v18097_v47 = vpop.f32.mrb[224].mxu0  ;;  %v18099_v39 = vpop.f32.mrb[228].mxu1 }
0x26a0   :  { %v13926_v41 = vpop.f32.mrb[225].mxu0  ;;  %v13932_v63 = vpop.f32.mrb[229].mxu1  ;;  %v9424_v40 = vsel %vm2750_vm2, %v18097_v47, -inf  ;;  %v9430_v25 = vsel %vm2750_vm2, %v18099_v39, -inf }
0x26a1   :  { %v18105_v22 = vpop.f32.mrb[226].mxu0  ;;  %9425 = vmax.xlane.f32.xlu1 %v9424_v40  ;;  %9422 = vmax.xlane.f32.xlu0 %v9421_v3  ;;  %v18107_v19 = vpop.f32.mrb[230].mxu1 }
0x26a2   :  { %v13927_v45 = vpop.f32.mrb[227].mxu0  ;;  %v13933_v5 = vpop.f32.mrb[231].mxu1  ;;  %v9427_v61 = vsel %vm2750_vm2, %v18105_v22, -inf  ;;  %v9433_v14 = vsel %vm2750_vm2, %v18107_v19, -inf }
0x26a5   :  { %9428 = vmax.xlane.f32.xlu0 %v9427_v61  ;;  %9431 = vmax.xlane.f32.xlu1 %v9430_v25 }
0x26a7   :  { %v18113_v42 = vpop.f32.mrb[228].mxu0  ;;  %v18115_v43 = vpop.f32.mrb[232].mxu1 }
0x26a8   :  { %v13938_v51 = vpop.f32.mrb[229].mxu0  ;;  %v13944_v46 = vpop.f32.mrb[233].mxu1  ;;  %v9436_v35 = vsel %vm2750_vm2, %v18113_v42, -inf  ;;  %v9442_v44 = vsel %vm2750_vm2, %v18115_v43, -inf }
0x26a9   :  { %9434 = vmax.xlane.f32.xlu0 %v9433_v14  ;;  %9437 = vmax.xlane.f32.xlu1 %v9436_v35  ;;  %v18121_v4 = vpop.f32.mrb[230].mxu0  ;;  %v18123_v0 = vpop.f32.mrb[234].mxu1 }
0x26aa   :  { %v13939_v37 = vpop.f32.mrb[231].mxu0  ;;  %v13945_v50 = vpop.f32.mrb[235].mxu1  ;;  %v9439_v7 = vsel %vm2750_vm2, %v18121_v4, -inf  ;;  %v9445_v53 = vsel %vm2750_vm2, %v18123_v0, -inf }
0x26ad   :  { %9440 = vmax.xlane.f32.xlu0 %v9439_v7  ;;  %9443 = vmax.xlane.f32.xlu1 %v9442_v44 }
0x26b1   :  { %9446 = vmax.xlane.f32.xlu0 %v9445_v53 }
0x26be   :  { %9629 = vrot.lane.b32.xlu1 %v18007_v48, %s15219_s30 }
0x26c2   :  { %9723 = vrot.lane.b32.xlu1 %v18007_v48, %s18865_s2 }
0x26c6   :  { %9845 = vrot.lane.b32.xlu1 %v18013_v38, %s15219_s30 }
0x26c7   :  { %9676 = vrot.lane.b32.xlu0 %v18007_v48, %s18864_s26 }
0x271e   :  { %v9402_v9 = vpop.xlane.xlu0 %9401 }
0x271f   :  { %v9448_v21 = vsub.f32 %v18067_v60, %v9402_v9 }
0x2720   :  { %v9405_v17 = vpop.xlane.xlu1 %9404 }
0x2721   :  { %v9464_v52 = vmul.f32 1.442695, %v9448_v21  ;;  %v9449_v24 = vsub.f32 %v18073_v57, %v9405_v17 }
0x2722   :  { %v9408_v36 = vpop.xlane.xlu0 %9407 }
0x2723   :  { %15032 = vpow2.f32 %v9464_v52  ;;  %v9466_v15 = vmul.f32 1.442695, %v9449_v24  ;;  %v9450_v31 = vsub.f32 %v18069_v2, %v9408_v36 }
0x2725   :  { %15034 = vpow2.f32 %v9466_v15  ;;  %v9468_v28 = vmul.f32 1.442695, %v9450_v31 }
0x2726   :  { %v9411_v29 = vpop.xlane.xlu0 %9410  ;;  %v9414_v16 = vpop.xlane.xlu1 %9413 }
0x2727   :  { %15036 = vpow2.f32 %v9468_v28  ;;  %v9451_v33 = vsub.f32 %v18075_v58, %v9411_v29  ;;  %v9452_v48 = vsub.f32 %v18081_v49, %v9414_v16 }
0x2729   :  { %v9470_v41 = vmul.f32 1.442695, %v9451_v33  ;;  %v9472_v60 = vmul.f32 1.442695, %v9452_v48 }
0x272a   :  { %v9417_v63 = vpop.xlane.xlu0 %9416  ;;  %v9420_v40 = vpop.xlane.xlu1 %9419 }
0x272b   :  { %15038 = vpow2.f32 %v9470_v41  ;;  %v9453_v57 = vsub.f32 %v18089_v26, %v9417_v63  ;;  %v9454_v3 = vsub.f32 %v18083_v23, %v9420_v40 }
0x272c   :  { %15040 = vpow2.f32 %v9472_v60 }
0x272d   :  { %v18146_v2 = vpop.eup %15032  ;;  %v9474_v45 = vmul.f32 1.442695, %v9453_v57  ;;  %v9476_v5 = vmul.f32 1.442695, %v9454_v3 }
0x272e   :  { %v9423_v61 = vpop.xlane.xlu0 %9422  ;;  %v9426_v25 = vpop.xlane.xlu1 %9425  ;;  %v9496_v58 = vsel %vm2750_vm2, %v18146_v2, 0.0 }
0x272f   :  { %v18150_v49 = vpop.eup %15034  ;;  %15042 = vpow2.f32 %v9474_v45  ;;  %v9455_v51 = vsub.f32 %v18091_v13, %v9423_v61  ;;  %v9456_v46 = vsub.f32 %v18097_v47, %v9426_v25  ;;  %9497 = vadd.xlane.f32.xlu1 %v9496_v58 }
0x2730   :  { %15044 = vpow2.f32 %v9476_v5  ;;  %v9499_v23 = vsel %vm2750_vm2, %v18150_v49, 0.0 }
0x2731   :  { %v18156_v26 = vpop.eup %15036  ;;  %v9478_v14 = vmul.f32 1.442695, %v9455_v51  ;;  %v9480_v35 = vmul.f32 1.442695, %v9456_v46  ;;  %9500 = vadd.xlane.f32.xlu0 %v9499_v23 }
0x2732   :  { %v9429_v37 = vpop.xlane.xlu0 %9428  ;;  %v9432_v50 = vpop.xlane.xlu1 %9431  ;;  %v9502_v7 = vsel %vm2750_vm2, %v18156_v26, 0.0 }
0x2733   :  { %15046 = vpow2.f32 %v9478_v14  ;;  %v9457_v13 = vsub.f32 %v18105_v22, %v9429_v37  ;;  %v9458_v47 = vsub.f32 %v18099_v39, %v9432_v50  ;;  %9503 = vadd.xlane.f32.xlu1 %v9502_v7 }
0x2734   :  { %15048 = vpow2.f32 %v9480_v35 }
0x2735   :  { %v18162_v44 = vpop.eup %15038  ;;  %v9482_v53 = vmul.f32 1.442695, %v9457_v13  ;;  %v9484_v9 = vmul.f32 1.442695, %v9458_v47 }
0x2736   :  { %v18164_v21 = vpop.eup %15040  ;;  %v9435_v17 = vpop.xlane.xlu0 %9434  ;;  %v9505_v24 = vsel %vm2750_vm2, %v18162_v44, 0.0 }
0x2737   :  { %v9438_v52 = vpop.xlane.xlu1 %9437  ;;  %15050 = vpow2.f32 %v9482_v53  ;;  %v9459_v36 = vsub.f32 %v18107_v19, %v9435_v17  ;;  %9506 = vadd.xlane.f32.xlu0 %v9505_v24  ;;  %v9508_v39 = vsel %vm2750_vm2, %v18164_v21, 0.0 }
0x2738   :  { %v9460_v22 = vsub.f32 %v18113_v42, %v9438_v52  ;;  %15052 = vpow2.f32 %v9484_v9  ;;  %9509 = vadd.xlane.f32.xlu1 %v9508_v39 }
0x2739   :  { %v18172_v15 = vpop.eup %15042  ;;  %v9486_v31 = vmul.f32 1.442695, %v9459_v36 }
0x273a   :  { %v9488_v28 = vmul.f32 1.442695, %v9460_v22  ;;  %v18174_v29 = vpop.eup %15044  ;;  %v9441_v16 = vpop.xlane.xlu0 %9440  ;;  %v9511_v48 = vsel %vm2750_vm2, %v18172_v15, 0.0 }
0x273b   :  { %v9444_v33 = vpop.xlane.xlu1 %9443  ;;  %15054 = vpow2.f32 %v9486_v31  ;;  %v9461_v19 = vsub.f32 %v18121_v4, %v9441_v16  ;;  %9512 = vadd.xlane.f32.xlu0 %v9511_v48  ;;  %v9514_v41 = vsel %vm2750_vm2, %v18174_v29, 0.0 }
0x273c   :  { %v9462_v42 = vsub.f32 %v18115_v43, %v9444_v33  ;;  %15056 = vpow2.f32 %v9488_v28  ;;  %9515 = vadd.xlane.f32.xlu1 %v9514_v41 }
0x273d   :  { %v18182_v60 = vpop.eup %15046  ;;  %v9490_v63 = vmul.f32 1.442695, %v9461_v19 }
0x273e   :  { %v9492_v40 = vmul.f32 1.442695, %v9462_v42  ;;  %v18184_v57 = vpop.eup %15048  ;;  %v9447_v3 = vpop.xlane.xlu0 %9446  ;;  %v9517_v5 = vsel %vm2750_vm2, %v18182_v60, 0.0 }
0x273f   :  { %v9630_v45 = vpop.permute.xlu1 %9629  ;;  %15058 = vpow2.f32 %v9490_v63  ;;  %v9463_v43 = vsub.f32 %v18123_v0, %v9447_v3  ;;  %9518 = vadd.xlane.f32.xlu0 %v9517_v5  ;;  %v9520_v4 = vsel %vm2750_vm2, %v18184_v57, 0.0 }
0x2740   :  { %13953 = vmatpush3.bf16.msra.mxu1 %v9630_v45  ;;  %15060 = vpow2.f32 %v9492_v40  ;;  %9521 = vadd.xlane.f32.xlu1 %v9520_v4 }
0x2741   :  { %13964 = vmatprep.subr.bf16.mxu1 %v15217_v27  ;;  %v18192_v61 = vpop.eup %15050  ;;  %v9494_v25 = vmul.f32 1.442695, %v9463_v43 }
0x2742   :  { %v18194_v58 = vpop.eup %15052  ;;  %v9523_v51 = vsel %vm2750_vm2, %v18192_v61, 0.0  ;;  %v9677_v52 = vpop.permute.xlu0 %9676 }
0x2743   :  { %15062 = vpow2.f32 %v9494_v25  ;;  %9524 = vadd.xlane.f32.xlu0 %v9523_v51  ;;  %v9526_v0 = vsel %vm2750_vm2, %v18194_v58, 0.0  ;;  %v9724_v9 = vpop.permute.xlu1 %9723 }
0x2744   :  { %9527 = vadd.xlane.f32.xlu1 %v9526_v0 }
0x2745   :  { %v18200_v46 = vpop.eup %15054 }
0x2746   :  { %v18202_v23 = vpop.eup %15056  ;;  %v9529_v14 = vsel %vm2750_vm2, %v18200_v46, 0.0 }
0x2747   :  { %9530 = vadd.xlane.f32.xlu0 %v9529_v14  ;;  %v9532_v35 = vsel %vm2750_vm2, %v18202_v23, 0.0  ;;  %v18224_v17 = vpop.permute.xlu1 %9845 }
0x2748   :  { %9533 = vadd.xlane.f32.xlu1 %v9532_v35 }
0x2749   :  { %v18208_v37 = vpop.eup %15058 }
0x274a   :  { %v18210_v50 = vpop.eup %15060  ;;  %v9535_v7 = vsel %vm2750_vm2, %v18208_v37, 0.0 }
0x274b   :  { %9536 = vadd.xlane.f32.xlu0 %v9535_v7  ;;  %v9538_v13 = vsel %vm2750_vm2, %v18210_v50, 0.0 }
0x274c   :  { %9539 = vadd.xlane.f32.xlu1 %v9538_v13 }
0x274d   :  { %v18216_v47 = vpop.eup %15062 }
0x274e   :  { %v9541_v53 = vsel %vm2750_vm2, %v18216_v47, 0.0 }
0x274f   :  { %9542 = vadd.xlane.f32.xlu0 %v9541_v53 }
0x275d   :  { %9939 = vrot.lane.b32.xlu1 %v18013_v38, %s18865_s2 }
0x2765   :  { %9892 = vrot.lane.b32.xlu0 %v18013_v38, %s18864_s26 }
0x27bc   :  { %v9498_v24 = vpop.xlane.xlu1 %9497 }
0x27bd   :  { %15064 = vrcp.f32 %v9498_v24 }
0x27be   :  { %v9501_v36 = vpop.xlane.xlu0 %9500 }
0x27bf   :  { %15066 = vrcp.f32 %v9501_v36 }
0x27c0   :  { %v9504_v22 = vpop.xlane.xlu1 %9503 }
0x27c1   :  { %15068 = vrcp.f32 %v9504_v22 }
0x27c4   :  { %v9507_v39 = vpop.xlane.xlu0 %9506 }
0x27c5   :  { %15070 = vrcp.f32 %v9507_v39  ;;  %v9510_v31 = vpop.xlane.xlu1 %9509 }
0x27c6   :  { %15072 = vrcp.f32 %v9510_v31 }
0x27c7   :  { %v15065_v28 = vpop.eup %15064 }
0x27c8   :  { %v9513_v16 = vpop.xlane.xlu0 %9512  ;;  %v9560_v19 = vmul.f32 %v15065_v28, %v18146_v2 }
0x27c9   :  { %v15067_v33 = vpop.eup %15066  ;;  %15074 = vrcp.f32 %v9513_v16  ;;  %v9516_v48 = vpop.xlane.xlu1 %9515 }
0x27ca   :  { %v9561_v42 = vmul.f32 %v15067_v33, %v18150_v49  ;;  %15076 = vrcp.f32 %v9516_v48 }
0x27cb   :  { %v15069_v40 = vpop.eup %15068 }
0x27cc   :  { %v9519_v41 = vpop.xlane.xlu0 %9518  ;;  %v9576_v63 = vpack.c.bf16 %v9561_v42, %v9560_v19  ;;  %v9562_v5 = vmul.f32 %v15069_v40, %v18156_v26 }
0x27cd   :  { %15078 = vrcp.f32 %v9519_v41  ;;  %v9522_v3 = vpop.xlane.xlu1 %9521 }
0x27ce   :  { %13949 = vmatmul.mubr.msk.bf16.vlgmr.msra.gmra.mrb[232].mxu0 %vm2750_vm2, %v9576_v63  ;;  %15080 = vrcp.f32 %v9522_v3 }
0x27cf   :  { %v15071_v45 = vpop.eup %15070  ;;  %13959 = vmatpush3.bf16.msra.mxu0 %v9677_v52  ;;  %13960 = vmatprep.mubr.msk.bf16.mxu0 %vm15218_vm1, %v15217_v27 }
0x27d0   :  { %v9563_v2 = vmul.f32 %v15071_v45, %v18162_v44  ;;  %v9525_v43 = vpop.xlane.xlu0 %9524  ;;  %13970 = vmatprep.subr.bf16.mxu0 %v15217_v27  ;;  %v15073_v49 = vpop.eup %15072 }
0x27d1   :  { %15082 = vrcp.f32 %v9525_v43  ;;  %v9528_v4 = vpop.xlane.xlu1 %9527  ;;  %v9564_v0 = vmul.f32 %v15073_v49, %v18164_v21 }
0x27d2   :  { %v9577_v25 = vpack.c.bf16 %v9563_v2, %v9562_v5  ;;  %15084 = vrcp.f32 %v9528_v4 }
0x27d3   :  { %v15075_v51 = vpop.eup %15074 }
0x27d4   :  { %v9565_v14 = vmul.f32 %v15075_v51, %v18172_v15  ;;  %v9531_v35 = vpop.xlane.xlu0 %9530  ;;  %13955 = vmatmul.mubr.msk.bf16.vlgmr.msra.gmra.mrb[236].mxu1 %vm2750_vm2, %v9577_v25  ;;  %v15077_v7 = vpop.eup %15076 }
0x27d5   :  { %15086 = vrcp.f32 %v9531_v35  ;;  %13965 = vmatpush3.bf16.msra.mxu1 %v9724_v9  ;;  %v9534_v26 = vpop.xlane.xlu1 %9533  ;;  %13966 = vmatprep.mubr.msk.bf16.mxu1 %vm15218_vm1, %v15217_v27  ;;  %v9566_v53 = vmul.f32 %v15077_v7, %v18174_v29  ;;  %v14681_v7 = vld [vmem:[%s18837_s9 + $0x28] sm:$0xff]  }
0x27d6   :  { %v9578_v44 = vpack.c.bf16 %v9565_v14, %v9564_v0  ;;  %13976 = vmatprep.subr.bf16.mxu1 %v15217_v27  ;;  %15088 = vrcp.f32 %v9534_v26 }
0x27d7   :  { %v15079_v13 = vpop.eup %15078 }
0x27d8   :  { %v9567_v21 = vmul.f32 %v15079_v13, %v18182_v60  ;;  %v9537_v15 = vpop.xlane.xlu0 %9536  ;;  %13961 = vmatmul.mubr.msk.bf16.vlgmr.msra.gmra.mrb[236].mxu0 %vm2750_vm2, %v9578_v44  ;;  %v15081_v52 = vpop.eup %15080 }
0x27d9   :  { %15090 = vrcp.f32 %v9537_v15  ;;  %13971 = vmatpush3.bf16.msra.mxu0 %v18013_v38  ;;  %v9540_v9 = vpop.xlane.xlu1 %9539  ;;  %13972 = vmatprep.mubr.msk.bf16.mxu0 %vm15218_vm1, %v15217_v27  ;;  %v9568_v29 = vmul.f32 %v15081_v52, %v18184_v57  ;;  %v14682_v15 = vld [vmem:[%s18837_s9 + $0x30] sm:$0xff]  }
0x27da   :  { %v9579_v24 = vpack.c.bf16 %v9567_v21, %v9566_v53  ;;  %13982 = vmatprep.subr.bf16.mxu0 %v15217_v27  ;;  %15092 = vrcp.f32 %v9540_v9 }
0x27db   :  { %v15083_v36 = vpop.eup %15082 }
0x27dc   :  { %v9569_v60 = vmul.f32 %v15083_v36, %v18192_v61  ;;  %v9543_v22 = vpop.xlane.xlu0 %9542  ;;  %13967 = vmatmul.mubr.msk.bf16.vlgmr.msra.gmra.mrb[240].mxu1 %vm2750_vm2, %v9579_v24  ;;  %v15085_v39 = vpop.eup %15084 }
0x27dd   :  { %15094 = vrcp.f32 %v9543_v22  ;;  %13977 = vmatpush3.bf16.msra.mxu1 %v18224_v17  ;;  %13978 = vmatprep.mubr.msk.bf16.mxu1 %vm15218_vm1, %v15217_v27  ;;  %v9570_v28 = vmul.f32 %v15085_v39, %v18194_v58  ;;  %v9940_v42 = vpop.permute.xlu1 %9939 }
0x27de   :  { %v9580_v38 = vpack.c.bf16 %v9569_v60, %v9568_v29  ;;  %13988 = vmatprep.subr.bf16.mxu1 %v15217_v27  ;;  %v14683_v29 = vld [vmem:[%s18837_s9 + $0x38] sm:$0xff]  }
0x27df   :  { %v15087_v31 = vpop.eup %15086 }
0x27e0   :  { %v9571_v57 = vmul.f32 %v15087_v31, %v18200_v46  ;;  %v9893_v16 = vpop.permute.xlu0 %9892  ;;  %13973 = vmatmul.mubr.msk.bf16.vlgmr.msra.gmra.mrb[240].mxu0 %vm2750_vm2, %v9580_v38  ;;  %v15089_v61 = vpop.eup %15088 }
0x27e1   :  { %13983 = vmatpush3.bf16.msra.mxu0 %v9893_v16  ;;  %13984 = vmatprep.mubr.msk.bf16.mxu0 %vm15218_vm1, %v15217_v27  ;;  %v9572_v48 = vmul.f32 %v15089_v61, %v18202_v23 }
0x27e2   :  { %v9581_v17 = vpack.c.bf16 %v9571_v57, %v9570_v28  ;;  %v14684_v28 = vld [vmem:[%s18838_s11 + $0x20] sm:$0xff]  }
0x27e3   :  { %v15091_v33 = vpop.eup %15090 }
0x27e4   :  { %v9573_v19 = vmul.f32 %v15091_v33, %v18208_v37  ;;  %13979 = vmatmul.mubr.msk.bf16.vlgmr.msra.gmra.mrb[244].mxu1 %vm2750_vm2, %v9581_v17  ;;  %v15093_v58 = vpop.eup %15092 }
0x27e5   :  { %13989 = vmatpush3.bf16.msra.mxu1 %v9940_v42  ;;  %13990 = vmatprep.mubr.msk.bf16.mxu1 %vm15218_vm1, %v15217_v27  ;;  %v9574_v63 = vmul.f32 %v15093_v58, %v18210_v50  ;;  %v14680_v50 = vld [vmem:[%s18837_s9 + $0x20] sm:$0xff]  }
0x27e6   :  { %v9582_v46 = vpack.c.bf16 %v9573_v19, %v9572_v48  ;;  %13994 = vmatprep.subr.bf16.mxu0 %v14680_v50 }
0x27e7   :  { %v15095_v41 = vpop.eup %15094 }
0x27e8   :  { %v9575_v40 = vmul.f32 %v15095_v41, %v18216_v47  ;;  %13985 = vmatmul.mubr.msk.bf16.vlgmr.msra.gmra.mrb[244].mxu0 %vm2750_vm2, %v9582_v46 }
0x27e9   :  { %13995 = vmatpush3.bf16.msra.mxu0 %v14680_v50 }
0x27ea   :  { %v9583_v3 = vpack.c.bf16 %v9575_v40, %v9574_v63  ;;  %13996 = vmatprep.subr.bf16.mxu0 %v14681_v7 }
0x27ec   :  { %13991 = vmatmul.mubr.msk.bf16.vlgmr.msra.gmra.mrb[248].mxu1 %vm2750_vm2, %v9583_v3 }
0x27ed   :  { %13997 = vmatpush3.bf16.msra.mxu0 %v14681_v7 }
0x27ee   :  { %13998 = vmatprep.subr.bf16.mxu0 %v14682_v15 }
0x27f1   :  { %13999 = vmatpush3.bf16.msra.mxu0 %v14682_v15 }
0x27f2   :  { %14000 = vmatprep.subr.bf16.mxu0 %v14683_v29 }
0x27f5   :  { %14001 = vmatpush3.bf16.msra.mxu0 %v14683_v29 }
0x27f6   :  { %14018 = vmatprep.subr.bf16.mxu0 %v14684_v28 }
0x28a1   :  { %v18268_v23 = vpop.f32.mrb[232].mxu0 }
0x28a2   :  { %v13950_v37 = vpop.f32.mrb[233].mxu0 }
0x28a3   :  { %v18270_v45 = vpop.f32.mrb[234].mxu0 }
0x28a4   :  { %v13951_v5 = vpop.f32.mrb[235].mxu0 }
0x28a7   :  { %v9669_v2 = vpop.f32.mrb[236].mxu1 }
0x28a8   :  { %v13956_v43 = vpop.f32.mrb[237].mxu1 }
0x28a9   :  { %v9672_v49 = vpop.f32.mrb[238].mxu1 }
0x28aa   :  { %v14312_v4 = vpack.i.bf16 %v9672_v49, %v9669_v2  ;;  %v13957_v25 = vpop.f32.mrb[239].mxu1 }
0x28ab   :  { %v9716_v47 = vpop.f32.mrb[236].mxu0 }
0x28ac   :  { %14313 = vrot.lane.b32.xlu0 %v14312_v4, %s15224_s16  ;;  %v13962_v51 = vpop.f32.mrb[237].mxu0 }
0x28ad   :  { %v9719_v0 = vpop.f32.mrb[238].mxu0 }
0x28ae   :  { %v14317_v14 = vpack.i.bf16 %v9719_v0, %v9716_v47  ;;  %v13963_v35 = vpop.f32.mrb[239].mxu0 }
0x28af   :  { %v9763_v26 = vpop.f32.mrb[240].mxu1 }
0x28b0   :  { %14318 = vrot.lane.b32.xlu1 %v14317_v14, %s15221_s23  ;;  %v13968_v44 = vpop.f32.mrb[241].mxu1 }
0x28b1   :  { %v9766_v13 = vpop.f32.mrb[242].mxu1 }
0x28b2   :  { %v14322_v53 = vpack.i.bf16 %v9766_v13, %v9763_v26  ;;  %v13969_v21 = vpop.f32.mrb[243].mxu1 }
0x28b3   :  { %v9837_v52 = vpop.f32.mrb[240].mxu0 }
0x28b4   :  { %14323 = vrot.lane.b32.xlu1 %v14322_v53, %s15222_s22  ;;  %v13974_v9 = vpop.f32.mrb[241].mxu0 }
0x28b5   :  { %v9840_v24 = vpop.f32.mrb[242].mxu0 }
0x28b6   :  { %v13975_v36 = vpop.f32.mrb[243].mxu0 }
0x28b7   :  { %v9885_v60 = vpop.f32.mrb[244].mxu1 }
0x28b8   :  { %v13980_v22 = vpop.f32.mrb[245].mxu1 }
0x28b9   :  { %v9888_v39 = vpop.f32.mrb[246].mxu1 }
0x28ba   :  { %v14327_v38 = vpack.i.bf16 %v9888_v39, %v9885_v60  ;;  %v13981_v31 = vpop.f32.mrb[247].mxu1 }
0x28bb   :  { %v9932_v57 = vpop.f32.mrb[244].mxu0 }
0x28bc   :  { %14328 = vrot.lane.b32.xlu0 %v14327_v38, %s15224_s16  ;;  %v13986_v16 = vpop.f32.mrb[245].mxu0  ;;  %v14685_v38 = vld [vmem:[%s18838_s11 + $0x28] sm:$0xff]  }
0x28bd   :  { %v9935_v61 = vpop.f32.mrb[246].mxu0 }
0x28be   :  { %v14332_v17 = vpack.i.bf16 %v9935_v61, %v9932_v57  ;;  %v13987_v33 = vpop.f32.mrb[247].mxu0 }
0x28bf   :  { %v9979_v48 = vpop.f32.mrb[248].mxu1 }
0x28c0   :  { %14333 = vrot.lane.b32.xlu0 %v14332_v17, %s15221_s23  ;;  %v13992_v19 = vpop.f32.mrb[249].mxu1 }
0x28c1   :  { %v9982_v42 = vpop.f32.mrb[250].mxu1 }
0x28c2   :  { %v14337_v58 = vpack.i.bf16 %v9982_v42, %v9979_v48  ;;  %v13993_v46 = vpop.f32.mrb[251].mxu1 }
0x28c4   :  { %14338 = vrot.lane.b32.xlu1 %v14337_v58, %s15222_s22 }
0x291e   :  { %v14314_v41 = vpop.permute.xlu0 %14313 }
0x291f   :  { %v14316_v40 = vunpack.i.h.bf16 %v14314_v41  ;;  %v14315_v3 = vunpack.i.l.bf16 %v14314_v41 }
0x2921   :  { %v9795_v43 = vsel %vm2750_vm2, %v18270_v45, %v14316_v40  ;;  %v9794_v49 = vsel %vm2750_vm2, %v18268_v23, %v14315_v3 }
0x2922   :  { %v14319_v63 = vpop.permute.xlu1 %14318 }
0x2923   :  { %v14321_v37 = vunpack.i.h.bf16 %v14319_v63  ;;  %v14320_v5 = vunpack.i.l.bf16 %v14319_v63 }
0x2925   :  { %v9797_v50 = vsel %vm3550_vm3, %v9795_v43, %v14321_v37  ;;  %v9796_v47 = vsel %vm3550_vm3, %v9794_v49, %v14320_v5 }
0x2926   :  { %v14324_v2 = vpop.permute.xlu1 %14323 }
0x2927   :  { %v14326_v4 = vunpack.i.h.bf16 %v14324_v2  ;;  %v14325_v25 = vunpack.i.l.bf16 %v14324_v2 }
0x2929   :  { %v9798_v51 = vsel %vm3553_vm4, %v9796_v47, %v14325_v25  ;;  %v9799_v0 = vsel %vm3553_vm4, %v9797_v50, %v14326_v4 }
0x292a   :  { %v10016_v14 = vpack.c.bf16 %v9799_v0, %v9798_v51 }
0x292c   :  { %14002 = vmatprep.mubr.msk.bf16.mxu0 %vm2675_vm0, %v10016_v14 }
0x292e   :  { %v14329_v35 = vpop.permute.xlu0 %14328 }
0x292f   :  { %v14331_v26 = vunpack.i.h.bf16 %v14329_v35  ;;  %v14330_v45 = vunpack.i.l.bf16 %v14329_v35 }
0x2931   :  { %v10011_v53 = vsel %vm2750_vm2, %v9840_v24, %v14331_v26  ;;  %v10010_v21 = vsel %vm2750_vm2, %v9837_v52, %v14330_v45  ;;  %v14686_v52 = vld [vmem:[%s18838_s11 + $0x30] sm:$0xff]   ;;  %v14687_v24 = vld [vmem:[%s18838_s11 + $0x38] sm:$0xff]  }
0x2932   :  { %v14334_v7 = vpop.permute.xlu0 %14333 }
0x2933   :  { %v14336_v44 = vunpack.i.h.bf16 %v14334_v7  ;;  %v14335_v13 = vunpack.i.l.bf16 %v14334_v7 }
0x2935   :  { %v10013_v36 = vsel %vm3550_vm3, %v10011_v53, %v14336_v44  ;;  %v10012_v29 = vsel %vm3550_vm3, %v10010_v21, %v14335_v13 }
0x2936   :  { %v14339_v23 = vpop.permute.xlu1 %14338 }
0x2937   :  { %v14341_v15 = vunpack.i.h.bf16 %v14339_v23  ;;  %v14340_v9 = vunpack.i.l.bf16 %v14339_v23 }
0x2939   :  { %v10015_v60 = vsel %vm3553_vm4, %v10013_v36, %v14341_v15  ;;  %v10014_v22 = vsel %vm3553_vm4, %v10012_v29, %v14340_v9  ;;  %v14688_v29 = vld [vmem:[%s18839_s10 + $0x20] sm:$0xff]  }
0x293a   :  { %v10017_v39 = vpack.c.bf16 %v10015_v60, %v10014_v22  ;;  %14006 = vmatprep.subr.bf16.mxu1 %v14688_v29  ;;  %v14689_v60 = vld [vmem:[%s18839_s10 + $0x28] sm:$0xff]   ;;  %v14690_v22 = vld [vmem:[%s18839_s10 + $0x30] sm:$0xff]  }
0x293b   :  { %14007 = vmatpush3.bf16.msra.mxu1 %v14688_v29 }
0x293c   :  { %14003 = vmatmul.mubr.msk.bf16.vlgmr.msra.gmra.mrb[248].mxu0 %vm2675_vm0, %v10017_v39  ;;  %14008 = vmatprep.subr.bf16.mxu1 %v14689_v60  ;;  %v14691_v39 = vld [vmem:[%s18839_s10 + $0x38] sm:$0xff]  }
0x293d   :  { %14019 = vmatpush3.bf16.msra.mxu0 %v14684_v28  ;;  %14026 = vmatprep.mubr.msk.bf16.mxu0 %vm2675_vm0, %v17506_v30  ;;  %v10021_v30 = vrot.slane %v17999_v18, %v16114_v8 }
0x293e   :  { %14020 = vmatprep.subr.bf16.mxu0 %v14685_v38 }
0x293f   :  { %14009 = vmatpush3.bf16.msra.mxu1 %v14689_v60 }
0x2940   :  { %14010 = vmatprep.subr.bf16.mxu1 %v14690_v22 }
0x2941   :  { %14021 = vmatpush3.bf16.msra.mxu0 %v14685_v38 }
0x2942   :  { %14022 = vmatprep.subr.bf16.mxu0 %v14686_v52 }
0x2943   :  { %14011 = vmatpush3.bf16.msra.mxu1 %v14690_v22 }
0x2944   :  { %14012 = vmatprep.subr.bf16.mxu1 %v14691_v39 }
0x2945   :  { %14023 = vmatpush3.bf16.msra.mxu0 %v14686_v52 }
0x2946   :  { %14024 = vmatprep.subr.bf16.mxu0 %v14687_v24 }
0x2947   :  { %14013 = vmatpush3.bf16.msra.mxu1 %v14691_v39 }
0x2948   :  { %14030 = vmatprep.subr.bf16.mxu1 %v15217_v27 }
0x2949   :  { %14025 = vmatpush3.bf16.msra.mxu0 %v14687_v24 }
0x294a   :  { %14042 = vmatprep.subr.bf16.mxu0 %v15217_v27 }
0x294c   :  { %14027 = vmatmul.mubr.msk.bf16.vlgmr.msra.gmra.mrb[252].mxu0 %vm2675_vm0, %v17514_v55 }
0x294d   :  { %14044 = vmatprep.mubr.msk.bf16.mxu0 %vm15218_vm1, %v15217_v27 }
0x2a0f   :  { %v14004_v31 = vpop.f32.mrb[248].mxu0 }
0x2a10   :  { %v10086_v28 = vpop.f32.mrb[249].mxu0  ;;  %v10095_v57 = vadd.f32 %v14004_v31, %v10021_v30 }
0x2a11   :  { %v10087_v16 = vadd.f32 %v10086_v28, %v10021_v30  ;;  %v14005_v61 = vpop.f32.mrb[250].mxu0 }
0x2a12   :  { %v10089_v17 = vpop.f32.mrb[251].mxu0  ;;  %v10103_v19 = vadd.f32 %v10095_v57, %v17989_v10  ;;  %v10098_v42 = vadd.f32 %v14005_v61, %v10021_v30 }
0x2a13   :  { %v10101_v33 = vadd.f32 %v10087_v16, %v17979_v20  ;;  %v10090_v48 = vadd.f32 %v10089_v17, %v10021_v30  ;;  %v10281_v20 = vrot.slane %v17999_v18, %v16564_v11 }
0x2a14   :  { %v10104_v41 = vadd.f32 %v10098_v42, %v17987_v62  ;;  %v10111_v63 = vsel %vm2675_vm0, %v10103_v19, 0.0 }
0x2a15   :  { %v10102_v55 = vadd.f32 %v10090_v48, %v17981_v1  ;;  %v10105_v58 = vsel %vm2675_vm0, %v10101_v33, 0.0 }
0x2a16   :  { %10106 = vadd.xlane.f32.xlu0 %v10105_v58  ;;  %v10114_v40 = vsel %vm2675_vm0, %v10104_v41, 0.0 }
0x2a17   :  { %v10108_v46 = vsel %vm2675_vm0, %v10102_v55, 0.0 }
0x2a18   :  { %10109 = vadd.xlane.f32.xlu1 %v10108_v46 }
0x2a1a   :  { %10112 = vadd.xlane.f32.xlu0 %v10111_v63 }
0x2a1e   :  { %10115 = vadd.xlane.f32.xlu0 %v10114_v40 }
0x2a1f   :  { %v14028_v10 = vpop.f32.mrb[252].mxu0 }
0x2a20   :  { %v10349_v3 = vadd.f32 %v14028_v10, %v10281_v20  ;;  %v10340_v1 = vpop.f32.mrb[253].mxu0 }
0x2a21   :  { %v14029_v37 = vpop.f32.mrb[254].mxu0  ;;  %v10341_v43 = vadd.f32 %v10340_v1, %v10281_v20 }
0x2a22   :  { %v10352_v5 = vadd.f32 %v14029_v37, %v10281_v20  ;;  %v10343_v2 = vpop.f32.mrb[255].mxu0 }
0x2a23   :  { %v10344_v49 = vadd.f32 %v10343_v2, %v10281_v20 }
0x2a24   :  { %v18337_v4 = vpack.c.bf16 %v10352_v5, %v10349_v3 }
0x2a25   :  { %v18339_v62 = vpack.c.bf16 %v10344_v49, %v10341_v43 }
0x2a26   :  { %v10572_v22 = vsel %vm2750_vm2, %v18337_v4, 0 }
0x2aa3   :  { %v10107_v25 = vpop.xlane.xlu0 %10106 }
0x2aa4   :  { %v10117_v50 = vmul.f32 0.015625, %v10107_v25 }
0x2aa5   :  { %v10110_v47 = vpop.xlane.xlu1 %10109 }
0x2aa6   :  { %v10121_v51 = vsub.f32 %v10101_v33, %v10117_v50  ;;  %v10118_v11 = vmul.f32 0.015625, %v10110_v47 }
0x2aa7   :  { %v10113_v18 = vpop.xlane.xlu0 %10112 }
0x2aa8   :  { %v10122_v0 = vsub.f32 %v10102_v55, %v10118_v11  ;;  %v10119_v14 = vmul.f32 0.015625, %v10113_v18  ;;  %v10125_v35 = vmul.f32 %v10121_v51, %v10121_v51  ;;  %v18366_v55 = vld [vmem:[%s18836_s18 + $0x20] sm:$0xff] }
0x2aa9   :  { %v10160_v58 = vrot.slane %v18366_v55, %v16528_v54  ;;  %v10168_v10 = vrot.slane %v18366_v55, %v16538_v59 }
0x2aaa   :  { %v10123_v7 = vsub.f32 %v10103_v19, %v10119_v14  ;;  %v10129_v26 = vsel %vm2675_vm0, %v10125_v35, 0.0  ;;  %v10126_v45 = vmul.f32 %v10122_v0, %v10122_v0  ;;  %v10187_v14 = vrot.slane %v18366_v55, %v16557_v6 }
0x2aab   :  { %10130 = vadd.xlane.f32.xlu1 %v10129_v26  ;;  %v10116_v44 = vpop.xlane.xlu0 %10115 }
0x2aac   :  { %v10120_v13 = vmul.f32 0.015625, %v10116_v44  ;;  %v10132_v23 = vsel %vm2675_vm0, %v10126_v45, 0.0  ;;  %v10127_v53 = vmul.f32 %v10123_v7, %v10123_v7 }
0x2aad   :  { %10133 = vadd.xlane.f32.xlu0 %v10132_v23 }
0x2aae   :  { %v10124_v21 = vsub.f32 %v10104_v41, %v10120_v13  ;;  %v10135_v15 = vsel %vm2675_vm0, %v10127_v53, 0.0 }
0x2aaf   :  { %10136 = vadd.xlane.f32.xlu1 %v10135_v15 }
0x2ab0   :  { %v10128_v9 = vmul.f32 %v10124_v21, %v10124_v21 }
0x2ab2   :  { %v10138_v36 = vsel %vm2675_vm0, %v10128_v9, 0.0 }
0x2ab3   :  { %10139 = vadd.xlane.f32.xlu0 %v10138_v36 }
0x2ac0   :  { %10417 = vrot.lane.b32.xlu1 %v18339_v62, %s15219_s30 }
0x2ac9   :  { %10468 = vrot.lane.b32.xlu0 %v18339_v62, %s18864_s26 }
0x2b38   :  { %v10131_v38 = vpop.xlane.xlu1 %10130 }
0x2b39   :  { %v10141_v52 = vmul.f32 0.015625, %v10131_v38 }
0x2b3a   :  { %v10134_v24 = vpop.xlane.xlu0 %10133 }
0x2b3b   :  { %v10145_v30 = vadd.f32 1e-05, %v10141_v52  ;;  %v10142_v31 = vmul.f32 0.015625, %v10134_v24 }
0x2b3c   :  { %v10137_v28 = vpop.xlane.xlu1 %10136 }
0x2b3d   :  { %15096 = vrsqrt.f32 %v10145_v30  ;;  %v10146_v57 = vadd.f32 1e-05, %v10142_v31  ;;  %v10143_v16 = vmul.f32 0.015625, %v10137_v28 }
0x2b3f   :  { %15098 = vrsqrt.f32 %v10146_v57  ;;  %v10147_v61 = vadd.f32 1e-05, %v10143_v16 }
0x2b40   :  { %v10140_v17 = vpop.xlane.xlu0 %10139  ;;  %v10418_v15 = vpop.permute.xlu1 %10417 }
0x2b41   :  { %15100 = vrsqrt.f32 %v10147_v61  ;;  %v10144_v33 = vmul.f32 0.015625, %v10140_v17  ;;  %v10423_v36 = vsel %vm2750_vm2, %v10418_v15, 0 }
0x2b43   :  { %v10148_v48 = vadd.f32 1e-05, %v10144_v33 }
0x2b44   :  { %v10469_v19 = vpop.permute.xlu0 %10468 }
0x2b45   :  { %15102 = vrsqrt.f32 %v10148_v48  ;;  %v10474_v42 = vsel %vm2750_vm2, %v10469_v19, 0 }
0x2b46   :  { %14043 = vmatpush3.bf16.xpose.msra.mxu0 %v10474_v42 }
0x2b47   :  { %v15097_v46 = vpop.eup %15096  ;;  %14054 = vmatprep.subr.bf16.mxu0 %v15217_v27 }
0x2b48   :  { %v10153_v41 = vmul.f32 %v15097_v46, %v10121_v51 }
0x2b49   :  { %v15099_v63 = vpop.eup %15098 }
0x2b4a   :  { %v10154_v20 = vmul.f32 %v15099_v63, %v10122_v0  ;;  %v10161_v40 = vmul.f32 %v10160_v58, %v10153_v41  ;;  %v10370_v0 = vsel %vm2750_vm2, %v18339_v62, 0 }
0x2b4b   :  { %v15101_v3 = vpop.eup %15100 }
0x2b4c   :  { %v10155_v1 = vmul.f32 %v15101_v3, %v10123_v7  ;;  %v10162_v37 = vmul.f32 %v10160_v58, %v10154_v20  ;;  %v18373_v5 = vadd.f32 %v10168_v10, %v10161_v40 }
0x2b4e   :  { %v18375_v2 = vadd.f32 %v10168_v10, %v10162_v37  ;;  %v10163_v49 = vmul.f32 %v10160_v58, %v10155_v1 }
0x2b4f   :  { %v15103_v43 = vpop.eup %15102 }
0x2b50   :  { %v10156_v25 = vmul.f32 %v15103_v43, %v10124_v21  ;;  %v10182_v50 = vpack.c.bf16 %v18375_v2, %v18373_v5  ;;  %v18380_v51 = vadd.f32 %v10168_v10, %v10163_v49 }
0x2b52   :  { %v10164_v47 = vmul.f32 %v10160_v58, %v10156_v25  ;;  %14014 = vmatprep.mubr.msk.bf16.mxu1 %vm2675_vm0, %v10182_v50 }
0x2b54   :  { %v18382_v11 = vadd.f32 %v10168_v10, %v10164_v47 }
0x2b56   :  { %v10183_v18 = vpack.c.bf16 %v18382_v11, %v18380_v51 }
0x2b58   :  { %14015 = vmatmul.mubr.msk.bf16.vlgmr.msra.gmra.mrb[252].mxu1 %vm2675_vm0, %v10183_v18 }
0x2b59   :  { %14031 = vmatpush3.bf16.xpose.msra.mxu1 %v10370_v0  ;;  %14032 = vmatprep.mubr.msk.bf16.mxu1 %vm15218_vm1, %v15217_v27 }
0x2b5a   :  { %14036 = vmatprep.subr.bf16.mxu1 %v15217_v27 }
0x2c2b   :  { %v14016_v35 = vpop.f32.mrb[252].mxu1 }
0x2c2c   :  { %v10252_v7 = vpop.f32.mrb[253].mxu1  ;;  %v10261_v45 = vadd.f32 %v14016_v35, %v10187_v14 }
0x2c2d   :  { %v14017_v26 = vpop.f32.mrb[254].mxu1  ;;  %v10253_v23 = vadd.f32 %v10252_v7, %v10187_v14 }
0x2c2e   :  { %v10264_v44 = vadd.f32 %v14017_v26, %v10187_v14  ;;  %v10255_v13 = vpop.f32.mrb[255].mxu1 }
0x2c2f   :  { %v10256_v53 = vadd.f32 %v10255_v13, %v10187_v14 }
0x2c30   :  { %v10268_v21 = vpack.c.bf16 %v10264_v44, %v10261_v45 }
0x2c31   :  { %v10267_v9 = vpack.c.bf16 %v10256_v53, %v10253_v23 }
0x2c33   :  { %10466 = vrot.lane.b32.xlu0 %v10267_v9, %s18864_s26  ;;  %10414 = vrot.lane.b32.xlu1 %v10267_v9, %s15219_s30 }
0x2c34   :  { %14033 = vmatmul.mubr.msk.bf16.vlgmr.msra.gmra.mrb[0].mxu1 %vm2750_vm2, %v10267_v9 }
0x2c35   :  { %14037 = vmatpush3.bf16.xpose.msra.mxu1 %v10423_v36  ;;  %14038 = vmatprep.mubr.msk.bf16.mxu1 %vm15218_vm1, %v15217_v27 }
0x2c36   :  { %14048 = vmatprep.subr.bf16.mxu1 %v15217_v27 }
0x2c37   :  { %10619 = vrot.lane.b32.xlu0 %v18337_v4, %s15219_s30  ;;  %10519 = vrot.lane.b32.xlu1 %v18339_v62, %s18865_s2 }
0x2c3b   :  { %10616 = vrot.lane.b32.xlu0 %v10268_v21, %s15219_s30  ;;  %10517 = vrot.lane.b32.xlu1 %v10267_v9, %s18865_s2 }
0x2c3f   :  { %10668 = vrot.lane.b32.xlu0 %v10268_v21, %s18864_s26  ;;  %10670 = vrot.lane.b32.xlu1 %v18337_v4, %s18864_s26 }
0x2c43   :  { %10721 = vrot.lane.b32.xlu1 %v18337_v4, %s18865_s2 }
0x2c47   :  { %10719 = vrot.lane.b32.xlu1 %v10268_v21, %s18865_s2 }
0x2c4b   :  { %10954 = vrot.lane.b32.xlu1 %v18339_v62, %s15220_s21 }
0x2ca5   :  { %v10415_v29 = vpop.permute.xlu1 %10414  ;;  %v10467_v60 = vpop.permute.xlu0 %10466 }
0x2ca6   :  { %14039 = vmatmul.mubr.msk.bf16.vlgmr.msra.gmra.mrb[4].mxu1 %vm2750_vm2, %v10415_v29  ;;  %14045 = vmatmul.mubr.msk.bf16.vlgmr.msra.gmra.mrb[0].mxu0 %vm2750_vm2, %v10467_v60 }
0x2ca7   :  { %14055 = vmatpush3.bf16.xpose.msra.mxu0 %v10572_v22  ;;  %14056 = vmatprep.mubr.msk.bf16.mxu0 %vm15218_vm1, %v15217_v27 }
0x2ca8   :  { %14050 = vmatprep.mubr.msk.bf16.mxu1 %vm15218_vm1, %v15217_v27  ;;  %14066 = vmatprep.subr.bf16.mxu0 %v15217_v27 }
0x2ca9   :  { %v10520_v39 = vpop.permute.xlu1 %10519  ;;  %v10620_v52 = vpop.permute.xlu0 %10619 }
0x2caa   :  { %v10525_v38 = vsel %vm2750_vm2, %v10520_v39, 0  ;;  %v10625_v31 = vsel %vm2750_vm2, %v10620_v52, 0 }
0x2cab   :  { %14049 = vmatpush3.bf16.xpose.msra.mxu1 %v10525_v38 }
0x2cac   :  { %14060 = vmatprep.subr.bf16.mxu1 %v15217_v27 }
0x2cad   :  { %v10518_v24 = vpop.permute.xlu1 %10517  ;;  %v10617_v57 = vpop.permute.xlu0 %10616 }
0x2cae   :  { %14057 = vmatmul.mubr.msk.bf16.vlgmr.msra.gmra.mrb[4].mxu0 %vm2750_vm2, %v10268_v21 }
0x2caf   :  { %14068 = vmatprep.mubr.msk.bf16.mxu0 %vm15218_vm1, %v15217_v27 }
0x2cb1   :  { %v10671_v30 = vpop.permute.xlu1 %10670  ;;  %v10669_v61 = vpop.permute.xlu0 %10668 }
0x2cb2   :  { %v10676_v28 = vsel %vm2750_vm2, %v10671_v30, 0  ;;  %14051 = vmatmul.mubr.msk.bf16.vlgmr.msra.gmra.mrb[8].mxu1 %vm2750_vm2, %v10518_v24 }
0x2cb3   :  { %14061 = vmatpush3.bf16.xpose.msra.mxu1 %v10625_v31  ;;  %14067 = vmatpush3.bf16.xpose.msra.mxu0 %v10676_v28 }
0x2cb4   :  { %14062 = vmatprep.mubr.msk.bf16.mxu1 %vm15218_vm1, %v15217_v27  ;;  %14072 = vmatprep.subr.bf16.mxu1 %v15217_v27 }
0x2cb5   :  { %v10722_v16 = vpop.permute.xlu1 %10721  ;;  %14078 = vmatprep.subr.bf16.mxu0 %v15217_v27 }
0x2cb6   :  { %v10727_v33 = vsel %vm2750_vm2, %v10722_v16, 0 }
0x2cb9   :  { %v10720_v17 = vpop.permute.xlu1 %10719 }
0x2cba   :  { %14063 = vmatmul.mubr.msk.bf16.vlgmr.msra.gmra.mrb[12].mxu1 %vm2750_vm2, %v10617_v57  ;;  %14069 = vmatmul.mubr.msk.bf16.vlgmr.msra.gmra.mrb[8].mxu0 %vm2750_vm2, %v10669_v61 }
0x2cbb   :  { %14073 = vmatpush3.bf16.xpose.msra.mxu1 %v10727_v33  ;;  %14074 = vmatprep.mubr.msk.bf16.mxu1 %vm15218_vm1, %v15217_v27 }
0x2cbc   :  { %14084 = vmatprep.subr.bf16.mxu1 %v15217_v27  ;;  %14080 = vmatprep.mubr.msk.bf16.mxu0 %vm15218_vm1, %v15217_v27 }
0x2cbd   :  { %v10955_v48 = vpop.permute.xlu1 %10954 }
0x2cbe   :  { %14079 = vmatpush3.bf16.msra.mxu0 %v10955_v48 }
0x2cbf   :  { %14090 = vmatprep.subr.bf16.mxu0 %v15217_v27 }
0x2cc2   :  { %14075 = vmatmul.mubr.msk.bf16.vlgmr.msra.gmra.mrb[16].mxu1 %vm2750_vm2, %v10720_v17 }
0x2cc3   :  { %14086 = vmatprep.mubr.msk.bf16.mxu1 %vm15218_vm1, %v15217_v27 }
0x2d07   :  { %v18448_v19 = vpop.f32.mrb[0].mxu1 }
0x2d08   :  { %v14034_v42 = vpop.f32.mrb[1].mxu1  ;;  %v10770_v58 = vsel %vm2750_vm2, %v18448_v19, -inf }
0x2d09   :  { %10771 = vmax.xlane.f32.xlu0 %v10770_v58  ;;  %v18452_v46 = vpop.f32.mrb[2].mxu1 }
0x2d0a   :  { %v14035_v41 = vpop.f32.mrb[3].mxu1  ;;  %v10773_v63 = vsel %vm2750_vm2, %v18452_v46, -inf }
0x2d0b   :  { %10774 = vmax.xlane.f32.xlu1 %v10773_v63 }
0x2d79   :  { %v18456_v20 = vpop.f32.mrb[4].mxu1  ;;  %v18458_v40 = vpop.f32.mrb[0].mxu0 }
0x2d7a   :  { %v14040_v10 = vpop.f32.mrb[5].mxu1  ;;  %v14046_v3 = vpop.f32.mrb[1].mxu0  ;;  %v10776_v1 = vsel %vm2750_vm2, %v18456_v20, -inf  ;;  %v10782_v37 = vsel %vm2750_vm2, %v18458_v40, -inf }
0x2d7b   :  { %10777 = vmax.xlane.f32.xlu0 %v10776_v1  ;;  %v18464_v43 = vpop.f32.mrb[6].mxu1  ;;  %10783 = vmax.xlane.f32.xlu1 %v10782_v37  ;;  %v18466_v49 = vpop.f32.mrb[2].mxu0 }
0x2d7c   :  { %v14041_v25 = vpop.f32.mrb[7].mxu1  ;;  %v14047_v50 = vpop.f32.mrb[3].mxu0  ;;  %v10779_v47 = vsel %vm2750_vm2, %v18464_v43, -inf  ;;  %v10785_v14 = vsel %vm2750_vm2, %v18466_v49, -inf }
0x2d7f   :  { %10780 = vmax.xlane.f32.xlu0 %v10779_v47 }
0x2d81   :  { %v18470_v18 = vpop.f32.mrb[4].mxu0 }
0x2d82   :  { %v14058_v0 = vpop.f32.mrb[5].mxu0  ;;  %v10794_v21 = vsel %vm2750_vm2, %v18470_v18, -inf }
0x2d83   :  { %10786 = vmax.xlane.f32.xlu0 %v10785_v14  ;;  %v18474_v35 = vpop.f32.mrb[6].mxu0 }
0x2d84   :  { %v14059_v7 = vpop.f32.mrb[7].mxu0  ;;  %v10797_v15 = vsel %vm2750_vm2, %v18474_v35, -inf }
0x2d85   :  { %v18476_v26 = vpop.f32.mrb[8].mxu1 }
0x2d86   :  { %v14052_v45 = vpop.f32.mrb[9].mxu1  ;;  %v10788_v44 = vsel %vm2750_vm2, %v18476_v26, -inf }
0x2d87   :  { %v18480_v13 = vpop.f32.mrb[10].mxu1  ;;  %10789 = vmax.xlane.f32.xlu1 %v10788_v44 }
0x2d88   :  { %v14053_v23 = vpop.f32.mrb[11].mxu1  ;;  %v10791_v53 = vsel %vm2750_vm2, %v18480_v13, -inf }
0x2d89   :  { %10792 = vmax.xlane.f32.xlu0 %v10791_v53 }
0x2d8b   :  { %10795 = vmax.xlane.f32.xlu1 %v10794_v21 }
0x2d8d   :  { %10798 = vmax.xlane.f32.xlu0 %v10797_v15  ;;  %v18488_v9 = vpop.f32.mrb[12].mxu1  ;;  %v18490_v36 = vpop.f32.mrb[8].mxu0 }
0x2d8e   :  { %v14064_v29 = vpop.f32.mrb[13].mxu1  ;;  %v14070_v60 = vpop.f32.mrb[9].mxu0  ;;  %v10800_v22 = vsel %vm2750_vm2, %v18488_v9, -inf  ;;  %v10806_v31 = vsel %vm2750_vm2, %v18490_v36, -inf }
0x2d8f   :  { %10801 = vmax.xlane.f32.xlu1 %v10800_v22  ;;  %v18494_v39 = vpop.f32.mrb[14].mxu1  ;;  %v18496_v38 = vpop.f32.mrb[10].mxu0 }
0x2d90   :  { %v14065_v52 = vpop.f32.mrb[15].mxu1  ;;  %v14071_v24 = vpop.f32.mrb[11].mxu0  ;;  %v10803_v30 = vsel %vm2750_vm2, %v18494_v39, -inf  ;;  %v10809_v28 = vsel %vm2750_vm2, %v18496_v38, -inf }
0x2d91   :  { %10804 = vmax.xlane.f32.xlu0 %v10803_v30 }
0x2d93   :  { %10807 = vmax.xlane.f32.xlu1 %v10806_v31 }
0x2d95   :  { %v18504_v57 = vpop.f32.mrb[16].mxu1  ;;  %10810 = vmax.xlane.f32.xlu0 %v10809_v28 }
0x2d96   :  { %v14076_v16 = vpop.f32.mrb[17].mxu1  ;;  %v10812_v61 = vsel %vm2750_vm2, %v18504_v57, -inf  ;;  %v10772_v58 = vpop.xlane.xlu0 %10771 }
0x2d97   :  { %v18508_v17 = vpop.f32.mrb[18].mxu1  ;;  %10813 = vmax.xlane.f32.xlu1 %v10812_v61  ;;  %v10818_v63 = vsub.f32 %v18448_v19, %v10772_v58 }
0x2d98   :  { %v14077_v33 = vpop.f32.mrb[19].mxu1  ;;  %v10815_v48 = vsel %vm2750_vm2, %v18508_v17, -inf  ;;  %v10775_v42 = vpop.xlane.xlu1 %10774 }
0x2d99   :  { %10816 = vmax.xlane.f32.xlu0 %v10815_v48  ;;  %v10819_v41 = vsub.f32 %v18452_v46, %v10775_v42  ;;  %v10834_v3 = vmul.f32 1.442695, %v10818_v63 }
0x2d9b   :  { %v10836_v10 = vmul.f32 1.442695, %v10819_v41 }
0x2d9d   :  { %15104 = vpow2.f32 %v10836_v10 }
0x2d9e   :  { %15106 = vpow2.f32 %v10834_v3 }
0x2da7   :  { %v18524_v1 = vpop.eup %15104 }
0x2da8   :  { %11048 = vrot.lane.b32.xlu1 %v18339_v62, %s15221_s23  ;;  %v18526_v37 = vpop.eup %15106 }
0x2da9   :  { %v10866_v25 = vsel %vm2750_vm2, %v18526_v37, 0.0 }
0x2dac   :  { %11095 = vrot.lane.b32.xlu1 %v18339_v62, %s15224_s16 }
0x2daf   :  { %11001 = vrot.lane.b32.xlu0 %v18339_v62, %s15222_s22  ;;  %v10869_v62 = vsel %vm2750_vm2, %v18524_v1, 0.0 }
0x2db0   :  { %11219 = vrot.lane.b32.xlu1 %v18337_v4, %s15222_s22 }
0x2db3   :  { %11172 = vrot.lane.b32.xlu0 %v18337_v4, %s15220_s21 }
0x2dd2   :  { %10870 = vadd.xlane.f32.xlu0 %v10869_v62 }
0x2dd4   :  { %10867 = vadd.xlane.f32.xlu1 %v10866_v25 }
0x2e08   :  { %v10784_v50 = vpop.xlane.xlu1 %10783  ;;  %v10778_v46 = vpop.xlane.xlu0 %10777 }
0x2e09   :  { %v10822_v19 = vsub.f32 %v18458_v40, %v10784_v50  ;;  %v10820_v47 = vsub.f32 %v18456_v20, %v10778_v46 }
0x2e0b   :  { %v10838_v0 = vmul.f32 1.442695, %v10820_v47  ;;  %v10842_v14 = vmul.f32 1.442695, %v10822_v19 }
0x2e0c   :  { %v10781_v7 = vpop.xlane.xlu0 %10780 }
0x2e0d   :  { %v10821_v45 = vsub.f32 %v18464_v43, %v10781_v7  ;;  %15108 = vpow2.f32 %v10838_v0 }
0x2e0e   :  { %15110 = vpow2.f32 %v10842_v14 }
0x2e0f   :  { %v10840_v44 = vmul.f32 1.442695, %v10821_v45 }
0x2e10   :  { %v10787_v23 = vpop.xlane.xlu0 %10786 }
0x2e11   :  { %15112 = vpow2.f32 %v10840_v44  ;;  %v10823_v53 = vsub.f32 %v18466_v49, %v10787_v23 }
0x2e13   :  { %v10844_v21 = vmul.f32 1.442695, %v10823_v53 }
0x2e14   :  { %v10790_v15 = vpop.xlane.xlu1 %10789 }
0x2e15   :  { %15114 = vpow2.f32 %v10844_v21  ;;  %v10824_v29 = vsub.f32 %v18476_v26, %v10790_v15 }
0x2e16   :  { %v10793_v40 = vpop.xlane.xlu0 %10792 }
0x2e17   :  { %v10846_v60 = vmul.f32 1.442695, %v10824_v29  ;;  %v10825_v20 = vsub.f32 %v18480_v13, %v10793_v40  ;;  %v18538_v22 = vpop.eup %15108 }
0x2e18   :  { %v10796_v52 = vpop.xlane.xlu1 %10795  ;;  %v10872_v30 = vsel %vm2750_vm2, %v18538_v22, 0.0  ;;  %v18543_v49 = vpop.eup %15110 }
0x2e19   :  { %15116 = vpow2.f32 %v10846_v60  ;;  %v10848_v43 = vmul.f32 1.442695, %v10825_v20  ;;  %v10826_v24 = vsub.f32 %v18470_v18, %v10796_v52  ;;  %10873 = vadd.xlane.f32.xlu1 %v10872_v30  ;;  %v10878_v48 = vsel %vm2750_vm2, %v18543_v49, 0.0 }
0x2e1a   :  { %v10799_v31 = vpop.xlane.xlu0 %10798 }
0x2e1b   :  { %v18545_v28 = vpop.eup %15112  ;;  %15118 = vpow2.f32 %v10848_v43  ;;  %v10850_v26 = vmul.f32 1.442695, %v10826_v24  ;;  %v10827_v13 = vsub.f32 %v18474_v35, %v10799_v31 }
0x2e1c   :  { %v10802_v16 = vpop.xlane.xlu1 %10801  ;;  %v10875_v61 = vsel %vm2750_vm2, %v18545_v28, 0.0 }
0x2e1d   :  { %15120 = vpow2.f32 %v10850_v26  ;;  %v10852_v33 = vmul.f32 1.442695, %v10827_v13  ;;  %v10828_v18 = vsub.f32 %v18488_v9, %v10802_v16  ;;  %10876 = vadd.xlane.f32.xlu0 %v10875_v61  ;;  %10879 = vadd.xlane.f32.xlu1 %v10878_v48 }
0x2e1e   :  { %v10805_v42 = vpop.xlane.xlu0 %10804 }
0x2e1f   :  { %v18553_v58 = vpop.eup %15114  ;;  %15122 = vpow2.f32 %v10852_v33  ;;  %v10854_v41 = vmul.f32 1.442695, %v10828_v18  ;;  %v10829_v35 = vsub.f32 %v18494_v39, %v10805_v42 }
0x2e20   :  { %v10808_v63 = vpop.xlane.xlu1 %10807  ;;  %v10881_v10 = vsel %vm2750_vm2, %v18553_v58, 0.0 }
0x2e21   :  { %15124 = vpow2.f32 %v10854_v41  ;;  %v10856_v3 = vmul.f32 1.442695, %v10829_v35  ;;  %v10830_v9 = vsub.f32 %v18490_v36, %v10808_v63  ;;  %10882 = vadd.xlane.f32.xlu0 %v10881_v10 }
0x2e22   :  { %v10811_v62 = vpop.xlane.xlu0 %10810 }
0x2e23   :  { %v18559_v25 = vpop.eup %15116  ;;  %15126 = vpow2.f32 %v10856_v3  ;;  %v10858_v50 = vmul.f32 1.442695, %v10830_v9  ;;  %v10831_v46 = vsub.f32 %v18496_v38, %v10811_v62 }
0x2e24   :  { %v10814_v19 = vpop.xlane.xlu1 %10813  ;;  %v10884_v39 = vsel %vm2750_vm2, %v18559_v25, 0.0 }
0x2e25   :  { %v18564_v47 = vpop.eup %15118  ;;  %15128 = vpow2.f32 %v10858_v50  ;;  %v10860_v0 = vmul.f32 1.442695, %v10831_v46  ;;  %v10832_v14 = vsub.f32 %v18504_v57, %v10814_v19  ;;  %10885 = vadd.xlane.f32.xlu1 %v10884_v39 }
0x2e26   :  { %v10817_v36 = vpop.xlane.xlu0 %10816  ;;  %v10887_v7 = vsel %vm2750_vm2, %v18564_v47, 0.0 }
0x2e27   :  { %v18569_v45 = vpop.eup %15120  ;;  %15130 = vpow2.f32 %v10860_v0  ;;  %v10862_v44 = vmul.f32 1.442695, %v10832_v14  ;;  %v10833_v38 = vsub.f32 %v18508_v17, %v10817_v36  ;;  %10888 = vadd.xlane.f32.xlu0 %v10887_v7 }
0x2e28   :  { %v10890_v23 = vsel %vm2750_vm2, %v18569_v45, 0.0  ;;  %v11049_v16 = vpop.permute.xlu1 %11048 }
0x2e29   :  { %v18574_v53 = vpop.eup %15122  ;;  %15132 = vpow2.f32 %v10862_v44  ;;  %v10864_v21 = vmul.f32 1.442695, %v10833_v38  ;;  %10891 = vadd.xlane.f32.xlu1 %v10890_v23 }
0x2e2a   :  { %v11002_v57 = vpop.permute.xlu0 %11001  ;;  %v10893_v15 = vsel %vm2750_vm2, %v18574_v53, 0.0 }
0x2e2b   :  { %v18578_v29 = vpop.eup %15124  ;;  %15134 = vpow2.f32 %v10864_v21  ;;  %10894 = vadd.xlane.f32.xlu0 %v10893_v15  ;;  %14085 = vmatpush3.bf16.msra.mxu1 %v11002_v57 }
0x2e2c   :  { %v10896_v17 = vsel %vm2750_vm2, %v18578_v29, 0.0  ;;  %14096 = vmatprep.subr.bf16.mxu1 %v15217_v27  ;;  %v11096_v61 = vpop.permute.xlu1 %11095 }
0x2e2d   :  { %v18583_v40 = vpop.eup %15126  ;;  %10897 = vadd.xlane.f32.xlu1 %v10896_v17 }
0x2e2e   :  { %v10899_v60 = vsel %vm2750_vm2, %v18583_v40, 0.0  ;;  %v11173_v33 = vpop.permute.xlu0 %11172 }
0x2e2f   :  { %v18587_v20 = vpop.eup %15128  ;;  %10900 = vadd.xlane.f32.xlu0 %v10899_v60 }
0x2e30   :  { %v10902_v52 = vsel %vm2750_vm2, %v18587_v20, 0.0  ;;  %v18607_v18 = vpop.permute.xlu1 %11219 }
0x2e31   :  { %v18591_v43 = vpop.eup %15130  ;;  %10903 = vadd.xlane.f32.xlu1 %v10902_v52 }
0x2e32   :  { %v10905_v24 = vsel %vm2750_vm2, %v18591_v43, 0.0 }
0x2e33   :  { %v18595_v30 = vpop.eup %15132  ;;  %10906 = vadd.xlane.f32.xlu0 %v10905_v24 }
0x2e34   :  { %v10908_v31 = vsel %vm2750_vm2, %v18595_v30, 0.0 }
0x2e35   :  { %v18599_v26 = vpop.eup %15134  ;;  %10909 = vadd.xlane.f32.xlu1 %v10908_v31 }
0x2e36   :  { %v10911_v13 = vsel %vm2750_vm2, %v18599_v26, 0.0 }
0x2e37   :  { %10912 = vadd.xlane.f32.xlu0 %v10911_v13 }
0x2e46   :  { %11313 = vrot.lane.b32.xlu1 %v18337_v4, %s15224_s16 }
0x2e4d   :  { %11266 = vrot.lane.b32.xlu0 %v18337_v4, %s15221_s23 }
0x2e5f   :  { %v10871_v48 = vpop.xlane.xlu0 %10870 }
0x2e60   :  { %15136 = vrcp.f32 %v10871_v48 }
0x2e61   :  { %v10868_v42 = vpop.xlane.xlu1 %10867 }
0x2e62   :  { %15138 = vrcp.f32 %v10868_v42 }
0x2e6a   :  { %v15137_v41 = vpop.eup %15136 }
0x2e6b   :  { %v10931_v63 = vmul.f32 %v15137_v41, %v18524_v1 }
0x2e6c   :  { %v15139_v35 = vpop.eup %15138 }
0x2e6d   :  { %v10930_v10 = vmul.f32 %v15139_v35, %v18526_v37 }
0x2e6f   :  { %v10946_v3 = vpack.c.bf16 %v10931_v63, %v10930_v10 }
0x2e71   :  { %14081 = vmatmul.mubr.msk.bf16.vlgmr.msra.gmra.mrb[12].mxu0 %vm2750_vm2, %v10946_v3 }
0x2e72   :  { %14091 = vmatpush3.bf16.msra.mxu0 %v11049_v16  ;;  %14092 = vmatprep.mubr.msk.bf16.mxu0 %vm15218_vm1, %v15217_v27 }
0x2e73   :  { %14102 = vmatprep.subr.bf16.mxu0 %v15217_v27 }
0x2ea6   :  { %v10874_v4 = vpop.xlane.xlu1 %10873 }
0x2ea7   :  { %15140 = vrcp.f32 %v10874_v4 }
0x2eaa   :  { %v10877_v9 = vpop.xlane.xlu0 %10876  ;;  %v10880_v62 = vpop.xlane.xlu1 %10879 }
0x2eab   :  { %15142 = vrcp.f32 %v10877_v9 }
0x2eac   :  { %15144 = vrcp.f32 %v10880_v62 }
0x2eae   :  { %v10883_v50 = vpop.xlane.xlu0 %10882 }
0x2eaf   :  { %15146 = vrcp.f32 %v10883_v50 }
0x2eb1   :  { %v15141_v46 = vpop.eup %15140 }
0x2eb2   :  { %v10886_v1 = vpop.xlane.xlu1 %10885  ;;  %v10932_v39 = vmul.f32 %v15141_v46, %v18538_v22 }
0x2eb3   :  { %15148 = vrcp.f32 %v10886_v1 }
0x2eb4   :  { %v10889_v37 = vpop.xlane.xlu0 %10888 }
0x2eb5   :  { %v15143_v19 = vpop.eup %15142  ;;  %15150 = vrcp.f32 %v10889_v37 }
0x2eb6   :  { %v10933_v0 = vmul.f32 %v15143_v19, %v18545_v28  ;;  %v10892_v14 = vpop.xlane.xlu1 %10891  ;;  %v15145_v36 = vpop.eup %15144 }
0x2eb7   :  { %15152 = vrcp.f32 %v10892_v14  ;;  %v10934_v23 = vmul.f32 %v15145_v36, %v18543_v49 }
0x2eb8   :  { %v10947_v7 = vpack.c.bf16 %v10933_v0, %v10932_v39  ;;  %v10895_v44 = vpop.xlane.xlu0 %10894 }
0x2eb9   :  { %v15147_v38 = vpop.eup %15146  ;;  %15154 = vrcp.f32 %v10895_v44 }
0x2eba   :  { %v10935_v21 = vmul.f32 %v15147_v38, %v18553_v58  ;;  %v10898_v57 = vpop.xlane.xlu1 %10897  ;;  %14087 = vmatmul.mubr.msk.bf16.vlgmr.msra.gmra.mrb[20].mxu1 %vm2750_vm2, %v10947_v7 }
0x2ebb   :  { %15156 = vrcp.f32 %v10898_v57  ;;  %14097 = vmatpush3.bf16.msra.mxu1 %v11096_v61  ;;  %14098 = vmatprep.mubr.msk.bf16.mxu1 %vm15218_vm1, %v15217_v27  ;;  %v14693_v57 = vld [vmem:[%s18841_s12 + $0x28] sm:$0xff]  }
0x2ebc   :  { %v10948_v22 = vpack.c.bf16 %v10935_v21, %v10934_v23  ;;  %v10901_v28 = vpop.xlane.xlu0 %10900  ;;  %14108 = vmatprep.subr.bf16.mxu1 %v15217_v27 }
0x2ebd   :  { %v15149_v15 = vpop.eup %15148  ;;  %15158 = vrcp.f32 %v10901_v28 }
0x2ebe   :  { %v10904_v17 = vpop.xlane.xlu1 %10903  ;;  %14093 = vmatmul.mubr.msk.bf16.vlgmr.msra.gmra.mrb[16].mxu0 %vm2750_vm2, %v10948_v22  ;;  %v10936_v58 = vmul.f32 %v15149_v15, %v18559_v25 }
0x2ebf   :  { %v15151_v49 = vpop.eup %15150  ;;  %15160 = vrcp.f32 %v10904_v17  ;;  %14103 = vmatpush3.bf16.msra.mxu0 %v11173_v33  ;;  %14104 = vmatprep.mubr.msk.bf16.mxu0 %vm15218_vm1, %v15217_v27 }
0x2ec0   :  { %v10937_v60 = vmul.f32 %v15151_v49, %v18564_v47  ;;  %v10907_v52 = vpop.xlane.xlu0 %10906  ;;  %14114 = vmatprep.subr.bf16.mxu0 %v15217_v27 }
0x2ec1   :  { %v15153_v24 = vpop.eup %15152  ;;  %15162 = vrcp.f32 %v10907_v52 }
0x2ec2   :  { %v10949_v31 = vpack.c.bf16 %v10937_v60, %v10936_v58  ;;  %v10910_v13 = vpop.xlane.xlu1 %10909  ;;  %v10938_v61 = vmul.f32 %v15153_v24, %v18569_v45  ;;  %v14694_v58 = vld [vmem:[%s18841_s12 + $0x30] sm:$0xff]  }
0x2ec3   :  { %v15155_v16 = vpop.eup %15154  ;;  %15164 = vrcp.f32 %v10910_v13  ;;  %v14695_v13 = vld [vmem:[%s18841_s12 + $0x38] sm:$0xff]  }
0x2ec4   :  { %v10939_v33 = vmul.f32 %v15155_v16, %v18574_v53  ;;  %14099 = vmatmul.mubr.msk.bf16.vlgmr.msra.gmra.mrb[24].mxu1 %vm2750_vm2, %v10949_v31  ;;  %v10913_v48 = vpop.xlane.xlu0 %10912 }
0x2ec5   :  { %v15157_v42 = vpop.eup %15156  ;;  %14109 = vmatpush3.bf16.msra.mxu1 %v18607_v18  ;;  %15166 = vrcp.f32 %v10913_v48  ;;  %14110 = vmatprep.mubr.msk.bf16.mxu1 %vm15218_vm1, %v15217_v27 }
0x2ec6   :  { %v10950_v25 = vpack.c.bf16 %v10939_v33, %v10938_v61  ;;  %14120 = vmatprep.subr.bf16.mxu1 %v15217_v27  ;;  %v10940_v41 = vmul.f32 %v15157_v42, %v18578_v29  ;;  %v11314_v4 = vpop.permute.xlu1 %11313 }
0x2ec7   :  { %v15159_v47 = vpop.eup %15158 }
0x2ec8   :  { %v10941_v45 = vmul.f32 %v15159_v47, %v18583_v40  ;;  %14105 = vmatmul.mubr.msk.bf16.vlgmr.msra.gmra.mrb[20].mxu0 %vm2750_vm2, %v10950_v25  ;;  %v11267_v53 = vpop.permute.xlu0 %11266 }
0x2ec9   :  { %v15161_v35 = vpop.eup %15160  ;;  %14115 = vmatpush3.bf16.msra.mxu0 %v11267_v53  ;;  %14116 = vmatprep.mubr.msk.bf16.mxu0 %vm15218_vm1, %v15217_v27 }
0x2eca   :  { %v10951_v18 = vpack.c.bf16 %v10941_v45, %v10940_v41  ;;  %v10942_v10 = vmul.f32 %v15161_v35, %v18587_v20 }
0x2ecb   :  { %v15163_v63 = vpop.eup %15162 }
0x2ecc   :  { %v10943_v3 = vmul.f32 %v15163_v63, %v18591_v43  ;;  %14111 = vmatmul.mubr.msk.bf16.vlgmr.msra.gmra.mrb[28].mxu1 %vm2750_vm2, %v10951_v18 }
0x2ecd   :  { %v15165_v29 = vpop.eup %15164  ;;  %14121 = vmatpush3.bf16.msra.mxu1 %v11314_v4  ;;  %14122 = vmatprep.mubr.msk.bf16.mxu1 %vm15218_vm1, %v15217_v27 }
0x2ece   :  { %v10952_v40 = vpack.c.bf16 %v10943_v3, %v10942_v10  ;;  %v10944_v62 = vmul.f32 %v15165_v29, %v18595_v30 }
0x2ecf   :  { %v15167_v9 = vpop.eup %15166 }
0x2ed0   :  { %v10945_v50 = vmul.f32 %v15167_v9, %v18599_v26  ;;  %14117 = vmatmul.mubr.msk.bf16.vlgmr.msra.gmra.mrb[24].mxu0 %vm2750_vm2, %v10952_v40  ;;  %v14692_v26 = vld [vmem:[%s18841_s12 + $0x20] sm:$0xff]  }
0x2ed1   :  { %14126 = vmatprep.subr.bf16.mxu0 %v14692_v26 }
0x2ed2   :  { %v10953_v1 = vpack.c.bf16 %v10945_v50, %v10944_v62  ;;  %14127 = vmatpush3.bf16.msra.mxu0 %v14692_v26 }
0x2ed3   :  { %14128 = vmatprep.subr.bf16.mxu0 %v14693_v57 }
0x2ed4   :  { %14123 = vmatmul.mubr.msk.bf16.vlgmr.msra.gmra.mrb[32].mxu1 %vm2750_vm2, %v10953_v1 }
0x2ed6   :  { %14129 = vmatpush3.bf16.msra.mxu0 %v14693_v57 }
0x2ed7   :  { %14130 = vmatprep.subr.bf16.mxu0 %v14694_v58 }
0x2eda   :  { %14131 = vmatpush3.bf16.msra.mxu0 %v14694_v58 }
0x2edb   :  { %14132 = vmatprep.subr.bf16.mxu0 %v14695_v13 }
0x2ede   :  { %14133 = vmatpush3.bf16.msra.mxu0 %v14695_v13 }
0x2f44   :  { %v18650_v20 = vpop.f32.mrb[12].mxu0 }
0x2f45   :  { %v14082_v43 = vpop.f32.mrb[13].mxu0 }
0x2f46   :  { %v10997_v46 = vpop.f32.mrb[14].mxu0 }
0x2f47   :  { %v14083_v37 = vpop.f32.mrb[15].mxu0 }
0x2f8d   :  { %v11041_v19 = vpop.f32.mrb[20].mxu1 }
0x2f8e   :  { %v14088_v39 = vpop.f32.mrb[21].mxu1 }
0x2f8f   :  { %v11044_v0 = vpop.f32.mrb[22].mxu1 }
0x2f90   :  { %v14342_v27 = vpack.i.bf16 %v11044_v0, %v11041_v19  ;;  %v14089_v14 = vpop.f32.mrb[23].mxu1 }
0x2f91   :  { %v11088_v36 = vpop.f32.mrb[16].mxu0 }
0x2f92   :  { %14343 = vrot.lane.b32.xlu0 %v14342_v27, %s15224_s16  ;;  %v14094_v30 = vpop.f32.mrb[17].mxu0 }
0x2f93   :  { %v11091_v7 = vpop.f32.mrb[18].mxu0 }
0x2f94   :  { %v14347_v44 = vpack.i.bf16 %v11091_v7, %v11088_v36  ;;  %v14095_v38 = vpop.f32.mrb[19].mxu0 }
0x2f96   :  { %14348 = vrot.lane.b32.xlu1 %v14347_v44, %s15221_s23 }
0x2f97   :  { %v11135_v23 = vpop.f32.mrb[24].mxu1 }
0x2f98   :  { %v14100_v21 = vpop.f32.mrb[25].mxu1 }
0x2f99   :  { %v11138_v22 = vpop.f32.mrb[26].mxu1 }
0x2f9a   :  { %v14352_v28 = vpack.i.bf16 %v11138_v22, %v11135_v23  ;;  %v14101_v15 = vpop.f32.mrb[27].mxu1 }
0x2f9b   :  { %v11212_v17 = vpop.f32.mrb[20].mxu0 }
0x2f9c   :  { %14353 = vrot.lane.b32.xlu1 %v14352_v28, %s15222_s22  ;;  %v14106_v49 = vpop.f32.mrb[21].mxu0 }
0x2f9d   :  { %v11215_v60 = vpop.f32.mrb[22].mxu0 }
0x2f9e   :  { %v14107_v52 = vpop.f32.mrb[23].mxu0 }
0x2f9f   :  { %v11259_v24 = vpop.f32.mrb[28].mxu1  ;;  %v11395_v52 = vrot.slane %v18366_v55, %v16602_v56 }
0x2fa0   :  { %v14112_v31 = vpop.f32.mrb[29].mxu1 }
0x2fa1   :  { %v11262_v16 = vpop.f32.mrb[30].mxu1 }
0x2fa2   :  { %v14357_v61 = vpack.i.bf16 %v11262_v16, %v11259_v24  ;;  %v14113_v33 = vpop.f32.mrb[31].mxu1 }
0x2fa3   :  { %v11306_v48 = vpop.f32.mrb[24].mxu0 }
0x2fa4   :  { %14358 = vrot.lane.b32.xlu0 %v14357_v61, %s15224_s16  ;;  %v14118_v42 = vpop.f32.mrb[25].mxu0 }
0x2fa5   :  { %v11309_v25 = vpop.f32.mrb[26].mxu0 }
0x2fa6   :  { %v14362_v47 = vpack.i.bf16 %v11309_v25, %v11306_v48  ;;  %v14119_v41 = vpop.f32.mrb[27].mxu0 }
0x2fa7   :  { %v11353_v45 = vpop.f32.mrb[32].mxu1 }
0x2fa8   :  { %v14124_v53 = vpop.f32.mrb[33].mxu1  ;;  %14363 = vrot.lane.b32.xlu0 %v14362_v47, %s15221_s23 }
0x2fa9   :  { %v11356_v35 = vpop.f32.mrb[34].mxu1 }
0x2faa   :  { %v14367_v18 = vpack.i.bf16 %v11356_v35, %v11353_v45  ;;  %v14125_v63 = vpop.f32.mrb[35].mxu1 }
0x2fac   :  { %14368 = vrot.lane.b32.xlu1 %v14367_v18, %s15222_s22 }
0x3004   :  { %v14344_v10 = vpop.permute.xlu0 %14343 }
0x3005   :  { %v14346_v4 = vunpack.i.h.bf16 %v14344_v10  ;;  %v14345_v29 = vunpack.i.l.bf16 %v14344_v10 }
0x3007   :  { %v11167_v50 = vsel %vm2750_vm2, %v10997_v46, %v14346_v4  ;;  %v11166_v1 = vsel %vm2750_vm2, %v18650_v20, %v14345_v29 }
0x3008   :  { %v14349_v3 = vpop.permute.xlu1 %14348 }
0x3009   :  { %v14351_v40 = vunpack.i.h.bf16 %v14349_v3  ;;  %v14350_v9 = vunpack.i.l.bf16 %v14349_v3 }
0x300b   :  { %v11168_v19 = vsel %vm3550_vm3, %v11166_v1, %v14350_v9  ;;  %v11169_v39 = vsel %vm3550_vm3, %v11167_v50, %v14351_v40 }
0x300e   :  { %v14354_v62 = vpop.permute.xlu1 %14353 }
0x300f   :  { %v14356_v43 = vunpack.i.h.bf16 %v14354_v62  ;;  %v14355_v37 = vunpack.i.l.bf16 %v14354_v62 }
0x3011   :  { %v11170_v0 = vsel %vm3553_vm4, %v11168_v19, %v14355_v37  ;;  %v11171_v27 = vsel %vm3553_vm4, %v11169_v39, %v14356_v43  ;;  %v14696_v39 = vld [vmem:[%s18842_s13 + $0x20] sm:$0xff]  }
0x3012   :  { %v11390_v14 = vpack.c.bf16 %v11171_v27, %v11170_v0  ;;  %14138 = vmatprep.subr.bf16.mxu1 %v14696_v39  ;;  %v14697_v0 = vld [vmem:[%s18842_s13 + $0x28] sm:$0xff]   ;;  %v14698_v27 = vld [vmem:[%s18842_s13 + $0x30] sm:$0xff]  }
0x3013   :  { %14139 = vmatpush3.bf16.msra.mxu1 %v14696_v39 }
0x3014   :  { %14134 = vmatprep.mubr.msk.bf16.mxu0 %vm2675_vm0, %v11390_v14  ;;  %14140 = vmatprep.subr.bf16.mxu1 %v14697_v0  ;;  %v14699_v14 = vld [vmem:[%s18842_s13 + $0x38] sm:$0xff]  }
0x3016   :  { %v14359_v36 = vpop.permute.xlu0 %14358 }
0x3017   :  { %v14361_v26 = vunpack.i.h.bf16 %v14359_v36  ;;  %v14360_v46 = vunpack.i.l.bf16 %v14359_v36  ;;  %14141 = vmatpush3.bf16.msra.mxu1 %v14697_v0  ;;  %v14700_v36 = vld [vmem:[%s18843_s14 + $0x40] sm:$0xff]  }
0x3018   :  { %14142 = vmatprep.subr.bf16.mxu1 %v14698_v27  ;;  %14150 = vmatprep.subr.bf16.mxu0 %v14700_v36 }
0x3019   :  { %v11385_v38 = vsel %vm2750_vm2, %v11215_v60, %v14361_v26  ;;  %v11384_v23 = vsel %vm2750_vm2, %v11212_v17, %v14360_v46  ;;  %v14702_v26 = vld [vmem:[%s18843_s14 + $0x50] sm:$0xff]   ;;  %v14703_v46 = vld [vmem:[%s18843_s14 + $0x58] sm:$0xff]  }
0x301a   :  { %v14364_v30 = vpop.permute.xlu0 %14363 }
0x301b   :  { %v14366_v7 = vunpack.i.h.bf16 %v14364_v30  ;;  %v14365_v44 = vunpack.i.l.bf16 %v14364_v30  ;;  %14143 = vmatpush3.bf16.msra.mxu1 %v14698_v27  ;;  %v14701_v30 = vld [vmem:[%s18843_s14 + $0x48] sm:$0xff]  }
0x301c   :  { %14144 = vmatprep.subr.bf16.mxu1 %v14699_v14 }
0x301d   :  { %v11386_v22 = vsel %vm3550_vm3, %v11384_v23, %v14365_v44  ;;  %v11387_v28 = vsel %vm3550_vm3, %v11385_v38, %v14366_v7  ;;  %v14704_v7 = vld [vmem:[%s18843_s14 + $0x60] sm:$0xff]   ;;  %v14705_v44 = vld [vmem:[%s18843_s14 + $0x68] sm:$0xff]  }
0x301e   :  { %v14369_v20 = vpop.permute.xlu1 %14368 }
0x301f   :  { %v14371_v21 = vunpack.i.h.bf16 %v14369_v20  ;;  %v14370_v57 = vunpack.i.l.bf16 %v14369_v20  ;;  %14145 = vmatpush3.bf16.msra.mxu1 %v14699_v14 }
0x3021   :  { %v11388_v15 = vsel %vm3553_vm4, %v11386_v22, %v14370_v57  ;;  %v11389_v49 = vsel %vm3553_vm4, %v11387_v28, %v14371_v21 }
0x3022   :  { %v11391_v58 = vpack.c.bf16 %v11389_v49, %v11388_v15 }
0x3024   :  { %14135 = vmatmul.mubr.msk.bf16.vlgmr.msra.gmra.mrb[28].mxu0 %vm2675_vm0, %v11391_v58 }
0x3025   :  { %14151 = vmatpush3.bf16.msra.mxu0 %v14700_v36 }
0x3026   :  { %14152 = vmatprep.subr.bf16.mxu0 %v14701_v30 }
0x3029   :  { %14153 = vmatpush3.bf16.msra.mxu0 %v14701_v30 }
0x302a   :  { %14154 = vmatprep.subr.bf16.mxu0 %v14702_v26 }
0x302d   :  { %14155 = vmatpush3.bf16.msra.mxu0 %v14702_v26 }
0x302e   :  { %14156 = vmatprep.subr.bf16.mxu0 %v14703_v46 }
0x3031   :  { %14157 = vmatpush3.bf16.msra.mxu0 %v14703_v46 }
0x3032   :  { %14158 = vmatprep.subr.bf16.mxu0 %v14704_v7 }
0x3035   :  { %14159 = vmatpush3.bf16.msra.mxu0 %v14704_v7 }
0x3036   :  { %14160 = vmatprep.subr.bf16.mxu0 %v14705_v44 }
0x3039   :  { %14161 = vmatpush3.bf16.msra.mxu0 %v14705_v44 }
0x30f7   :  { %v14136_v24 = vpop.f32.mrb[28].mxu0 }
0x30f8   :  { %v11460_v60 = vpop.f32.mrb[29].mxu0  ;;  %v11469_v31 = vadd.f32 %v14136_v24, %v11395_v52 }
0x30f9   :  { %v11461_v17 = vadd.f32 %v11460_v60, %v11395_v52  ;;  %v14137_v13 = vpop.f32.mrb[30].mxu0  ;;  %v15214_v60 = vld [vmem:[%s18836_s18 + $0x20] sm:$0xff] }
0x30fa   :  { %v11463_v16 = vpop.f32.mrb[31].mxu0  ;;  %v11477_v48 = vadd.f32 %v11469_v31, %v18380_v51  ;;  %v11472_v42 = vadd.f32 %v14137_v13, %v11395_v52  ;;  %v11534_v31 = vrot.slane %v15214_v60, %v16607_v12  ;;  %v18752_v13 = vld [vmem:[%s18836_s18 + $0x30] sm:$0x1f] }
0x30fb   :  { %v11475_v61 = vadd.f32 %v11461_v17, %v18373_v5  ;;  %v11464_v33 = vadd.f32 %v11463_v16, %v11395_v52  ;;  %v11667_v27 = vrot.slane %v18752_v13, %v16528_v54 }
0x30fc   :  { %v11478_v56 = vadd.f32 %v11472_v42, %v18382_v11  ;;  %v11485_v55 = vsel %vm2675_vm0, %v11477_v48, 0.0 }
0x30fd   :  { %v11476_v25 = vadd.f32 %v11464_v33, %v18375_v2  ;;  %v11479_v47 = vsel %vm2675_vm0, %v11475_v61, 0.0 }
0x30fe   :  { %11480 = vadd.xlane.f32.xlu0 %v11479_v47  ;;  %v11488_v45 = vsel %vm2675_vm0, %v11478_v56, 0.0 }
0x30ff   :  { %v11482_v41 = vsel %vm2675_vm0, %v11476_v25, 0.0 }
0x3100   :  { %11483 = vadd.xlane.f32.xlu1 %v11482_v41 }
0x3102   :  { %11486 = vadd.xlane.f32.xlu0 %v11485_v55 }
0x3106   :  { %11489 = vadd.xlane.f32.xlu0 %v11488_v45 }
0x318b   :  { %v11481_v5 = vpop.xlane.xlu0 %11480 }
0x318c   :  { %v11491_v53 = vmul.f32 0.015625, %v11481_v5 }
0x318d   :  { %v11484_v51 = vpop.xlane.xlu1 %11483 }
0x318e   :  { %v18695_v35 = vsub.f32 %v11475_v61, %v11491_v53  ;;  %v11492_v2 = vmul.f32 0.015625, %v11484_v51 }
0x318f   :  { %v11487_v18 = vpop.xlane.xlu0 %11486 }
0x3190   :  { %v18697_v63 = vsub.f32 %v11476_v25, %v11492_v2  ;;  %v11493_v10 = vmul.f32 0.015625, %v11487_v18  ;;  %v11499_v3 = vmul.f32 %v18695_v35, %v18695_v35 }
0x3192   :  { %v18701_v11 = vsub.f32 %v11477_v48, %v11493_v10  ;;  %v11503_v4 = vsel %vm2675_vm0, %v11499_v3, 0.0  ;;  %v11500_v29 = vmul.f32 %v18697_v63, %v18697_v63  ;;  %v11542_v48 = vrot.slane %v18752_v13, %v16055_v34  ;;  %v14706_v34 = vld [vmem:[%s18843_s14 + $0x70] sm:$0xff]  }
0x3193   :  { %11504 = vadd.xlane.f32.xlu1 %v11503_v4  ;;  %v11490_v40 = vpop.xlane.xlu0 %11489  ;;  %14162 = vmatprep.subr.bf16.mxu0 %v14706_v34  ;;  %v11561_v10 = vrot.slane %v18752_v13, %v16114_v8 }
0x3194   :  { %v11494_v9 = vmul.f32 0.015625, %v11490_v40  ;;  %v11506_v62 = vsel %vm2675_vm0, %v11500_v29, 0.0  ;;  %v11501_v50 = vmul.f32 %v18701_v11, %v18701_v11  ;;  %14163 = vmatpush3.bf16.msra.mxu0 %v14706_v34 }
0x3195   :  { %11507 = vadd.xlane.f32.xlu0 %v11506_v62 }
0x3196   :  { %v18709_v1 = vsub.f32 %v11478_v56, %v11494_v9  ;;  %v11509_v43 = vsel %vm2675_vm0, %v11501_v50, 0.0 }
0x3197   :  { %11510 = vadd.xlane.f32.xlu1 %v11509_v43 }
0x3198   :  { %v11502_v37 = vmul.f32 %v18709_v1, %v18709_v1 }
0x319a   :  { %v11512_v19 = vsel %vm2675_vm0, %v11502_v37, 0.0 }
0x319b   :  { %11513 = vadd.xlane.f32.xlu0 %v11512_v19 }
0x3220   :  { %v11505_v20 = vpop.xlane.xlu1 %11504 }
0x3221   :  { %v11515_v38 = vmul.f32 0.015625, %v11505_v20 }
0x3222   :  { %v11508_v23 = vpop.xlane.xlu0 %11507 }
0x3223   :  { %v11519_v21 = vadd.f32 1e-05, %v11515_v38  ;;  %v11516_v57 = vmul.f32 0.015625, %v11508_v23 }
0x3224   :  { %v11511_v22 = vpop.xlane.xlu1 %11510 }
0x3225   :  { %15168 = vrsqrt.f32 %v11519_v21  ;;  %v11520_v28 = vadd.f32 1e-05, %v11516_v57  ;;  %v11517_v15 = vmul.f32 0.015625, %v11511_v22 }
0x3227   :  { %15170 = vrsqrt.f32 %v11520_v28  ;;  %v11521_v49 = vadd.f32 1e-05, %v11517_v15 }
0x3228   :  { %v11514_v58 = vpop.xlane.xlu0 %11513 }
0x3229   :  { %15172 = vrsqrt.f32 %v11521_v49  ;;  %v11518_v52 = vmul.f32 0.015625, %v11514_v58 }
0x322b   :  { %v11522_v24 = vadd.f32 1e-05, %v11518_v52 }
0x322d   :  { %15174 = vrsqrt.f32 %v11522_v24 }
0x322f   :  { %v15169_v17 = vpop.eup %15168 }
0x3230   :  { %v11527_v16 = vmul.f32 %v15169_v17, %v18695_v35 }
0x3231   :  { %v15171_v61 = vpop.eup %15170 }
0x3232   :  { %v11528_v33 = vmul.f32 %v15171_v61, %v18697_v63  ;;  %v11535_v42 = vmul.f32 %v11534_v31, %v11527_v16  ;;  %v14707_v63 = vld [vmem:[%s18843_s14 + $0x78] sm:$0xff]  }
0x3233   :  { %v15173_v25 = vpop.eup %15172  ;;  %14164 = vmatprep.subr.bf16.mxu0 %v14707_v63 }
0x3234   :  { %v11529_v47 = vmul.f32 %v15173_v25, %v18701_v11  ;;  %v11536_v41 = vmul.f32 %v11534_v31, %v11528_v33  ;;  %v11543_v12 = vadd.f32 %v11542_v48, %v11535_v42  ;;  %14165 = vmatpush3.bf16.msra.mxu0 %v14707_v63 }
0x3236   :  { %v11544_v56 = vadd.f32 %v11542_v48, %v11536_v41  ;;  %v11537_v45 = vmul.f32 %v11534_v31, %v11529_v47 }
0x3237   :  { %v15175_v55 = vpop.eup %15174 }
0x3238   :  { %v11530_v5 = vmul.f32 %v15175_v55, %v18709_v1  ;;  %v11556_v53 = vpack.c.bf16 %v11544_v56, %v11543_v12  ;;  %v11545_v35 = vadd.f32 %v11542_v48, %v11537_v45 }
0x323a   :  { %v11538_v51 = vmul.f32 %v11534_v31, %v11530_v5  ;;  %14146 = vmatprep.mubr.msk.bf16.mxu1 %vm2675_vm0, %v11556_v53 }
0x323c   :  { %v11546_v2 = vadd.f32 %v11542_v48, %v11538_v51 }
0x323e   :  { %v11557_v18 = vpack.c.bf16 %v11546_v2, %v11545_v35 }
0x3240   :  { %14147 = vmatmul.mubr.msk.bf16.vlgmr.msra.gmra.mrb[36].mxu1 %vm2675_vm0, %v11557_v18 }
0x3313   :  { %v14148_v3 = vpop.f32.mrb[36].mxu1 }
0x3314   :  { %v11635_v11 = vadd.f32 %v14148_v3, %v11561_v10  ;;  %v11626_v4 = vpop.f32.mrb[37].mxu1 }
0x3315   :  { %v11627_v29 = vadd.f32 %v11626_v4, %v11561_v10  ;;  %v14149_v40 = vpop.f32.mrb[38].mxu1 }
0x3316   :  { %v11638_v9 = vadd.f32 %v14149_v40, %v11561_v10  ;;  %v11629_v62 = vpop.f32.mrb[39].mxu1  ;;  %v11643_v1 = vmax.f32 %v11635_v11, 0.0  ;;  %v11824_v40 = vrot.slane %v18752_v13, %v16538_v59 }
0x3317   :  { %v11630_v50 = vadd.f32 %v11629_v62, %v11561_v10  ;;  %v11641_v37 = vmax.f32 %v11627_v29, 0.0 }
0x3318   :  { %v11644_v43 = vmax.f32 %v11638_v9, 0.0 }
0x3319   :  { %v11642_v19 = vmax.f32 %v11630_v50, 0.0  ;;  %v11832_v50 = vrot.slane %v18752_v13, %v16557_v6 }
0x331a   :  { %v11663_v39 = vpack.c.bf16 %v11644_v43, %v11643_v1 }
0x331b   :  { %v11662_v0 = vpack.c.bf16 %v11642_v19, %v11641_v37 }
0x331d   :  { %14166 = vmatprep.mubr.bf16.mxu0 %v11662_v0 }
0x331e   :  { %14167 = vmatmul.mubr.bf16.vlgmr.msra.gmra.mrb[32].mxu0 %v11663_v39 }
0x33f1   :  { %v14168_v8 = vpop.f32.mrb[32].mxu0 }
0x33f2   :  { %v11750_v14 = vpop.f32.mrb[33].mxu0  ;;  %v11759_v36 = vadd.f32 %v14168_v8, %v11667_v27 }
0x33f3   :  { %v11751_v30 = vadd.f32 %v11750_v14, %v11667_v27  ;;  %v14169_v26 = vpop.f32.mrb[34].mxu0 }
0x33f4   :  { %v11753_v46 = vpop.f32.mrb[35].mxu0  ;;  %v11762_v44 = vadd.f32 %v14169_v26, %v11667_v27  ;;  %v11767_v38 = vadd.f32 %v11759_v36, %v11545_v35 }
0x33f5   :  { %v11765_v7 = vadd.f32 %v11751_v30, %v11543_v12  ;;  %v11754_v20 = vadd.f32 %v11753_v46, %v11667_v27 }
0x33f6   :  { %v11768_v57 = vadd.f32 %v11762_v44, %v11546_v2  ;;  %v11775_v28 = vsel %vm2675_vm0, %v11767_v38, 0.0 }
0x33f7   :  { %v11766_v23 = vadd.f32 %v11754_v20, %v11544_v56  ;;  %v11769_v21 = vsel %vm2675_vm0, %v11765_v7, 0.0 }
0x33f8   :  { %11770 = vadd.xlane.f32.xlu1 %v11769_v21  ;;  %v11778_v15 = vsel %vm2675_vm0, %v11768_v57, 0.0 }
0x33f9   :  { %v11772_v22 = vsel %vm2675_vm0, %v11766_v23, 0.0 }
0x33fa   :  { %11773 = vadd.xlane.f32.xlu0 %v11772_v22 }
0x33fc   :  { %11776 = vadd.xlane.f32.xlu1 %v11775_v28 }
0x33fe   :  { %11779 = vadd.xlane.f32.xlu0 %v11778_v15 }
0x3485   :  { %v11771_v49 = vpop.xlane.xlu1 %11770 }
0x3486   :  { %v11781_v58 = vmul.f32 0.015625, %v11771_v49 }
0x3487   :  { %v11774_v52 = vpop.xlane.xlu0 %11773 }
0x3488   :  { %v11785_v24 = vsub.f32 %v11765_v7, %v11781_v58  ;;  %v11782_v60 = vmul.f32 0.015625, %v11774_v52 }
0x3489   :  { %v11777_v31 = vpop.xlane.xlu1 %11776 }
0x348a   :  { %v11786_v17 = vsub.f32 %v11766_v23, %v11782_v60  ;;  %v11783_v16 = vmul.f32 0.015625, %v11777_v31  ;;  %v11789_v61 = vmul.f32 %v11785_v24, %v11785_v24 }
0x348b   :  { %v11780_v33 = vpop.xlane.xlu0 %11779 }
0x348c   :  { %v11787_v48 = vsub.f32 %v11767_v38, %v11783_v16  ;;  %v11784_v42 = vmul.f32 0.015625, %v11780_v33  ;;  %v11793_v25 = vsel %vm2675_vm0, %v11789_v61, 0.0  ;;  %v11790_v47 = vmul.f32 %v11786_v17, %v11786_v17 }
0x348d   :  { %11794 = vadd.xlane.f32.xlu1 %v11793_v25 }
0x348e   :  { %v11788_v41 = vsub.f32 %v11768_v57, %v11784_v42  ;;  %v11796_v12 = vsel %vm2675_vm0, %v11790_v47, 0.0  ;;  %v11791_v56 = vmul.f32 %v11787_v48, %v11787_v48 }
0x348f   :  { %11797 = vadd.xlane.f32.xlu0 %v11796_v12  ;;  %v14709_v12 = vld [vmem:[%s18844_s15 + $0x8] sm:$0xff]  }
0x3490   :  { %v11799_v55 = vsel %vm2675_vm0, %v11791_v56, 0.0  ;;  %v11792_v45 = vmul.f32 %v11788_v41, %v11788_v41  ;;  %v14710_v56 = vld [vmem:[%s18844_s15 + $0x10] sm:$0xff]  }
0x3491   :  { %11800 = vadd.xlane.f32.xlu1 %v11799_v55  ;;  %v14711_v55 = vld [vmem:[%s18844_s15 + $0x18] sm:$0xff]  }
0x3492   :  { %v11802_v5 = vsel %vm2675_vm0, %v11792_v45, 0.0 }
0x3493   :  { %11803 = vadd.xlane.f32.xlu0 %v11802_v5 }
0x351a   :  { %v11795_v53 = vpop.xlane.xlu1 %11794 }
0x351b   :  { %v11805_v51 = vmul.f32 0.015625, %v11795_v53 }
0x351c   :  { %v11798_v35 = vpop.xlane.xlu0 %11797 }
0x351d   :  { %v11809_v2 = vadd.f32 1e-05, %v11805_v51  ;;  %v11806_v18 = vmul.f32 0.015625, %v11798_v35 }
0x351e   :  { %v11801_v34 = vpop.xlane.xlu1 %11800 }
0x351f   :  { %15176 = vrsqrt.f32 %v11809_v2  ;;  %v11810_v63 = vadd.f32 1e-05, %v11806_v18  ;;  %v11807_v10 = vmul.f32 0.015625, %v11801_v34 }
0x3520   :  { %v11804_v3 = vpop.xlane.xlu0 %11803 }
0x3521   :  { %15178 = vrsqrt.f32 %v11810_v63  ;;  %v11811_v11 = vadd.f32 1e-05, %v11807_v10  ;;  %v11808_v4 = vmul.f32 0.015625, %v11804_v3 }
0x3523   :  { %15180 = vrsqrt.f32 %v11811_v11  ;;  %v11812_v29 = vadd.f32 1e-05, %v11808_v4  ;;  %v15215_v4 = vld [vmem:[%s18840_s19] sm:$0x1f] }
0x3525   :  { %15182 = vrsqrt.f32 %v11812_v29  ;;  %v11892_v29 = vrot.slane %v15215_v4, %v16528_v54 }
0x3529   :  { %v15177_v9 = vpop.eup %15176 }
0x352a   :  { %v11817_v62 = vmul.f32 %v15177_v9, %v11785_v24 }
0x352b   :  { %v15179_v1 = vpop.eup %15178 }
0x352c   :  { %v11825_v43 = vmul.f32 %v11824_v40, %v11817_v62  ;;  %v11818_v37 = vmul.f32 %v15179_v1, %v11786_v17  ;;  %v11900_v1 = vrot.slane %v15215_v4, %v16538_v59  ;;  %v11918_v59 = vrot.slane %v15215_v4, %v16557_v6 }
0x352d   :  { %v15181_v19 = vpop.eup %15180 }
0x352e   :  { %v11833_v39 = vadd.f32 %v11832_v50, %v11825_v43  ;;  %v11826_v0 = vmul.f32 %v11824_v40, %v11818_v37  ;;  %v11819_v27 = vmul.f32 %v15181_v19, %v11787_v48 }
0x352f   :  { %v15183_v8 = vpop.eup %15182 }
0x3530   :  { %v11837_v14 = vsel %vm2675_vm0, %v11833_v39, 0.0  ;;  %v11834_v36 = vadd.f32 %v11832_v50, %v11826_v0  ;;  %v11827_v30 = vmul.f32 %v11824_v40, %v11819_v27  ;;  %v11820_v26 = vmul.f32 %v15183_v8, %v11788_v41  ;;  %v14708_v41 = vld [vmem:[%s18844_s15] sm:$0xff]  }
0x3531   :  { %11838 = vadd.xlane.f32.xlu1 %v11837_v14  ;;  %14170 = vmatprep.subr.bf16.mxu1 %v14708_v41 }
0x3532   :  { %v11840_v46 = vsel %vm2675_vm0, %v11834_v36, 0.0  ;;  %v11835_v7 = vadd.f32 %v11832_v50, %v11827_v30  ;;  %v11828_v44 = vmul.f32 %v11824_v40, %v11820_v26  ;;  %14171 = vmatpush3.bf16.msra.mxu1 %v14708_v41 }
0x3533   :  { %11841 = vadd.xlane.f32.xlu0 %v11840_v46  ;;  %14172 = vmatprep.subr.bf16.mxu1 %v14709_v12 }
0x3534   :  { %v11843_v13 = vsel %vm2675_vm0, %v11835_v7, 0.0  ;;  %v11836_v20 = vadd.f32 %v11832_v50, %v11828_v44 }
0x3535   :  { %11844 = vadd.xlane.f32.xlu1 %v11843_v13 }
0x3536   :  { %v11846_v38 = vsel %vm2675_vm0, %v11836_v20, 0.0  ;;  %14173 = vmatpush3.bf16.msra.mxu1 %v14709_v12 }
0x3537   :  { %11847 = vadd.xlane.f32.xlu0 %v11846_v38  ;;  %14174 = vmatprep.subr.bf16.mxu1 %v14710_v56 }
0x353a   :  { %14175 = vmatpush3.bf16.msra.mxu1 %v14710_v56 }
0x353b   :  { %14176 = vmatprep.subr.bf16.mxu1 %v14711_v55 }
0x353e   :  { %14177 = vmatpush3.bf16.msra.mxu1 %v14711_v55 }
0x35be   :  { %v11839_v23 = vpop.xlane.xlu1 %11838 }
0x35bf   :  { %v11849_v21 = vmul.f32 0.015625, %v11839_v23 }
0x35c0   :  { %v11842_v57 = vpop.xlane.xlu0 %11841 }
0x35c1   :  { %v11853_v22 = vsub.f32 %v11833_v39, %v11849_v21  ;;  %v11850_v28 = vmul.f32 0.015625, %v11842_v57 }
0x35c2   :  { %v11845_v15 = vpop.xlane.xlu1 %11844 }
0x35c3   :  { %v11854_v49 = vsub.f32 %v11834_v36, %v11850_v28  ;;  %v11851_v58 = vmul.f32 0.015625, %v11845_v15  ;;  %v11857_v52 = vmul.f32 %v11853_v22, %v11853_v22 }
0x35c4   :  { %v11848_v24 = vpop.xlane.xlu0 %11847 }
0x35c5   :  { %v11855_v60 = vsub.f32 %v11835_v7, %v11851_v58  ;;  %v11852_v31 = vmul.f32 0.015625, %v11848_v24  ;;  %v11861_v17 = vsel %vm2675_vm0, %v11857_v52, 0.0  ;;  %v11858_v16 = vmul.f32 %v11854_v49, %v11854_v49 }
0x35c6   :  { %11862 = vadd.xlane.f32.xlu1 %v11861_v17 }
0x35c7   :  { %v11856_v61 = vsub.f32 %v11836_v20, %v11852_v31  ;;  %v11864_v33 = vsel %vm2675_vm0, %v11858_v16, 0.0  ;;  %v11859_v48 = vmul.f32 %v11855_v60, %v11855_v60 }
0x35c8   :  { %11865 = vadd.xlane.f32.xlu0 %v11864_v33 }
0x35c9   :  { %v11867_v42 = vsel %vm2675_vm0, %v11859_v48, 0.0  ;;  %v11860_v25 = vmul.f32 %v11856_v61, %v11856_v61 }
0x35ca   :  { %11868 = vadd.xlane.f32.xlu1 %v11867_v42 }
0x35cb   :  { %v11870_v47 = vsel %vm2675_vm0, %v11860_v25, 0.0 }
0x35cc   :  { %11871 = vadd.xlane.f32.xlu0 %v11870_v47 }
0x3653   :  { %v11863_v45 = vpop.xlane.xlu1 %11862 }
0x3654   :  { %v11873_v5 = vmul.f32 0.015625, %v11863_v45 }
0x3655   :  { %v11866_v53 = vpop.xlane.xlu0 %11865 }
0x3656   :  { %v11877_v51 = vadd.f32 1e-05, %v11873_v5  ;;  %v11874_v35 = vmul.f32 0.015625, %v11866_v53 }
0x3657   :  { %v11869_v2 = vpop.xlane.xlu1 %11868 }
0x3658   :  { %15184 = vrsqrt.f32 %v11877_v51  ;;  %v11878_v18 = vadd.f32 1e-05, %v11874_v35  ;;  %v11875_v34 = vmul.f32 0.015625, %v11869_v2 }
0x3659   :  { %v11872_v63 = vpop.xlane.xlu0 %11871 }
0x365a   :  { %15186 = vrsqrt.f32 %v11878_v18  ;;  %v11879_v10 = vadd.f32 1e-05, %v11875_v34  ;;  %v11876_v3 = vmul.f32 0.015625, %v11872_v63 }
0x365c   :  { %15188 = vrsqrt.f32 %v11879_v10  ;;  %v11880_v11 = vadd.f32 1e-05, %v11876_v3 }
0x365e   :  { %15190 = vrsqrt.f32 %v11880_v11 }
0x3662   :  { %v15185_v40 = vpop.eup %15184 }
0x3663   :  { %v11885_v9 = vmul.f32 %v15185_v40, %v11853_v22 }
0x3664   :  { %v15187_v62 = vpop.eup %15186 }
0x3665   :  { %v11886_v50 = vmul.f32 %v15187_v62, %v11854_v49  ;;  %v11893_v43 = vmul.f32 %v11892_v29, %v11885_v9 }
0x3666   :  { %v15189_v37 = vpop.eup %15188 }
0x3667   :  { %v11887_v19 = vmul.f32 %v15189_v37, %v11855_v60  ;;  %v11894_v39 = vmul.f32 %v11892_v29, %v11886_v50  ;;  %v11901_v14 = vadd.f32 %v11900_v1, %v11893_v43 }
0x3668   :  { %v15191_v0 = vpop.eup %15190 }
0x3669   :  { %v11895_v27 = vmul.f32 %v11892_v29, %v11887_v19  ;;  %v11888_v8 = vmul.f32 %v15191_v0, %v11856_v61  ;;  %v11902_v36 = vadd.f32 %v11900_v1, %v11894_v39  ;;  %v11999_v61 = vand.u32 127, %v499_v32 }
0x366b   :  { %v11896_v30 = vmul.f32 %v11892_v29, %v11888_v8  ;;  %v11913_v26 = vpack.c.bf16 %v11902_v36, %v11901_v14  ;;  %v11903_v46 = vadd.f32 %v11900_v1, %v11895_v27  ;;  %vm12000_vm5 = vcmp.ge.s32.totalorder %v11999_v61, 32 }
0x366c   :  { %vm12001_vm6 = vcmp.lt.s32.totalorder %v11999_v61, 36 }
0x366d   :  { %v11904_v7 = vadd.f32 %v11900_v1, %v11896_v30  ;;  %14178 = vmatprep.mubr.msk.bf16.mxu1 %vm2675_vm0, %v11913_v26  ;;  %vm12002_vm7 = vmand %vm12000_vm5, %vm12001_vm6 }
0x366f   :  { %v11914_v54 = vpack.c.bf16 %v11904_v7, %v11903_v46 }
0x3671   :  { %14179 = vmatmul.mubr.msk.bf16.vlgmr.msra.gmra.mrb[40].mxu1 %vm2675_vm0, %v11914_v54 }
0x3744   :  { %v14180_v44 = vpop.f32.mrb[40].mxu1 }
0x3745   :  { %v11992_v13 = vadd.f32 %v14180_v44, %v11918_v59  ;;  %v11983_v20 = vpop.f32.mrb[41].mxu1 }
0x3746   :  { %v11984_v38 = vadd.f32 %v11983_v20, %v11918_v59  ;;  %v14181_v23 = vpop.f32.mrb[42].mxu1 }
0x3747   :  { %v12656_v21 = vmul.f32 -1.442695, %v11992_v13  ;;  %v11995_v57 = vadd.f32 %v14181_v23, %v11918_v59  ;;  %v11986_v22 = vpop.f32.mrb[43].mxu1 }
0x3748   :  { %v12654_v28 = vmul.f32 -1.442695, %v11984_v38  ;;  %v11987_v15 = vadd.f32 %v11986_v22, %v11918_v59 }
0x3749   :  { %15192 = vpow2.f32 %v12656_v21  ;;  %v12657_v49 = vmul.f32 -1.442695, %v11995_v57 }
0x374a   :  { %15194 = vpow2.f32 %v12654_v28  ;;  %v12655_v58 = vmul.f32 -1.442695, %v11987_v15 }
0x374b   :  { %15196 = vpow2.f32 %v12657_v49 }
0x374c   :  { %15198 = vpow2.f32 %v12655_v58 }
0x3753   :  { %v15193_v52 = vpop.eup %15192 }
0x3754   :  { %v15195_v24 = vpop.eup %15194  ;;  %v12017_v60 = vadd.f32 1.0, %v15193_v52 }
0x3755   :  { %v15197_v6 = vpop.eup %15196  ;;  %v12015_v31 = vadd.f32 1.0, %v15195_v24 }
0x3756   :  { %v15199_v17 = vpop.eup %15198  ;;  %15200 = vrcp.f32 %v12017_v60  ;;  %v12018_v16 = vadd.f32 1.0, %v15197_v6 }
0x3757   :  { %15202 = vrcp.f32 %v12015_v31  ;;  %v12016_v33 = vadd.f32 1.0, %v15199_v17 }
0x3758   :  { %15204 = vrcp.f32 %v12018_v16 }
0x3759   :  { %15206 = vrcp.f32 %v12016_v33 }
0x3760   :  { %v15201_v48 = vpop.eup %15200 }
0x3761   :  { %v15203_v42 = vpop.eup %15202  ;;  %v12029_v25 = vsel %vm12002_vm7, %v15201_v48, %v11992_v13 }
0x3762   :  { %v15205_v47 = vpop.eup %15204  ;;  %12033 = vst [vmem:[%s18845_s20 + $0x10] sm:$0xff] %v12029_v25  ;;  %v12027_v41 = vsel %vm12002_vm7, %v15203_v42, %v11984_v38 }
0x3763   :  { %v15207_v12 = vpop.eup %15206  ;;  %12031 = vst [vmem:[%s18845_s20] sm:$0xff] %v12027_v41  ;;  %v12030_v32 = vsel %vm12002_vm7, %v15205_v47, %v11995_v57 }
0x3764   :  { %12034 = vst [vmem:[%s18845_s20 + $0x18] sm:$0xff] %v12030_v32  ;;  %v12028_v56 = vsel %vm12002_vm7, %v15207_v12, %v11987_v15 }
0x3765   :  { %12032 = vst [vmem:[%s18845_s20 + $0x8] sm:$0xff] %v12028_v56 }

</bundles_post_ra>
